<compile_context>
chip_gen: v6e
topology: v6e:2x2x1
jax: 0.10.0
libtpu: 0.0.40
codegen_flags: <defaults>
</compile_context>

<pallas_src>
import jax
import jax.numpy as jnp
from jax.experimental import pallas as pl
from jax.experimental.pallas import tpu as pltpu

# ---- model hyperparameters (matching the PyTorch module + nn.Transformer defaults) ----
INPUT_DIM = 17
HIDDEN_DIM = 64
NUM_HEADS = 4
HEAD_DIM = HIDDEN_DIM // NUM_HEADS
ATTN_SCALE = 1.0 / float(HEAD_DIM) ** 0.5
NUM_ENC_LAYERS = 2
NUM_DEC_LAYERS = 6          # nn.Transformer default
DIM_FF = 2048               # nn.Transformer default dim_feedforward
OUTPUT_DIM = 3
LN_EPS = 1e-5               # nn.Transformer default layer_norm_eps
SEQ_LEN = 8                 # small example sequence length

LAYERS_PER_STEP = 2
NUM_STEPS = (NUM_ENC_LAYERS + NUM_DEC_LAYERS) // LAYERS_PER_STEP   # 4
assert NUM_ENC_LAYERS == LAYERS_PER_STEP
assert NUM_DEC_LAYERS % LAYERS_PER_STEP == 0

_D = HIDDEN_DIM

# --- packed per-layer matmul-weight matrix (fan-in = 64 rows for every field), bf16 ---
WA_OFF_QKV = 0                          # (64, 192)  self-attn fused QKV
WA_OFF_WO_S = WA_OFF_QKV + 3 * _D       # (64, 64)   self-attn output proj
WA_OFF_WQ_C = WA_OFF_WO_S + _D          # (64, 64)   cross-attn Q proj   (zero for enc layers)
WA_OFF_WO_C = WA_OFF_WQ_C + _D          # (64, 64)   cross-attn out proj (zero for enc layers)
WA_OFF_WKV_C = WA_OFF_WO_C + _D         # (64, 128)  cross-attn fused KV (zero for enc layers)
WA_OFF_W1 = WA_OFF_WKV_C + 2 * _D       # (64, 2048) FFN up
WA_COLS = WA_OFF_W1 + DIM_FF            # 2560

# --- packed per-layer small params (biases + LayerNorm gamma/beta), f32 ---
SP_OFF_B_QKV = 0
SP_OFF_B_O_S = SP_OFF_B_QKV + 3 * _D
SP_OFF_B_Q_C = SP_OFF_B_O_S + _D
SP_OFF_B_O_C = SP_OFF_B_Q_C + _D
SP_OFF_B_KV_C = SP_OFF_B_O_C + _D
SP_OFF_LN_SA = SP_OFF_B_KV_C + 2 * _D   # post self-attn norm (gamma, beta)
SP_OFF_LN_CA = SP_OFF_LN_SA + 2 * _D    # post cross-attn norm (unused for enc layers)
SP_OFF_LN_FF = SP_OFF_LN_CA + 2 * _D    # post FFN norm
SP_OFF_B2 = SP_OFF_LN_FF + 2 * _D
SP_OFF_B1 = SP_OFF_B2 + _D
SP_COLS = SP_OFF_B1 + DIM_FF            # 3008

# --- packed global small params, f32 ---
GP_OFF_EMB_B = 0
GP_OFF_ENC_G = _D
GP_OFF_ENC_B = 2 * _D
GP_OFF_DEC_G = 3 * _D
GP_OFF_DEC_B = 4 * _D
GP_OFF_FC_B = 5 * _D
GP_COLS = 5 * _D + 128                  # 448 (fc bias padded to a lane tile)


# --------------------------- in-kernel building blocks ---------------------------

def _layernorm(x, g, b):
    mean = jnp.mean(x, axis=-1, keepdims=True)
    var = jnp.mean(jnp.square(x - mean), axis=-1, keepdims=True)
    return (x - mean) * jax.lax.rsqrt(var + LN_EPS) * g + b


def _softmax_rows(s):
    s = s - jnp.max(s, axis=-1, keepdims=True)
    p = jnp.exp(s)
    return p * pl.reciprocal(jnp.sum(p, axis=-1, keepdims=True), approx=True)


def _mha(q, k, v, wo, bo):
    """Scaled dot-product attention; single fused output projection."""
    q = q.astype(jnp.bfloat16)
    k = k.astype(jnp.bfloat16)
    v = v.astype(jnp.bfloat16)
    outs = []
    for h in range(NUM_HEADS):                       # static unroll over 4 heads
        sl = slice(h * HEAD_DIM, (h + 1) * HEAD_DIM)
        scores = jnp.einsum("qd,kd->qk", q[:, sl], k[:, sl],
                            preferred_element_type=jnp.float32) * ATTN_SCALE
        p = _softmax_rows(scores).astype(jnp.bfloat16)
        outs.append(jnp.dot(p, v[:, sl], preferred_element_type=jnp.float32))
    o = jnp.concatenate(outs, axis=-1).astype(jnp.bfloat16)      # (S, D)
    return jnp.dot(o, wo, preferred_element_type=jnp.float32) + bo


def _ffn(x, w1, b1, w2, b2):
    hidden = jnp.dot(x.astype(jnp.bfloat16), w1,
                     preferred_element_type=jnp.float32) + b1
    hidden = jnp.maximum(hidden, 0.0).astype(jnp.bfloat16)       # ReLU, cast once
    return jnp.dot(hidden, w2, preferred_element_type=jnp.float32) + b2


def _spv(sp_ref, i, off, width):
    return sp_ref[i, :, off:off + width]              # (1, width) f32


def _encoder_layer(h, wa_ref, w2_ref, sp_ref, i):
    d = HIDDEN_DIM
    wqkv = wa_ref[i, :, WA_OFF_QKV:WA_OFF_QKV + 3 * d]
    wo_s = wa_ref[i, :, WA_OFF_WO_S:WA_OFF_WO_S + d]
    w1 = wa_ref[i, :, WA_OFF_W1:WA_OFF_W1 + DIM_FF]
    w2 = w2_ref[i]

    bqkv = _spv(sp_ref, i, SP_OFF_B_QKV, 3 * d)
    bo_s = _spv(sp_ref, i, SP_OFF_B_O_S, d)
    b1 = _spv(sp_ref, i, SP_OFF_B1, DIM_FF)
    b2 = _spv(sp_ref, i, SP_OFF_B2, d)
    ln_sa_g = _spv(sp_ref, i, SP_OFF_LN_SA, d)
    ln_sa_b = _spv(sp_ref, i, SP_OFF_LN_SA + d, d)
    ln_ff_g = _spv(sp_ref, i, SP_OFF_LN_FF, d)
    ln_ff_b = _spv(sp_ref, i, SP_OFF_LN_FF + d, d)

    qkv = jnp.dot(h.astype(jnp.bfloat16), wqkv,
                  preferred_element_type=jnp.float32) + bqkv
    a = _mha(qkv[:, :d], qkv[:, d:2 * d], qkv[:, 2 * d:], wo_s, bo_s)
    h = _layernorm(h + a, ln_sa_g, ln_sa_b)
    f = _ffn(h, w1, b1, w2, b2)
    return _layernorm(h + f, ln_ff_g, ln_ff_b)


def _decoder_layer(h, mem, wa_ref, w2_ref, sp_ref, i):
    d = HIDDEN_DIM
    wqkv = wa_ref[i, :, WA_OFF_QKV:WA_OFF_QKV + 3 * d]
    wo_s = wa_ref[i, :, WA_OFF_WO_S:WA_OFF_WO_S + d]
    wq_c = wa_ref[i, :, WA_OFF_WQ_C:WA_OFF_WQ_C + d]
    wo_c = wa_ref[i, :, WA_OFF_WO_C:WA_OFF_WO_C + d]
    wkv_c = wa_ref[i, :, WA_OFF_WKV_C:WA_OFF_WKV_C + 2 * d]
    w1 = wa_ref[i, :, WA_OFF_W1:WA_OFF_W1 + DIM_FF]
    w2 = w2_ref[i]

    bqkv = _spv(sp_ref, i, SP_OFF_B_QKV, 3 * d)
    bo_s = _spv(sp_ref, i, SP_OFF_B_O_S, d)
    bq_c = _spv(sp_ref, i, SP_OFF_B_Q_C, d)
    bo_c = _spv(sp_ref, i, SP_OFF_B_O_C, d)
    bkv_c = _spv(sp_ref, i, SP_OFF_B_KV_C, 2 * d)
    b1 = _spv(sp_ref, i, SP_OFF_B1, DIM_FF)
    b2 = _spv(sp_ref, i, SP_OFF_B2, d)
    ln_sa_g = _spv(sp_ref, i, SP_OFF_LN_SA, d)
    ln_sa_b = _spv(sp_ref, i, SP_OFF_LN_SA + d, d)
    ln_ca_g = _spv(sp_ref, i, SP_OFF_LN_CA, d)
    ln_ca_b = _spv(sp_ref, i, SP_OFF_LN_CA + d, d)
    ln_ff_g = _spv(sp_ref, i, SP_OFF_LN_FF, d)
    ln_ff_b = _spv(sp_ref, i, SP_OFF_LN_FF + d, d)

    # self-attention + post-norm
    qkv = jnp.dot(h.astype(jnp.bfloat16), wqkv,
                  preferred_element_type=jnp.float32) + bqkv
    a = _mha(qkv[:, :d], qkv[:, d:2 * d], qkv[:, 2 * d:], wo_s, bo_s)
    h = _layernorm(h + a, ln_sa_g, ln_sa_b)

    # cross-attention (q from decoder state, k/v from encoder memory) + post-norm
    q = jnp.dot(h.astype(jnp.bfloat16), wq_c,
                preferred_element_type=jnp.float32) + bq_c
    kv = jnp.dot(mem.astype(jnp.bfloat16), wkv_c,
                 preferred_element_type=jnp.float32) + bkv_c
    c = _mha(q, kv[:, :d], kv[:, d:], wo_c, bo_c)
    h = _layernorm(h + c, ln_ca_g, ln_ca_b)

    # feed-forward + post-norm
    f = _ffn(h, w1, b1, w2, b2)
    return _layernorm(h + f, ln_ff_g, ln_ff_b)


# -------------------------------- fused kernel --------------------------------

def _transformer_kernel(x_ref, emb_w_ref, fc_w_ref, gp_ref,
                        wa_ref, w2_ref, sp_ref,
                        y_ref, h_scr, mem_scr):
    step = pl.program_id(0)
    last_step = pl.num_programs(0) - 1

    def gp_vec(off, width=HIDDEN_DIM):
        return gp_ref[:, off:off + width]

    def embed(xv):
        return (jnp.dot(xv.astype(jnp.bfloat16), emb_w_ref[...],
                        preferred_element_type=jnp.float32)
                + gp_vec(GP_OFF_EMB_B))

    @pl.when(step == 0)
    def _encoder_phase():
        # src/tgt embedding is identical (transformer(x, x) with shared nn.Linear)
        e = embed(x_ref[...])
        h = e
        for i in range(LAYERS_PER_STEP):           # both encoder layers in one step
            h = _encoder_layer(h, wa_ref, w2_ref, sp_ref, i)
        mem_scr[...] = _layernorm(h, gp_vec(GP_OFF_ENC_G), gp_vec(GP_OFF_ENC_B))
        h_scr[...] = e                              # decoder residual stream := tgt embedding

    @pl.when(step > 0)
    def _decoder_phase():
        h = h_scr[...]
        mem = mem_scr[...]
        for i in range(LAYERS_PER_STEP):           # two decoder layers per step
            h = _decoder_layer(h, mem, wa_ref, w2_ref, sp_ref, i)
        h_scr[...] = h

        @pl.when(step == last_step)
        def _finalize():
            hn = _layernorm(h, gp_vec(GP_OFF_DEC_G), gp_vec(GP_OFF_DEC_B))
            y_ref[...] = (jnp.dot(hn.astype(jnp.bfloat16), fc_w_ref[...],
                                  preferred_element_type=jnp.float32)
                          + gp_ref[:, GP_OFF_FC_B:GP_OFF_FC_B + OUTPUT_DIM])


# --------------------------------- pallas_call wrapper ---------------------------------

def transformer_forward(x, params):
    """x: (S, INPUT_DIM) -> (S, OUTPUT_DIM); mirrors TransformerModel.forward (batch squeezed)."""
    in_specs = [
        pl.BlockSpec((SEQ_LEN, INPUT_DIM), lambda s: (0, 0)),                 # x (resident)
        pl.BlockSpec((INPUT_DIM, HIDDEN_DIM), lambda s: (0, 0)),              # emb_w (resident)
        pl.BlockSpec((HIDDEN_DIM, OUTPUT_DIM), lambda s: (0, 0)),             # fc_w (resident)
        pl.BlockSpec((1, GP_COLS), lambda s: (0, 0)),                         # packed globals
        pl.BlockSpec((LAYERS_PER_STEP, HIDDEN_DIM, WA_COLS), lambda s: (s, 0, 0)),  # wa
        pl.BlockSpec((LAYERS_PER_STEP, DIM_FF, HIDDEN_DIM), lambda s: (s, 0, 0)),   # w2
        pl.BlockSpec((LAYERS_PER_STEP, 1, SP_COLS), lambda s: (s, 0, 0)),           # sp
    ]
    return pl.pallas_call(
        _transformer_kernel,
        out_shape=jax.ShapeDtypeStruct((SEQ_LEN, OUTPUT_DIM), jnp.float32),
        grid=(NUM_STEPS,),
        in_specs=in_specs,
        out_specs=pl.BlockSpec((SEQ_LEN, OUTPUT_DIM), lambda s: (0, 0)),
        scratch_shapes=[pltpu.VMEM((SEQ_LEN, HIDDEN_DIM), jnp.float32),   # residual stream
                        pltpu.VMEM((SEQ_LEN, HIDDEN_DIM), jnp.float32)],  # encoder memory
        compiler_params=pltpu.CompilerParams(dimension_semantics=("arbitrary",)),
    )(x, params["emb_w"], params["fc_w"], params["gp"],
      params["wa"], params["w2"], params["sp"])


# ------------------------- deterministic parameter init ---------------------

def _init_dense_params(key, fan_in, fan_out, scale=0.05):
    kw, kb = jax.random.split(key)
    w = scale * jax.random.normal(kw, (fan_in, fan_out), jnp.float32)
    b = scale * jax.random.normal(kb, (fan_out,), jnp.float32)
    return w, b


def init_params(key):
    d, dff = HIDDEN_DIM, DIM_FF
    ones = jnp.ones((d,), jnp.float32)
    zeros = jnp.zeros((d,), jnp.float32)
    keys = jax.random.split(key, 2 + NUM_ENC_LAYERS + NUM_DEC_LAYERS)
    emb_w, emb_b = _init_dense_params(keys[0], INPUT_DIM, d)
    fc_w, fc_b = _init_dense_params(keys[1], d, OUTPUT_DIM)

    wa_rows, w2_rows, sp_rows = [], [], []

    for l in range(NUM_ENC_LAYERS):
        ks = jax.random.split(keys[2 + l], 4)
        wqkv, bqkv = _init_dense_params(ks[0], d, 3 * d)
        wo, bo = _init_dense_params(ks[1], d, d)
        w1, b1 = _init_dense_params(ks[2], d, dff)
        w2, b2 = _init_dense_params(ks[3], dff, d)
        wa_rows.append(jnp.concatenate(
            [wqkv, wo,
             jnp.zeros((d, d), jnp.float32), jnp.zeros((d, d), jnp.float32),
             jnp.zeros((d, 2 * d), jnp.float32), w1], axis=1))
        w2_rows.append(w2)
        sp_rows.append(jnp.concatenate(
            [bqkv, bo,
             jnp.zeros((d,), jnp.float32), jnp.zeros((d,), jnp.float32),
             jnp.zeros((2 * d,), jnp.float32),
             ones, zeros,          # post self-attn LN
             ones, zeros,          # post cross-attn LN (unused for encoder layers)
             ones, zeros,          # post FFN LN
             b2, b1]))

    for l in range(NUM_DEC_LAYERS):
        ks = jax.random.split(keys[2 + NUM_ENC_LAYERS + l], 7)
        wqkv, bqkv = _init_dense_params(ks[0], d, 3 * d)
        wo_s, bo_s = _init_dense_params(ks[1], d, d)
        wq_c, bq_c = _init_dense_params(ks[2], d, d)
        wkv_c, bkv_c = _init_dense_params(ks[3], d, 2 * d)
        wo_c, bo_c = _init_dense_params(ks[4], d, d)
        w1, b1 = _init_dense_params(ks[5], d, dff)
        w2, b2 = _init_dense_params(ks[6], dff, d)
        wa_rows.append(jnp.concatenate([wqkv, wo_s, wq_c, wo_c, wkv_c, w1], axis=1))
        w2_rows.append(w2)
        sp_rows.append(jnp.concatenate(
            [bqkv, bo_s, bq_c, bo_c, bkv_c,
             ones, zeros, ones, zeros, ones, zeros,
             b2, b1]))

    gp = jnp.concatenate(
        [emb_b, ones, zeros, ones, zeros, fc_b,
         jnp.zeros((GP_COLS - 5 * d - OUTPUT_DIM,), jnp.float32)])

    wa = jnp.stack(wa_rows).astype(jnp.bfloat16)                 # (8, 64, 2560)
    w2s = jnp.stack(w2_rows).astype(jnp.bfloat16)                # (8, 2048, 64)
    sp = jnp.stack(sp_rows)[:, None, :].astype(jnp.float32)      # (8, 1, 3008)
    assert wa.shape == (NUM_ENC_LAYERS + NUM_DEC_LAYERS, d, WA_COLS)
    assert sp.shape == (NUM_ENC_LAYERS + NUM_DEC_LAYERS, 1, SP_COLS)

    return dict(
        emb_w=emb_w.astype(jnp.bfloat16),
        fc_w=fc_w.astype(jnp.bfloat16),
        gp=gp.reshape(1, GP_COLS),
        wa=wa, w2=w2s, sp=sp,
    )


# ----------------------------------- main ------------------------------------

if __name__ == "__main__":
    key = jax.random.PRNGKey(0)
    k_x, k_p = jax.random.split(key)
    x = jax.random.normal(k_x, (SEQ_LEN, INPUT_DIM), dtype=jnp.float32)
    params = init_params(k_p)

    fwd = jax.jit(transformer_forward)
    y = jax.block_until_ready(fwd(x, params))

    assert y.shape == (SEQ_LEN, OUTPUT_DIM), y.shape
    assert y.dtype == jnp.float32
    assert bool(jnp.all(jnp.isfinite(y)))
    print("KERNEL_OK")
</pallas_src>

<mosaic_0001>
module attributes {stable_mosaic.version = 11 : i64} {
  func.func @_transformer_kernel(%arg0: i32, %arg1: memref<8x17xf32, #tpu.memory_space<vmem>>, %arg2: memref<17x64xbf16, #tpu.memory_space<vmem>>, %arg3: memref<64x3xbf16, #tpu.memory_space<vmem>>, %arg4: memref<1x448xf32, #tpu.memory_space<vmem>>, %arg5: memref<2x64x2560xbf16, #tpu.memory_space<vmem>>, %arg6: memref<2x2048x64xbf16, #tpu.memory_space<vmem>>, %arg7: memref<2x1x3008xf32, #tpu.memory_space<vmem>>, %arg8: memref<8x3xf32, #tpu.memory_space<vmem>>, %arg9: memref<8x64xf32, #tpu.memory_space<vmem>>, %arg10: memref<8x64xf32, #tpu.memory_space<vmem>>) attributes {dimension_semantics = [#tpu.dimension_semantics<arbitrary>], iteration_bounds = array<i64: 4>, scalar_prefetch = 0 : i64, scratch_operands = 2 : i64, tpu.core_type = #tpu.core_type<tc>, window_params = [{pipeline_mode = #tpu.pipeline_mode<synchronous>, transform_indices = @transform_0, window_bounds = array<i64: 8, 17>}, {pipeline_mode = #tpu.pipeline_mode<synchronous>, transform_indices = @transform_1, window_bounds = array<i64: 17, 64>}, {pipeline_mode = #tpu.pipeline_mode<synchronous>, transform_indices = @transform_2, window_bounds = array<i64: 64, 3>}, {pipeline_mode = #tpu.pipeline_mode<synchronous>, transform_indices = @transform_3, window_bounds = array<i64: 1, 448>}, {transform_indices = @transform_4, window_bounds = array<i64: 2, 64, 2560>}, {transform_indices = @transform_5, window_bounds = array<i64: 2, 2048, 64>}, {transform_indices = @transform_6, window_bounds = array<i64: 2, 1, 3008>}, {pipeline_mode = #tpu.pipeline_mode<synchronous>, transform_indices = @transform_7, window_bounds = array<i64: 8, 3>}]} {
    %c0_i32 = arith.constant 0 : i32
    %0 = arith.cmpi eq, %arg0, %c0_i32 : i32
    %1 = arith.extui %0 : i1 to i32
    %c0_i32_0 = arith.constant 0 : i32
    %2 = arith.cmpi ne, %1, %c0_i32_0 : i32
    scf.if %2 {
      %c0 = arith.constant 0 : index
      %c0_3 = arith.constant 0 : index
      %6 = vector.load %arg1[%c0, %c0_3] : memref<8x17xf32, #tpu.memory_space<vmem>>, vector<8x17xf32>
      %7 = arith.truncf %6 : vector<8x17xf32> to vector<8x17xbf16>
      %c0_4 = arith.constant 0 : index
      %c0_5 = arith.constant 0 : index
      %8 = vector.load %arg2[%c0_4, %c0_5] : memref<17x64xbf16, #tpu.memory_space<vmem>>, vector<17x64xbf16>
      %cst = arith.constant dense<0.000000e+00> : vector<8x64xf32>
      %9 = tpu.matmul %7, %8, %cst {dimension_numbers = #tpu.dot_dimension_numbers<[1], [0], [0], [1], [0, 0, 1, 1], [], []>} : vector<8x17xbf16>, vector<17x64xbf16>, vector<8x64xf32> -> vector<8x64xf32>
      %c0_6 = arith.constant 0 : index
      %c0_7 = arith.constant 0 : index
      %10 = vector.load %arg4[%c0_6, %c0_7] : memref<1x448xf32, #tpu.memory_space<vmem>>, vector<1x64xf32>
      %11 = vector.broadcast %10 : vector<1x64xf32> to vector<8x64xf32>
      %12 = arith.addf %9, %11 : vector<8x64xf32>
      %c0_8 = arith.constant 0 : index
      %c0_9 = arith.constant 0 : index
      %c0_10 = arith.constant 0 : index
      %13 = vector.load %arg5[%c0_8, %c0_9, %c0_10] : memref<2x64x2560xbf16, #tpu.memory_space<vmem>>, vector<1x64x192xbf16>
      %14 = vector.shape_cast %13 : vector<1x64x192xbf16> to vector<64x192xbf16>
      %c0_11 = arith.constant 0 : index
      %c0_12 = arith.constant 0 : index
      %c192 = arith.constant 192 : index
      %15 = vector.load %arg5[%c0_11, %c0_12, %c192] : memref<2x64x2560xbf16, #tpu.memory_space<vmem>>, vector<1x64x64xbf16>
      %16 = vector.shape_cast %15 : vector<1x64x64xbf16> to vector<64x64xbf16>
      %c0_13 = arith.constant 0 : index
      %c0_14 = arith.constant 0 : index
      %c512 = arith.constant 512 : index
      %17 = vector.load %arg5[%c0_13, %c0_14, %c512] : memref<2x64x2560xbf16, #tpu.memory_space<vmem>>, vector<1x64x2048xbf16>
      %18 = vector.shape_cast %17 : vector<1x64x2048xbf16> to vector<64x2048xbf16>
      %c0_15 = arith.constant 0 : index
      %c0_16 = arith.constant 0 : index
      %c0_17 = arith.constant 0 : index
      %19 = vector.load %arg6[%c0_15, %c0_16, %c0_17] : memref<2x2048x64xbf16, #tpu.memory_space<vmem>>, vector<1x2048x64xbf16>
      %20 = vector.shape_cast %19 : vector<1x2048x64xbf16> to vector<2048x64xbf16>
      %c0_18 = arith.constant 0 : index
      %c0_19 = arith.constant 0 : index
      %c0_20 = arith.constant 0 : index
      %21 = vector.load %arg7[%c0_18, %c0_19, %c0_20] : memref<2x1x3008xf32, #tpu.memory_space<vmem>>, vector<1x1x192xf32>
      %22 = vector.shape_cast %21 : vector<1x1x192xf32> to vector<1x192xf32>
      %c0_21 = arith.constant 0 : index
      %c0_22 = arith.constant 0 : index
      %c192_23 = arith.constant 192 : index
      %23 = vector.load %arg7[%c0_21, %c0_22, %c192_23] : memref<2x1x3008xf32, #tpu.memory_space<vmem>>, vector<1x1x64xf32>
      %24 = vector.shape_cast %23 : vector<1x1x64xf32> to vector<1x64xf32>
      %c0_24 = arith.constant 0 : index
      %c0_25 = arith.constant 0 : index
      %c960 = arith.constant 960 : index
      %25 = vector.load %arg7[%c0_24, %c0_25, %c960] : memref<2x1x3008xf32, #tpu.memory_space<vmem>>, vector<1x1x2048xf32>
      %26 = vector.shape_cast %25 : vector<1x1x2048xf32> to vector<1x2048xf32>
      %c0_26 = arith.constant 0 : index
      %c0_27 = arith.constant 0 : index
      %c896 = arith.constant 896 : index
      %27 = vector.load %arg7[%c0_26, %c0_27, %c896] : memref<2x1x3008xf32, #tpu.memory_space<vmem>>, vector<1x1x64xf32>
      %28 = vector.shape_cast %27 : vector<1x1x64xf32> to vector<1x64xf32>
      %c0_28 = arith.constant 0 : index
      %c0_29 = arith.constant 0 : index
      %c512_30 = arith.constant 512 : index
      %29 = vector.load %arg7[%c0_28, %c0_29, %c512_30] : memref<2x1x3008xf32, #tpu.memory_space<vmem>>, vector<1x1x64xf32>
      %30 = vector.shape_cast %29 : vector<1x1x64xf32> to vector<1x64xf32>
      %c0_31 = arith.constant 0 : index
      %c0_32 = arith.constant 0 : index
      %c576 = arith.constant 576 : index
      %31 = vector.load %arg7[%c0_31, %c0_32, %c576] : memref<2x1x3008xf32, #tpu.memory_space<vmem>>, vector<1x1x64xf32>
      %32 = vector.shape_cast %31 : vector<1x1x64xf32> to vector<1x64xf32>
      %c0_33 = arith.constant 0 : index
      %c0_34 = arith.constant 0 : index
      %c768 = arith.constant 768 : index
      %33 = vector.load %arg7[%c0_33, %c0_34, %c768] : memref<2x1x3008xf32, #tpu.memory_space<vmem>>, vector<1x1x64xf32>
      %34 = vector.shape_cast %33 : vector<1x1x64xf32> to vector<1x64xf32>
      %c0_35 = arith.constant 0 : index
      %c0_36 = arith.constant 0 : index
      %c832 = arith.constant 832 : index
      %35 = vector.load %arg7[%c0_35, %c0_36, %c832] : memref<2x1x3008xf32, #tpu.memory_space<vmem>>, vector<1x1x64xf32>
      %36 = vector.shape_cast %35 : vector<1x1x64xf32> to vector<1x64xf32>
      %37 = arith.truncf %12 : vector<8x64xf32> to vector<8x64xbf16>
      %cst_37 = arith.constant dense<0.000000e+00> : vector<8x192xf32>
      %38 = tpu.matmul %37, %14, %cst_37 {dimension_numbers = #tpu.dot_dimension_numbers<[1], [0], [0], [1], [0, 0, 1, 1], [], []>} : vector<8x64xbf16>, vector<64x192xbf16>, vector<8x192xf32> -> vector<8x192xf32>
      %39 = vector.broadcast %22 : vector<1x192xf32> to vector<8x192xf32>
      %40 = arith.addf %38, %39 : vector<8x192xf32>
      %41 = vector.extract_strided_slice %40 {offsets = [0, 0], sizes = [8, 64], strides = [1, 1]} : vector<8x192xf32> to vector<8x64xf32>
      %42 = vector.extract_strided_slice %40 {offsets = [0, 64], sizes = [8, 64], strides = [1, 1]} : vector<8x192xf32> to vector<8x64xf32>
      %43 = vector.extract_strided_slice %40 {offsets = [0, 128], sizes = [8, 64], strides = [1, 1]} : vector<8x192xf32> to vector<8x64xf32>
      %44 = arith.truncf %41 : vector<8x64xf32> to vector<8x64xbf16>
      %45 = arith.truncf %42 : vector<8x64xf32> to vector<8x64xbf16>
      %46 = arith.truncf %43 : vector<8x64xf32> to vector<8x64xbf16>
      %47 = vector.extract_strided_slice %44 {offsets = [0, 0], sizes = [8, 16], strides = [1, 1]} : vector<8x64xbf16> to vector<8x16xbf16>
      %48 = vector.extract_strided_slice %45 {offsets = [0, 0], sizes = [8, 16], strides = [1, 1]} : vector<8x64xbf16> to vector<8x16xbf16>
      "tpu.trace_start"() <{level = 10 : i32, message = "qd,kd->qk"}> : () -> ()
      %cst_38 = arith.constant dense<0.000000e+00> : vector<8x8xf32>
      %49 = tpu.matmul %47, %48, %cst_38 {dimension_numbers = #tpu.dot_dimension_numbers<[1], [1], [0], [0], [0, 0, 1, 0], [], []>} : vector<8x16xbf16>, vector<8x16xbf16>, vector<8x8xf32> -> vector<8x8xf32>
      "tpu.trace_stop"() : () -> ()
      %cst_39 = arith.constant 2.500000e-01 : f32
      %50 = vector.broadcast %cst_39 : f32 to vector<8x8xf32>
      %51 = arith.mulf %49, %50 : vector<8x8xf32>
      %cst_40 = arith.constant dense<0xFF800000> : vector<8xf32>
      %52 = vector.multi_reduction <maximumf>, %51, %cst_40 [1] : vector<8x8xf32> to vector<8xf32>
      %53 = vector.shape_cast %52 : vector<8xf32> to vector<8x1xf32>
      %54 = vector.broadcast %53 : vector<8x1xf32> to vector<8x8xf32>
      %55 = arith.subf %51, %54 : vector<8x8xf32>
      %56 = math.exp %55 : vector<8x8xf32>
      %cst_41 = arith.constant dense<0.000000e+00> : vector<8xf32>
      %57 = vector.multi_reduction <add>, %56, %cst_41 [1] : vector<8x8xf32> to vector<8xf32>
      %58 = vector.shape_cast %57 : vector<8xf32> to vector<8x1xf32>
      %59 = tpu.reciprocal %58 {approx = true} : vector<8x1xf32> -> vector<8x1xf32>
      %60 = vector.broadcast %59 : vector<8x1xf32> to vector<8x8xf32>
      %61 = arith.mulf %56, %60 : vector<8x8xf32>
      %62 = arith.truncf %61 : vector<8x8xf32> to vector<8x8xbf16>
      %63 = vector.extract_strided_slice %46 {offsets = [0, 0], sizes = [8, 16], strides = [1, 1]} : vector<8x64xbf16> to vector<8x16xbf16>
      %cst_42 = arith.constant dense<0.000000e+00> : vector<8x16xf32>
      %64 = tpu.matmul %62, %63, %cst_42 {dimension_numbers = #tpu.dot_dimension_numbers<[1], [0], [0], [1], [0, 0, 1, 1], [], []>} : vector<8x8xbf16>, vector<8x16xbf16>, vector<8x16xf32> -> vector<8x16xf32>
      %65 = vector.extract_strided_slice %44 {offsets = [0, 16], sizes = [8, 16], strides = [1, 1]} : vector<8x64xbf16> to vector<8x16xbf16>
      %66 = vector.extract_strided_slice %45 {offsets = [0, 16], sizes = [8, 16], strides = [1, 1]} : vector<8x64xbf16> to vector<8x16xbf16>
      "tpu.trace_start"() <{level = 10 : i32, message = "qd,kd->qk"}> : () -> ()
      %cst_43 = arith.constant dense<0.000000e+00> : vector<8x8xf32>
      %67 = tpu.matmul %65, %66, %cst_43 {dimension_numbers = #tpu.dot_dimension_numbers<[1], [1], [0], [0], [0, 0, 1, 0], [], []>} : vector<8x16xbf16>, vector<8x16xbf16>, vector<8x8xf32> -> vector<8x8xf32>
      "tpu.trace_stop"() : () -> ()
      %cst_44 = arith.constant 2.500000e-01 : f32
      %68 = vector.broadcast %cst_44 : f32 to vector<8x8xf32>
      %69 = arith.mulf %67, %68 : vector<8x8xf32>
      %cst_45 = arith.constant dense<0xFF800000> : vector<8xf32>
      %70 = vector.multi_reduction <maximumf>, %69, %cst_45 [1] : vector<8x8xf32> to vector<8xf32>
      %71 = vector.shape_cast %70 : vector<8xf32> to vector<8x1xf32>
      %72 = vector.broadcast %71 : vector<8x1xf32> to vector<8x8xf32>
      %73 = arith.subf %69, %72 : vector<8x8xf32>
      %74 = math.exp %73 : vector<8x8xf32>
      %cst_46 = arith.constant dense<0.000000e+00> : vector<8xf32>
      %75 = vector.multi_reduction <add>, %74, %cst_46 [1] : vector<8x8xf32> to vector<8xf32>
      %76 = vector.shape_cast %75 : vector<8xf32> to vector<8x1xf32>
      %77 = tpu.reciprocal %76 {approx = true} : vector<8x1xf32> -> vector<8x1xf32>
      %78 = vector.broadcast %77 : vector<8x1xf32> to vector<8x8xf32>
      %79 = arith.mulf %74, %78 : vector<8x8xf32>
      %80 = arith.truncf %79 : vector<8x8xf32> to vector<8x8xbf16>
      %81 = vector.extract_strided_slice %46 {offsets = [0, 16], sizes = [8, 16], strides = [1, 1]} : vector<8x64xbf16> to vector<8x16xbf16>
      %cst_47 = arith.constant dense<0.000000e+00> : vector<8x16xf32>
      %82 = tpu.matmul %80, %81, %cst_47 {dimension_numbers = #tpu.dot_dimension_numbers<[1], [0], [0], [1], [0, 0, 1, 1], [], []>} : vector<8x8xbf16>, vector<8x16xbf16>, vector<8x16xf32> -> vector<8x16xf32>
      %83 = vector.extract_strided_slice %44 {offsets = [0, 32], sizes = [8, 16], strides = [1, 1]} : vector<8x64xbf16> to vector<8x16xbf16>
      %84 = vector.extract_strided_slice %45 {offsets = [0, 32], sizes = [8, 16], strides = [1, 1]} : vector<8x64xbf16> to vector<8x16xbf16>
      "tpu.trace_start"() <{level = 10 : i32, message = "qd,kd->qk"}> : () -> ()
      %cst_48 = arith.constant dense<0.000000e+00> : vector<8x8xf32>
      %85 = tpu.matmul %83, %84, %cst_48 {dimension_numbers = #tpu.dot_dimension_numbers<[1], [1], [0], [0], [0, 0, 1, 0], [], []>} : vector<8x16xbf16>, vector<8x16xbf16>, vector<8x8xf32> -> vector<8x8xf32>
      "tpu.trace_stop"() : () -> ()
      %cst_49 = arith.constant 2.500000e-01 : f32
      %86 = vector.broadcast %cst_49 : f32 to vector<8x8xf32>
      %87 = arith.mulf %85, %86 : vector<8x8xf32>
      %cst_50 = arith.constant dense<0xFF800000> : vector<8xf32>
      %88 = vector.multi_reduction <maximumf>, %87, %cst_50 [1] : vector<8x8xf32> to vector<8xf32>
      %89 = vector.shape_cast %88 : vector<8xf32> to vector<8x1xf32>
      %90 = vector.broadcast %89 : vector<8x1xf32> to vector<8x8xf32>
      %91 = arith.subf %87, %90 : vector<8x8xf32>
      %92 = math.exp %91 : vector<8x8xf32>
      %cst_51 = arith.constant dense<0.000000e+00> : vector<8xf32>
      %93 = vector.multi_reduction <add>, %92, %cst_51 [1] : vector<8x8xf32> to vector<8xf32>
      %94 = vector.shape_cast %93 : vector<8xf32> to vector<8x1xf32>
      %95 = tpu.reciprocal %94 {approx = true} : vector<8x1xf32> -> vector<8x1xf32>
      %96 = vector.broadcast %95 : vector<8x1xf32> to vector<8x8xf32>
      %97 = arith.mulf %92, %96 : vector<8x8xf32>
      %98 = arith.truncf %97 : vector<8x8xf32> to vector<8x8xbf16>
      %99 = vector.extract_strided_slice %46 {offsets = [0, 32], sizes = [8, 16], strides = [1, 1]} : vector<8x64xbf16> to vector<8x16xbf16>
      %cst_52 = arith.constant dense<0.000000e+00> : vector<8x16xf32>
      %100 = tpu.matmul %98, %99, %cst_52 {dimension_numbers = #tpu.dot_dimension_numbers<[1], [0], [0], [1], [0, 0, 1, 1], [], []>} : vector<8x8xbf16>, vector<8x16xbf16>, vector<8x16xf32> -> vector<8x16xf32>
      %101 = vector.extract_strided_slice %44 {offsets = [0, 48], sizes = [8, 16], strides = [1, 1]} : vector<8x64xbf16> to vector<8x16xbf16>
      %102 = vector.extract_strided_slice %45 {offsets = [0, 48], sizes = [8, 16], strides = [1, 1]} : vector<8x64xbf16> to vector<8x16xbf16>
      "tpu.trace_start"() <{level = 10 : i32, message = "qd,kd->qk"}> : () -> ()
      %cst_53 = arith.constant dense<0.000000e+00> : vector<8x8xf32>
      %103 = tpu.matmul %101, %102, %cst_53 {dimension_numbers = #tpu.dot_dimension_numbers<[1], [1], [0], [0], [0, 0, 1, 0], [], []>} : vector<8x16xbf16>, vector<8x16xbf16>, vector<8x8xf32> -> vector<8x8xf32>
      "tpu.trace_stop"() : () -> ()
      %cst_54 = arith.constant 2.500000e-01 : f32
      %104 = vector.broadcast %cst_54 : f32 to vector<8x8xf32>
      %105 = arith.mulf %103, %104 : vector<8x8xf32>
      %cst_55 = arith.constant dense<0xFF800000> : vector<8xf32>
      %106 = vector.multi_reduction <maximumf>, %105, %cst_55 [1] : vector<8x8xf32> to vector<8xf32>
      %107 = vector.shape_cast %106 : vector<8xf32> to vector<8x1xf32>
      %108 = vector.broadcast %107 : vector<8x1xf32> to vector<8x8xf32>
      %109 = arith.subf %105, %108 : vector<8x8xf32>
      %110 = math.exp %109 : vector<8x8xf32>
      %cst_56 = arith.constant dense<0.000000e+00> : vector<8xf32>
      %111 = vector.multi_reduction <add>, %110, %cst_56 [1] : vector<8x8xf32> to vector<8xf32>
      %112 = vector.shape_cast %111 : vector<8xf32> to vector<8x1xf32>
      %113 = tpu.reciprocal %112 {approx = true} : vector<8x1xf32> -> vector<8x1xf32>
      %114 = vector.broadcast %113 : vector<8x1xf32> to vector<8x8xf32>
      %115 = arith.mulf %110, %114 : vector<8x8xf32>
      %116 = arith.truncf %115 : vector<8x8xf32> to vector<8x8xbf16>
      %117 = vector.extract_strided_slice %46 {offsets = [0, 48], sizes = [8, 16], strides = [1, 1]} : vector<8x64xbf16> to vector<8x16xbf16>
      %cst_57 = arith.constant dense<0.000000e+00> : vector<8x16xf32>
      %118 = tpu.matmul %116, %117, %cst_57 {dimension_numbers = #tpu.dot_dimension_numbers<[1], [0], [0], [1], [0, 0, 1, 1], [], []>} : vector<8x8xbf16>, vector<8x16xbf16>, vector<8x16xf32> -> vector<8x16xf32>
      %119 = tpu.concatenate %64, %82, %100, %118 in 1 : vector<8x16xf32>, vector<8x16xf32>, vector<8x16xf32>, vector<8x16xf32> -> vector<8x64xf32>
      %120 = arith.truncf %119 : vector<8x64xf32> to vector<8x64xbf16>
      %cst_58 = arith.constant dense<0.000000e+00> : vector<8x64xf32>
      %121 = tpu.matmul %120, %16, %cst_58 {dimension_numbers = #tpu.dot_dimension_numbers<[1], [0], [0], [1], [0, 0, 1, 1], [], []>} : vector<8x64xbf16>, vector<64x64xbf16>, vector<8x64xf32> -> vector<8x64xf32>
      %122 = vector.broadcast %24 : vector<1x64xf32> to vector<8x64xf32>
      %123 = arith.addf %121, %122 : vector<8x64xf32>
      %124 = arith.addf %12, %123 : vector<8x64xf32>
      %cst_59 = arith.constant dense<0.000000e+00> : vector<8xf32>
      %125 = vector.multi_reduction <add>, %124, %cst_59 [1] : vector<8x64xf32> to vector<8xf32>
      %126 = vector.shape_cast %125 : vector<8xf32> to vector<8x1xf32>
      %cst_60 = arith.constant 6.400000e+01 : f32
      %127 = vector.broadcast %cst_60 : f32 to vector<8x1xf32>
      %128 = arith.divf %126, %127 : vector<8x1xf32>
      %129 = vector.broadcast %128 : vector<8x1xf32> to vector<8x64xf32>
      %130 = arith.subf %124, %129 : vector<8x64xf32>
      %131 = arith.mulf %130, %130 : vector<8x64xf32>
      %cst_61 = arith.constant dense<0.000000e+00> : vector<8xf32>
      %132 = vector.multi_reduction <add>, %131, %cst_61 [1] : vector<8x64xf32> to vector<8xf32>
      %133 = vector.shape_cast %132 : vector<8xf32> to vector<8x1xf32>
      %cst_62 = arith.constant 6.400000e+01 : f32
      %134 = vector.broadcast %cst_62 : f32 to vector<8x1xf32>
      %135 = arith.divf %133, %134 : vector<8x1xf32>
      %136 = vector.broadcast %128 : vector<8x1xf32> to vector<8x64xf32>
      %137 = arith.subf %124, %136 : vector<8x64xf32>
      %cst_63 = arith.constant 9.99999974E-6 : f32
      %138 = vector.broadcast %cst_63 : f32 to vector<8x1xf32>
      %139 = arith.addf %135, %138 : vector<8x1xf32>
      %140 = math.rsqrt %139 : vector<8x1xf32>
      %141 = vector.broadcast %140 : vector<8x1xf32> to vector<8x64xf32>
      %142 = arith.mulf %137, %141 : vector<8x64xf32>
      %143 = vector.broadcast %30 : vector<1x64xf32> to vector<8x64xf32>
      %144 = arith.mulf %142, %143 : vector<8x64xf32>
      %145 = vector.broadcast %32 : vector<1x64xf32> to vector<8x64xf32>
      %146 = arith.addf %144, %145 : vector<8x64xf32>
      %147 = arith.truncf %146 : vector<8x64xf32> to vector<8x64xbf16>
      %cst_64 = arith.constant dense<0.000000e+00> : vector<8x2048xf32>
      %148 = tpu.matmul %147, %18, %cst_64 {dimension_numbers = #tpu.dot_dimension_numbers<[1], [0], [0], [1], [0, 0, 1, 1], [], []>} : vector<8x64xbf16>, vector<64x2048xbf16>, vector<8x2048xf32> -> vector<8x2048xf32>
      %149 = vector.broadcast %26 : vector<1x2048xf32> to vector<8x2048xf32>
      %150 = arith.addf %148, %149 : vector<8x2048xf32>
      %cst_65 = arith.constant 0.000000e+00 : f32
      %151 = vector.broadcast %cst_65 : f32 to vector<8x2048xf32>
      %152 = arith.maximumf %150, %151 : vector<8x2048xf32>
      %153 = arith.truncf %152 : vector<8x2048xf32> to vector<8x2048xbf16>
      %cst_66 = arith.constant dense<0.000000e+00> : vector<8x64xf32>
      %154 = tpu.matmul %153, %20, %cst_66 {dimension_numbers = #tpu.dot_dimension_numbers<[1], [0], [0], [1], [0, 0, 1, 1], [], []>} : vector<8x2048xbf16>, vector<2048x64xbf16>, vector<8x64xf32> -> vector<8x64xf32>
      %155 = vector.broadcast %28 : vector<1x64xf32> to vector<8x64xf32>
      %156 = arith.addf %154, %155 : vector<8x64xf32>
      %157 = arith.addf %146, %156 : vector<8x64xf32>
      %cst_67 = arith.constant dense<0.000000e+00> : vector<8xf32>
      %158 = vector.multi_reduction <add>, %157, %cst_67 [1] : vector<8x64xf32> to vector<8xf32>
      %159 = vector.shape_cast %158 : vector<8xf32> to vector<8x1xf32>
      %cst_68 = arith.constant 6.400000e+01 : f32
      %160 = vector.broadcast %cst_68 : f32 to vector<8x1xf32>
      %161 = arith.divf %159, %160 : vector<8x1xf32>
      %162 = vector.broadcast %161 : vector<8x1xf32> to vector<8x64xf32>
      %163 = arith.subf %157, %162 : vector<8x64xf32>
      %164 = arith.mulf %163, %163 : vector<8x64xf32>
      %cst_69 = arith.constant dense<0.000000e+00> : vector<8xf32>
      %165 = vector.multi_reduction <add>, %164, %cst_69 [1] : vector<8x64xf32> to vector<8xf32>
      %166 = vector.shape_cast %165 : vector<8xf32> to vector<8x1xf32>
      %cst_70 = arith.constant 6.400000e+01 : f32
      %167 = vector.broadcast %cst_70 : f32 to vector<8x1xf32>
      %168 = arith.divf %166, %167 : vector<8x1xf32>
      %169 = vector.broadcast %161 : vector<8x1xf32> to vector<8x64xf32>
      %170 = arith.subf %157, %169 : vector<8x64xf32>
      %cst_71 = arith.constant 9.99999974E-6 : f32
      %171 = vector.broadcast %cst_71 : f32 to vector<8x1xf32>
      %172 = arith.addf %168, %171 : vector<8x1xf32>
      %173 = math.rsqrt %172 : vector<8x1xf32>
      %174 = vector.broadcast %173 : vector<8x1xf32> to vector<8x64xf32>
      %175 = arith.mulf %170, %174 : vector<8x64xf32>
      %176 = vector.broadcast %34 : vector<1x64xf32> to vector<8x64xf32>
      %177 = arith.mulf %175, %176 : vector<8x64xf32>
      %178 = vector.broadcast %36 : vector<1x64xf32> to vector<8x64xf32>
      %179 = arith.addf %177, %178 : vector<8x64xf32>
      %c1 = arith.constant 1 : index
      %c0_72 = arith.constant 0 : index
      %c0_73 = arith.constant 0 : index
      %180 = vector.load %arg5[%c1, %c0_72, %c0_73] : memref<2x64x2560xbf16, #tpu.memory_space<vmem>>, vector<1x64x192xbf16>
      %181 = vector.shape_cast %180 : vector<1x64x192xbf16> to vector<64x192xbf16>
      %c1_74 = arith.constant 1 : index
      %c0_75 = arith.constant 0 : index
      %c192_76 = arith.constant 192 : index
      %182 = vector.load %arg5[%c1_74, %c0_75, %c192_76] : memref<2x64x2560xbf16, #tpu.memory_space<vmem>>, vector<1x64x64xbf16>
      %183 = vector.shape_cast %182 : vector<1x64x64xbf16> to vector<64x64xbf16>
      %c1_77 = arith.constant 1 : index
      %c0_78 = arith.constant 0 : index
      %c512_79 = arith.constant 512 : index
      %184 = vector.load %arg5[%c1_77, %c0_78, %c512_79] : memref<2x64x2560xbf16, #tpu.memory_space<vmem>>, vector<1x64x2048xbf16>
      %185 = vector.shape_cast %184 : vector<1x64x2048xbf16> to vector<64x2048xbf16>
      %c1_80 = arith.constant 1 : index
      %c0_81 = arith.constant 0 : index
      %c0_82 = arith.constant 0 : index
      %186 = vector.load %arg6[%c1_80, %c0_81, %c0_82] : memref<2x2048x64xbf16, #tpu.memory_space<vmem>>, vector<1x2048x64xbf16>
      %187 = vector.shape_cast %186 : vector<1x2048x64xbf16> to vector<2048x64xbf16>
      %c1_83 = arith.constant 1 : index
      %c0_84 = arith.constant 0 : index
      %c0_85 = arith.constant 0 : index
      %188 = vector.load %arg7[%c1_83, %c0_84, %c0_85] : memref<2x1x3008xf32, #tpu.memory_space<vmem>>, vector<1x1x192xf32>
      %189 = vector.shape_cast %188 : vector<1x1x192xf32> to vector<1x192xf32>
      %c1_86 = arith.constant 1 : index
      %c0_87 = arith.constant 0 : index
      %c192_88 = arith.constant 192 : index
      %190 = vector.load %arg7[%c1_86, %c0_87, %c192_88] : memref<2x1x3008xf32, #tpu.memory_space<vmem>>, vector<1x1x64xf32>
      %191 = vector.shape_cast %190 : vector<1x1x64xf32> to vector<1x64xf32>
      %c1_89 = arith.constant 1 : index
      %c0_90 = arith.constant 0 : index
      %c960_91 = arith.constant 960 : index
      %192 = vector.load %arg7[%c1_89, %c0_90, %c960_91] : memref<2x1x3008xf32, #tpu.memory_space<vmem>>, vector<1x1x2048xf32>
      %193 = vector.shape_cast %192 : vector<1x1x2048xf32> to vector<1x2048xf32>
      %c1_92 = arith.constant 1 : index
      %c0_93 = arith.constant 0 : index
      %c896_94 = arith.constant 896 : index
      %194 = vector.load %arg7[%c1_92, %c0_93, %c896_94] : memref<2x1x3008xf32, #tpu.memory_space<vmem>>, vector<1x1x64xf32>
      %195 = vector.shape_cast %194 : vector<1x1x64xf32> to vector<1x64xf32>
      %c1_95 = arith.constant 1 : index
      %c0_96 = arith.constant 0 : index
      %c512_97 = arith.constant 512 : index
      %196 = vector.load %arg7[%c1_95, %c0_96, %c512_97] : memref<2x1x3008xf32, #tpu.memory_space<vmem>>, vector<1x1x64xf32>
      %197 = vector.shape_cast %196 : vector<1x1x64xf32> to vector<1x64xf32>
      %c1_98 = arith.constant 1 : index
      %c0_99 = arith.constant 0 : index
      %c576_100 = arith.constant 576 : index
      %198 = vector.load %arg7[%c1_98, %c0_99, %c576_100] : memref<2x1x3008xf32, #tpu.memory_space<vmem>>, vector<1x1x64xf32>
      %199 = vector.shape_cast %198 : vector<1x1x64xf32> to vector<1x64xf32>
      %c1_101 = arith.constant 1 : index
      %c0_102 = arith.constant 0 : index
      %c768_103 = arith.constant 768 : index
      %200 = vector.load %arg7[%c1_101, %c0_102, %c768_103] : memref<2x1x3008xf32, #tpu.memory_space<vmem>>, vector<1x1x64xf32>
      %201 = vector.shape_cast %200 : vector<1x1x64xf32> to vector<1x64xf32>
      %c1_104 = arith.constant 1 : index
      %c0_105 = arith.constant 0 : index
      %c832_106 = arith.constant 832 : index
      %202 = vector.load %arg7[%c1_104, %c0_105, %c832_106] : memref<2x1x3008xf32, #tpu.memory_space<vmem>>, vector<1x1x64xf32>
      %203 = vector.shape_cast %202 : vector<1x1x64xf32> to vector<1x64xf32>
      %204 = arith.truncf %179 : vector<8x64xf32> to vector<8x64xbf16>
      %cst_107 = arith.constant dense<0.000000e+00> : vector<8x192xf32>
      %205 = tpu.matmul %204, %181, %cst_107 {dimension_numbers = #tpu.dot_dimension_numbers<[1], [0], [0], [1], [0, 0, 1, 1], [], []>} : vector<8x64xbf16>, vector<64x192xbf16>, vector<8x192xf32> -> vector<8x192xf32>
      %206 = vector.broadcast %189 : vector<1x192xf32> to vector<8x192xf32>
      %207 = arith.addf %205, %206 : vector<8x192xf32>
      %208 = vector.extract_strided_slice %207 {offsets = [0, 0], sizes = [8, 64], strides = [1, 1]} : vector<8x192xf32> to vector<8x64xf32>
      %209 = vector.extract_strided_slice %207 {offsets = [0, 64], sizes = [8, 64], strides = [1, 1]} : vector<8x192xf32> to vector<8x64xf32>
      %210 = vector.extract_strided_slice %207 {offsets = [0, 128], sizes = [8, 64], strides = [1, 1]} : vector<8x192xf32> to vector<8x64xf32>
      %211 = arith.truncf %208 : vector<8x64xf32> to vector<8x64xbf16>
      %212 = arith.truncf %209 : vector<8x64xf32> to vector<8x64xbf16>
      %213 = arith.truncf %210 : vector<8x64xf32> to vector<8x64xbf16>
      %214 = vector.extract_strided_slice %211 {offsets = [0, 0], sizes = [8, 16], strides = [1, 1]} : vector<8x64xbf16> to vector<8x16xbf16>
      %215 = vector.extract_strided_slice %212 {offsets = [0, 0], sizes = [8, 16], strides = [1, 1]} : vector<8x64xbf16> to vector<8x16xbf16>
      "tpu.trace_start"() <{level = 10 : i32, message = "qd,kd->qk"}> : () -> ()
      %cst_108 = arith.constant dense<0.000000e+00> : vector<8x8xf32>
      %216 = tpu.matmul %214, %215, %cst_108 {dimension_numbers = #tpu.dot_dimension_numbers<[1], [1], [0], [0], [0, 0, 1, 0], [], []>} : vector<8x16xbf16>, vector<8x16xbf16>, vector<8x8xf32> -> vector<8x8xf32>
      "tpu.trace_stop"() : () -> ()
      %cst_109 = arith.constant 2.500000e-01 : f32
      %217 = vector.broadcast %cst_109 : f32 to vector<8x8xf32>
      %218 = arith.mulf %216, %217 : vector<8x8xf32>
      %cst_110 = arith.constant dense<0xFF800000> : vector<8xf32>
      %219 = vector.multi_reduction <maximumf>, %218, %cst_110 [1] : vector<8x8xf32> to vector<8xf32>
      %220 = vector.shape_cast %219 : vector<8xf32> to vector<8x1xf32>
      %221 = vector.broadcast %220 : vector<8x1xf32> to vector<8x8xf32>
      %222 = arith.subf %218, %221 : vector<8x8xf32>
      %223 = math.exp %222 : vector<8x8xf32>
      %cst_111 = arith.constant dense<0.000000e+00> : vector<8xf32>
      %224 = vector.multi_reduction <add>, %223, %cst_111 [1] : vector<8x8xf32> to vector<8xf32>
      %225 = vector.shape_cast %224 : vector<8xf32> to vector<8x1xf32>
      %226 = tpu.reciprocal %225 {approx = true} : vector<8x1xf32> -> vector<8x1xf32>
      %227 = vector.broadcast %226 : vector<8x1xf32> to vector<8x8xf32>
      %228 = arith.mulf %223, %227 : vector<8x8xf32>
      %229 = arith.truncf %228 : vector<8x8xf32> to vector<8x8xbf16>
      %230 = vector.extract_strided_slice %213 {offsets = [0, 0], sizes = [8, 16], strides = [1, 1]} : vector<8x64xbf16> to vector<8x16xbf16>
      %cst_112 = arith.constant dense<0.000000e+00> : vector<8x16xf32>
      %231 = tpu.matmul %229, %230, %cst_112 {dimension_numbers = #tpu.dot_dimension_numbers<[1], [0], [0], [1], [0, 0, 1, 1], [], []>} : vector<8x8xbf16>, vector<8x16xbf16>, vector<8x16xf32> -> vector<8x16xf32>
      %232 = vector.extract_strided_slice %211 {offsets = [0, 16], sizes = [8, 16], strides = [1, 1]} : vector<8x64xbf16> to vector<8x16xbf16>
      %233 = vector.extract_strided_slice %212 {offsets = [0, 16], sizes = [8, 16], strides = [1, 1]} : vector<8x64xbf16> to vector<8x16xbf16>
      "tpu.trace_start"() <{level = 10 : i32, message = "qd,kd->qk"}> : () -> ()
      %cst_113 = arith.constant dense<0.000000e+00> : vector<8x8xf32>
      %234 = tpu.matmul %232, %233, %cst_113 {dimension_numbers = #tpu.dot_dimension_numbers<[1], [1], [0], [0], [0, 0, 1, 0], [], []>} : vector<8x16xbf16>, vector<8x16xbf16>, vector<8x8xf32> -> vector<8x8xf32>
      "tpu.trace_stop"() : () -> ()
      %cst_114 = arith.constant 2.500000e-01 : f32
      %235 = vector.broadcast %cst_114 : f32 to vector<8x8xf32>
      %236 = arith.mulf %234, %235 : vector<8x8xf32>
      %cst_115 = arith.constant dense<0xFF800000> : vector<8xf32>
      %237 = vector.multi_reduction <maximumf>, %236, %cst_115 [1] : vector<8x8xf32> to vector<8xf32>
      %238 = vector.shape_cast %237 : vector<8xf32> to vector<8x1xf32>
      %239 = vector.broadcast %238 : vector<8x1xf32> to vector<8x8xf32>
      %240 = arith.subf %236, %239 : vector<8x8xf32>
      %241 = math.exp %240 : vector<8x8xf32>
      %cst_116 = arith.constant dense<0.000000e+00> : vector<8xf32>
      %242 = vector.multi_reduction <add>, %241, %cst_116 [1] : vector<8x8xf32> to vector<8xf32>
      %243 = vector.shape_cast %242 : vector<8xf32> to vector<8x1xf32>
      %244 = tpu.reciprocal %243 {approx = true} : vector<8x1xf32> -> vector<8x1xf32>
      %245 = vector.broadcast %244 : vector<8x1xf32> to vector<8x8xf32>
      %246 = arith.mulf %241, %245 : vector<8x8xf32>
      %247 = arith.truncf %246 : vector<8x8xf32> to vector<8x8xbf16>
      %248 = vector.extract_strided_slice %213 {offsets = [0, 16], sizes = [8, 16], strides = [1, 1]} : vector<8x64xbf16> to vector<8x16xbf16>
      %cst_117 = arith.constant dense<0.000000e+00> : vector<8x16xf32>
      %249 = tpu.matmul %247, %248, %cst_117 {dimension_numbers = #tpu.dot_dimension_numbers<[1], [0], [0], [1], [0, 0, 1, 1], [], []>} : vector<8x8xbf16>, vector<8x16xbf16>, vector<8x16xf32> -> vector<8x16xf32>
      %250 = vector.extract_strided_slice %211 {offsets = [0, 32], sizes = [8, 16], strides = [1, 1]} : vector<8x64xbf16> to vector<8x16xbf16>
      %251 = vector.extract_strided_slice %212 {offsets = [0, 32], sizes = [8, 16], strides = [1, 1]} : vector<8x64xbf16> to vector<8x16xbf16>
      "tpu.trace_start"() <{level = 10 : i32, message = "qd,kd->qk"}> : () -> ()
      %cst_118 = arith.constant dense<0.000000e+00> : vector<8x8xf32>
      %252 = tpu.matmul %250, %251, %cst_118 {dimension_numbers = #tpu.dot_dimension_numbers<[1], [1], [0], [0], [0, 0, 1, 0], [], []>} : vector<8x16xbf16>, vector<8x16xbf16>, vector<8x8xf32> -> vector<8x8xf32>
      "tpu.trace_stop"() : () -> ()
      %cst_119 = arith.constant 2.500000e-01 : f32
      %253 = vector.broadcast %cst_119 : f32 to vector<8x8xf32>
      %254 = arith.mulf %252, %253 : vector<8x8xf32>
      %cst_120 = arith.constant dense<0xFF800000> : vector<8xf32>
      %255 = vector.multi_reduction <maximumf>, %254, %cst_120 [1] : vector<8x8xf32> to vector<8xf32>
      %256 = vector.shape_cast %255 : vector<8xf32> to vector<8x1xf32>
      %257 = vector.broadcast %256 : vector<8x1xf32> to vector<8x8xf32>
      %258 = arith.subf %254, %257 : vector<8x8xf32>
      %259 = math.exp %258 : vector<8x8xf32>
      %cst_121 = arith.constant dense<0.000000e+00> : vector<8xf32>
      %260 = vector.multi_reduction <add>, %259, %cst_121 [1] : vector<8x8xf32> to vector<8xf32>
      %261 = vector.shape_cast %260 : vector<8xf32> to vector<8x1xf32>
      %262 = tpu.reciprocal %261 {approx = true} : vector<8x1xf32> -> vector<8x1xf32>
      %263 = vector.broadcast %262 : vector<8x1xf32> to vector<8x8xf32>
      %264 = arith.mulf %259, %263 : vector<8x8xf32>
      %265 = arith.truncf %264 : vector<8x8xf32> to vector<8x8xbf16>
      %266 = vector.extract_strided_slice %213 {offsets = [0, 32], sizes = [8, 16], strides = [1, 1]} : vector<8x64xbf16> to vector<8x16xbf16>
      %cst_122 = arith.constant dense<0.000000e+00> : vector<8x16xf32>
      %267 = tpu.matmul %265, %266, %cst_122 {dimension_numbers = #tpu.dot_dimension_numbers<[1], [0], [0], [1], [0, 0, 1, 1], [], []>} : vector<8x8xbf16>, vector<8x16xbf16>, vector<8x16xf32> -> vector<8x16xf32>
      %268 = vector.extract_strided_slice %211 {offsets = [0, 48], sizes = [8, 16], strides = [1, 1]} : vector<8x64xbf16> to vector<8x16xbf16>
      %269 = vector.extract_strided_slice %212 {offsets = [0, 48], sizes = [8, 16], strides = [1, 1]} : vector<8x64xbf16> to vector<8x16xbf16>
      "tpu.trace_start"() <{level = 10 : i32, message = "qd,kd->qk"}> : () -> ()
      %cst_123 = arith.constant dense<0.000000e+00> : vector<8x8xf32>
      %270 = tpu.matmul %268, %269, %cst_123 {dimension_numbers = #tpu.dot_dimension_numbers<[1], [1], [0], [0], [0, 0, 1, 0], [], []>} : vector<8x16xbf16>, vector<8x16xbf16>, vector<8x8xf32> -> vector<8x8xf32>
      "tpu.trace_stop"() : () -> ()
      %cst_124 = arith.constant 2.500000e-01 : f32
      %271 = vector.broadcast %cst_124 : f32 to vector<8x8xf32>
      %272 = arith.mulf %270, %271 : vector<8x8xf32>
      %cst_125 = arith.constant dense<0xFF800000> : vector<8xf32>
      %273 = vector.multi_reduction <maximumf>, %272, %cst_125 [1] : vector<8x8xf32> to vector<8xf32>
      %274 = vector.shape_cast %273 : vector<8xf32> to vector<8x1xf32>
      %275 = vector.broadcast %274 : vector<8x1xf32> to vector<8x8xf32>
      %276 = arith.subf %272, %275 : vector<8x8xf32>
      %277 = math.exp %276 : vector<8x8xf32>
      %cst_126 = arith.constant dense<0.000000e+00> : vector<8xf32>
      %278 = vector.multi_reduction <add>, %277, %cst_126 [1] : vector<8x8xf32> to vector<8xf32>
      %279 = vector.shape_cast %278 : vector<8xf32> to vector<8x1xf32>
      %280 = tpu.reciprocal %279 {approx = true} : vector<8x1xf32> -> vector<8x1xf32>
      %281 = vector.broadcast %280 : vector<8x1xf32> to vector<8x8xf32>
      %282 = arith.mulf %277, %281 : vector<8x8xf32>
      %283 = arith.truncf %282 : vector<8x8xf32> to vector<8x8xbf16>
      %284 = vector.extract_strided_slice %213 {offsets = [0, 48], sizes = [8, 16], strides = [1, 1]} : vector<8x64xbf16> to vector<8x16xbf16>
      %cst_127 = arith.constant dense<0.000000e+00> : vector<8x16xf32>
      %285 = tpu.matmul %283, %284, %cst_127 {dimension_numbers = #tpu.dot_dimension_numbers<[1], [0], [0], [1], [0, 0, 1, 1], [], []>} : vector<8x8xbf16>, vector<8x16xbf16>, vector<8x16xf32> -> vector<8x16xf32>
      %286 = tpu.concatenate %231, %249, %267, %285 in 1 : vector<8x16xf32>, vector<8x16xf32>, vector<8x16xf32>, vector<8x16xf32> -> vector<8x64xf32>
      %287 = arith.truncf %286 : vector<8x64xf32> to vector<8x64xbf16>
      %cst_128 = arith.constant dense<0.000000e+00> : vector<8x64xf32>
      %288 = tpu.matmul %287, %183, %cst_128 {dimension_numbers = #tpu.dot_dimension_numbers<[1], [0], [0], [1], [0, 0, 1, 1], [], []>} : vector<8x64xbf16>, vector<64x64xbf16>, vector<8x64xf32> -> vector<8x64xf32>
      %289 = vector.broadcast %191 : vector<1x64xf32> to vector<8x64xf32>
      %290 = arith.addf %288, %289 : vector<8x64xf32>
      %291 = arith.addf %179, %290 : vector<8x64xf32>
      %cst_129 = arith.constant dense<0.000000e+00> : vector<8xf32>
      %292 = vector.multi_reduction <add>, %291, %cst_129 [1] : vector<8x64xf32> to vector<8xf32>
      %293 = vector.shape_cast %292 : vector<8xf32> to vector<8x1xf32>
      %cst_130 = arith.constant 6.400000e+01 : f32
      %294 = vector.broadcast %cst_130 : f32 to vector<8x1xf32>
      %295 = arith.divf %293, %294 : vector<8x1xf32>
      %296 = vector.broadcast %295 : vector<8x1xf32> to vector<8x64xf32>
      %297 = arith.subf %291, %296 : vector<8x64xf32>
      %298 = arith.mulf %297, %297 : vector<8x64xf32>
      %cst_131 = arith.constant dense<0.000000e+00> : vector<8xf32>
      %299 = vector.multi_reduction <add>, %298, %cst_131 [1] : vector<8x64xf32> to vector<8xf32>
      %300 = vector.shape_cast %299 : vector<8xf32> to vector<8x1xf32>
      %cst_132 = arith.constant 6.400000e+01 : f32
      %301 = vector.broadcast %cst_132 : f32 to vector<8x1xf32>
      %302 = arith.divf %300, %301 : vector<8x1xf32>
      %303 = vector.broadcast %295 : vector<8x1xf32> to vector<8x64xf32>
      %304 = arith.subf %291, %303 : vector<8x64xf32>
      %cst_133 = arith.constant 9.99999974E-6 : f32
      %305 = vector.broadcast %cst_133 : f32 to vector<8x1xf32>
      %306 = arith.addf %302, %305 : vector<8x1xf32>
      %307 = math.rsqrt %306 : vector<8x1xf32>
      %308 = vector.broadcast %307 : vector<8x1xf32> to vector<8x64xf32>
      %309 = arith.mulf %304, %308 : vector<8x64xf32>
      %310 = vector.broadcast %197 : vector<1x64xf32> to vector<8x64xf32>
      %311 = arith.mulf %309, %310 : vector<8x64xf32>
      %312 = vector.broadcast %199 : vector<1x64xf32> to vector<8x64xf32>
      %313 = arith.addf %311, %312 : vector<8x64xf32>
      %314 = arith.truncf %313 : vector<8x64xf32> to vector<8x64xbf16>
      %cst_134 = arith.constant dense<0.000000e+00> : vector<8x2048xf32>
      %315 = tpu.matmul %314, %185, %cst_134 {dimension_numbers = #tpu.dot_dimension_numbers<[1], [0], [0], [1], [0, 0, 1, 1], [], []>} : vector<8x64xbf16>, vector<64x2048xbf16>, vector<8x2048xf32> -> vector<8x2048xf32>
      %316 = vector.broadcast %193 : vector<1x2048xf32> to vector<8x2048xf32>
      %317 = arith.addf %315, %316 : vector<8x2048xf32>
      %cst_135 = arith.constant 0.000000e+00 : f32
      %318 = vector.broadcast %cst_135 : f32 to vector<8x2048xf32>
      %319 = arith.maximumf %317, %318 : vector<8x2048xf32>
      %320 = arith.truncf %319 : vector<8x2048xf32> to vector<8x2048xbf16>
      %cst_136 = arith.constant dense<0.000000e+00> : vector<8x64xf32>
      %321 = tpu.matmul %320, %187, %cst_136 {dimension_numbers = #tpu.dot_dimension_numbers<[1], [0], [0], [1], [0, 0, 1, 1], [], []>} : vector<8x2048xbf16>, vector<2048x64xbf16>, vector<8x64xf32> -> vector<8x64xf32>
      %322 = vector.broadcast %195 : vector<1x64xf32> to vector<8x64xf32>
      %323 = arith.addf %321, %322 : vector<8x64xf32>
      %324 = arith.addf %313, %323 : vector<8x64xf32>
      %cst_137 = arith.constant dense<0.000000e+00> : vector<8xf32>
      %325 = vector.multi_reduction <add>, %324, %cst_137 [1] : vector<8x64xf32> to vector<8xf32>
      %326 = vector.shape_cast %325 : vector<8xf32> to vector<8x1xf32>
      %cst_138 = arith.constant 6.400000e+01 : f32
      %327 = vector.broadcast %cst_138 : f32 to vector<8x1xf32>
      %328 = arith.divf %326, %327 : vector<8x1xf32>
      %329 = vector.broadcast %328 : vector<8x1xf32> to vector<8x64xf32>
      %330 = arith.subf %324, %329 : vector<8x64xf32>
      %331 = arith.mulf %330, %330 : vector<8x64xf32>
      %cst_139 = arith.constant dense<0.000000e+00> : vector<8xf32>
      %332 = vector.multi_reduction <add>, %331, %cst_139 [1] : vector<8x64xf32> to vector<8xf32>
      %333 = vector.shape_cast %332 : vector<8xf32> to vector<8x1xf32>
      %cst_140 = arith.constant 6.400000e+01 : f32
      %334 = vector.broadcast %cst_140 : f32 to vector<8x1xf32>
      %335 = arith.divf %333, %334 : vector<8x1xf32>
      %336 = vector.broadcast %328 : vector<8x1xf32> to vector<8x64xf32>
      %337 = arith.subf %324, %336 : vector<8x64xf32>
      %cst_141 = arith.constant 9.99999974E-6 : f32
      %338 = vector.broadcast %cst_141 : f32 to vector<8x1xf32>
      %339 = arith.addf %335, %338 : vector<8x1xf32>
      %340 = math.rsqrt %339 : vector<8x1xf32>
      %341 = vector.broadcast %340 : vector<8x1xf32> to vector<8x64xf32>
      %342 = arith.mulf %337, %341 : vector<8x64xf32>
      %343 = vector.broadcast %201 : vector<1x64xf32> to vector<8x64xf32>
      %344 = arith.mulf %342, %343 : vector<8x64xf32>
      %345 = vector.broadcast %203 : vector<1x64xf32> to vector<8x64xf32>
      %346 = arith.addf %344, %345 : vector<8x64xf32>
      %c0_142 = arith.constant 0 : index
      %c64 = arith.constant 64 : index
      %347 = vector.load %arg4[%c0_142, %c64] : memref<1x448xf32, #tpu.memory_space<vmem>>, vector<1x64xf32>
      %c0_143 = arith.constant 0 : index
      %c128 = arith.constant 128 : index
      %348 = vector.load %arg4[%c0_143, %c128] : memref<1x448xf32, #tpu.memory_space<vmem>>, vector<1x64xf32>
      %cst_144 = arith.constant dense<0.000000e+00> : vector<8xf32>
      %349 = vector.multi_reduction <add>, %346, %cst_144 [1] : vector<8x64xf32> to vector<8xf32>
      %350 = vector.shape_cast %349 : vector<8xf32> to vector<8x1xf32>
      %cst_145 = arith.constant 6.400000e+01 : f32
      %351 = vector.broadcast %cst_145 : f32 to vector<8x1xf32>
      %352 = arith.divf %350, %351 : vector<8x1xf32>
      %353 = vector.broadcast %352 : vector<8x1xf32> to vector<8x64xf32>
      %354 = arith.subf %346, %353 : vector<8x64xf32>
      %355 = arith.mulf %354, %354 : vector<8x64xf32>
      %cst_146 = arith.constant dense<0.000000e+00> : vector<8xf32>
      %356 = vector.multi_reduction <add>, %355, %cst_146 [1] : vector<8x64xf32> to vector<8xf32>
      %357 = vector.shape_cast %356 : vector<8xf32> to vector<8x1xf32>
      %cst_147 = arith.constant 6.400000e+01 : f32
      %358 = vector.broadcast %cst_147 : f32 to vector<8x1xf32>
      %359 = arith.divf %357, %358 : vector<8x1xf32>
      %360 = vector.broadcast %352 : vector<8x1xf32> to vector<8x64xf32>
      %361 = arith.subf %346, %360 : vector<8x64xf32>
      %cst_148 = arith.constant 9.99999974E-6 : f32
      %362 = vector.broadcast %cst_148 : f32 to vector<8x1xf32>
      %363 = arith.addf %359, %362 : vector<8x1xf32>
      %364 = math.rsqrt %363 : vector<8x1xf32>
      %365 = vector.broadcast %364 : vector<8x1xf32> to vector<8x64xf32>
      %366 = arith.mulf %361, %365 : vector<8x64xf32>
      %367 = vector.broadcast %347 : vector<1x64xf32> to vector<8x64xf32>
      %368 = arith.mulf %366, %367 : vector<8x64xf32>
      %369 = vector.broadcast %348 : vector<1x64xf32> to vector<8x64xf32>
      %370 = arith.addf %368, %369 : vector<8x64xf32>
      %c0_149 = arith.constant 0 : index
      %c0_150 = arith.constant 0 : index
      %371 = vector.load %arg10[%c0_149, %c0_150] : memref<8x64xf32, #tpu.memory_space<vmem>>, vector<8x64xf32>
      tpu.vector_store %arg10[%c0_149, %c0_150], %370 {strides = array<i32>} : memref<8x64xf32, #tpu.memory_space<vmem>>, vector<8x64xf32>,
      %c0_151 = arith.constant 0 : index
      %c0_152 = arith.constant 0 : index
      %372 = vector.load %arg9[%c0_151, %c0_152] : memref<8x64xf32, #tpu.memory_space<vmem>>, vector<8x64xf32>
      tpu.vector_store %arg9[%c0_151, %c0_152], %12 {strides = array<i32>} : memref<8x64xf32, #tpu.memory_space<vmem>>, vector<8x64xf32>,
    } else {
    }
    %c0_i32_1 = arith.constant 0 : i32
    %3 = arith.cmpi sgt, %arg0, %c0_i32_1 : i32
    %4 = arith.extui %3 : i1 to i32
    %c0_i32_2 = arith.constant 0 : i32
    %5 = arith.cmpi ne, %4, %c0_i32_2 : i32
    scf.if %5 {
      %c0 = arith.constant 0 : index
      %c0_3 = arith.constant 0 : index
      %6 = vector.load %arg9[%c0, %c0_3] : memref<8x64xf32, #tpu.memory_space<vmem>>, vector<8x64xf32>
      %c0_4 = arith.constant 0 : index
      %c0_5 = arith.constant 0 : index
      %7 = vector.load %arg10[%c0_4, %c0_5] : memref<8x64xf32, #tpu.memory_space<vmem>>, vector<8x64xf32>
      %c0_6 = arith.constant 0 : index
      %c0_7 = arith.constant 0 : index
      %c0_8 = arith.constant 0 : index
      %8 = vector.load %arg5[%c0_6, %c0_7, %c0_8] : memref<2x64x2560xbf16, #tpu.memory_space<vmem>>, vector<1x64x192xbf16>
      %9 = vector.shape_cast %8 : vector<1x64x192xbf16> to vector<64x192xbf16>
      %c0_9 = arith.constant 0 : index
      %c0_10 = arith.constant 0 : index
      %c192 = arith.constant 192 : index
      %10 = vector.load %arg5[%c0_9, %c0_10, %c192] : memref<2x64x2560xbf16, #tpu.memory_space<vmem>>, vector<1x64x64xbf16>
      %11 = vector.shape_cast %10 : vector<1x64x64xbf16> to vector<64x64xbf16>
      %c0_11 = arith.constant 0 : index
      %c0_12 = arith.constant 0 : index
      %c256 = arith.constant 256 : index
      %12 = vector.load %arg5[%c0_11, %c0_12, %c256] : memref<2x64x2560xbf16, #tpu.memory_space<vmem>>, vector<1x64x64xbf16>
      %13 = vector.shape_cast %12 : vector<1x64x64xbf16> to vector<64x64xbf16>
      %c0_13 = arith.constant 0 : index
      %c0_14 = arith.constant 0 : index
      %c320 = arith.constant 320 : index
      %14 = vector.load %arg5[%c0_13, %c0_14, %c320] : memref<2x64x2560xbf16, #tpu.memory_space<vmem>>, vector<1x64x64xbf16>
      %15 = vector.shape_cast %14 : vector<1x64x64xbf16> to vector<64x64xbf16>
      %c0_15 = arith.constant 0 : index
      %c0_16 = arith.constant 0 : index
      %c384 = arith.constant 384 : index
      %16 = vector.load %arg5[%c0_15, %c0_16, %c384] : memref<2x64x2560xbf16, #tpu.memory_space<vmem>>, vector<1x64x128xbf16>
      %17 = vector.shape_cast %16 : vector<1x64x128xbf16> to vector<64x128xbf16>
      %c0_17 = arith.constant 0 : index
      %c0_18 = arith.constant 0 : index
      %c512 = arith.constant 512 : index
      %18 = vector.load %arg5[%c0_17, %c0_18, %c512] : memref<2x64x2560xbf16, #tpu.memory_space<vmem>>, vector<1x64x2048xbf16>
      %19 = vector.shape_cast %18 : vector<1x64x2048xbf16> to vector<64x2048xbf16>
      %c0_19 = arith.constant 0 : index
      %c0_20 = arith.constant 0 : index
      %c0_21 = arith.constant 0 : index
      %20 = vector.load %arg6[%c0_19, %c0_20, %c0_21] : memref<2x2048x64xbf16, #tpu.memory_space<vmem>>, vector<1x2048x64xbf16>
      %21 = vector.shape_cast %20 : vector<1x2048x64xbf16> to vector<2048x64xbf16>
      %c0_22 = arith.constant 0 : index
      %c0_23 = arith.constant 0 : index
      %c0_24 = arith.constant 0 : index
      %22 = vector.load %arg7[%c0_22, %c0_23, %c0_24] : memref<2x1x3008xf32, #tpu.memory_space<vmem>>, vector<1x1x192xf32>
      %23 = vector.shape_cast %22 : vector<1x1x192xf32> to vector<1x192xf32>
      %c0_25 = arith.constant 0 : index
      %c0_26 = arith.constant 0 : index
      %c192_27 = arith.constant 192 : index
      %24 = vector.load %arg7[%c0_25, %c0_26, %c192_27] : memref<2x1x3008xf32, #tpu.memory_space<vmem>>, vector<1x1x64xf32>
      %25 = vector.shape_cast %24 : vector<1x1x64xf32> to vector<1x64xf32>
      %c0_28 = arith.constant 0 : index
      %c0_29 = arith.constant 0 : index
      %c256_30 = arith.constant 256 : index
      %26 = vector.load %arg7[%c0_28, %c0_29, %c256_30] : memref<2x1x3008xf32, #tpu.memory_space<vmem>>, vector<1x1x64xf32>
      %27 = vector.shape_cast %26 : vector<1x1x64xf32> to vector<1x64xf32>
      %c0_31 = arith.constant 0 : index
      %c0_32 = arith.constant 0 : index
      %c320_33 = arith.constant 320 : index
      %28 = vector.load %arg7[%c0_31, %c0_32, %c320_33] : memref<2x1x3008xf32, #tpu.memory_space<vmem>>, vector<1x1x64xf32>
      %29 = vector.shape_cast %28 : vector<1x1x64xf32> to vector<1x64xf32>
      %c0_34 = arith.constant 0 : index
      %c0_35 = arith.constant 0 : index
      %c384_36 = arith.constant 384 : index
      %30 = vector.load %arg7[%c0_34, %c0_35, %c384_36] : memref<2x1x3008xf32, #tpu.memory_space<vmem>>, vector<1x1x128xf32>
      %31 = vector.shape_cast %30 : vector<1x1x128xf32> to vector<1x128xf32>
      %c0_37 = arith.constant 0 : index
      %c0_38 = arith.constant 0 : index
      %c960 = arith.constant 960 : index
      %32 = vector.load %arg7[%c0_37, %c0_38, %c960] : memref<2x1x3008xf32, #tpu.memory_space<vmem>>, vector<1x1x2048xf32>
      %33 = vector.shape_cast %32 : vector<1x1x2048xf32> to vector<1x2048xf32>
      %c0_39 = arith.constant 0 : index
      %c0_40 = arith.constant 0 : index
      %c896 = arith.constant 896 : index
      %34 = vector.load %arg7[%c0_39, %c0_40, %c896] : memref<2x1x3008xf32, #tpu.memory_space<vmem>>, vector<1x1x64xf32>
      %35 = vector.shape_cast %34 : vector<1x1x64xf32> to vector<1x64xf32>
      %c0_41 = arith.constant 0 : index
      %c0_42 = arith.constant 0 : index
      %c512_43 = arith.constant 512 : index
      %36 = vector.load %arg7[%c0_41, %c0_42, %c512_43] : memref<2x1x3008xf32, #tpu.memory_space<vmem>>, vector<1x1x64xf32>
      %37 = vector.shape_cast %36 : vector<1x1x64xf32> to vector<1x64xf32>
      %c0_44 = arith.constant 0 : index
      %c0_45 = arith.constant 0 : index
      %c576 = arith.constant 576 : index
      %38 = vector.load %arg7[%c0_44, %c0_45, %c576] : memref<2x1x3008xf32, #tpu.memory_space<vmem>>, vector<1x1x64xf32>
      %39 = vector.shape_cast %38 : vector<1x1x64xf32> to vector<1x64xf32>
      %c0_46 = arith.constant 0 : index
      %c0_47 = arith.constant 0 : index
      %c640 = arith.constant 640 : index
      %40 = vector.load %arg7[%c0_46, %c0_47, %c640] : memref<2x1x3008xf32, #tpu.memory_space<vmem>>, vector<1x1x64xf32>
      %41 = vector.shape_cast %40 : vector<1x1x64xf32> to vector<1x64xf32>
      %c0_48 = arith.constant 0 : index
      %c0_49 = arith.constant 0 : index
      %c704 = arith.constant 704 : index
      %42 = vector.load %arg7[%c0_48, %c0_49, %c704] : memref<2x1x3008xf32, #tpu.memory_space<vmem>>, vector<1x1x64xf32>
      %43 = vector.shape_cast %42 : vector<1x1x64xf32> to vector<1x64xf32>
      %c0_50 = arith.constant 0 : index
      %c0_51 = arith.constant 0 : index
      %c768 = arith.constant 768 : index
      %44 = vector.load %arg7[%c0_50, %c0_51, %c768] : memref<2x1x3008xf32, #tpu.memory_space<vmem>>, vector<1x1x64xf32>
      %45 = vector.shape_cast %44 : vector<1x1x64xf32> to vector<1x64xf32>
      %c0_52 = arith.constant 0 : index
      %c0_53 = arith.constant 0 : index
      %c832 = arith.constant 832 : index
      %46 = vector.load %arg7[%c0_52, %c0_53, %c832] : memref<2x1x3008xf32, #tpu.memory_space<vmem>>, vector<1x1x64xf32>
      %47 = vector.shape_cast %46 : vector<1x1x64xf32> to vector<1x64xf32>
      %48 = arith.truncf %6 : vector<8x64xf32> to vector<8x64xbf16>
      %cst = arith.constant dense<0.000000e+00> : vector<8x192xf32>
      %49 = tpu.matmul %48, %9, %cst {dimension_numbers = #tpu.dot_dimension_numbers<[1], [0], [0], [1], [0, 0, 1, 1], [], []>} : vector<8x64xbf16>, vector<64x192xbf16>, vector<8x192xf32> -> vector<8x192xf32>
      %50 = vector.broadcast %23 : vector<1x192xf32> to vector<8x192xf32>
      %51 = arith.addf %49, %50 : vector<8x192xf32>
      %52 = vector.extract_strided_slice %51 {offsets = [0, 0], sizes = [8, 64], strides = [1, 1]} : vector<8x192xf32> to vector<8x64xf32>
      %53 = vector.extract_strided_slice %51 {offsets = [0, 64], sizes = [8, 64], strides = [1, 1]} : vector<8x192xf32> to vector<8x64xf32>
      %54 = vector.extract_strided_slice %51 {offsets = [0, 128], sizes = [8, 64], strides = [1, 1]} : vector<8x192xf32> to vector<8x64xf32>
      %55 = arith.truncf %52 : vector<8x64xf32> to vector<8x64xbf16>
      %56 = arith.truncf %53 : vector<8x64xf32> to vector<8x64xbf16>
      %57 = arith.truncf %54 : vector<8x64xf32> to vector<8x64xbf16>
      %58 = vector.extract_strided_slice %55 {offsets = [0, 0], sizes = [8, 16], strides = [1, 1]} : vector<8x64xbf16> to vector<8x16xbf16>
      %59 = vector.extract_strided_slice %56 {offsets = [0, 0], sizes = [8, 16], strides = [1, 1]} : vector<8x64xbf16> to vector<8x16xbf16>
      "tpu.trace_start"() <{level = 10 : i32, message = "qd,kd->qk"}> : () -> ()
      %cst_54 = arith.constant dense<0.000000e+00> : vector<8x8xf32>
      %60 = tpu.matmul %58, %59, %cst_54 {dimension_numbers = #tpu.dot_dimension_numbers<[1], [1], [0], [0], [0, 0, 1, 0], [], []>} : vector<8x16xbf16>, vector<8x16xbf16>, vector<8x8xf32> -> vector<8x8xf32>
      "tpu.trace_stop"() : () -> ()
      %cst_55 = arith.constant 2.500000e-01 : f32
      %61 = vector.broadcast %cst_55 : f32 to vector<8x8xf32>
      %62 = arith.mulf %60, %61 : vector<8x8xf32>
      %cst_56 = arith.constant dense<0xFF800000> : vector<8xf32>
      %63 = vector.multi_reduction <maximumf>, %62, %cst_56 [1] : vector<8x8xf32> to vector<8xf32>
      %64 = vector.shape_cast %63 : vector<8xf32> to vector<8x1xf32>
      %65 = vector.broadcast %64 : vector<8x1xf32> to vector<8x8xf32>
      %66 = arith.subf %62, %65 : vector<8x8xf32>
      %67 = math.exp %66 : vector<8x8xf32>
      %cst_57 = arith.constant dense<0.000000e+00> : vector<8xf32>
      %68 = vector.multi_reduction <add>, %67, %cst_57 [1] : vector<8x8xf32> to vector<8xf32>
      %69 = vector.shape_cast %68 : vector<8xf32> to vector<8x1xf32>
      %70 = tpu.reciprocal %69 {approx = true} : vector<8x1xf32> -> vector<8x1xf32>
      %71 = vector.broadcast %70 : vector<8x1xf32> to vector<8x8xf32>
      %72 = arith.mulf %67, %71 : vector<8x8xf32>
      %73 = arith.truncf %72 : vector<8x8xf32> to vector<8x8xbf16>
      %74 = vector.extract_strided_slice %57 {offsets = [0, 0], sizes = [8, 16], strides = [1, 1]} : vector<8x64xbf16> to vector<8x16xbf16>
      %cst_58 = arith.constant dense<0.000000e+00> : vector<8x16xf32>
      %75 = tpu.matmul %73, %74, %cst_58 {dimension_numbers = #tpu.dot_dimension_numbers<[1], [0], [0], [1], [0, 0, 1, 1], [], []>} : vector<8x8xbf16>, vector<8x16xbf16>, vector<8x16xf32> -> vector<8x16xf32>
      %76 = vector.extract_strided_slice %55 {offsets = [0, 16], sizes = [8, 16], strides = [1, 1]} : vector<8x64xbf16> to vector<8x16xbf16>
      %77 = vector.extract_strided_slice %56 {offsets = [0, 16], sizes = [8, 16], strides = [1, 1]} : vector<8x64xbf16> to vector<8x16xbf16>
      "tpu.trace_start"() <{level = 10 : i32, message = "qd,kd->qk"}> : () -> ()
      %cst_59 = arith.constant dense<0.000000e+00> : vector<8x8xf32>
      %78 = tpu.matmul %76, %77, %cst_59 {dimension_numbers = #tpu.dot_dimension_numbers<[1], [1], [0], [0], [0, 0, 1, 0], [], []>} : vector<8x16xbf16>, vector<8x16xbf16>, vector<8x8xf32> -> vector<8x8xf32>
      "tpu.trace_stop"() : () -> ()
      %cst_60 = arith.constant 2.500000e-01 : f32
      %79 = vector.broadcast %cst_60 : f32 to vector<8x8xf32>
      %80 = arith.mulf %78, %79 : vector<8x8xf32>
      %cst_61 = arith.constant dense<0xFF800000> : vector<8xf32>
      %81 = vector.multi_reduction <maximumf>, %80, %cst_61 [1] : vector<8x8xf32> to vector<8xf32>
      %82 = vector.shape_cast %81 : vector<8xf32> to vector<8x1xf32>
      %83 = vector.broadcast %82 : vector<8x1xf32> to vector<8x8xf32>
      %84 = arith.subf %80, %83 : vector<8x8xf32>
      %85 = math.exp %84 : vector<8x8xf32>
      %cst_62 = arith.constant dense<0.000000e+00> : vector<8xf32>
      %86 = vector.multi_reduction <add>, %85, %cst_62 [1] : vector<8x8xf32> to vector<8xf32>
      %87 = vector.shape_cast %86 : vector<8xf32> to vector<8x1xf32>
      %88 = tpu.reciprocal %87 {approx = true} : vector<8x1xf32> -> vector<8x1xf32>
      %89 = vector.broadcast %88 : vector<8x1xf32> to vector<8x8xf32>
      %90 = arith.mulf %85, %89 : vector<8x8xf32>
      %91 = arith.truncf %90 : vector<8x8xf32> to vector<8x8xbf16>
      %92 = vector.extract_strided_slice %57 {offsets = [0, 16], sizes = [8, 16], strides = [1, 1]} : vector<8x64xbf16> to vector<8x16xbf16>
      %cst_63 = arith.constant dense<0.000000e+00> : vector<8x16xf32>
      %93 = tpu.matmul %91, %92, %cst_63 {dimension_numbers = #tpu.dot_dimension_numbers<[1], [0], [0], [1], [0, 0, 1, 1], [], []>} : vector<8x8xbf16>, vector<8x16xbf16>, vector<8x16xf32> -> vector<8x16xf32>
      %94 = vector.extract_strided_slice %55 {offsets = [0, 32], sizes = [8, 16], strides = [1, 1]} : vector<8x64xbf16> to vector<8x16xbf16>
      %95 = vector.extract_strided_slice %56 {offsets = [0, 32], sizes = [8, 16], strides = [1, 1]} : vector<8x64xbf16> to vector<8x16xbf16>
      "tpu.trace_start"() <{level = 10 : i32, message = "qd,kd->qk"}> : () -> ()
      %cst_64 = arith.constant dense<0.000000e+00> : vector<8x8xf32>
      %96 = tpu.matmul %94, %95, %cst_64 {dimension_numbers = #tpu.dot_dimension_numbers<[1], [1], [0], [0], [0, 0, 1, 0], [], []>} : vector<8x16xbf16>, vector<8x16xbf16>, vector<8x8xf32> -> vector<8x8xf32>
      "tpu.trace_stop"() : () -> ()
      %cst_65 = arith.constant 2.500000e-01 : f32
      %97 = vector.broadcast %cst_65 : f32 to vector<8x8xf32>
      %98 = arith.mulf %96, %97 : vector<8x8xf32>
      %cst_66 = arith.constant dense<0xFF800000> : vector<8xf32>
      %99 = vector.multi_reduction <maximumf>, %98, %cst_66 [1] : vector<8x8xf32> to vector<8xf32>
      %100 = vector.shape_cast %99 : vector<8xf32> to vector<8x1xf32>
      %101 = vector.broadcast %100 : vector<8x1xf32> to vector<8x8xf32>
      %102 = arith.subf %98, %101 : vector<8x8xf32>
      %103 = math.exp %102 : vector<8x8xf32>
      %cst_67 = arith.constant dense<0.000000e+00> : vector<8xf32>
      %104 = vector.multi_reduction <add>, %103, %cst_67 [1] : vector<8x8xf32> to vector<8xf32>
      %105 = vector.shape_cast %104 : vector<8xf32> to vector<8x1xf32>
      %106 = tpu.reciprocal %105 {approx = true} : vector<8x1xf32> -> vector<8x1xf32>
      %107 = vector.broadcast %106 : vector<8x1xf32> to vector<8x8xf32>
      %108 = arith.mulf %103, %107 : vector<8x8xf32>
      %109 = arith.truncf %108 : vector<8x8xf32> to vector<8x8xbf16>
      %110 = vector.extract_strided_slice %57 {offsets = [0, 32], sizes = [8, 16], strides = [1, 1]} : vector<8x64xbf16> to vector<8x16xbf16>
      %cst_68 = arith.constant dense<0.000000e+00> : vector<8x16xf32>
      %111 = tpu.matmul %109, %110, %cst_68 {dimension_numbers = #tpu.dot_dimension_numbers<[1], [0], [0], [1], [0, 0, 1, 1], [], []>} : vector<8x8xbf16>, vector<8x16xbf16>, vector<8x16xf32> -> vector<8x16xf32>
      %112 = vector.extract_strided_slice %55 {offsets = [0, 48], sizes = [8, 16], strides = [1, 1]} : vector<8x64xbf16> to vector<8x16xbf16>
      %113 = vector.extract_strided_slice %56 {offsets = [0, 48], sizes = [8, 16], strides = [1, 1]} : vector<8x64xbf16> to vector<8x16xbf16>
      "tpu.trace_start"() <{level = 10 : i32, message = "qd,kd->qk"}> : () -> ()
      %cst_69 = arith.constant dense<0.000000e+00> : vector<8x8xf32>
      %114 = tpu.matmul %112, %113, %cst_69 {dimension_numbers = #tpu.dot_dimension_numbers<[1], [1], [0], [0], [0, 0, 1, 0], [], []>} : vector<8x16xbf16>, vector<8x16xbf16>, vector<8x8xf32> -> vector<8x8xf32>
      "tpu.trace_stop"() : () -> ()
      %cst_70 = arith.constant 2.500000e-01 : f32
      %115 = vector.broadcast %cst_70 : f32 to vector<8x8xf32>
      %116 = arith.mulf %114, %115 : vector<8x8xf32>
      %cst_71 = arith.constant dense<0xFF800000> : vector<8xf32>
      %117 = vector.multi_reduction <maximumf>, %116, %cst_71 [1] : vector<8x8xf32> to vector<8xf32>
      %118 = vector.shape_cast %117 : vector<8xf32> to vector<8x1xf32>
      %119 = vector.broadcast %118 : vector<8x1xf32> to vector<8x8xf32>
      %120 = arith.subf %116, %119 : vector<8x8xf32>
      %121 = math.exp %120 : vector<8x8xf32>
      %cst_72 = arith.constant dense<0.000000e+00> : vector<8xf32>
      %122 = vector.multi_reduction <add>, %121, %cst_72 [1] : vector<8x8xf32> to vector<8xf32>
      %123 = vector.shape_cast %122 : vector<8xf32> to vector<8x1xf32>
      %124 = tpu.reciprocal %123 {approx = true} : vector<8x1xf32> -> vector<8x1xf32>
      %125 = vector.broadcast %124 : vector<8x1xf32> to vector<8x8xf32>
      %126 = arith.mulf %121, %125 : vector<8x8xf32>
      %127 = arith.truncf %126 : vector<8x8xf32> to vector<8x8xbf16>
      %128 = vector.extract_strided_slice %57 {offsets = [0, 48], sizes = [8, 16], strides = [1, 1]} : vector<8x64xbf16> to vector<8x16xbf16>
      %cst_73 = arith.constant dense<0.000000e+00> : vector<8x16xf32>
      %129 = tpu.matmul %127, %128, %cst_73 {dimension_numbers = #tpu.dot_dimension_numbers<[1], [0], [0], [1], [0, 0, 1, 1], [], []>} : vector<8x8xbf16>, vector<8x16xbf16>, vector<8x16xf32> -> vector<8x16xf32>
      %130 = tpu.concatenate %75, %93, %111, %129 in 1 : vector<8x16xf32>, vector<8x16xf32>, vector<8x16xf32>, vector<8x16xf32> -> vector<8x64xf32>
      %131 = arith.truncf %130 : vector<8x64xf32> to vector<8x64xbf16>
      %cst_74 = arith.constant dense<0.000000e+00> : vector<8x64xf32>
      %132 = tpu.matmul %131, %11, %cst_74 {dimension_numbers = #tpu.dot_dimension_numbers<[1], [0], [0], [1], [0, 0, 1, 1], [], []>} : vector<8x64xbf16>, vector<64x64xbf16>, vector<8x64xf32> -> vector<8x64xf32>
      %133 = vector.broadcast %25 : vector<1x64xf32> to vector<8x64xf32>
      %134 = arith.addf %132, %133 : vector<8x64xf32>
      %135 = arith.addf %6, %134 : vector<8x64xf32>
      %cst_75 = arith.constant dense<0.000000e+00> : vector<8xf32>
      %136 = vector.multi_reduction <add>, %135, %cst_75 [1] : vector<8x64xf32> to vector<8xf32>
      %137 = vector.shape_cast %136 : vector<8xf32> to vector<8x1xf32>
      %cst_76 = arith.constant 6.400000e+01 : f32
      %138 = vector.broadcast %cst_76 : f32 to vector<8x1xf32>
      %139 = arith.divf %137, %138 : vector<8x1xf32>
      %140 = vector.broadcast %139 : vector<8x1xf32> to vector<8x64xf32>
      %141 = arith.subf %135, %140 : vector<8x64xf32>
      %142 = arith.mulf %141, %141 : vector<8x64xf32>
      %cst_77 = arith.constant dense<0.000000e+00> : vector<8xf32>
      %143 = vector.multi_reduction <add>, %142, %cst_77 [1] : vector<8x64xf32> to vector<8xf32>
      %144 = vector.shape_cast %143 : vector<8xf32> to vector<8x1xf32>
      %cst_78 = arith.constant 6.400000e+01 : f32
      %145 = vector.broadcast %cst_78 : f32 to vector<8x1xf32>
      %146 = arith.divf %144, %145 : vector<8x1xf32>
      %147 = vector.broadcast %139 : vector<8x1xf32> to vector<8x64xf32>
      %148 = arith.subf %135, %147 : vector<8x64xf32>
      %cst_79 = arith.constant 9.99999974E-6 : f32
      %149 = vector.broadcast %cst_79 : f32 to vector<8x1xf32>
      %150 = arith.addf %146, %149 : vector<8x1xf32>
      %151 = math.rsqrt %150 : vector<8x1xf32>
      %152 = vector.broadcast %151 : vector<8x1xf32> to vector<8x64xf32>
      %153 = arith.mulf %148, %152 : vector<8x64xf32>
      %154 = vector.broadcast %37 : vector<1x64xf32> to vector<8x64xf32>
      %155 = arith.mulf %153, %154 : vector<8x64xf32>
      %156 = vector.broadcast %39 : vector<1x64xf32> to vector<8x64xf32>
      %157 = arith.addf %155, %156 : vector<8x64xf32>
      %158 = arith.truncf %157 : vector<8x64xf32> to vector<8x64xbf16>
      %cst_80 = arith.constant dense<0.000000e+00> : vector<8x64xf32>
      %159 = tpu.matmul %158, %13, %cst_80 {dimension_numbers = #tpu.dot_dimension_numbers<[1], [0], [0], [1], [0, 0, 1, 1], [], []>} : vector<8x64xbf16>, vector<64x64xbf16>, vector<8x64xf32> -> vector<8x64xf32>
      %160 = vector.broadcast %27 : vector<1x64xf32> to vector<8x64xf32>
      %161 = arith.addf %159, %160 : vector<8x64xf32>
      %162 = arith.truncf %7 : vector<8x64xf32> to vector<8x64xbf16>
      %cst_81 = arith.constant dense<0.000000e+00> : vector<8x128xf32>
      %163 = tpu.matmul %162, %17, %cst_81 {dimension_numbers = #tpu.dot_dimension_numbers<[1], [0], [0], [1], [0, 0, 1, 1], [], []>} : vector<8x64xbf16>, vector<64x128xbf16>, vector<8x128xf32> -> vector<8x128xf32>
      %164 = vector.broadcast %31 : vector<1x128xf32> to vector<8x128xf32>
      %165 = arith.addf %163, %164 : vector<8x128xf32>
      %166 = vector.extract_strided_slice %165 {offsets = [0, 0], sizes = [8, 64], strides = [1, 1]} : vector<8x128xf32> to vector<8x64xf32>
      %167 = vector.extract_strided_slice %165 {offsets = [0, 64], sizes = [8, 64], strides = [1, 1]} : vector<8x128xf32> to vector<8x64xf32>
      %168 = arith.truncf %161 : vector<8x64xf32> to vector<8x64xbf16>
      %169 = arith.truncf %166 : vector<8x64xf32> to vector<8x64xbf16>
      %170 = arith.truncf %167 : vector<8x64xf32> to vector<8x64xbf16>
      %171 = vector.extract_strided_slice %168 {offsets = [0, 0], sizes = [8, 16], strides = [1, 1]} : vector<8x64xbf16> to vector<8x16xbf16>
      %172 = vector.extract_strided_slice %169 {offsets = [0, 0], sizes = [8, 16], strides = [1, 1]} : vector<8x64xbf16> to vector<8x16xbf16>
      "tpu.trace_start"() <{level = 10 : i32, message = "qd,kd->qk"}> : () -> ()
      %cst_82 = arith.constant dense<0.000000e+00> : vector<8x8xf32>
      %173 = tpu.matmul %171, %172, %cst_82 {dimension_numbers = #tpu.dot_dimension_numbers<[1], [1], [0], [0], [0, 0, 1, 0], [], []>} : vector<8x16xbf16>, vector<8x16xbf16>, vector<8x8xf32> -> vector<8x8xf32>
      "tpu.trace_stop"() : () -> ()
      %cst_83 = arith.constant 2.500000e-01 : f32
      %174 = vector.broadcast %cst_83 : f32 to vector<8x8xf32>
      %175 = arith.mulf %173, %174 : vector<8x8xf32>
      %cst_84 = arith.constant dense<0xFF800000> : vector<8xf32>
      %176 = vector.multi_reduction <maximumf>, %175, %cst_84 [1] : vector<8x8xf32> to vector<8xf32>
      %177 = vector.shape_cast %176 : vector<8xf32> to vector<8x1xf32>
      %178 = vector.broadcast %177 : vector<8x1xf32> to vector<8x8xf32>
      %179 = arith.subf %175, %178 : vector<8x8xf32>
      %180 = math.exp %179 : vector<8x8xf32>
      %cst_85 = arith.constant dense<0.000000e+00> : vector<8xf32>
      %181 = vector.multi_reduction <add>, %180, %cst_85 [1] : vector<8x8xf32> to vector<8xf32>
      %182 = vector.shape_cast %181 : vector<8xf32> to vector<8x1xf32>
      %183 = tpu.reciprocal %182 {approx = true} : vector<8x1xf32> -> vector<8x1xf32>
      %184 = vector.broadcast %183 : vector<8x1xf32> to vector<8x8xf32>
      %185 = arith.mulf %180, %184 : vector<8x8xf32>
      %186 = arith.truncf %185 : vector<8x8xf32> to vector<8x8xbf16>
      %187 = vector.extract_strided_slice %170 {offsets = [0, 0], sizes = [8, 16], strides = [1, 1]} : vector<8x64xbf16> to vector<8x16xbf16>
      %cst_86 = arith.constant dense<0.000000e+00> : vector<8x16xf32>
      %188 = tpu.matmul %186, %187, %cst_86 {dimension_numbers = #tpu.dot_dimension_numbers<[1], [0], [0], [1], [0, 0, 1, 1], [], []>} : vector<8x8xbf16>, vector<8x16xbf16>, vector<8x16xf32> -> vector<8x16xf32>
      %189 = vector.extract_strided_slice %168 {offsets = [0, 16], sizes = [8, 16], strides = [1, 1]} : vector<8x64xbf16> to vector<8x16xbf16>
      %190 = vector.extract_strided_slice %169 {offsets = [0, 16], sizes = [8, 16], strides = [1, 1]} : vector<8x64xbf16> to vector<8x16xbf16>
      "tpu.trace_start"() <{level = 10 : i32, message = "qd,kd->qk"}> : () -> ()
      %cst_87 = arith.constant dense<0.000000e+00> : vector<8x8xf32>
      %191 = tpu.matmul %189, %190, %cst_87 {dimension_numbers = #tpu.dot_dimension_numbers<[1], [1], [0], [0], [0, 0, 1, 0], [], []>} : vector<8x16xbf16>, vector<8x16xbf16>, vector<8x8xf32> -> vector<8x8xf32>
      "tpu.trace_stop"() : () -> ()
      %cst_88 = arith.constant 2.500000e-01 : f32
      %192 = vector.broadcast %cst_88 : f32 to vector<8x8xf32>
      %193 = arith.mulf %191, %192 : vector<8x8xf32>
      %cst_89 = arith.constant dense<0xFF800000> : vector<8xf32>
      %194 = vector.multi_reduction <maximumf>, %193, %cst_89 [1] : vector<8x8xf32> to vector<8xf32>
      %195 = vector.shape_cast %194 : vector<8xf32> to vector<8x1xf32>
      %196 = vector.broadcast %195 : vector<8x1xf32> to vector<8x8xf32>
      %197 = arith.subf %193, %196 : vector<8x8xf32>
      %198 = math.exp %197 : vector<8x8xf32>
      %cst_90 = arith.constant dense<0.000000e+00> : vector<8xf32>
      %199 = vector.multi_reduction <add>, %198, %cst_90 [1] : vector<8x8xf32> to vector<8xf32>
      %200 = vector.shape_cast %199 : vector<8xf32> to vector<8x1xf32>
      %201 = tpu.reciprocal %200 {approx = true} : vector<8x1xf32> -> vector<8x1xf32>
      %202 = vector.broadcast %201 : vector<8x1xf32> to vector<8x8xf32>
      %203 = arith.mulf %198, %202 : vector<8x8xf32>
      %204 = arith.truncf %203 : vector<8x8xf32> to vector<8x8xbf16>
      %205 = vector.extract_strided_slice %170 {offsets = [0, 16], sizes = [8, 16], strides = [1, 1]} : vector<8x64xbf16> to vector<8x16xbf16>
      %cst_91 = arith.constant dense<0.000000e+00> : vector<8x16xf32>
      %206 = tpu.matmul %204, %205, %cst_91 {dimension_numbers = #tpu.dot_dimension_numbers<[1], [0], [0], [1], [0, 0, 1, 1], [], []>} : vector<8x8xbf16>, vector<8x16xbf16>, vector<8x16xf32> -> vector<8x16xf32>
      %207 = vector.extract_strided_slice %168 {offsets = [0, 32], sizes = [8, 16], strides = [1, 1]} : vector<8x64xbf16> to vector<8x16xbf16>
      %208 = vector.extract_strided_slice %169 {offsets = [0, 32], sizes = [8, 16], strides = [1, 1]} : vector<8x64xbf16> to vector<8x16xbf16>
      "tpu.trace_start"() <{level = 10 : i32, message = "qd,kd->qk"}> : () -> ()
      %cst_92 = arith.constant dense<0.000000e+00> : vector<8x8xf32>
      %209 = tpu.matmul %207, %208, %cst_92 {dimension_numbers = #tpu.dot_dimension_numbers<[1], [1], [0], [0], [0, 0, 1, 0], [], []>} : vector<8x16xbf16>, vector<8x16xbf16>, vector<8x8xf32> -> vector<8x8xf32>
      "tpu.trace_stop"() : () -> ()
      %cst_93 = arith.constant 2.500000e-01 : f32
      %210 = vector.broadcast %cst_93 : f32 to vector<8x8xf32>
      %211 = arith.mulf %209, %210 : vector<8x8xf32>
      %cst_94 = arith.constant dense<0xFF800000> : vector<8xf32>
      %212 = vector.multi_reduction <maximumf>, %211, %cst_94 [1] : vector<8x8xf32> to vector<8xf32>
      %213 = vector.shape_cast %212 : vector<8xf32> to vector<8x1xf32>
      %214 = vector.broadcast %213 : vector<8x1xf32> to vector<8x8xf32>
      %215 = arith.subf %211, %214 : vector<8x8xf32>
      %216 = math.exp %215 : vector<8x8xf32>
      %cst_95 = arith.constant dense<0.000000e+00> : vector<8xf32>
      %217 = vector.multi_reduction <add>, %216, %cst_95 [1] : vector<8x8xf32> to vector<8xf32>
      %218 = vector.shape_cast %217 : vector<8xf32> to vector<8x1xf32>
      %219 = tpu.reciprocal %218 {approx = true} : vector<8x1xf32> -> vector<8x1xf32>
      %220 = vector.broadcast %219 : vector<8x1xf32> to vector<8x8xf32>
      %221 = arith.mulf %216, %220 : vector<8x8xf32>
      %222 = arith.truncf %221 : vector<8x8xf32> to vector<8x8xbf16>
      %223 = vector.extract_strided_slice %170 {offsets = [0, 32], sizes = [8, 16], strides = [1, 1]} : vector<8x64xbf16> to vector<8x16xbf16>
      %cst_96 = arith.constant dense<0.000000e+00> : vector<8x16xf32>
      %224 = tpu.matmul %222, %223, %cst_96 {dimension_numbers = #tpu.dot_dimension_numbers<[1], [0], [0], [1], [0, 0, 1, 1], [], []>} : vector<8x8xbf16>, vector<8x16xbf16>, vector<8x16xf32> -> vector<8x16xf32>
      %225 = vector.extract_strided_slice %168 {offsets = [0, 48], sizes = [8, 16], strides = [1, 1]} : vector<8x64xbf16> to vector<8x16xbf16>
      %226 = vector.extract_strided_slice %169 {offsets = [0, 48], sizes = [8, 16], strides = [1, 1]} : vector<8x64xbf16> to vector<8x16xbf16>
      "tpu.trace_start"() <{level = 10 : i32, message = "qd,kd->qk"}> : () -> ()
      %cst_97 = arith.constant dense<0.000000e+00> : vector<8x8xf32>
      %227 = tpu.matmul %225, %226, %cst_97 {dimension_numbers = #tpu.dot_dimension_numbers<[1], [1], [0], [0], [0, 0, 1, 0], [], []>} : vector<8x16xbf16>, vector<8x16xbf16>, vector<8x8xf32> -> vector<8x8xf32>
      "tpu.trace_stop"() : () -> ()
      %cst_98 = arith.constant 2.500000e-01 : f32
      %228 = vector.broadcast %cst_98 : f32 to vector<8x8xf32>
      %229 = arith.mulf %227, %228 : vector<8x8xf32>
      %cst_99 = arith.constant dense<0xFF800000> : vector<8xf32>
      %230 = vector.multi_reduction <maximumf>, %229, %cst_99 [1] : vector<8x8xf32> to vector<8xf32>
      %231 = vector.shape_cast %230 : vector<8xf32> to vector<8x1xf32>
      %232 = vector.broadcast %231 : vector<8x1xf32> to vector<8x8xf32>
      %233 = arith.subf %229, %232 : vector<8x8xf32>
      %234 = math.exp %233 : vector<8x8xf32>
      %cst_100 = arith.constant dense<0.000000e+00> : vector<8xf32>
      %235 = vector.multi_reduction <add>, %234, %cst_100 [1] : vector<8x8xf32> to vector<8xf32>
      %236 = vector.shape_cast %235 : vector<8xf32> to vector<8x1xf32>
      %237 = tpu.reciprocal %236 {approx = true} : vector<8x1xf32> -> vector<8x1xf32>
      %238 = vector.broadcast %237 : vector<8x1xf32> to vector<8x8xf32>
      %239 = arith.mulf %234, %238 : vector<8x8xf32>
      %240 = arith.truncf %239 : vector<8x8xf32> to vector<8x8xbf16>
      %241 = vector.extract_strided_slice %170 {offsets = [0, 48], sizes = [8, 16], strides = [1, 1]} : vector<8x64xbf16> to vector<8x16xbf16>
      %cst_101 = arith.constant dense<0.000000e+00> : vector<8x16xf32>
      %242 = tpu.matmul %240, %241, %cst_101 {dimension_numbers = #tpu.dot_dimension_numbers<[1], [0], [0], [1], [0, 0, 1, 1], [], []>} : vector<8x8xbf16>, vector<8x16xbf16>, vector<8x16xf32> -> vector<8x16xf32>
      %243 = tpu.concatenate %188, %206, %224, %242 in 1 : vector<8x16xf32>, vector<8x16xf32>, vector<8x16xf32>, vector<8x16xf32> -> vector<8x64xf32>
      %244 = arith.truncf %243 : vector<8x64xf32> to vector<8x64xbf16>
      %cst_102 = arith.constant dense<0.000000e+00> : vector<8x64xf32>
      %245 = tpu.matmul %244, %15, %cst_102 {dimension_numbers = #tpu.dot_dimension_numbers<[1], [0], [0], [1], [0, 0, 1, 1], [], []>} : vector<8x64xbf16>, vector<64x64xbf16>, vector<8x64xf32> -> vector<8x64xf32>
      %246 = vector.broadcast %29 : vector<1x64xf32> to vector<8x64xf32>
      %247 = arith.addf %245, %246 : vector<8x64xf32>
      %248 = arith.addf %157, %247 : vector<8x64xf32>
      %cst_103 = arith.constant dense<0.000000e+00> : vector<8xf32>
      %249 = vector.multi_reduction <add>, %248, %cst_103 [1] : vector<8x64xf32> to vector<8xf32>
      %250 = vector.shape_cast %249 : vector<8xf32> to vector<8x1xf32>
      %cst_104 = arith.constant 6.400000e+01 : f32
      %251 = vector.broadcast %cst_104 : f32 to vector<8x1xf32>
      %252 = arith.divf %250, %251 : vector<8x1xf32>
      %253 = vector.broadcast %252 : vector<8x1xf32> to vector<8x64xf32>
      %254 = arith.subf %248, %253 : vector<8x64xf32>
      %255 = arith.mulf %254, %254 : vector<8x64xf32>
      %cst_105 = arith.constant dense<0.000000e+00> : vector<8xf32>
      %256 = vector.multi_reduction <add>, %255, %cst_105 [1] : vector<8x64xf32> to vector<8xf32>
      %257 = vector.shape_cast %256 : vector<8xf32> to vector<8x1xf32>
      %cst_106 = arith.constant 6.400000e+01 : f32
      %258 = vector.broadcast %cst_106 : f32 to vector<8x1xf32>
      %259 = arith.divf %257, %258 : vector<8x1xf32>
      %260 = vector.broadcast %252 : vector<8x1xf32> to vector<8x64xf32>
      %261 = arith.subf %248, %260 : vector<8x64xf32>
      %cst_107 = arith.constant 9.99999974E-6 : f32
      %262 = vector.broadcast %cst_107 : f32 to vector<8x1xf32>
      %263 = arith.addf %259, %262 : vector<8x1xf32>
      %264 = math.rsqrt %263 : vector<8x1xf32>
      %265 = vector.broadcast %264 : vector<8x1xf32> to vector<8x64xf32>
      %266 = arith.mulf %261, %265 : vector<8x64xf32>
      %267 = vector.broadcast %41 : vector<1x64xf32> to vector<8x64xf32>
      %268 = arith.mulf %266, %267 : vector<8x64xf32>
      %269 = vector.broadcast %43 : vector<1x64xf32> to vector<8x64xf32>
      %270 = arith.addf %268, %269 : vector<8x64xf32>
      %271 = arith.truncf %270 : vector<8x64xf32> to vector<8x64xbf16>
      %cst_108 = arith.constant dense<0.000000e+00> : vector<8x2048xf32>
      %272 = tpu.matmul %271, %19, %cst_108 {dimension_numbers = #tpu.dot_dimension_numbers<[1], [0], [0], [1], [0, 0, 1, 1], [], []>} : vector<8x64xbf16>, vector<64x2048xbf16>, vector<8x2048xf32> -> vector<8x2048xf32>
      %273 = vector.broadcast %33 : vector<1x2048xf32> to vector<8x2048xf32>
      %274 = arith.addf %272, %273 : vector<8x2048xf32>
      %cst_109 = arith.constant 0.000000e+00 : f32
      %275 = vector.broadcast %cst_109 : f32 to vector<8x2048xf32>
      %276 = arith.maximumf %274, %275 : vector<8x2048xf32>
      %277 = arith.truncf %276 : vector<8x2048xf32> to vector<8x2048xbf16>
      %cst_110 = arith.constant dense<0.000000e+00> : vector<8x64xf32>
      %278 = tpu.matmul %277, %21, %cst_110 {dimension_numbers = #tpu.dot_dimension_numbers<[1], [0], [0], [1], [0, 0, 1, 1], [], []>} : vector<8x2048xbf16>, vector<2048x64xbf16>, vector<8x64xf32> -> vector<8x64xf32>
      %279 = vector.broadcast %35 : vector<1x64xf32> to vector<8x64xf32>
      %280 = arith.addf %278, %279 : vector<8x64xf32>
      %281 = arith.addf %270, %280 : vector<8x64xf32>
      %cst_111 = arith.constant dense<0.000000e+00> : vector<8xf32>
      %282 = vector.multi_reduction <add>, %281, %cst_111 [1] : vector<8x64xf32> to vector<8xf32>
      %283 = vector.shape_cast %282 : vector<8xf32> to vector<8x1xf32>
      %cst_112 = arith.constant 6.400000e+01 : f32
      %284 = vector.broadcast %cst_112 : f32 to vector<8x1xf32>
      %285 = arith.divf %283, %284 : vector<8x1xf32>
      %286 = vector.broadcast %285 : vector<8x1xf32> to vector<8x64xf32>
      %287 = arith.subf %281, %286 : vector<8x64xf32>
      %288 = arith.mulf %287, %287 : vector<8x64xf32>
      %cst_113 = arith.constant dense<0.000000e+00> : vector<8xf32>
      %289 = vector.multi_reduction <add>, %288, %cst_113 [1] : vector<8x64xf32> to vector<8xf32>
      %290 = vector.shape_cast %289 : vector<8xf32> to vector<8x1xf32>
      %cst_114 = arith.constant 6.400000e+01 : f32
      %291 = vector.broadcast %cst_114 : f32 to vector<8x1xf32>
      %292 = arith.divf %290, %291 : vector<8x1xf32>
      %293 = vector.broadcast %285 : vector<8x1xf32> to vector<8x64xf32>
      %294 = arith.subf %281, %293 : vector<8x64xf32>
      %cst_115 = arith.constant 9.99999974E-6 : f32
      %295 = vector.broadcast %cst_115 : f32 to vector<8x1xf32>
      %296 = arith.addf %292, %295 : vector<8x1xf32>
      %297 = math.rsqrt %296 : vector<8x1xf32>
      %298 = vector.broadcast %297 : vector<8x1xf32> to vector<8x64xf32>
      %299 = arith.mulf %294, %298 : vector<8x64xf32>
      %300 = vector.broadcast %45 : vector<1x64xf32> to vector<8x64xf32>
      %301 = arith.mulf %299, %300 : vector<8x64xf32>
      %302 = vector.broadcast %47 : vector<1x64xf32> to vector<8x64xf32>
      %303 = arith.addf %301, %302 : vector<8x64xf32>
      %c1 = arith.constant 1 : index
      %c0_116 = arith.constant 0 : index
      %c0_117 = arith.constant 0 : index
      %304 = vector.load %arg5[%c1, %c0_116, %c0_117] : memref<2x64x2560xbf16, #tpu.memory_space<vmem>>, vector<1x64x192xbf16>
      %305 = vector.shape_cast %304 : vector<1x64x192xbf16> to vector<64x192xbf16>
      %c1_118 = arith.constant 1 : index
      %c0_119 = arith.constant 0 : index
      %c192_120 = arith.constant 192 : index
      %306 = vector.load %arg5[%c1_118, %c0_119, %c192_120] : memref<2x64x2560xbf16, #tpu.memory_space<vmem>>, vector<1x64x64xbf16>
      %307 = vector.shape_cast %306 : vector<1x64x64xbf16> to vector<64x64xbf16>
      %c1_121 = arith.constant 1 : index
      %c0_122 = arith.constant 0 : index
      %c256_123 = arith.constant 256 : index
      %308 = vector.load %arg5[%c1_121, %c0_122, %c256_123] : memref<2x64x2560xbf16, #tpu.memory_space<vmem>>, vector<1x64x64xbf16>
      %309 = vector.shape_cast %308 : vector<1x64x64xbf16> to vector<64x64xbf16>
      %c1_124 = arith.constant 1 : index
      %c0_125 = arith.constant 0 : index
      %c320_126 = arith.constant 320 : index
      %310 = vector.load %arg5[%c1_124, %c0_125, %c320_126] : memref<2x64x2560xbf16, #tpu.memory_space<vmem>>, vector<1x64x64xbf16>
      %311 = vector.shape_cast %310 : vector<1x64x64xbf16> to vector<64x64xbf16>
      %c1_127 = arith.constant 1 : index
      %c0_128 = arith.constant 0 : index
      %c384_129 = arith.constant 384 : index
      %312 = vector.load %arg5[%c1_127, %c0_128, %c384_129] : memref<2x64x2560xbf16, #tpu.memory_space<vmem>>, vector<1x64x128xbf16>
      %313 = vector.shape_cast %312 : vector<1x64x128xbf16> to vector<64x128xbf16>
      %c1_130 = arith.constant 1 : index
      %c0_131 = arith.constant 0 : index
      %c512_132 = arith.constant 512 : index
      %314 = vector.load %arg5[%c1_130, %c0_131, %c512_132] : memref<2x64x2560xbf16, #tpu.memory_space<vmem>>, vector<1x64x2048xbf16>
      %315 = vector.shape_cast %314 : vector<1x64x2048xbf16> to vector<64x2048xbf16>
      %c1_133 = arith.constant 1 : index
      %c0_134 = arith.constant 0 : index
      %c0_135 = arith.constant 0 : index
      %316 = vector.load %arg6[%c1_133, %c0_134, %c0_135] : memref<2x2048x64xbf16, #tpu.memory_space<vmem>>, vector<1x2048x64xbf16>
      %317 = vector.shape_cast %316 : vector<1x2048x64xbf16> to vector<2048x64xbf16>
      %c1_136 = arith.constant 1 : index
      %c0_137 = arith.constant 0 : index
      %c0_138 = arith.constant 0 : index
      %318 = vector.load %arg7[%c1_136, %c0_137, %c0_138] : memref<2x1x3008xf32, #tpu.memory_space<vmem>>, vector<1x1x192xf32>
      %319 = vector.shape_cast %318 : vector<1x1x192xf32> to vector<1x192xf32>
      %c1_139 = arith.constant 1 : index
      %c0_140 = arith.constant 0 : index
      %c192_141 = arith.constant 192 : index
      %320 = vector.load %arg7[%c1_139, %c0_140, %c192_141] : memref<2x1x3008xf32, #tpu.memory_space<vmem>>, vector<1x1x64xf32>
      %321 = vector.shape_cast %320 : vector<1x1x64xf32> to vector<1x64xf32>
      %c1_142 = arith.constant 1 : index
      %c0_143 = arith.constant 0 : index
      %c256_144 = arith.constant 256 : index
      %322 = vector.load %arg7[%c1_142, %c0_143, %c256_144] : memref<2x1x3008xf32, #tpu.memory_space<vmem>>, vector<1x1x64xf32>
      %323 = vector.shape_cast %322 : vector<1x1x64xf32> to vector<1x64xf32>
      %c1_145 = arith.constant 1 : index
      %c0_146 = arith.constant 0 : index
      %c320_147 = arith.constant 320 : index
      %324 = vector.load %arg7[%c1_145, %c0_146, %c320_147] : memref<2x1x3008xf32, #tpu.memory_space<vmem>>, vector<1x1x64xf32>
      %325 = vector.shape_cast %324 : vector<1x1x64xf32> to vector<1x64xf32>
      %c1_148 = arith.constant 1 : index
      %c0_149 = arith.constant 0 : index
      %c384_150 = arith.constant 384 : index
      %326 = vector.load %arg7[%c1_148, %c0_149, %c384_150] : memref<2x1x3008xf32, #tpu.memory_space<vmem>>, vector<1x1x128xf32>
      %327 = vector.shape_cast %326 : vector<1x1x128xf32> to vector<1x128xf32>
      %c1_151 = arith.constant 1 : index
      %c0_152 = arith.constant 0 : index
      %c960_153 = arith.constant 960 : index
      %328 = vector.load %arg7[%c1_151, %c0_152, %c960_153] : memref<2x1x3008xf32, #tpu.memory_space<vmem>>, vector<1x1x2048xf32>
      %329 = vector.shape_cast %328 : vector<1x1x2048xf32> to vector<1x2048xf32>
      %c1_154 = arith.constant 1 : index
      %c0_155 = arith.constant 0 : index
      %c896_156 = arith.constant 896 : index
      %330 = vector.load %arg7[%c1_154, %c0_155, %c896_156] : memref<2x1x3008xf32, #tpu.memory_space<vmem>>, vector<1x1x64xf32>
      %331 = vector.shape_cast %330 : vector<1x1x64xf32> to vector<1x64xf32>
      %c1_157 = arith.constant 1 : index
      %c0_158 = arith.constant 0 : index
      %c512_159 = arith.constant 512 : index
      %332 = vector.load %arg7[%c1_157, %c0_158, %c512_159] : memref<2x1x3008xf32, #tpu.memory_space<vmem>>, vector<1x1x64xf32>
      %333 = vector.shape_cast %332 : vector<1x1x64xf32> to vector<1x64xf32>
      %c1_160 = arith.constant 1 : index
      %c0_161 = arith.constant 0 : index
      %c576_162 = arith.constant 576 : index
      %334 = vector.load %arg7[%c1_160, %c0_161, %c576_162] : memref<2x1x3008xf32, #tpu.memory_space<vmem>>, vector<1x1x64xf32>
      %335 = vector.shape_cast %334 : vector<1x1x64xf32> to vector<1x64xf32>
      %c1_163 = arith.constant 1 : index
      %c0_164 = arith.constant 0 : index
      %c640_165 = arith.constant 640 : index
      %336 = vector.load %arg7[%c1_163, %c0_164, %c640_165] : memref<2x1x3008xf32, #tpu.memory_space<vmem>>, vector<1x1x64xf32>
      %337 = vector.shape_cast %336 : vector<1x1x64xf32> to vector<1x64xf32>
      %c1_166 = arith.constant 1 : index
      %c0_167 = arith.constant 0 : index
      %c704_168 = arith.constant 704 : index
      %338 = vector.load %arg7[%c1_166, %c0_167, %c704_168] : memref<2x1x3008xf32, #tpu.memory_space<vmem>>, vector<1x1x64xf32>
      %339 = vector.shape_cast %338 : vector<1x1x64xf32> to vector<1x64xf32>
      %c1_169 = arith.constant 1 : index
      %c0_170 = arith.constant 0 : index
      %c768_171 = arith.constant 768 : index
      %340 = vector.load %arg7[%c1_169, %c0_170, %c768_171] : memref<2x1x3008xf32, #tpu.memory_space<vmem>>, vector<1x1x64xf32>
      %341 = vector.shape_cast %340 : vector<1x1x64xf32> to vector<1x64xf32>
      %c1_172 = arith.constant 1 : index
      %c0_173 = arith.constant 0 : index
      %c832_174 = arith.constant 832 : index
      %342 = vector.load %arg7[%c1_172, %c0_173, %c832_174] : memref<2x1x3008xf32, #tpu.memory_space<vmem>>, vector<1x1x64xf32>
      %343 = vector.shape_cast %342 : vector<1x1x64xf32> to vector<1x64xf32>
      %344 = arith.truncf %303 : vector<8x64xf32> to vector<8x64xbf16>
      %cst_175 = arith.constant dense<0.000000e+00> : vector<8x192xf32>
      %345 = tpu.matmul %344, %305, %cst_175 {dimension_numbers = #tpu.dot_dimension_numbers<[1], [0], [0], [1], [0, 0, 1, 1], [], []>} : vector<8x64xbf16>, vector<64x192xbf16>, vector<8x192xf32> -> vector<8x192xf32>
      %346 = vector.broadcast %319 : vector<1x192xf32> to vector<8x192xf32>
      %347 = arith.addf %345, %346 : vector<8x192xf32>
      %348 = vector.extract_strided_slice %347 {offsets = [0, 0], sizes = [8, 64], strides = [1, 1]} : vector<8x192xf32> to vector<8x64xf32>
      %349 = vector.extract_strided_slice %347 {offsets = [0, 64], sizes = [8, 64], strides = [1, 1]} : vector<8x192xf32> to vector<8x64xf32>
      %350 = vector.extract_strided_slice %347 {offsets = [0, 128], sizes = [8, 64], strides = [1, 1]} : vector<8x192xf32> to vector<8x64xf32>
      %351 = arith.truncf %348 : vector<8x64xf32> to vector<8x64xbf16>
      %352 = arith.truncf %349 : vector<8x64xf32> to vector<8x64xbf16>
      %353 = arith.truncf %350 : vector<8x64xf32> to vector<8x64xbf16>
      %354 = vector.extract_strided_slice %351 {offsets = [0, 0], sizes = [8, 16], strides = [1, 1]} : vector<8x64xbf16> to vector<8x16xbf16>
      %355 = vector.extract_strided_slice %352 {offsets = [0, 0], sizes = [8, 16], strides = [1, 1]} : vector<8x64xbf16> to vector<8x16xbf16>
      "tpu.trace_start"() <{level = 10 : i32, message = "qd,kd->qk"}> : () -> ()
      %cst_176 = arith.constant dense<0.000000e+00> : vector<8x8xf32>
      %356 = tpu.matmul %354, %355, %cst_176 {dimension_numbers = #tpu.dot_dimension_numbers<[1], [1], [0], [0], [0, 0, 1, 0], [], []>} : vector<8x16xbf16>, vector<8x16xbf16>, vector<8x8xf32> -> vector<8x8xf32>
      "tpu.trace_stop"() : () -> ()
      %cst_177 = arith.constant 2.500000e-01 : f32
      %357 = vector.broadcast %cst_177 : f32 to vector<8x8xf32>
      %358 = arith.mulf %356, %357 : vector<8x8xf32>
      %cst_178 = arith.constant dense<0xFF800000> : vector<8xf32>
      %359 = vector.multi_reduction <maximumf>, %358, %cst_178 [1] : vector<8x8xf32> to vector<8xf32>
      %360 = vector.shape_cast %359 : vector<8xf32> to vector<8x1xf32>
      %361 = vector.broadcast %360 : vector<8x1xf32> to vector<8x8xf32>
      %362 = arith.subf %358, %361 : vector<8x8xf32>
      %363 = math.exp %362 : vector<8x8xf32>
      %cst_179 = arith.constant dense<0.000000e+00> : vector<8xf32>
      %364 = vector.multi_reduction <add>, %363, %cst_179 [1] : vector<8x8xf32> to vector<8xf32>
      %365 = vector.shape_cast %364 : vector<8xf32> to vector<8x1xf32>
      %366 = tpu.reciprocal %365 {approx = true} : vector<8x1xf32> -> vector<8x1xf32>
      %367 = vector.broadcast %366 : vector<8x1xf32> to vector<8x8xf32>
      %368 = arith.mulf %363, %367 : vector<8x8xf32>
      %369 = arith.truncf %368 : vector<8x8xf32> to vector<8x8xbf16>
      %370 = vector.extract_strided_slice %353 {offsets = [0, 0], sizes = [8, 16], strides = [1, 1]} : vector<8x64xbf16> to vector<8x16xbf16>
      %cst_180 = arith.constant dense<0.000000e+00> : vector<8x16xf32>
      %371 = tpu.matmul %369, %370, %cst_180 {dimension_numbers = #tpu.dot_dimension_numbers<[1], [0], [0], [1], [0, 0, 1, 1], [], []>} : vector<8x8xbf16>, vector<8x16xbf16>, vector<8x16xf32> -> vector<8x16xf32>
      %372 = vector.extract_strided_slice %351 {offsets = [0, 16], sizes = [8, 16], strides = [1, 1]} : vector<8x64xbf16> to vector<8x16xbf16>
      %373 = vector.extract_strided_slice %352 {offsets = [0, 16], sizes = [8, 16], strides = [1, 1]} : vector<8x64xbf16> to vector<8x16xbf16>
      "tpu.trace_start"() <{level = 10 : i32, message = "qd,kd->qk"}> : () -> ()
      %cst_181 = arith.constant dense<0.000000e+00> : vector<8x8xf32>
      %374 = tpu.matmul %372, %373, %cst_181 {dimension_numbers = #tpu.dot_dimension_numbers<[1], [1], [0], [0], [0, 0, 1, 0], [], []>} : vector<8x16xbf16>, vector<8x16xbf16>, vector<8x8xf32> -> vector<8x8xf32>
      "tpu.trace_stop"() : () -> ()
      %cst_182 = arith.constant 2.500000e-01 : f32
      %375 = vector.broadcast %cst_182 : f32 to vector<8x8xf32>
      %376 = arith.mulf %374, %375 : vector<8x8xf32>
      %cst_183 = arith.constant dense<0xFF800000> : vector<8xf32>
      %377 = vector.multi_reduction <maximumf>, %376, %cst_183 [1] : vector<8x8xf32> to vector<8xf32>
      %378 = vector.shape_cast %377 : vector<8xf32> to vector<8x1xf32>
      %379 = vector.broadcast %378 : vector<8x1xf32> to vector<8x8xf32>
      %380 = arith.subf %376, %379 : vector<8x8xf32>
      %381 = math.exp %380 : vector<8x8xf32>
      %cst_184 = arith.constant dense<0.000000e+00> : vector<8xf32>
      %382 = vector.multi_reduction <add>, %381, %cst_184 [1] : vector<8x8xf32> to vector<8xf32>
      %383 = vector.shape_cast %382 : vector<8xf32> to vector<8x1xf32>
      %384 = tpu.reciprocal %383 {approx = true} : vector<8x1xf32> -> vector<8x1xf32>
      %385 = vector.broadcast %384 : vector<8x1xf32> to vector<8x8xf32>
      %386 = arith.mulf %381, %385 : vector<8x8xf32>
      %387 = arith.truncf %386 : vector<8x8xf32> to vector<8x8xbf16>
      %388 = vector.extract_strided_slice %353 {offsets = [0, 16], sizes = [8, 16], strides = [1, 1]} : vector<8x64xbf16> to vector<8x16xbf16>
      %cst_185 = arith.constant dense<0.000000e+00> : vector<8x16xf32>
      %389 = tpu.matmul %387, %388, %cst_185 {dimension_numbers = #tpu.dot_dimension_numbers<[1], [0], [0], [1], [0, 0, 1, 1], [], []>} : vector<8x8xbf16>, vector<8x16xbf16>, vector<8x16xf32> -> vector<8x16xf32>
      %390 = vector.extract_strided_slice %351 {offsets = [0, 32], sizes = [8, 16], strides = [1, 1]} : vector<8x64xbf16> to vector<8x16xbf16>
      %391 = vector.extract_strided_slice %352 {offsets = [0, 32], sizes = [8, 16], strides = [1, 1]} : vector<8x64xbf16> to vector<8x16xbf16>
      "tpu.trace_start"() <{level = 10 : i32, message = "qd,kd->qk"}> : () -> ()
      %cst_186 = arith.constant dense<0.000000e+00> : vector<8x8xf32>
      %392 = tpu.matmul %390, %391, %cst_186 {dimension_numbers = #tpu.dot_dimension_numbers<[1], [1], [0], [0], [0, 0, 1, 0], [], []>} : vector<8x16xbf16>, vector<8x16xbf16>, vector<8x8xf32> -> vector<8x8xf32>
      "tpu.trace_stop"() : () -> ()
      %cst_187 = arith.constant 2.500000e-01 : f32
      %393 = vector.broadcast %cst_187 : f32 to vector<8x8xf32>
      %394 = arith.mulf %392, %393 : vector<8x8xf32>
      %cst_188 = arith.constant dense<0xFF800000> : vector<8xf32>
      %395 = vector.multi_reduction <maximumf>, %394, %cst_188 [1] : vector<8x8xf32> to vector<8xf32>
      %396 = vector.shape_cast %395 : vector<8xf32> to vector<8x1xf32>
      %397 = vector.broadcast %396 : vector<8x1xf32> to vector<8x8xf32>
      %398 = arith.subf %394, %397 : vector<8x8xf32>
      %399 = math.exp %398 : vector<8x8xf32>
      %cst_189 = arith.constant dense<0.000000e+00> : vector<8xf32>
      %400 = vector.multi_reduction <add>, %399, %cst_189 [1] : vector<8x8xf32> to vector<8xf32>
      %401 = vector.shape_cast %400 : vector<8xf32> to vector<8x1xf32>
      %402 = tpu.reciprocal %401 {approx = true} : vector<8x1xf32> -> vector<8x1xf32>
      %403 = vector.broadcast %402 : vector<8x1xf32> to vector<8x8xf32>
      %404 = arith.mulf %399, %403 : vector<8x8xf32>
      %405 = arith.truncf %404 : vector<8x8xf32> to vector<8x8xbf16>
      %406 = vector.extract_strided_slice %353 {offsets = [0, 32], sizes = [8, 16], strides = [1, 1]} : vector<8x64xbf16> to vector<8x16xbf16>
      %cst_190 = arith.constant dense<0.000000e+00> : vector<8x16xf32>
      %407 = tpu.matmul %405, %406, %cst_190 {dimension_numbers = #tpu.dot_dimension_numbers<[1], [0], [0], [1], [0, 0, 1, 1], [], []>} : vector<8x8xbf16>, vector<8x16xbf16>, vector<8x16xf32> -> vector<8x16xf32>
      %408 = vector.extract_strided_slice %351 {offsets = [0, 48], sizes = [8, 16], strides = [1, 1]} : vector<8x64xbf16> to vector<8x16xbf16>
      %409 = vector.extract_strided_slice %352 {offsets = [0, 48], sizes = [8, 16], strides = [1, 1]} : vector<8x64xbf16> to vector<8x16xbf16>
      "tpu.trace_start"() <{level = 10 : i32, message = "qd,kd->qk"}> : () -> ()
      %cst_191 = arith.constant dense<0.000000e+00> : vector<8x8xf32>
      %410 = tpu.matmul %408, %409, %cst_191 {dimension_numbers = #tpu.dot_dimension_numbers<[1], [1], [0], [0], [0, 0, 1, 0], [], []>} : vector<8x16xbf16>, vector<8x16xbf16>, vector<8x8xf32> -> vector<8x8xf32>
      "tpu.trace_stop"() : () -> ()
      %cst_192 = arith.constant 2.500000e-01 : f32
      %411 = vector.broadcast %cst_192 : f32 to vector<8x8xf32>
      %412 = arith.mulf %410, %411 : vector<8x8xf32>
      %cst_193 = arith.constant dense<0xFF800000> : vector<8xf32>
      %413 = vector.multi_reduction <maximumf>, %412, %cst_193 [1] : vector<8x8xf32> to vector<8xf32>
      %414 = vector.shape_cast %413 : vector<8xf32> to vector<8x1xf32>
      %415 = vector.broadcast %414 : vector<8x1xf32> to vector<8x8xf32>
      %416 = arith.subf %412, %415 : vector<8x8xf32>
      %417 = math.exp %416 : vector<8x8xf32>
      %cst_194 = arith.constant dense<0.000000e+00> : vector<8xf32>
      %418 = vector.multi_reduction <add>, %417, %cst_194 [1] : vector<8x8xf32> to vector<8xf32>
      %419 = vector.shape_cast %418 : vector<8xf32> to vector<8x1xf32>
      %420 = tpu.reciprocal %419 {approx = true} : vector<8x1xf32> -> vector<8x1xf32>
      %421 = vector.broadcast %420 : vector<8x1xf32> to vector<8x8xf32>
      %422 = arith.mulf %417, %421 : vector<8x8xf32>
      %423 = arith.truncf %422 : vector<8x8xf32> to vector<8x8xbf16>
      %424 = vector.extract_strided_slice %353 {offsets = [0, 48], sizes = [8, 16], strides = [1, 1]} : vector<8x64xbf16> to vector<8x16xbf16>
      %cst_195 = arith.constant dense<0.000000e+00> : vector<8x16xf32>
      %425 = tpu.matmul %423, %424, %cst_195 {dimension_numbers = #tpu.dot_dimension_numbers<[1], [0], [0], [1], [0, 0, 1, 1], [], []>} : vector<8x8xbf16>, vector<8x16xbf16>, vector<8x16xf32> -> vector<8x16xf32>
      %426 = tpu.concatenate %371, %389, %407, %425 in 1 : vector<8x16xf32>, vector<8x16xf32>, vector<8x16xf32>, vector<8x16xf32> -> vector<8x64xf32>
      %427 = arith.truncf %426 : vector<8x64xf32> to vector<8x64xbf16>
      %cst_196 = arith.constant dense<0.000000e+00> : vector<8x64xf32>
      %428 = tpu.matmul %427, %307, %cst_196 {dimension_numbers = #tpu.dot_dimension_numbers<[1], [0], [0], [1], [0, 0, 1, 1], [], []>} : vector<8x64xbf16>, vector<64x64xbf16>, vector<8x64xf32> -> vector<8x64xf32>
      %429 = vector.broadcast %321 : vector<1x64xf32> to vector<8x64xf32>
      %430 = arith.addf %428, %429 : vector<8x64xf32>
      %431 = arith.addf %303, %430 : vector<8x64xf32>
      %cst_197 = arith.constant dense<0.000000e+00> : vector<8xf32>
      %432 = vector.multi_reduction <add>, %431, %cst_197 [1] : vector<8x64xf32> to vector<8xf32>
      %433 = vector.shape_cast %432 : vector<8xf32> to vector<8x1xf32>
      %cst_198 = arith.constant 6.400000e+01 : f32
      %434 = vector.broadcast %cst_198 : f32 to vector<8x1xf32>
      %435 = arith.divf %433, %434 : vector<8x1xf32>
      %436 = vector.broadcast %435 : vector<8x1xf32> to vector<8x64xf32>
      %437 = arith.subf %431, %436 : vector<8x64xf32>
      %438 = arith.mulf %437, %437 : vector<8x64xf32>
      %cst_199 = arith.constant dense<0.000000e+00> : vector<8xf32>
      %439 = vector.multi_reduction <add>, %438, %cst_199 [1] : vector<8x64xf32> to vector<8xf32>
      %440 = vector.shape_cast %439 : vector<8xf32> to vector<8x1xf32>
      %cst_200 = arith.constant 6.400000e+01 : f32
      %441 = vector.broadcast %cst_200 : f32 to vector<8x1xf32>
      %442 = arith.divf %440, %441 : vector<8x1xf32>
      %443 = vector.broadcast %435 : vector<8x1xf32> to vector<8x64xf32>
      %444 = arith.subf %431, %443 : vector<8x64xf32>
      %cst_201 = arith.constant 9.99999974E-6 : f32
      %445 = vector.broadcast %cst_201 : f32 to vector<8x1xf32>
      %446 = arith.addf %442, %445 : vector<8x1xf32>
      %447 = math.rsqrt %446 : vector<8x1xf32>
      %448 = vector.broadcast %447 : vector<8x1xf32> to vector<8x64xf32>
      %449 = arith.mulf %444, %448 : vector<8x64xf32>
      %450 = vector.broadcast %333 : vector<1x64xf32> to vector<8x64xf32>
      %451 = arith.mulf %449, %450 : vector<8x64xf32>
      %452 = vector.broadcast %335 : vector<1x64xf32> to vector<8x64xf32>
      %453 = arith.addf %451, %452 : vector<8x64xf32>
      %454 = arith.truncf %453 : vector<8x64xf32> to vector<8x64xbf16>
      %cst_202 = arith.constant dense<0.000000e+00> : vector<8x64xf32>
      %455 = tpu.matmul %454, %309, %cst_202 {dimension_numbers = #tpu.dot_dimension_numbers<[1], [0], [0], [1], [0, 0, 1, 1], [], []>} : vector<8x64xbf16>, vector<64x64xbf16>, vector<8x64xf32> -> vector<8x64xf32>
      %456 = vector.broadcast %323 : vector<1x64xf32> to vector<8x64xf32>
      %457 = arith.addf %455, %456 : vector<8x64xf32>
      %458 = arith.truncf %7 : vector<8x64xf32> to vector<8x64xbf16>
      %cst_203 = arith.constant dense<0.000000e+00> : vector<8x128xf32>
      %459 = tpu.matmul %458, %313, %cst_203 {dimension_numbers = #tpu.dot_dimension_numbers<[1], [0], [0], [1], [0, 0, 1, 1], [], []>} : vector<8x64xbf16>, vector<64x128xbf16>, vector<8x128xf32> -> vector<8x128xf32>
      %460 = vector.broadcast %327 : vector<1x128xf32> to vector<8x128xf32>
      %461 = arith.addf %459, %460 : vector<8x128xf32>
      %462 = vector.extract_strided_slice %461 {offsets = [0, 0], sizes = [8, 64], strides = [1, 1]} : vector<8x128xf32> to vector<8x64xf32>
      %463 = vector.extract_strided_slice %461 {offsets = [0, 64], sizes = [8, 64], strides = [1, 1]} : vector<8x128xf32> to vector<8x64xf32>
      %464 = arith.truncf %457 : vector<8x64xf32> to vector<8x64xbf16>
      %465 = arith.truncf %462 : vector<8x64xf32> to vector<8x64xbf16>
      %466 = arith.truncf %463 : vector<8x64xf32> to vector<8x64xbf16>
      %467 = vector.extract_strided_slice %464 {offsets = [0, 0], sizes = [8, 16], strides = [1, 1]} : vector<8x64xbf16> to vector<8x16xbf16>
      %468 = vector.extract_strided_slice %465 {offsets = [0, 0], sizes = [8, 16], strides = [1, 1]} : vector<8x64xbf16> to vector<8x16xbf16>
      "tpu.trace_start"() <{level = 10 : i32, message = "qd,kd->qk"}> : () -> ()
      %cst_204 = arith.constant dense<0.000000e+00> : vector<8x8xf32>
      %469 = tpu.matmul %467, %468, %cst_204 {dimension_numbers = #tpu.dot_dimension_numbers<[1], [1], [0], [0], [0, 0, 1, 0], [], []>} : vector<8x16xbf16>, vector<8x16xbf16>, vector<8x8xf32> -> vector<8x8xf32>
      "tpu.trace_stop"() : () -> ()
      %cst_205 = arith.constant 2.500000e-01 : f32
      %470 = vector.broadcast %cst_205 : f32 to vector<8x8xf32>
      %471 = arith.mulf %469, %470 : vector<8x8xf32>
      %cst_206 = arith.constant dense<0xFF800000> : vector<8xf32>
      %472 = vector.multi_reduction <maximumf>, %471, %cst_206 [1] : vector<8x8xf32> to vector<8xf32>
      %473 = vector.shape_cast %472 : vector<8xf32> to vector<8x1xf32>
      %474 = vector.broadcast %473 : vector<8x1xf32> to vector<8x8xf32>
      %475 = arith.subf %471, %474 : vector<8x8xf32>
      %476 = math.exp %475 : vector<8x8xf32>
      %cst_207 = arith.constant dense<0.000000e+00> : vector<8xf32>
      %477 = vector.multi_reduction <add>, %476, %cst_207 [1] : vector<8x8xf32> to vector<8xf32>
      %478 = vector.shape_cast %477 : vector<8xf32> to vector<8x1xf32>
      %479 = tpu.reciprocal %478 {approx = true} : vector<8x1xf32> -> vector<8x1xf32>
      %480 = vector.broadcast %479 : vector<8x1xf32> to vector<8x8xf32>
      %481 = arith.mulf %476, %480 : vector<8x8xf32>
      %482 = arith.truncf %481 : vector<8x8xf32> to vector<8x8xbf16>
      %483 = vector.extract_strided_slice %466 {offsets = [0, 0], sizes = [8, 16], strides = [1, 1]} : vector<8x64xbf16> to vector<8x16xbf16>
      %cst_208 = arith.constant dense<0.000000e+00> : vector<8x16xf32>
      %484 = tpu.matmul %482, %483, %cst_208 {dimension_numbers = #tpu.dot_dimension_numbers<[1], [0], [0], [1], [0, 0, 1, 1], [], []>} : vector<8x8xbf16>, vector<8x16xbf16>, vector<8x16xf32> -> vector<8x16xf32>
      %485 = vector.extract_strided_slice %464 {offsets = [0, 16], sizes = [8, 16], strides = [1, 1]} : vector<8x64xbf16> to vector<8x16xbf16>
      %486 = vector.extract_strided_slice %465 {offsets = [0, 16], sizes = [8, 16], strides = [1, 1]} : vector<8x64xbf16> to vector<8x16xbf16>
      "tpu.trace_start"() <{level = 10 : i32, message = "qd,kd->qk"}> : () -> ()
      %cst_209 = arith.constant dense<0.000000e+00> : vector<8x8xf32>
      %487 = tpu.matmul %485, %486, %cst_209 {dimension_numbers = #tpu.dot_dimension_numbers<[1], [1], [0], [0], [0, 0, 1, 0], [], []>} : vector<8x16xbf16>, vector<8x16xbf16>, vector<8x8xf32> -> vector<8x8xf32>
      "tpu.trace_stop"() : () -> ()
      %cst_210 = arith.constant 2.500000e-01 : f32
      %488 = vector.broadcast %cst_210 : f32 to vector<8x8xf32>
      %489 = arith.mulf %487, %488 : vector<8x8xf32>
      %cst_211 = arith.constant dense<0xFF800000> : vector<8xf32>
      %490 = vector.multi_reduction <maximumf>, %489, %cst_211 [1] : vector<8x8xf32> to vector<8xf32>
      %491 = vector.shape_cast %490 : vector<8xf32> to vector<8x1xf32>
      %492 = vector.broadcast %491 : vector<8x1xf32> to vector<8x8xf32>
      %493 = arith.subf %489, %492 : vector<8x8xf32>
      %494 = math.exp %493 : vector<8x8xf32>
      %cst_212 = arith.constant dense<0.000000e+00> : vector<8xf32>
      %495 = vector.multi_reduction <add>, %494, %cst_212 [1] : vector<8x8xf32> to vector<8xf32>
      %496 = vector.shape_cast %495 : vector<8xf32> to vector<8x1xf32>
      %497 = tpu.reciprocal %496 {approx = true} : vector<8x1xf32> -> vector<8x1xf32>
      %498 = vector.broadcast %497 : vector<8x1xf32> to vector<8x8xf32>
      %499 = arith.mulf %494, %498 : vector<8x8xf32>
      %500 = arith.truncf %499 : vector<8x8xf32> to vector<8x8xbf16>
      %501 = vector.extract_strided_slice %466 {offsets = [0, 16], sizes = [8, 16], strides = [1, 1]} : vector<8x64xbf16> to vector<8x16xbf16>
      %cst_213 = arith.constant dense<0.000000e+00> : vector<8x16xf32>
      %502 = tpu.matmul %500, %501, %cst_213 {dimension_numbers = #tpu.dot_dimension_numbers<[1], [0], [0], [1], [0, 0, 1, 1], [], []>} : vector<8x8xbf16>, vector<8x16xbf16>, vector<8x16xf32> -> vector<8x16xf32>
      %503 = vector.extract_strided_slice %464 {offsets = [0, 32], sizes = [8, 16], strides = [1, 1]} : vector<8x64xbf16> to vector<8x16xbf16>
      %504 = vector.extract_strided_slice %465 {offsets = [0, 32], sizes = [8, 16], strides = [1, 1]} : vector<8x64xbf16> to vector<8x16xbf16>
      "tpu.trace_start"() <{level = 10 : i32, message = "qd,kd->qk"}> : () -> ()
      %cst_214 = arith.constant dense<0.000000e+00> : vector<8x8xf32>
      %505 = tpu.matmul %503, %504, %cst_214 {dimension_numbers = #tpu.dot_dimension_numbers<[1], [1], [0], [0], [0, 0, 1, 0], [], []>} : vector<8x16xbf16>, vector<8x16xbf16>, vector<8x8xf32> -> vector<8x8xf32>
      "tpu.trace_stop"() : () -> ()
      %cst_215 = arith.constant 2.500000e-01 : f32
      %506 = vector.broadcast %cst_215 : f32 to vector<8x8xf32>
      %507 = arith.mulf %505, %506 : vector<8x8xf32>
      %cst_216 = arith.constant dense<0xFF800000> : vector<8xf32>
      %508 = vector.multi_reduction <maximumf>, %507, %cst_216 [1] : vector<8x8xf32> to vector<8xf32>
      %509 = vector.shape_cast %508 : vector<8xf32> to vector<8x1xf32>
      %510 = vector.broadcast %509 : vector<8x1xf32> to vector<8x8xf32>
      %511 = arith.subf %507, %510 : vector<8x8xf32>
      %512 = math.exp %511 : vector<8x8xf32>
      %cst_217 = arith.constant dense<0.000000e+00> : vector<8xf32>
      %513 = vector.multi_reduction <add>, %512, %cst_217 [1] : vector<8x8xf32> to vector<8xf32>
      %514 = vector.shape_cast %513 : vector<8xf32> to vector<8x1xf32>
      %515 = tpu.reciprocal %514 {approx = true} : vector<8x1xf32> -> vector<8x1xf32>
      %516 = vector.broadcast %515 : vector<8x1xf32> to vector<8x8xf32>
      %517 = arith.mulf %512, %516 : vector<8x8xf32>
      %518 = arith.truncf %517 : vector<8x8xf32> to vector<8x8xbf16>
      %519 = vector.extract_strided_slice %466 {offsets = [0, 32], sizes = [8, 16], strides = [1, 1]} : vector<8x64xbf16> to vector<8x16xbf16>
      %cst_218 = arith.constant dense<0.000000e+00> : vector<8x16xf32>
      %520 = tpu.matmul %518, %519, %cst_218 {dimension_numbers = #tpu.dot_dimension_numbers<[1], [0], [0], [1], [0, 0, 1, 1], [], []>} : vector<8x8xbf16>, vector<8x16xbf16>, vector<8x16xf32> -> vector<8x16xf32>
      %521 = vector.extract_strided_slice %464 {offsets = [0, 48], sizes = [8, 16], strides = [1, 1]} : vector<8x64xbf16> to vector<8x16xbf16>
      %522 = vector.extract_strided_slice %465 {offsets = [0, 48], sizes = [8, 16], strides = [1, 1]} : vector<8x64xbf16> to vector<8x16xbf16>
      "tpu.trace_start"() <{level = 10 : i32, message = "qd,kd->qk"}> : () -> ()
      %cst_219 = arith.constant dense<0.000000e+00> : vector<8x8xf32>
      %523 = tpu.matmul %521, %522, %cst_219 {dimension_numbers = #tpu.dot_dimension_numbers<[1], [1], [0], [0], [0, 0, 1, 0], [], []>} : vector<8x16xbf16>, vector<8x16xbf16>, vector<8x8xf32> -> vector<8x8xf32>
      "tpu.trace_stop"() : () -> ()
      %cst_220 = arith.constant 2.500000e-01 : f32
      %524 = vector.broadcast %cst_220 : f32 to vector<8x8xf32>
      %525 = arith.mulf %523, %524 : vector<8x8xf32>
      %cst_221 = arith.constant dense<0xFF800000> : vector<8xf32>
      %526 = vector.multi_reduction <maximumf>, %525, %cst_221 [1] : vector<8x8xf32> to vector<8xf32>
      %527 = vector.shape_cast %526 : vector<8xf32> to vector<8x1xf32>
      %528 = vector.broadcast %527 : vector<8x1xf32> to vector<8x8xf32>
      %529 = arith.subf %525, %528 : vector<8x8xf32>
      %530 = math.exp %529 : vector<8x8xf32>
      %cst_222 = arith.constant dense<0.000000e+00> : vector<8xf32>
      %531 = vector.multi_reduction <add>, %530, %cst_222 [1] : vector<8x8xf32> to vector<8xf32>
      %532 = vector.shape_cast %531 : vector<8xf32> to vector<8x1xf32>
      %533 = tpu.reciprocal %532 {approx = true} : vector<8x1xf32> -> vector<8x1xf32>
      %534 = vector.broadcast %533 : vector<8x1xf32> to vector<8x8xf32>
      %535 = arith.mulf %530, %534 : vector<8x8xf32>
      %536 = arith.truncf %535 : vector<8x8xf32> to vector<8x8xbf16>
      %537 = vector.extract_strided_slice %466 {offsets = [0, 48], sizes = [8, 16], strides = [1, 1]} : vector<8x64xbf16> to vector<8x16xbf16>
      %cst_223 = arith.constant dense<0.000000e+00> : vector<8x16xf32>
      %538 = tpu.matmul %536, %537, %cst_223 {dimension_numbers = #tpu.dot_dimension_numbers<[1], [0], [0], [1], [0, 0, 1, 1], [], []>} : vector<8x8xbf16>, vector<8x16xbf16>, vector<8x16xf32> -> vector<8x16xf32>
      %539 = tpu.concatenate %484, %502, %520, %538 in 1 : vector<8x16xf32>, vector<8x16xf32>, vector<8x16xf32>, vector<8x16xf32> -> vector<8x64xf32>
      %540 = arith.truncf %539 : vector<8x64xf32> to vector<8x64xbf16>
      %cst_224 = arith.constant dense<0.000000e+00> : vector<8x64xf32>
      %541 = tpu.matmul %540, %311, %cst_224 {dimension_numbers = #tpu.dot_dimension_numbers<[1], [0], [0], [1], [0, 0, 1, 1], [], []>} : vector<8x64xbf16>, vector<64x64xbf16>, vector<8x64xf32> -> vector<8x64xf32>
      %542 = vector.broadcast %325 : vector<1x64xf32> to vector<8x64xf32>
      %543 = arith.addf %541, %542 : vector<8x64xf32>
      %544 = arith.addf %453, %543 : vector<8x64xf32>
      %cst_225 = arith.constant dense<0.000000e+00> : vector<8xf32>
      %545 = vector.multi_reduction <add>, %544, %cst_225 [1] : vector<8x64xf32> to vector<8xf32>
      %546 = vector.shape_cast %545 : vector<8xf32> to vector<8x1xf32>
      %cst_226 = arith.constant 6.400000e+01 : f32
      %547 = vector.broadcast %cst_226 : f32 to vector<8x1xf32>
      %548 = arith.divf %546, %547 : vector<8x1xf32>
      %549 = vector.broadcast %548 : vector<8x1xf32> to vector<8x64xf32>
      %550 = arith.subf %544, %549 : vector<8x64xf32>
      %551 = arith.mulf %550, %550 : vector<8x64xf32>
      %cst_227 = arith.constant dense<0.000000e+00> : vector<8xf32>
      %552 = vector.multi_reduction <add>, %551, %cst_227 [1] : vector<8x64xf32> to vector<8xf32>
      %553 = vector.shape_cast %552 : vector<8xf32> to vector<8x1xf32>
      %cst_228 = arith.constant 6.400000e+01 : f32
      %554 = vector.broadcast %cst_228 : f32 to vector<8x1xf32>
      %555 = arith.divf %553, %554 : vector<8x1xf32>
      %556 = vector.broadcast %548 : vector<8x1xf32> to vector<8x64xf32>
      %557 = arith.subf %544, %556 : vector<8x64xf32>
      %cst_229 = arith.constant 9.99999974E-6 : f32
      %558 = vector.broadcast %cst_229 : f32 to vector<8x1xf32>
      %559 = arith.addf %555, %558 : vector<8x1xf32>
      %560 = math.rsqrt %559 : vector<8x1xf32>
      %561 = vector.broadcast %560 : vector<8x1xf32> to vector<8x64xf32>
      %562 = arith.mulf %557, %561 : vector<8x64xf32>
      %563 = vector.broadcast %337 : vector<1x64xf32> to vector<8x64xf32>
      %564 = arith.mulf %562, %563 : vector<8x64xf32>
      %565 = vector.broadcast %339 : vector<1x64xf32> to vector<8x64xf32>
      %566 = arith.addf %564, %565 : vector<8x64xf32>
      %567 = arith.truncf %566 : vector<8x64xf32> to vector<8x64xbf16>
      %cst_230 = arith.constant dense<0.000000e+00> : vector<8x2048xf32>
      %568 = tpu.matmul %567, %315, %cst_230 {dimension_numbers = #tpu.dot_dimension_numbers<[1], [0], [0], [1], [0, 0, 1, 1], [], []>} : vector<8x64xbf16>, vector<64x2048xbf16>, vector<8x2048xf32> -> vector<8x2048xf32>
      %569 = vector.broadcast %329 : vector<1x2048xf32> to vector<8x2048xf32>
      %570 = arith.addf %568, %569 : vector<8x2048xf32>
      %cst_231 = arith.constant 0.000000e+00 : f32
      %571 = vector.broadcast %cst_231 : f32 to vector<8x2048xf32>
      %572 = arith.maximumf %570, %571 : vector<8x2048xf32>
      %573 = arith.truncf %572 : vector<8x2048xf32> to vector<8x2048xbf16>
      %cst_232 = arith.constant dense<0.000000e+00> : vector<8x64xf32>
      %574 = tpu.matmul %573, %317, %cst_232 {dimension_numbers = #tpu.dot_dimension_numbers<[1], [0], [0], [1], [0, 0, 1, 1], [], []>} : vector<8x2048xbf16>, vector<2048x64xbf16>, vector<8x64xf32> -> vector<8x64xf32>
      %575 = vector.broadcast %331 : vector<1x64xf32> to vector<8x64xf32>
      %576 = arith.addf %574, %575 : vector<8x64xf32>
      %577 = arith.addf %566, %576 : vector<8x64xf32>
      %cst_233 = arith.constant dense<0.000000e+00> : vector<8xf32>
      %578 = vector.multi_reduction <add>, %577, %cst_233 [1] : vector<8x64xf32> to vector<8xf32>
      %579 = vector.shape_cast %578 : vector<8xf32> to vector<8x1xf32>
      %cst_234 = arith.constant 6.400000e+01 : f32
      %580 = vector.broadcast %cst_234 : f32 to vector<8x1xf32>
      %581 = arith.divf %579, %580 : vector<8x1xf32>
      %582 = vector.broadcast %581 : vector<8x1xf32> to vector<8x64xf32>
      %583 = arith.subf %577, %582 : vector<8x64xf32>
      %584 = arith.mulf %583, %583 : vector<8x64xf32>
      %cst_235 = arith.constant dense<0.000000e+00> : vector<8xf32>
      %585 = vector.multi_reduction <add>, %584, %cst_235 [1] : vector<8x64xf32> to vector<8xf32>
      %586 = vector.shape_cast %585 : vector<8xf32> to vector<8x1xf32>
      %cst_236 = arith.constant 6.400000e+01 : f32
      %587 = vector.broadcast %cst_236 : f32 to vector<8x1xf32>
      %588 = arith.divf %586, %587 : vector<8x1xf32>
      %589 = vector.broadcast %581 : vector<8x1xf32> to vector<8x64xf32>
      %590 = arith.subf %577, %589 : vector<8x64xf32>
      %cst_237 = arith.constant 9.99999974E-6 : f32
      %591 = vector.broadcast %cst_237 : f32 to vector<8x1xf32>
      %592 = arith.addf %588, %591 : vector<8x1xf32>
      %593 = math.rsqrt %592 : vector<8x1xf32>
      %594 = vector.broadcast %593 : vector<8x1xf32> to vector<8x64xf32>
      %595 = arith.mulf %590, %594 : vector<8x64xf32>
      %596 = vector.broadcast %341 : vector<1x64xf32> to vector<8x64xf32>
      %597 = arith.mulf %595, %596 : vector<8x64xf32>
      %598 = vector.broadcast %343 : vector<1x64xf32> to vector<8x64xf32>
      %599 = arith.addf %597, %598 : vector<8x64xf32>
      %c0_238 = arith.constant 0 : index
      %c0_239 = arith.constant 0 : index
      %600 = vector.load %arg9[%c0_238, %c0_239] : memref<8x64xf32, #tpu.memory_space<vmem>>, vector<8x64xf32>
      tpu.vector_store %arg9[%c0_238, %c0_239], %599 {strides = array<i32>} : memref<8x64xf32, #tpu.memory_space<vmem>>, vector<8x64xf32>,
      %c3_i32 = arith.constant 3 : i32
      %601 = arith.cmpi eq, %arg0, %c3_i32 : i32
      %602 = arith.extui %601 : i1 to i32
      %c0_i32_240 = arith.constant 0 : i32
      %603 = arith.cmpi ne, %602, %c0_i32_240 : i32
      scf.if %603 {
        %c0_241 = arith.constant 0 : index
        %c192_242 = arith.constant 192 : index
        %604 = vector.load %arg4[%c0_241, %c192_242] : memref<1x448xf32, #tpu.memory_space<vmem>>, vector<1x64xf32>
        %c0_243 = arith.constant 0 : index
        %c256_244 = arith.constant 256 : index
        %605 = vector.load %arg4[%c0_243, %c256_244] : memref<1x448xf32, #tpu.memory_space<vmem>>, vector<1x64xf32>
        %cst_245 = arith.constant dense<0.000000e+00> : vector<8xf32>
        %606 = vector.multi_reduction <add>, %599, %cst_245 [1] : vector<8x64xf32> to vector<8xf32>
        %607 = vector.shape_cast %606 : vector<8xf32> to vector<8x1xf32>
        %cst_246 = arith.constant 6.400000e+01 : f32
        %608 = vector.broadcast %cst_246 : f32 to vector<8x1xf32>
        %609 = arith.divf %607, %608 : vector<8x1xf32>
        %610 = vector.broadcast %609 : vector<8x1xf32> to vector<8x64xf32>
        %611 = arith.subf %599, %610 : vector<8x64xf32>
        %612 = arith.mulf %611, %611 : vector<8x64xf32>
        %cst_247 = arith.constant dense<0.000000e+00> : vector<8xf32>
        %613 = vector.multi_reduction <add>, %612, %cst_247 [1] : vector<8x64xf32> to vector<8xf32>
        %614 = vector.shape_cast %613 : vector<8xf32> to vector<8x1xf32>
        %cst_248 = arith.constant 6.400000e+01 : f32
        %615 = vector.broadcast %cst_248 : f32 to vector<8x1xf32>
        %616 = arith.divf %614, %615 : vector<8x1xf32>
        %617 = vector.broadcast %609 : vector<8x1xf32> to vector<8x64xf32>
        %618 = arith.subf %599, %617 : vector<8x64xf32>
        %cst_249 = arith.constant 9.99999974E-6 : f32
        %619 = vector.broadcast %cst_249 : f32 to vector<8x1xf32>
        %620 = arith.addf %616, %619 : vector<8x1xf32>
        %621 = math.rsqrt %620 : vector<8x1xf32>
        %622 = vector.broadcast %621 : vector<8x1xf32> to vector<8x64xf32>
        %623 = arith.mulf %618, %622 : vector<8x64xf32>
        %624 = vector.broadcast %604 : vector<1x64xf32> to vector<8x64xf32>
        %625 = arith.mulf %623, %624 : vector<8x64xf32>
        %626 = vector.broadcast %605 : vector<1x64xf32> to vector<8x64xf32>
        %627 = arith.addf %625, %626 : vector<8x64xf32>
        %628 = arith.truncf %627 : vector<8x64xf32> to vector<8x64xbf16>
        %c0_250 = arith.constant 0 : index
        %c0_251 = arith.constant 0 : index
        %629 = vector.load %arg3[%c0_250, %c0_251] : memref<64x3xbf16, #tpu.memory_space<vmem>>, vector<64x3xbf16>
        %cst_252 = arith.constant dense<0.000000e+00> : vector<8x3xf32>
        %630 = tpu.matmul %628, %629, %cst_252 {dimension_numbers = #tpu.dot_dimension_numbers<[1], [0], [0], [1], [0, 0, 1, 1], [], []>} : vector<8x64xbf16>, vector<64x3xbf16>, vector<8x3xf32> -> vector<8x3xf32>
        %c0_253 = arith.constant 0 : index
        %c320_254 = arith.constant 320 : index
        %631 = vector.load %arg4[%c0_253, %c320_254] : memref<1x448xf32, #tpu.memory_space<vmem>>, vector<1x3xf32>
        %632 = vector.broadcast %631 : vector<1x3xf32> to vector<8x3xf32>
        %633 = arith.addf %630, %632 : vector<8x3xf32>
        %c0_255 = arith.constant 0 : index
        %c0_256 = arith.constant 0 : index
        %634 = vector.load %arg8[%c0_255, %c0_256] : memref<8x3xf32, #tpu.memory_space<vmem>>, vector<8x3xf32>
        tpu.vector_store %arg8[%c0_255, %c0_256], %633 {strides = array<i32>} : memref<8x3xf32, #tpu.memory_space<vmem>>, vector<8x3xf32>,
      } else {
      }
    } else {
    }
    return
  }
  func.func @transform_0(%arg0: i32) -> (i32, i32) {
    %c0_i32 = arith.constant 0 : i32
    %c0_i32_0 = arith.constant 0 : i32
    %c0_i32_1 = arith.constant 0 : i32
    return %c0_i32, %c0_i32_0 : i32, i32
  }
  func.func @transform_1(%arg0: i32) -> (i32, i32) {
    %c0_i32 = arith.constant 0 : i32
    %c0_i32_0 = arith.constant 0 : i32
    %c0_i32_1 = arith.constant 0 : i32
    return %c0_i32, %c0_i32_0 : i32, i32
  }
  func.func @transform_2(%arg0: i32) -> (i32, i32) {
    %c0_i32 = arith.constant 0 : i32
    %c0_i32_0 = arith.constant 0 : i32
    %c0_i32_1 = arith.constant 0 : i32
    return %c0_i32, %c0_i32_0 : i32, i32
  }
  func.func @transform_3(%arg0: i32) -> (i32, i32) {
    %c0_i32 = arith.constant 0 : i32
    %c0_i32_0 = arith.constant 0 : i32
    %c0_i32_1 = arith.constant 0 : i32
    return %c0_i32, %c0_i32_0 : i32, i32
  }
  func.func @transform_4(%arg0: i32) -> (i32, i32, i32) {
    %c0_i32 = arith.constant 0 : i32
    %c0_i32_0 = arith.constant 0 : i32
    %c0_i32_1 = arith.constant 0 : i32
    return %arg0, %c0_i32, %c0_i32_0 : i32, i32, i32
  }
  func.func @transform_5(%arg0: i32) -> (i32, i32, i32) {
    %c0_i32 = arith.constant 0 : i32
    %c0_i32_0 = arith.constant 0 : i32
    %c0_i32_1 = arith.constant 0 : i32
    return %arg0, %c0_i32, %c0_i32_0 : i32, i32, i32
  }
  func.func @transform_6(%arg0: i32) -> (i32, i32, i32) {
    %c0_i32 = arith.constant 0 : i32
    %c0_i32_0 = arith.constant 0 : i32
    %c0_i32_1 = arith.constant 0 : i32
    return %arg0, %c0_i32, %c0_i32_0 : i32, i32, i32
  }
  func.func @transform_7(%arg0: i32) -> (i32, i32) {
    %c0_i32 = arith.constant 0 : i32
    %c0_i32_0 = arith.constant 0 : i32
    %c0_i32_1 = arith.constant 0 : i32
    return %c0_i32, %c0_i32_0 : i32, i32
  }
}

</mosaic_0001>

<bundles_post_ra>
// kernel: transformer_forward.1
= control target key start
LH: loop header
LB: loop body
LE: loop exit
PB: predicated region body
PF: predicated region fallthrough
CT: control target
= control target key end

     0   :  { %s18009_s24 = smov 0   ;;  %s20243_s0 = inlined_call_operand.vmem [shape: f32[8,17], index: 0, kind: input, shape index: {}]   ;;  %s20244_s1 = inlined_call_operand.vmem [shape: bf16[17,64], index: 1, kind: input, shape index: {}]   ;;  %s20245_s2 = inlined_call_operand.vmem [shape: bf16[64,3], index: 2, kind: input, shape index: {}]   ;;  %s20246_s3 = inlined_call_operand.vmem [shape: f32[1,448], index: 3, kind: input, shape index: {}]   ;;  %s20247_s4 = inlined_call_operand.vmem [shape: bf16[8,64,2560], index: 4, kind: input, shape index: {}]   ;;  %s20248_s5 = inlined_call_operand.vmem [shape: bf16[8,2048,64], index: 5, kind: input, shape index: {}]   ;;  %s20249_s6 = inlined_call_operand.vmem [shape: f32[8,1,3008], index: 6, kind: input, shape index: {}]   ;;  %s20250_s7 = inlined_call_operand.vmem [shape: f32[8,3], index: 7, kind: output, shape index: {}]  }
   0x1 LB: > { %s18015_s25 = sadd.s32 4294967295, %s17944_s24   ;;  %p13831_p0 = scmp.ge.s32.totalorder %s17944_s24, 1  ;;  %s17944_s24 = sphi %s18009_s24, %s17_s24  }
   0x2   : > { %p257_p1 = scmp.lt.s32.totalorder %s17944_s24, 5 }
   0x4   : > { %p258_p2 = pnand %p13831_p0, %p257_p1 }
   0x5   : > { %s13832_s26 = sshll.u32 (!%p258_p2), %s18015_s25, 1  ;;  %p13838_p4 = scmp.ne.s32.totalorder (!%p258_p2), %s18015_s25, 0 }
   0x6   : > { %261 = sbr.rel (%p258_p2) target bundleno = 15002 (0x3a9a), region = 48  ;;  %p297_p3 = scmp.lt.s32.totalorder (!%p258_p2), %s13832_s26, 7 }
   0xb   : > { %s20252_s26 = smov (!%p297_p3, %s13832_s26), 7  ;;  %320 = sbr.rel (%p13838_p4) target bundleno = 5566 (0x15be), region = 52 }
   0xc   : > { %s16802_s27 = smul.u32 640, %s20252_s26  ;;  %s15515_s28 = sshll.u32 %s20252_s26, 10 }
   0xd   : > { %s18023_s8 = scalar_lea.vmem %s20248_s5, %s15515_s28  ;;  %s16803_s9 = smul.u32 24, %s20252_s26 }
   0xe   : > { %s18028_s12 = scalar_lea.vmem %s20247_s4, %s16802_s27  ;;  %s17949_s26 = smov (!%p13838_p4), 112  }
   0xf   : > { %s18033_s15 = scalar_lea.vmem %s20249_s6, %s16803_s9  ;;  %s17950_s27 = smov (!%p13838_p4), 64  }
  0x10   : > { %v16835_v0 = vld [vmem:[%s20244_s1 + $0x8] ss:$0 sps:$4 sm:$0x11]   ;;  %v17946_v1 = vmov 0.0   ;;  %vm346_vm0 = vcmask 1040384   ;;  %v17947_v2 = vmov 0   ;;  %v738_v23 = vlaneseq }
  0x11   : > { %16374 = vmatprep.subr.bf16.mxu0 %v17946_v1  ;;  %v348_v3 = vsel %vm346_vm0, 65535, %v17947_v2  ;;  %824 = vmatprep.mubr.bf16.mxu1 %v17947_v2  ;;  %v16836_v5 = vld [vmem:[%s20244_s1] sm:$0xff]   ;;  %vm17948_vm1 = vmmov 0   ;;  %vm342_vm2 = vcmask 138240   ;;  %vm788_vm3 = vcmask 523264   ;;  %s17951_s28 = smov 32  }
  0x12   : > { %v350_v4 = vand.u32 %v16835_v0, %v348_v3  ;;  %16378 = vmatprep.mubr.msk.bf16.mxu0 %vm17948_vm1, %v17946_v1  ;;  %v16837_v6 = vld [vmem:[%s18028_s12 + $0x1e4] ss:$80 sps:$4 sm:$0xff]   ;;  %v16839_v7 = vld [vmem:[%s18028_s12 + $0x1e0] ss:$80 sps:$4 sm:$0xff]   ;;  %v18075_v24 = vshrl.u32 %v738_v23, 7  ;;  %s17952_s29 = smov 48  }
  0x13   : > { %v16840_v8 = vld [vmem:[%s18028_s12 + $0x144] ss:$80 sps:$4 sm:$0xff]   ;;  %800 = vmatprep.subr.bf16.mxu1 %v16837_v6  ;;  %v16842_v10 = vld [vmem:[%s18028_s12 + $0x140] ss:$80 sps:$4 sm:$0xff]   ;;  %s17953_s30 = smov 16   ;;  %s17954_s9 = smov 96  }
  0x14   : > { %16375 = vmatpush3.bf16.msra.mxu0 %v350_v4  ;;  %v321_v9 = vld [vmem:[%s20243_s0] sm:$0xff]  ;;  %801 = vmatpush1.bf16.msra.mxu1 %v16839_v7  ;;  %v18078_v25 = vsub.s32 0, %v18075_v24  ;;  %s17955_s10 = smov 80   ;;  %v18090_v34 = vsub.s32 1, %v18075_v24  ;;  %vm838_vm4 = vcmask 130048   ;;  %vm902_vm5 = vcmask 1043456  }
  0x15   : > { %16376 = vmatprep.subr.bf16.mxu0 %v17946_v1  ;;  %v16843_v11 = vld [vmem:[%s18028_s12 + $0xa4] ss:$80 sps:$4 sm:$0xff]   ;;  %802 = vmatprep.subr.bf16.mxu1 %v16840_v8  ;;  %v322_v12 = vpack.c.bf16 %v321_v9, %v321_v9  ;;  %v16845_v13 = vld [vmem:[%s18028_s12 + $0xa0] ss:$80 sps:$4 sm:$0xff]   ;;  %vm886_vm6 = vcmask 64512   ;;  %vm1293_vm7 = vcmask 261120  }
  0x16   : > { %v16846_v14 = vld [vmem:[%s18028_s12 + $0x4] ss:$80 sps:$4 sm:$0xff]   ;;  %v16848_v15 = vld [vmem:[%s18028_s12] ss:$80 sps:$4 sm:$0xff]   ;;  %vm1295_vm8 = vcmask 392192  }
  0x17   : > { %v13839_v16 = vld [vmem:[%s20246_s3] ss:$0 sm:$0xff] }
  0x18   : > { %16377 = vmatpush3.bf16.msra.mxu0 %v16836_v5  ;;  %803 = vmatpush1.bf16.msra.mxu1 %v16842_v10  ;;  %v728_v26 = vld [vmem:[%s18033_s15] sm:$0x3] }
  0x19   : > { %16382 = vmatprep.subr.bf16.mxu0 %v17946_v1  ;;  %804 = vmatprep.subr.bf16.mxu1 %v16843_v11  ;;  %v741_v27 = vrot.slane %v728_v26, %v18078_v25  ;;  %v745_v35 = vrot.slane %v728_v26, %v18090_v34 }
  0x1b   : > { %16379 = vmatmul.mubr.msk.bf16.vlgmr.msra.gmra.mxu0 %vm342_vm2, %v322_v12 }
  0x1c   : > { %16384 = vmatprep.mubr.msk.bf16.mxu0 %vm17948_vm1, %v17946_v1  ;;  %805 = vmatpush1.bf16.msra.mxu1 %v16845_v13 }
  0x1d   : > { %806 = vmatprep.subr.bf16.mxu1 %v16846_v14 }
  0x20   : > { %807 = vmatpush1.bf16.msra.mxu1 %v16848_v15 }
  0x21   : > { %16394 = vmatprep.subr.bf16.mxu1 %v17946_v1 }
  0xdb   : > { %v386_v17 = vpop.f32.mrf.mxu0 }
  0xdc   : > { %v18066_v18 = vadd.f32 %v13839_v16, %v386_v17 }
  0xdd   : > { %v16380_v19 = vpop.f32.mrf.mxu0 }
  0xde   : > { %v736_v20 = vpack.c.bf16 %v18066_v18, %v18066_v18  ;;  %6330 = vst.msk [vmem:[#allocation2] sm:$0xff] %vm788_vm3, %v18066_v18 }
  0xdf   : > { %v389_v21 = vpop.f32.mrf.mxu0 }
  0xe0   : > { %13851 = vmatmul.mubr.msk.bf16.vlgmr.msra.gmra.mxu1 %vm788_vm3, %v736_v20 }
  0xe1   : > { %v16381_v22 = vpop.f32.mrf.mxu0  ;;  %16396 = vmatprep.mubr.msk.bf16.mxu1 %vm17948_vm1, %v17946_v1 }
 0x1a0   : > { %v826_v28 = vpop.f32.mrf.mxu1 }
 0x1a1   : > { %v827_v29 = vadd.f32 %v826_v28, %v741_v27 }
 0x1a2   : > { %v828_v30 = vpop.f32.mrf.mxu1 }
 0x1a3   : > { %v833_v31 = vpack.c.bf16 %v827_v29, %v827_v29  ;;  %v829_v37 = vadd.f32 %v828_v30, %v745_v35 }
 0x1a4   : > { %v830_v32 = vpop.f32.mrf.mxu1 }
 0x1a5   : > { %946 = vrot.lane.b32.xlu1 %v833_v31, %s17949_s26  ;;  %836 = vrot.lane.b32.xlu0 %v833_v31, %s17950_s27  ;;  %v18095_v41 = vpack.c.bf16 %v829_v37, %v829_v37 }
 0x1a6   : > { %v831_v33 = vpop.f32.mrf.mxu1 }
 0x1a7   : > { %v904_v43 = vsel %vm902_vm5, %v18095_v41, 0 }
 0x1a9   : > { %1060 = vrot.lane.b32.xlu1 %v833_v31, %s17951_s28  ;;  %948 = vrot.lane.b32.xlu0 %v833_v31, %s17952_s29 }
 0x1ad   : > { %1171 = vrot.lane.b32.xlu1 %v833_v31, %s17953_s30  ;;  %1058 = vrot.lane.b32.xlu0 %v833_v31, %s17954_s9 }
 0x1b1   : > { %1169 = vrot.lane.b32.xlu0 %v833_v31, %s17955_s10 }
 0x217   : > { %v837_v36 = vpop.permute.xlu0 %836  ;;  %v947_v39 = vpop.permute.xlu1 %946 }
 0x218   : > { %v843_v38 = vsel %vm838_vm4, %v837_v36, 0 }
 0x219   : > { %16383 = vmatpush3.bf16.xpose.msra.mxu0 %v843_v38 }
 0x21a   : > { %16388 = vmatprep.subr.bf16.mxu0 %v17946_v1 }
 0x21b   : > { %v949_v40 = vpop.permute.xlu0 %948  ;;  %v1061_v44 = vpop.permute.xlu1 %1060 }
 0x21c   : > { %v954_v42 = vsel %vm838_vm4, %v949_v40, 0  ;;  %v1066_v45 = vsel %vm838_vm4, %v1061_v44, 0 }
 0x21d   : > { %16395 = vmatpush3.bf16.xpose.msra.mxu1 %v954_v42 }
 0x21e   : > { %16406 = vmatprep.subr.bf16.mxu1 %v17946_v1 }
 0x21f   : > { %v1172_v46 = vpop.permute.xlu1 %1171  ;;  %v1059_v47 = vpop.permute.xlu0 %1058 }
 0x220   : > { %16385 = vmatmul.mubr.msk.bf16.vlgmr.msra.gmra.mxu0 %vm838_vm4, %v833_v31  ;;  %v1177_v48 = vsel %vm838_vm4, %v1172_v46, 0 }
 0x221   : > { %16389 = vmatpush3.bf16.msra.mxu0 %v904_v43  ;;  %16390 = vmatprep.mubr.msk.bf16.mxu0 %vm17948_vm1, %v17946_v1 }
 0x222   : > { %16400 = vmatprep.subr.bf16.mxu0 %v17946_v1 }
 0x223   : > { %v1170_v49 = vpop.permute.xlu0 %1169 }
 0x224   : > { %16397 = vmatmul.mubr.msk.bf16.vlgmr.msra.gmra.mxu1 %vm838_vm4, %v947_v39 }
 0x225   : > { %16407 = vmatpush3.bf16.xpose.msra.mxu1 %v1066_v45  ;;  %16408 = vmatprep.mubr.msk.bf16.mxu1 %vm17948_vm1, %v17946_v1 }
 0x226   : > { %16418 = vmatprep.subr.bf16.mxu1 %v17946_v1 }
 0x22c   : > { %16409 = vmatmul.mubr.msk.bf16.vlgmr.msra.gmra.mxu1 %vm838_vm4, %v1059_v47 }
 0x22d   : > { %16419 = vmatpush3.bf16.xpose.msra.mxu1 %v1177_v48  ;;  %16420 = vmatprep.mubr.msk.bf16.mxu1 %vm17948_vm1, %v17946_v1 }
 0x22e   : > { %16430 = vmatprep.subr.bf16.mxu1 %v17946_v1 }
 0x234   : > { %16421 = vmatmul.mubr.msk.bf16.vlgmr.msra.gmra.mxu1 %vm838_vm4, %v1170_v49 }
 0x235   : > { %16438 = vmatprep.mubr.msk.bf16.mxu1 %vm17948_vm1, %v17946_v1 }
 0x2e0   : > { %v879_v50 = vpop.f32.mrf.mxu0 }
 0x2e1   : > { %v885_v51 = vmul.f32 0.25, %v879_v50 }
 0x2e2   : > { %v16386_v52 = vpop.f32.mrf.mxu0 }
 0x2e3   : > { %v887_v53 = vsel %vm886_vm6, %v885_v51, -inf }
 0x2e4   : > { %v990_v54 = vpop.f32.mrf.mxu1  ;;  %888 = vmax.xlane.f32.xlu1 %v887_v53  ;;  %v882_v55 = vpop.f32.mrf.mxu0 }
 0x2e5   : > { %v996_v56 = vmul.f32 0.25, %v990_v54 }
 0x2e6   : > { %v16387_v57 = vpop.f32.mrf.mxu0  ;;  %v16398_v58 = vpop.f32.mrf.mxu1 }
 0x2e7   : > { %v997_v59 = vsel %vm886_vm6, %v996_v56, -inf  ;;  %v16849_v58 = vld [vmem:[%s18028_s12 + $0x144] ss:$80 sps:$4 sm:$0xff]  }
 0x2e8   : > { %998 = vmax.xlane.f32.xlu0 %v997_v59  ;;  %v993_v60 = vpop.f32.mrf.mxu1  ;;  %v16850_v59 = vld [vmem:[%s18028_s12 + $0x1e4] ss:$80 sps:$4 sm:$0xff]  }
 0x2e9   : > { %v16851_v60 = vld [vmem:[%s18028_s12 + $0xa4] ss:$80 sps:$4 sm:$0xff]  }
 0x2ea   : > { %v16399_v61 = vpop.f32.mrf.mxu1 }
 0x2ec   : > { %v1102_v62 = vpop.f32.mrf.mxu1 }
 0x2ed   : > { %v1108_v63 = vmul.f32 0.25, %v1102_v62 }
 0x2ee   : > { %v16410_v0 = vpop.f32.mrf.mxu1 }
 0x2ef   : > { %v1109_v3 = vsel %vm886_vm6, %v1108_v63, -inf }
 0x2f0   : > { %1110 = vmax.xlane.f32.xlu0 %v1109_v3  ;;  %v1105_v4 = vpop.f32.mrf.mxu1 }
 0x2f2   : > { %v16411_v5 = vpop.f32.mrf.mxu1 }
 0x2f4   : > { %v1213_v6 = vpop.f32.mrf.mxu1 }
 0x2f5   : > { %v1219_v7 = vmul.f32 0.25, %v1213_v6 }
 0x2f6   : > { %v16422_v8 = vpop.f32.mrf.mxu1 }
 0x2f7   : > { %v1220_v9 = vsel %vm886_vm6, %v1219_v7, -inf }
 0x2f8   : > { %v1216_v10 = vpop.f32.mrf.mxu1  ;;  %1221 = vmax.xlane.f32.xlu1 %v1220_v9 }
 0x2fa   : > { %v16423_v11 = vpop.f32.mrf.mxu1 }
 0x2fb   : > { %v16852_v11 = vld [vmem:[%s18028_s12 + $0x4] ss:$80 sps:$4 sm:$0xff]  }
 0x36d   : > { %v889_v12 = vpop.xlane.xlu1 %888 }
 0x36e   : > { %v890_v13 = vsub.f32 %v885_v51, %v889_v12 }
 0x370   : > { %v891_v14 = vmul.f32 1.442695, %v890_v13 }
 0x371   : > { %v999_v15 = vpop.xlane.xlu0 %998 }
 0x372   : > { %17317 = vpow2.f32 %v891_v14  ;;  %v1000_v16 = vsub.f32 %v996_v56, %v999_v15 }
 0x374   : > { %v1001_v17 = vmul.f32 1.442695, %v1000_v16 }
 0x376   : > { %17319 = vpow2.f32 %v1001_v17  ;;  %v13860_v17 = vld [vmem:[%s18033_s15 + $0x1] ss:$0 sm:$0xff] }
 0x379   : > { %v1111_v19 = vpop.xlane.xlu0 %1110 }
 0x37a   : > { %v1112_v20 = vsub.f32 %v1108_v63, %v1111_v19 }
 0x37c   : > { %v1113_v21 = vmul.f32 1.442695, %v1112_v20 }
 0x37e   : > { %17321 = vpow2.f32 %v1113_v21 }
 0x37f   : > { %v17318_v22 = vpop.eup %17317 }
 0x380   : > { %v893_v23 = vsel %vm886_vm6, %v17318_v22, 0.0 }
 0x381   : > { %894 = vadd.xlane.f32.xlu0 %v893_v23  ;;  %v1222_v30 = vpop.xlane.xlu1 %1221 }
 0x382   : > { %v1223_v31 = vsub.f32 %v1219_v7, %v1222_v30 }
 0x383   : > { %v17320_v26 = vpop.eup %17319 }
 0x384   : > { %v1003_v27 = vsel %vm886_vm6, %v17320_v26, 0.0  ;;  %v1224_v32 = vmul.f32 1.442695, %v1223_v31 }
 0x385   : > { %1004 = vadd.xlane.f32.xlu1 %v1003_v27 }
 0x386   : > { %17323 = vpow2.f32 %v1224_v32 }
 0x38b   : > { %v17322_v28 = vpop.eup %17321 }
 0x38c   : > { %v1115_v29 = vsel %vm886_vm6, %v17322_v28, 0.0 }
 0x38d   : > { %1116 = vadd.xlane.f32.xlu0 %v1115_v29 }
 0x393   : > { %v17324_v33 = vpop.eup %17323 }
 0x394   : > { %v1226_v35 = vsel %vm886_vm6, %v17324_v33, 0.0 }
 0x396   : > { %1121 = vrot.lane.b32.xlu1 %v18095_v41, %s17954_s9 }
 0x3a3   : > { %1010 = vrot.lane.b32.xlu0 %v18095_v41, %s17949_s26 }
 0x3a7   : > { %1329 = vrot.lane.b32.xlu0 %v16850_v59, %s17950_s27  ;;  %v16871_v59 = vld [vmem:[%s18028_s12 + $0x10] ss:$80 sps:$4 sm:$0xff]  }
 0x3ab   : > { %1325 = vrot.lane.b32.xlu0 %v16851_v60, %s17950_s27  ;;  %v16874_v60 = vld [vmem:[%s18028_s12 + $0x18] ss:$80 sps:$4 sm:$0xff]  }
 0x3ba   : > { %1227 = vadd.xlane.f32.xlu1 %v1226_v35 }
 0x3cb   : > { %1232 = vrot.lane.b32.xlu1 %v18095_v41, %s17955_s10 }
 0x3cf   : > { %1327 = vrot.lane.b32.xlu1 %v16849_v58, %s17950_s27  ;;  %v16876_v58 = vld [vmem:[%s18028_s12 + $0x1c] ss:$80 sps:$4 sm:$0xff]  }
 0x40a   : > { %v895_v36 = vpop.xlane.xlu0 %894 }
 0x40b   : > { %17325 = vrcp.f32 %v895_v36 }
 0x40e   : > { %v1005_v37 = vpop.xlane.xlu1 %1004 }
 0x40f   : > { %17327 = vrcp.f32 %v1005_v37 }
 0x412   : > { %v1122_v46 = vpop.permute.xlu1 %1121 }
 0x413   : > { %v1127_v49 = vsel %vm902_vm5, %v1122_v46, 0  ;;  %v16855_v46 = vld [vmem:[%s18028_s12 + $0x1f4] ss:$80 sps:$4 sm:$0xff]  }
 0x416   : > { %v1117_v38 = vpop.xlane.xlu0 %1116 }
 0x417   : > { %17329 = vrcp.f32 %v1117_v38 }
 0x418   : > { %v17326_v39 = vpop.eup %17325 }
 0x419   : > { %v897_v40 = vmul.f32 %v17326_v39, %v17318_v22 }
 0x41a   : > { %v1011_v42 = vpop.permute.xlu0 %1010 }
 0x41b   : > { %v1016_v43 = vsel %vm902_vm5, %v1011_v42, 0  ;;  %v898_v44 = vpack.c.bf16 %v897_v40, %v897_v40  ;;  %v18172_v40 = vld [vmem:[%s18033_s15 + $0x4] ss:$0 sm:$0xff] }
 0x41c   : > { %v17328_v45 = vpop.eup %17327 }
 0x41d   : > { %16391 = vmatmul.mubr.msk.bf16.vlgmr.msra.gmra.mxu0 %vm886_vm6, %v898_v44  ;;  %v1007_v41 = vmul.f32 %v17328_v45, %v17320_v26 }
 0x41e   : > { %16401 = vmatpush3.bf16.msra.mxu0 %v1016_v43  ;;  %16402 = vmatprep.mubr.msk.bf16.mxu0 %vm17948_vm1, %v17946_v1  ;;  %v1330_v61 = vpop.permute.xlu0 %1329 }
 0x41f   : > { %16412 = vmatprep.subr.bf16.mxu0 %v17946_v1  ;;  %v1008_v47 = vpack.c.bf16 %v1007_v41, %v1007_v41  ;;  %16431 = vmatpush3.bf16.msra.mxu1 %v1330_v61  ;;  %v16853_v41 = vld [vmem:[%s18028_s12 + $0x1f0] ss:$80 sps:$4 sm:$0xff]   ;;  %v16879_v61 = vld [vmem:[%s18028_s12 + $0x204] ss:$80 sps:$4 sm:$0xff]  }
 0x420   : > { %16432 = vmatprep.subr.bf16.mxu1 %v17946_v1 }
 0x422   : > { %v1326_v4 = vpop.permute.xlu0 %1325 }
 0x424   : > { %v17330_v48 = vpop.eup %17329 }
 0x425   : > { %16403 = vmatmul.mubr.msk.bf16.vlgmr.msra.gmra.mxu0 %vm886_vm6, %v1008_v47  ;;  %v1119_v50 = vmul.f32 %v17330_v48, %v17322_v28  ;;  %v16856_v47 = vld [vmem:[%s18028_s12 + $0x1f8] ss:$80 sps:$4 sm:$0xff]   ;;  %v16858_v48 = vld [vmem:[%s18028_s12 + $0x1fc] ss:$80 sps:$4 sm:$0xff]  }
 0x426   : > { %16413 = vmatpush3.bf16.msra.mxu0 %v1127_v49  ;;  %16414 = vmatprep.mubr.msk.bf16.mxu0 %vm17948_vm1, %v17946_v1  ;;  %v16861_v49 = vld [vmem:[%s18028_s12 + $0x154] ss:$80 sps:$4 sm:$0xff]  }
 0x427   : > { %16424 = vmatprep.subr.bf16.mxu0 %v17946_v1  ;;  %v1120_v51 = vpack.c.bf16 %v1119_v50, %v1119_v50  ;;  %v16864_v50 = vld [vmem:[%s18028_s12 + $0x15c] ss:$80 sps:$4 sm:$0xff]  }
 0x42d   : > { %16415 = vmatmul.mubr.msk.bf16.vlgmr.msra.gmra.mxu0 %vm886_vm6, %v1120_v51  ;;  %v16859_v51 = vld [vmem:[%s18028_s12 + $0x150] ss:$80 sps:$4 sm:$0xff]  }
 0x42e   : > { %16426 = vmatprep.mubr.msk.bf16.mxu0 %vm17948_vm1, %v17946_v1 }
 0x443   : > { %v1228_v52 = vpop.xlane.xlu1 %1227 }
 0x444   : > { %17331 = vrcp.f32 %v1228_v52  ;;  %v16862_v52 = vld [vmem:[%s18028_s12 + $0x158] ss:$80 sps:$4 sm:$0xff]  }
 0x447   : > { %v1233_v53 = vpop.permute.xlu1 %1232 }
 0x448   : > { %v1238_v54 = vsel %vm902_vm5, %v1233_v53, 0  ;;  %v16867_v53 = vld [vmem:[%s18028_s12 + $0xb4] ss:$80 sps:$4 sm:$0xff]  }
 0x449   : > { %16425 = vmatpush3.bf16.msra.mxu0 %v1238_v54  ;;  %v16870_v54 = vld [vmem:[%s18028_s12 + $0xbc] ss:$80 sps:$4 sm:$0xff]  }
 0x44a   : > { %1876 = vmatprep.subr.bf16.mxu0 %v16855_v46  ;;  %v16892_v46 = vld [vmem:[%s18028_s12 + $0xc8] ss:$80 sps:$4 sm:$0xff]  }
 0x44b   : > { %v1328_v63 = vpop.permute.xlu1 %1327 }
 0x44c   : > { %16433 = vmatpush3.bf16.msra.mxu1 %v1328_v63  ;;  %v730_v63 = vld [vmem:[%s18033_s15 + $0x7] sm:$0xff] }
 0x44d   : > { %16434 = vmatprep.subr.bf16.mxu1 %v17946_v1 }
 0x450   : > { %16435 = vmatpush3.bf16.msra.mxu1 %v1326_v4  ;;  %v1418_v4 = vrot.slane %v730_v63, %v18090_v34 }
 0x451   : > { %v17332_v55 = vpop.eup %17331  ;;  %16436 = vmatprep.subr.bf16.mxu1 %v17946_v1 }
 0x452   : > { %v1230_v56 = vmul.f32 %v17332_v55, %v17324_v33  ;;  %v16865_v55 = vld [vmem:[%s18028_s12 + $0xb0] ss:$80 sps:$4 sm:$0xff]  }
 0x454   : > { %v1231_v57 = vpack.c.bf16 %v1230_v56, %v1230_v56  ;;  %v16868_v56 = vld [vmem:[%s18028_s12 + $0xb8] ss:$80 sps:$4 sm:$0xff]  }
 0x456   : > { %16427 = vmatmul.mubr.msk.bf16.vlgmr.msra.gmra.mxu0 %vm886_vm6, %v1231_v57  ;;  %v16873_v57 = vld [vmem:[%s18028_s12 + $0x14] ss:$80 sps:$4 sm:$0xff]  }
 0x457   : > { %1900 = vmatprep.mubr.bf16.mxu0 %v17947_v2  ;;  %1877 = vmatpush1.bf16.msra.mxu0 %v16853_v41  ;;  %v16889_v41 = vld [vmem:[%s18028_s12 + $0xc0] ss:$80 sps:$4 sm:$0xff]  }
 0x458   : > { %1878 = vmatprep.subr.bf16.mxu0 %v16861_v49  ;;  %v16895_v49 = vld [vmem:[%s18028_s12 + $0x20] ss:$80 sps:$4 sm:$0xff]  }
 0x45b   : > { %1879 = vmatpush1.bf16.msra.mxu0 %v16859_v51  ;;  %v16903_v51 = vld [vmem:[%s18028_s12 + $0x214] ss:$80 sps:$4 sm:$0xff]  }
 0x45c   : > { %1880 = vmatprep.subr.bf16.mxu0 %v16867_v53  ;;  %v16901_v53 = vld [vmem:[%s18028_s12 + $0x210] ss:$80 sps:$4 sm:$0xff]  }
 0x45f   : > { %1881 = vmatpush1.bf16.msra.mxu0 %v16865_v55  ;;  %v16909_v55 = vld [vmem:[%s18028_s12 + $0x174] ss:$80 sps:$4 sm:$0xff]  }
 0x460   : > { %1882 = vmatprep.subr.bf16.mxu0 %v16873_v57  ;;  %v16907_v57 = vld [vmem:[%s18028_s12 + $0x170] ss:$80 sps:$4 sm:$0xff]  }
 0x463   : > { %1883 = vmatpush1.bf16.msra.mxu0 %v16871_v59  ;;  %v16915_v59 = vld [vmem:[%s18028_s12 + $0xd4] ss:$80 sps:$4 sm:$0xff]  }
 0x464   : > { %1958 = vmatprep.subr.bf16.mxu0 %v16879_v61  ;;  %v16913_v61 = vld [vmem:[%s18028_s12 + $0xd0] ss:$80 sps:$4 sm:$0xff]  }
 0x4dd   : > { %v940_v62 = vpop.f32.mrf.mxu0 }
 0x4df   : > { %v16392_v0 = vpop.f32.mrf.mxu0 }
 0x4e0   : > { %v18201_v0 = vsub.s32 2, %v18075_v24 }
 0x4e1   : > { %v943_v3 = vpop.f32.mrf.mxu0 }
 0x4e2   : > { %v18204_v3 = vsub.s32 3, %v18075_v24 }
 0x4e3   : > { %v16393_v5 = vpop.f32.mrf.mxu0 }
 0x4e4   : > { %v1422_v5 = vrot.slane %v730_v63, %v18201_v0 }
 0x4e5   : > { %v1052_v6 = vpop.f32.mrf.mxu0 }
 0x4e6   : > { %1281 = vrot.lane.b32.xlu1 %v1052_v6, %s17953_s30  ;;  %v1414_v6 = vrot.slane %v730_v63, %v18078_v25 }
 0x4e7   : > { %v16404_v7 = vpop.f32.mrf.mxu0 }
 0x4e8   : > { %v18211_v7 = vsub.s32 4, %v18075_v24 }
 0x4e9   : > { %v1055_v8 = vpop.f32.mrf.mxu0 }
 0x4ea   : > { %v1426_v8 = vrot.slane %v730_v63, %v18204_v3 }
 0x4eb   : > { %v16405_v9 = vpop.f32.mrf.mxu0 }
 0x4ec   : > { %v18216_v9 = vsub.s32 5, %v18075_v24 }
 0x4ed   : > { %v1163_v10 = vpop.f32.mrf.mxu0 }
 0x4ee   : > { %1285 = vrot.lane.b32.xlu0 %v1163_v10, %s17951_s28  ;;  %v1430_v10 = vrot.slane %v730_v63, %v18211_v7 }
 0x4ef   : > { %v16416_v12 = vpop.f32.mrf.mxu0 }
 0x4f0   : > { %v1434_v12 = vrot.slane %v730_v63, %v18216_v9 }
 0x4f1   : > { %v1166_v13 = vpop.f32.mrf.mxu0 }
 0x4f2   : > { %1323 = vrot.lane.b32.xlu0 %v16852_v11, %s17950_s27  ;;  %v18221_v11 = vsub.s32 6, %v18075_v24  ;;  %v18226_v13 = vsub.s32 7, %v18075_v24 }
 0x4f3   : > { %v16417_v14 = vpop.f32.mrf.mxu0 }
 0x4f4   : > { %v1438_v14 = vrot.slane %v730_v63, %v18221_v11 }
 0x516   : > { %v1274_v15 = vpop.f32.mrf.mxu0 }
 0x517   : > { %1289 = vrot.lane.b32.xlu1 %v1274_v15, %s17952_s29  ;;  %v1442_v15 = vrot.slane %v730_v63, %v18226_v13  ;;  %v16921_v63 = vld [vmem:[%s18028_s12 + $0x34] ss:$80 sps:$4 sm:$0xff]  }
 0x518   : > { %v16428_v16 = vpop.f32.mrf.mxu0 }
 0x519   : > { %v731_v16 = vld [vmem:[%s18033_s15 + $0xf] sm:$0xff] }
 0x51a   : > { %v1277_v19 = vpop.f32.mrf.mxu0  ;;  %v1454_v24 = vrot.slane %v731_v16, %v18201_v0 }
 0x51b   : > { %1335 = vrot.lane.b32.xlu1 %v13860_v17, %s17950_s27  ;;  %v1446_v17 = vrot.slane %v731_v16, %v18078_v25  ;;  %v1450_v19 = vrot.slane %v731_v16, %v18090_v34 }
 0x51c   : > { %v16429_v20 = vpop.f32.mrf.mxu0 }
 0x51d   : > { %v1458_v20 = vrot.slane %v731_v16, %v18204_v3 }
 0x558   : > { %v1282_v23 = vpop.permute.xlu1 %1281 }
 0x559   : > { %v1292_v26 = vsel %vm838_vm4, %v940_v62, %v1282_v23  ;;  %v16882_v62 = vld [vmem:[%s18028_s12 + $0x20c] ss:$80 sps:$4 sm:$0xff]   ;;  %v1470_v23 = vrot.slane %v731_v16, %v18221_v11 }
 0x560   : > { %v1286_v21 = vpop.permute.xlu0 %1285 }
 0x561   : > { %v1294_v27 = vsel %vm1293_vm7, %v1292_v26, %v1286_v21  ;;  %v1462_v21 = vrot.slane %v731_v16, %v18211_v7  ;;  %v1474_v26 = vrot.slane %v731_v16, %v18226_v13 }
 0x564   : > { %v1324_v22 = vpop.permute.xlu0 %1323 }
 0x565   : > { %16437 = vmatpush3.bf16.msra.mxu1 %v1324_v22  ;;  %v1466_v22 = vrot.slane %v731_v16, %v18216_v9  ;;  %v16936_v16 = vld [vmem:[%s18028_s12 + $0x18c] ss:$80 sps:$4 sm:$0xff]  }
 0x566   : > { %1917 = vmatprep.subr.bf16.mxu1 %v16858_v48  ;;  %v16900_v48 = vld [vmem:[%s18028_s12 + $0x2c] ss:$80 sps:$4 sm:$0xff]  }
 0x589   : > { %v1290_v28 = vpop.permute.xlu1 %1289 }
 0x58a   : > { %v1296_v29 = vsel %vm1295_vm8, %v1294_v27, %v1290_v28  ;;  %v13867_v27 = vld [vmem:[%s18033_s15 + $0x17] ss:$0 sm:$0xff] }
 0x58b   : > { %v1297_v30 = vpack.c.bf16 %v1296_v29, %v1296_v29 }
 0x58d   : > { %16439 = vmatmul.mubr.msk.bf16.vlgmr.msra.gmra.mxu1 %vm788_vm3, %v1297_v30  ;;  %v1336_v31 = vpop.permute.xlu1 %1335 }
 0x58e   : > { %1941 = vmatprep.mubr.bf16.mxu1 %v17947_v2  ;;  %1918 = vmatpush1.bf16.msra.mxu1 %v16856_v47  ;;  %v16897_v47 = vld [vmem:[%s18028_s12 + $0x24] ss:$80 sps:$4 sm:$0xff]  }
 0x58f   : > { %1919 = vmatprep.subr.bf16.mxu1 %v16864_v50  ;;  %v16898_v50 = vld [vmem:[%s18028_s12 + $0x28] ss:$80 sps:$4 sm:$0xff]  }
 0x592   : > { %1920 = vmatpush1.bf16.msra.mxu1 %v16862_v52  ;;  %v16906_v52 = vld [vmem:[%s18028_s12 + $0x21c] ss:$80 sps:$4 sm:$0xff]  }
 0x593   : > { %1921 = vmatprep.subr.bf16.mxu1 %v16870_v54  ;;  %v16904_v54 = vld [vmem:[%s18028_s12 + $0x218] ss:$80 sps:$4 sm:$0xff]  }
 0x596   : > { %1922 = vmatpush1.bf16.msra.mxu1 %v16868_v56  ;;  %v16912_v56 = vld [vmem:[%s18028_s12 + $0x17c] ss:$80 sps:$4 sm:$0xff]  }
 0x597   : > { %1923 = vmatprep.subr.bf16.mxu1 %v16876_v58  ;;  %v16910_v58 = vld [vmem:[%s18028_s12 + $0x178] ss:$80 sps:$4 sm:$0xff]  }
 0x59a   : > { %1924 = vmatpush1.bf16.msra.mxu1 %v16874_v60  ;;  %v16918_v60 = vld [vmem:[%s18028_s12 + $0xdc] ss:$80 sps:$4 sm:$0xff]  }
 0x59b   : > { %1999 = vmatprep.subr.bf16.mxu1 %v16882_v62  ;;  %v16916_v62 = vld [vmem:[%s18028_s12 + $0xd8] ss:$80 sps:$4 sm:$0xff]  }
 0x64d   : > { %v1375_v32 = vpop.f32.mrf.mxu1 }
 0x64e   : > { %v1376_v33 = vadd.f32 %v1375_v32, %v1336_v31 }
 0x64f   : > { %v16440_v35 = vpop.f32.mrf.mxu1 }
 0x650   : > { %v1381_v36 = vadd.f32 %v1376_v33, %v18066_v18 }
 0x651   : > { %v1378_v37 = vpop.f32.mrf.mxu1 }
 0x652   : > { %v1382_v38 = vsel %vm788_vm3, %v1381_v36, 0.0  ;;  %v16877_v37 = vld [vmem:[%s18028_s12 + $0x200] ss:$80 sps:$4 sm:$0xff]  }
 0x653   : > { %v16441_v39 = vpop.f32.mrf.mxu1  ;;  %1383 = vadd.xlane.f32.xlu0 %v1382_v38  ;;  %v16880_v38 = vld [vmem:[%s18028_s12 + $0x208] ss:$80 sps:$4 sm:$0xff]  }
 0x669   : > { %1403 = vrot.lane.b32.xlu0 %v18172_v40, %s17950_s27 }
 0x66d   : > { %1803 = vrot.lane.b32.xlu0 %v1422_v5, %s17950_s27  ;;  %v16919_v5 = vld [vmem:[%s18028_s12 + $0x30] ss:$80 sps:$4 sm:$0xff]  }
 0x671   : > { %1805 = vrot.lane.b32.xlu0 %v1426_v8, %s17950_s27  ;;  %v16927_v8 = vld [vmem:[%s18028_s12 + $0x224] ss:$80 sps:$4 sm:$0xff]  }
 0x675   : > { %1809 = vrot.lane.b32.xlu0 %v1434_v12, %s17950_s27  ;;  %v16925_v12 = vld [vmem:[%s18028_s12 + $0x220] ss:$80 sps:$4 sm:$0xff]  }
 0x679   : > { %1813 = vrot.lane.b32.xlu0 %v1442_v15, %s17950_s27  ;;  %v16933_v15 = vld [vmem:[%s18028_s12 + $0x184] ss:$80 sps:$4 sm:$0xff]  }
 0x67d   : > { %1817 = vrot.lane.b32.xlu0 %v1450_v19, %s17950_s27  ;;  %v16934_v19 = vld [vmem:[%s18028_s12 + $0x188] ss:$80 sps:$4 sm:$0xff]  }
 0x681   : > { %1821 = vrot.lane.b32.xlu0 %v1458_v20, %s17950_s27  ;;  %v16942_v20 = vld [vmem:[%s18028_s12 + $0xec] ss:$80 sps:$4 sm:$0xff]  }
 0x685   : > { %1825 = vrot.lane.b32.xlu0 %v1466_v22, %s17950_s27  ;;  %v16940_v22 = vld [vmem:[%s18028_s12 + $0xe8] ss:$80 sps:$4 sm:$0xff]  }
 0x689   : > { %1829 = vrot.lane.b32.xlu0 %v1474_v26, %s17950_s27  ;;  %v16948_v26 = vld [vmem:[%s18028_s12 + $0x4c] ss:$80 sps:$4 sm:$0xff]  }
 0x6dc   : > { %v1384_v42 = vpop.xlane.xlu0 %1383 }
 0x6dd   : > { %v1386_v43 = vmul.f32 0.015625, %v1384_v42  ;;  %v16885_v42 = vld [vmem:[%s18028_s12 + $0x164] ss:$80 sps:$4 sm:$0xff]  }
 0x6df   : > { %v18176_v44 = vsub.f32 %v1381_v36, %v1386_v43  ;;  %v16888_v43 = vld [vmem:[%s18028_s12 + $0x16c] ss:$80 sps:$4 sm:$0xff]  }
 0x6e0   : > { %v1404_v33 = vpop.permute.xlu0 %1403 }
 0x6e1   : > { %v1388_v18 = vmul.f32 %v18176_v44, %v18176_v44 }
 0x6e3   : > { %v1389_v45 = vsel %vm788_vm3, %v1388_v18, 0.0  ;;  %v16891_v18 = vld [vmem:[%s18028_s12 + $0xc4] ss:$80 sps:$4 sm:$0xff]  }
 0x6e4   : > { %1390 = vadd.xlane.f32.xlu1 %v1389_v45  ;;  %v16894_v45 = vld [vmem:[%s18028_s12 + $0xcc] ss:$80 sps:$4 sm:$0xff]  }
 0x6f5   : > { %1801 = vrot.lane.b32.xlu1 %v1418_v4, %s17950_s27  ;;  %v16924_v4 = vld [vmem:[%s18028_s12 + $0x3c] ss:$80 sps:$4 sm:$0xff]  }
 0x6f9   : > { %1799 = vrot.lane.b32.xlu1 %v1414_v6, %s17950_s27  ;;  %v16922_v6 = vld [vmem:[%s18028_s12 + $0x38] ss:$80 sps:$4 sm:$0xff]  }
 0x6fd   : > { %1807 = vrot.lane.b32.xlu1 %v1430_v10, %s17950_s27  ;;  %v16930_v10 = vld [vmem:[%s18028_s12 + $0x22c] ss:$80 sps:$4 sm:$0xff]  }
 0x701   : > { %1811 = vrot.lane.b32.xlu1 %v1438_v14, %s17950_s27  ;;  %v16928_v14 = vld [vmem:[%s18028_s12 + $0x228] ss:$80 sps:$4 sm:$0xff]  }
 0x705   : > { %1815 = vrot.lane.b32.xlu1 %v1446_v17, %s17950_s27  ;;  %v16931_v17 = vld [vmem:[%s18028_s12 + $0x180] ss:$80 sps:$4 sm:$0xff]  }
 0x709   : > { %1819 = vrot.lane.b32.xlu1 %v1454_v24, %s17950_s27  ;;  %v16939_v24 = vld [vmem:[%s18028_s12 + $0xe4] ss:$80 sps:$4 sm:$0xff]  }
 0x70d   : > { %1823 = vrot.lane.b32.xlu1 %v1462_v21, %s17950_s27  ;;  %v16937_v21 = vld [vmem:[%s18028_s12 + $0xe0] ss:$80 sps:$4 sm:$0xff]  }
 0x711   : > { %1827 = vrot.lane.b32.xlu1 %v1470_v23, %s17950_s27  ;;  %v16945_v23 = vld [vmem:[%s18028_s12 + $0x44] ss:$80 sps:$4 sm:$0xff]  }
 0x715   : > { %1831 = vrot.lane.b32.xlu1 %v13867_v27, %s17950_s27  ;;  %v16943_v27 = vld [vmem:[%s18028_s12 + $0x40] ss:$80 sps:$4 sm:$0xff]  }
 0x76d   : > { %v1391_v28 = vpop.xlane.xlu1 %1390 }
 0x76e   : > { %v1392_v29 = vmul.f32 0.015625, %v1391_v28  ;;  %v16946_v28 = vld [vmem:[%s18028_s12 + $0x48] ss:$80 sps:$4 sm:$0xff]  }
 0x770   : > { %v1393_v30 = vadd.f32 1e-05, %v1392_v29  ;;  %v16949_v29 = vld [vmem:[%s18023_s8 + $0x78] sm:$0xff]  }
 0x772   : > { %17333 = vrsqrt.f32 %v1393_v30  ;;  %v16950_v30 = vld [vmem:[%s18023_s8 + $0xf8] sm:$0xff]  }
 0x77f   : > { %v17334_v31 = vpop.eup %17333 }
 0x780   : > { %v1395_v32 = vmul.f32 %v17334_v31, %v18176_v44  ;;  %v16886_v44 = vld [vmem:[%s18028_s12 + $0x168] ss:$80 sps:$4 sm:$0xff]  }
 0x781   : > { %v16951_v31 = vld [vmem:[%s18023_s8 + $0x38] sm:$0xff]  }
 0x782   : > { %v1402_v35 = vmul.f32 %v18172_v40, %v1395_v32  ;;  %v16883_v40 = vld [vmem:[%s18028_s12 + $0x160] ss:$80 sps:$4 sm:$0xff]   ;;  %v16952_v32 = vld [vmem:[%s18023_s8 + $0xb8] sm:$0xff]  }
 0x784   : > { %v18255_v36 = vadd.f32 %v1404_v33, %v1402_v35  ;;  %v16953_v33 = vld [vmem:[%s18023_s8 + $0x70] sm:$0xff]  }
 0x785   : > { %v16954_v35 = vld [vmem:[%s18023_s8 + $0xf0] sm:$0xff]  }
 0x786   : > { %v18261_v39 = vpack.c.bf16 %v18255_v36, %v18255_v36 }
 0x788   : > { %13932 = vmatmul.mubr.msk.bf16.vlgmr.msra.gmra.mxu0 %vm788_vm3, %v18261_v39  ;;  %13933 = vmatmul.mubr.msk.bf16.vlgmr.msra.gmra.mxu1 %vm788_vm3, %v18261_v39 }
 0x789   : > { %1959 = vmatpush1.bf16.msra.mxu0 %v16877_v37  ;;  %2000 = vmatpush1.bf16.msra.mxu1 %v16880_v38  ;;  %v16955_v37 = vld [vmem:[%s18023_s8 + $0x30] sm:$0xff]  }
 0x78a   : > { %1960 = vmatprep.subr.bf16.mxu0 %v16885_v42  ;;  %2001 = vmatprep.subr.bf16.mxu1 %v16888_v43  ;;  %v16956_v38 = vld [vmem:[%s18023_s8 + $0xb0] sm:$0xff]   ;;  %v16957_v42 = vld [vmem:[%s18023_s8 + $0x68] sm:$0xff]  }
 0x78b   : > { %1982 = vmatprep.mubr.bf16.mxu0 %v17947_v2  ;;  %2023 = vmatprep.mubr.bf16.mxu1 %v17947_v2  ;;  %v16958_v43 = vld [vmem:[%s18023_s8 + $0xe8] sm:$0xff]  }
 0x78d   : > { %1961 = vmatpush1.bf16.msra.mxu0 %v16883_v40  ;;  %2002 = vmatpush1.bf16.msra.mxu1 %v16886_v44  ;;  %v16959_v40 = vld [vmem:[%s18023_s8 + $0x28] sm:$0xff]  }
 0x78e   : > { %1962 = vmatprep.subr.bf16.mxu0 %v16891_v18  ;;  %2003 = vmatprep.subr.bf16.mxu1 %v16894_v45  ;;  %v16960_v44 = vld [vmem:[%s18023_s8 + $0xa8] sm:$0xff]   ;;  %v16962_v18 = vld [vmem:[%s18023_s8 + $0xe0] sm:$0xff]  }
 0x78f   : > { %v16963_v45 = vld [vmem:[%s18023_s8 + $0x20] sm:$0xff]  }
 0x791   : > { %1963 = vmatpush1.bf16.msra.mxu0 %v16889_v41  ;;  %2004 = vmatpush1.bf16.msra.mxu1 %v16892_v46  ;;  %v16964_v41 = vld [vmem:[%s18023_s8 + $0xa0] sm:$0xff]   ;;  %v16965_v46 = vld [vmem:[%s18023_s8 + $0x58] sm:$0xff]  }
 0x792   : > { %1964 = vmatprep.subr.bf16.mxu0 %v16897_v47  ;;  %2005 = vmatprep.subr.bf16.mxu1 %v16900_v48  ;;  %v16966_v47 = vld [vmem:[%s18023_s8 + $0xd8] sm:$0xff]  }
 0x793   : > { %v16967_v48 = vld [vmem:[%s18023_s8 + $0x18] sm:$0xff]  }
 0x795   : > { %1965 = vmatpush1.bf16.msra.mxu0 %v16895_v49  ;;  %2006 = vmatpush1.bf16.msra.mxu1 %v16898_v50  ;;  %v16968_v49 = vld [vmem:[%s18023_s8 + $0x98] sm:$0xff]   ;;  %v16969_v50 = vld [vmem:[%s18023_s8 + $0x50] sm:$0xff]  }
 0x796   : > { %2040 = vmatprep.subr.bf16.mxu0 %v16903_v51  ;;  %2081 = vmatprep.subr.bf16.mxu1 %v16906_v52  ;;  %v16970_v51 = vld [vmem:[%s18023_s8 + $0xd0] sm:$0xff]  }
 0x797   : > { %v16971_v52 = vld [vmem:[%s18023_s8 + $0x10] sm:$0xff]  }
 0x798   : > { %13934 = vmatmul.mubr.msk.bf16.vlgmr.msra.gmra.mxu0 %vm788_vm3, %v18261_v39  ;;  %13935 = vmatmul.mubr.msk.bf16.vlgmr.msra.gmra.mxu1 %vm788_vm3, %v18261_v39 }
 0x799   : > { %2041 = vmatpush1.bf16.msra.mxu0 %v16901_v53  ;;  %2082 = vmatpush1.bf16.msra.mxu1 %v16904_v54  ;;  %v16972_v53 = vld [vmem:[%s18023_s8 + $0x90] sm:$0xff]   ;;  %v16973_v54 = vld [vmem:[%s18023_s8 + $0x48] sm:$0xff]  }
 0x79a   : > { %2042 = vmatprep.subr.bf16.mxu0 %v16909_v55  ;;  %2083 = vmatprep.subr.bf16.mxu1 %v16912_v56  ;;  %v16974_v55 = vld [vmem:[%s18023_s8 + $0xc8] sm:$0xff]  }
 0x79b   : > { %2064 = vmatprep.mubr.bf16.mxu0 %v17947_v2  ;;  %2105 = vmatprep.mubr.bf16.mxu1 %v17947_v2  ;;  %v16975_v56 = vld [vmem:[%s18023_s8 + $0x8] sm:$0xff]  }
 0x79d   : > { %2043 = vmatpush1.bf16.msra.mxu0 %v16907_v57  ;;  %2084 = vmatpush1.bf16.msra.mxu1 %v16910_v58  ;;  %v16976_v57 = vld [vmem:[%s18023_s8 + $0x88] sm:$0xff]   ;;  %v16977_v58 = vld [vmem:[%s18023_s8 + $0x40] sm:$0xff]  }
 0x79e   : > { %2044 = vmatprep.subr.bf16.mxu0 %v16915_v59  ;;  %2085 = vmatprep.subr.bf16.mxu1 %v16918_v60  ;;  %v16978_v59 = vld [vmem:[%s18023_s8 + $0xc0] sm:$0xff]  }
 0x79f   : > { %v16979_v60 = vld [vmem:[%s18023_s8] sm:$0xff]  }
 0x7a1   : > { %2045 = vmatpush1.bf16.msra.mxu0 %v16913_v61  ;;  %2086 = vmatpush1.bf16.msra.mxu1 %v16916_v62  ;;  %v16980_v61 = vld [vmem:[%s18023_s8 + $0x80] sm:$0xff]   ;;  %v16981_v62 = vld [vmem:[%s18023_s8 + $0x178] sm:$0xff]  }
 0x7a2   : > { %2046 = vmatprep.subr.bf16.mxu0 %v16921_v63  ;;  %2087 = vmatprep.subr.bf16.mxu1 %v16924_v4  ;;  %v16982_v63 = vld [vmem:[%s18023_s8 + $0x1f8] sm:$0xff]   ;;  %v1802_v4 = vpop.permute.xlu1 %1801 }
 0x7a5   : > { %2047 = vmatpush1.bf16.msra.mxu0 %v16919_v5  ;;  %2088 = vmatpush1.bf16.msra.mxu1 %v16922_v6  ;;  %v1804_v5 = vpop.permute.xlu0 %1803 }
 0x7a6   : > { %2122 = vmatprep.subr.bf16.mxu0 %v16927_v8  ;;  %2163 = vmatprep.subr.bf16.mxu1 %v16930_v10  ;;  %v1800_v6 = vpop.permute.xlu1 %1799 }
 0x7a8   : > { %13936 = vmatmul.mubr.msk.bf16.vlgmr.msra.gmra.mxu0 %vm788_vm3, %v18261_v39  ;;  %13937 = vmatmul.mubr.msk.bf16.vlgmr.msra.gmra.mxu1 %vm788_vm3, %v18261_v39 }
 0x7a9   : > { %2123 = vmatpush1.bf16.msra.mxu0 %v16925_v12  ;;  %2164 = vmatpush1.bf16.msra.mxu1 %v16928_v14  ;;  %v1806_v8 = vpop.permute.xlu0 %1805  ;;  %v1833_v14 = vsel %vm788_vm3, %v1800_v6, %v1802_v4 }
 0x7aa   : > { %2124 = vmatprep.subr.bf16.mxu0 %v16933_v15  ;;  %2165 = vmatprep.subr.bf16.mxu1 %v16936_v16  ;;  %v18363_v10 = vpop.permute.xlu1 %1807  ;;  %v1835_v12 = vsel %vm788_vm3, %v1804_v5, %v1806_v8 }
 0x7ab   : > { %2146 = vmatprep.mubr.bf16.mxu0 %v17947_v2  ;;  %2187 = vmatprep.mubr.bf16.mxu1 %v17947_v2 }
 0x7ad   : > { %2125 = vmatpush1.bf16.msra.mxu0 %v16931_v17  ;;  %2166 = vmatpush1.bf16.msra.mxu1 %v16934_v19  ;;  %v1836_v17 = vsel %vm788_vm3, %v1806_v8, %v18363_v10 }
 0x7ae   : > { %2126 = vmatprep.subr.bf16.mxu0 %v16939_v24  ;;  %2167 = vmatprep.subr.bf16.mxu1 %v16942_v20  ;;  %v1834_v20 = vsel %vm788_vm3, %v1802_v4, %v1804_v5  ;;  %v16995_v4 = vld [vmem:[%s18023_s8 + $0x120] sm:$0xff]  }
 0x7af   : > { %v16996_v5 = vld [vmem:[%s18023_s8 + $0x1a0] sm:$0xff]  }
 0x7b1   : > { %2127 = vmatpush1.bf16.msra.mxu0 %v16937_v21  ;;  %2168 = vmatpush1.bf16.msra.mxu1 %v16940_v22 }
 0x7b2   : > { %2128 = vmatprep.subr.bf16.mxu0 %v16945_v23  ;;  %2169 = vmatprep.subr.bf16.mxu1 %v16948_v26 }
 0x7b5   : > { %2129 = vmatpush1.bf16.msra.mxu0 %v16943_v27  ;;  %2170 = vmatpush1.bf16.msra.mxu1 %v16946_v28 }
 0x7b6   : > { %15540 = vmatprep.subr.bf16.mxu0 %v16949_v29  ;;  %15562 = vmatprep.subr.bf16.mxu1 %v16950_v30 }
 0x7b8   : > { %13938 = vmatmul.mubr.msk.bf16.vlgmr.msra.gmra.mxu0 %vm788_vm3, %v18261_v39  ;;  %13939 = vmatmul.mubr.msk.bf16.vlgmr.msra.gmra.mxu1 %vm788_vm3, %v18261_v39  ;;  %v16961_v39 = vld [vmem:[%s18023_s8 + $0x60] sm:$0xff]  }
 0x7b9   : > { %15541 = vmatpush3.bf16.msra.mxu0 %v16951_v31  ;;  %15563 = vmatpush3.bf16.msra.mxu1 %v16952_v32 }
 0x7ba   : > { %15542 = vmatprep.subr.bf16.mxu0 %v16953_v33  ;;  %15564 = vmatprep.subr.bf16.mxu1 %v16954_v35 }
 0x7bd   : > { %15543 = vmatpush3.bf16.msra.mxu0 %v16955_v37  ;;  %15565 = vmatpush3.bf16.msra.mxu1 %v16956_v38 }
 0x7be   : > { %15544 = vmatprep.subr.bf16.mxu0 %v16957_v42  ;;  %15566 = vmatprep.subr.bf16.mxu1 %v16958_v43  ;;  %v16983_v42 = vld [vmem:[%s18023_s8 + $0x138] sm:$0xff]  }
 0x7bf   : > { %v16984_v43 = vld [vmem:[%s18023_s8 + $0x1b8] sm:$0xff]  }
 0x7c1   : > { %15545 = vmatpush3.bf16.msra.mxu0 %v16959_v40  ;;  %15567 = vmatpush3.bf16.msra.mxu1 %v16960_v44  ;;  %v18372_v40 = vpop.permute.xlu1 %1811 }
 0x7c2   : > { %15546 = vmatprep.subr.bf16.mxu0 %v16961_v39  ;;  %15568 = vmatprep.subr.bf16.mxu1 %v16962_v18  ;;  %v16985_v18 = vld [vmem:[%s18023_s8 + $0x170] sm:$0xff]  }
 0x7c5   : > { %15547 = vmatpush3.bf16.msra.mxu0 %v16963_v45  ;;  %15569 = vmatpush3.bf16.msra.mxu1 %v16964_v41  ;;  %v16986_v45 = vld [vmem:[%s18023_s8 + $0x1f0] sm:$0xff]   ;;  %v18376_v41 = vpop.permute.xlu0 %1809 }
 0x7c6   : > { %15548 = vmatprep.subr.bf16.mxu0 %v16965_v46  ;;  %15570 = vmatprep.subr.bf16.mxu1 %v16966_v47  ;;  %v16987_v46 = vld [vmem:[%s18023_s8 + $0x1b0] sm:$0xff]  }
 0x7c7   : > { %v16988_v47 = vld [vmem:[%s18023_s8 + $0x130] sm:$0xff]  }
 0x7c9   : > { %15549 = vmatpush3.bf16.msra.mxu0 %v16967_v48  ;;  %15571 = vmatpush3.bf16.msra.mxu1 %v16968_v49  ;;  %v16989_v48 = vld [vmem:[%s18023_s8 + $0x168] sm:$0xff]  }
 0x7ca   : > { %15550 = vmatprep.subr.bf16.mxu0 %v16969_v50  ;;  %15572 = vmatprep.subr.bf16.mxu1 %v16970_v51  ;;  %v16990_v49 = vld [vmem:[%s18023_s8 + $0x1e8] sm:$0xff]   ;;  %v18382_v50 = vpop.permute.xlu1 %1815  ;;  %v1814_v51 = vpop.permute.xlu0 %1813 }
 0x7cd   : > { %15551 = vmatpush3.bf16.msra.mxu0 %v16971_v52  ;;  %15573 = vmatpush3.bf16.msra.mxu1 %v16972_v53  ;;  %v16991_v52 = vld [vmem:[%s18023_s8 + $0x128] sm:$0xff]  }
 0x7ce   : > { %15552 = vmatprep.subr.bf16.mxu0 %v16973_v54  ;;  %15574 = vmatprep.subr.bf16.mxu1 %v16974_v55  ;;  %v16992_v53 = vld [vmem:[%s18023_s8 + $0x1a8] sm:$0xff]  }
 0x7d1   : > { %15553 = vmatpush3.bf16.msra.mxu0 %v16975_v56  ;;  %15575 = vmatpush3.bf16.msra.mxu1 %v16976_v57  ;;  %v1838_v56 = vsel %vm788_vm3, %v18376_v41, %v18372_v40  ;;  %v1840_v57 = vsel %vm788_vm3, %v1814_v51, %v18382_v50 }
 0x7d2   : > { %15554 = vmatprep.subr.bf16.mxu0 %v16977_v58  ;;  %15576 = vmatprep.subr.bf16.mxu1 %v16978_v59  ;;  %v16993_v58 = vld [vmem:[%s18023_s8 + $0x160] sm:$0xff]  }
 0x7d3   : > { %v16994_v59 = vld [vmem:[%s18023_s8 + $0x1e0] sm:$0xff]  }
 0x7d5   : > { %15555 = vmatpush3.bf16.msra.mxu0 %v16979_v60  ;;  %15577 = vmatpush3.bf16.msra.mxu1 %v16980_v61 }
 0x7d6   : > { %15584 = vmatprep.subr.bf16.mxu0 %v16981_v62  ;;  %15606 = vmatprep.subr.bf16.mxu1 %v16982_v63 }
 0x848   : > { %v1902_v15 = vpop.f32.mrf.mxu0  ;;  %v1943_v16 = vpop.f32.mrf.mxu1 }
 0x849   : > { %v1903_v19 = vadd.f32 %v1902_v15, %v1833_v14  ;;  %v1944_v24 = vadd.f32 %v1943_v16, %v1835_v12  ;;  %v16997_v12 = vld [vmem:[%s18023_s8 + $0x158] sm:$0xff]  }
 0x84a   : > { %v1904_v21 = vpop.f32.mrf.mxu0  ;;  %v1945_v22 = vpop.f32.mrf.mxu1  ;;  %v16998_v14 = vld [vmem:[%s18023_s8 + $0x1d8] sm:$0xff]  }
 0x84b   : > { %v1905_v23 = vadd.f32 %v1904_v21, %v1834_v20  ;;  %v1946_v26 = vadd.f32 %v1945_v22, %v1836_v17  ;;  %v2196_v27 = vmax.f32 %v1903_v19, 0.0  ;;  %v2198_v28 = vmax.f32 %v1944_v24, 0.0  ;;  %v16999_v21 = vld [vmem:[%s18023_s8 + $0x198] sm:$0xff]  }
 0x84c   : > { %v1906_v29 = vpop.f32.mrf.mxu0  ;;  %v1947_v30 = vpop.f32.mrf.mxu1  ;;  %v17000_v22 = vld [vmem:[%s18023_s8 + $0x118] sm:$0xff]  }
 0x84d   : > { %v2197_v31 = vmax.f32 %v1905_v23, 0.0  ;;  %v2199_v32 = vmax.f32 %v1946_v26, 0.0  ;;  %v2212_v44 = vpack.c.bf16 %v2196_v27, %v2196_v27  ;;  %v2214_v39 = vpack.c.bf16 %v2198_v28, %v2198_v28  ;;  %v18399_v23 = vpop.permute.xlu1 %1819  ;;  %v17001_v26 = vld [vmem:[%s18023_s8 + $0x150] sm:$0xff]   ;;  %v18403_v28 = vpop.permute.xlu0 %1817 }
 0x84e   : > { %v1907_v33 = vpop.f32.mrf.mxu0  ;;  %v1948_v35 = vpop.f32.mrf.mxu1  ;;  %v17002_v27 = vld [vmem:[%s18023_s8 + $0x1d0] sm:$0xff]  }
 0x84f   : > { %v2213_v37 = vpack.c.bf16 %v2197_v31, %v2197_v31  ;;  %v2215_v38 = vpack.c.bf16 %v2199_v32, %v2199_v32  ;;  %v17003_v29 = vld [vmem:[%s18023_s8 + $0x190] sm:$0xff]   ;;  %v17005_v31 = vld [vmem:[%s18023_s8 + $0x148] sm:$0xff]   ;;  %v1839_v33 = vsel %vm788_vm3, %v18372_v40, %v1814_v51 }
 0x850   : > { %v17004_v30 = vld [vmem:[%s18023_s8 + $0x110] sm:$0xff]   ;;  %v17006_v32 = vld [vmem:[%s18023_s8 + $0x1c8] sm:$0xff]  }
 0x851   : > { %3034 = vmatprep.mubr.bf16.mxu0 %v2213_v37  ;;  %3074 = vmatprep.mubr.bf16.mxu1 %v2215_v38  ;;  %v18411_v35 = vpop.permute.xlu1 %1823  ;;  %v1837_v37 = vsel %vm788_vm3, %v18363_v10, %v18376_v41  ;;  %v18416_v38 = vpop.permute.xlu0 %1821  ;;  %v17009_v41 = vld [vmem:[%s18023_s8 + $0x140] sm:$0xff]  }
 0x852   : > { %3035 = vmatmul.mubr.bf16.vlgmr.msra.gmra.mxu0 %v2212_v44  ;;  %3075 = vmatmul.mubr.bf16.vlgmr.msra.gmra.mxu1 %v2214_v39  ;;  %v17008_v44 = vld [vmem:[%s18023_s8 + $0x188] sm:$0xff]   ;;  %v1844_v10 = vsel %vm788_vm3, %v18416_v38, %v18411_v35 }
 0x853   : > { %15585 = vmatpush3.bf16.msra.mxu0 %v16983_v42  ;;  %15607 = vmatpush3.bf16.msra.mxu1 %v16984_v43  ;;  %v1842_v42 = vsel %vm788_vm3, %v18403_v28, %v18399_v23  ;;  %v17007_v43 = vld [vmem:[%s18023_s8 + $0x108] sm:$0xff]  }
 0x854   : > { %15586 = vmatprep.subr.bf16.mxu0 %v16985_v18  ;;  %15608 = vmatprep.subr.bf16.mxu1 %v16986_v45 }
 0x857   : > { %15609 = vmatpush3.bf16.msra.mxu1 %v16987_v46  ;;  %15587 = vmatpush3.bf16.msra.mxu0 %v16988_v47  ;;  %v17010_v46 = vld [vmem:[%s18023_s8 + $0x1c0] sm:$0xff]  }
 0x858   : > { %v1984_v54 = vpop.f32.mrf.mxu0  ;;  %v2025_v55 = vpop.f32.mrf.mxu1  ;;  %15588 = vmatprep.subr.bf16.mxu0 %v16989_v48  ;;  %15610 = vmatprep.subr.bf16.mxu1 %v16990_v49 }
 0x859   : > { %v1985_v40 = vadd.f32 %v1984_v54, %v1837_v37  ;;  %v2026_v39 = vadd.f32 %v2025_v55, %v1839_v33  ;;  %v17028_v33 = vld [vmem:[%s18023_s8 + $0x2a0] sm:$0xff]  }
 0x85a   : > { %v1986_v60 = vpop.f32.mrf.mxu0  ;;  %v2027_v61 = vpop.f32.mrf.mxu1 }
 0x85b   : > { %v1987_v62 = vadd.f32 %v1986_v60, %v1838_v56  ;;  %v2028_v63 = vadd.f32 %v2027_v61, %v1840_v57  ;;  %15589 = vmatpush3.bf16.msra.mxu0 %v16991_v52  ;;  %15611 = vmatpush3.bf16.msra.mxu1 %v16992_v53  ;;  %v17011_v52 = vld [vmem:[%s18023_s8 + $0x100] sm:$0xff]   ;;  %v2200_v54 = vmax.f32 %v1985_v40, 0.0  ;;  %v2202_v55 = vmax.f32 %v2026_v39, 0.0  ;;  %v17029_v40 = vld [vmem:[%s18023_s8 + $0x258] sm:$0xff]  }
 0x85c   : > { %v1988_v6 = vpop.f32.mrf.mxu0  ;;  %v2029_v8 = vpop.f32.mrf.mxu1  ;;  %15590 = vmatprep.subr.bf16.mxu0 %v16993_v58  ;;  %15612 = vmatprep.subr.bf16.mxu1 %v16994_v59  ;;  %v17012_v53 = vld [vmem:[%s18023_s8 + $0x180] sm:$0xff]   ;;  %v17013_v58 = vld [vmem:[%s18023_s8 + $0x278] sm:$0xff]  }
 0x85d   : > { %v2201_v15 = vmax.f32 %v1987_v62, 0.0  ;;  %v2203_v16 = vmax.f32 %v2028_v63, 0.0  ;;  %v17014_v59 = vld [vmem:[%s18023_s8 + $0x2f8] sm:$0xff]   ;;  %v2218_v6 = vpack.c.bf16 %v2202_v55, %v2202_v55  ;;  %v1843_v55 = vsel %vm788_vm3, %v18399_v23, %v18416_v38  ;;  %v17039_v38 = vld [vmem:[%s18023_s8 + $0x208] sm:$0xff]  }
 0x85e   : > { %v1989_v17 = vpop.f32.mrf.mxu0  ;;  %v2030_v19 = vpop.f32.mrf.mxu1  ;;  %v17016_v8 = vld [vmem:[%s18023_s8 + $0x238] sm:$0xff]  }
 0x85f   : > { %v2217_v24 = vpack.c.bf16 %v2201_v15, %v2201_v15  ;;  %v2219_v20 = vpack.c.bf16 %v2203_v16, %v2203_v16  ;;  %15591 = vmatpush3.bf16.msra.mxu0 %v16995_v4  ;;  %15613 = vmatpush3.bf16.msra.mxu1 %v16996_v5  ;;  %v17015_v4 = vld [vmem:[%s18023_s8 + $0x2b8] sm:$0xff]   ;;  %v2216_v5 = vpack.c.bf16 %v2200_v54, %v2200_v54  ;;  %v17018_v15 = vld [vmem:[%s18023_s8 + $0x2f0] sm:$0xff]   ;;  %v17038_v54 = vld [vmem:[%s18023_s8 + $0x2c8] sm:$0xff]  }
 0x860   : > { %15592 = vmatprep.subr.bf16.mxu0 %v16997_v12  ;;  %15614 = vmatprep.subr.bf16.mxu1 %v16998_v14  ;;  %v17017_v14 = vld [vmem:[%s18023_s8 + $0x270] sm:$0xff]  }
 0x861   : > { %3114 = vmatprep.mubr.bf16.mxu0 %v2217_v24  ;;  %3154 = vmatprep.mubr.bf16.mxu1 %v2219_v20  ;;  %v17019_v17 = vld [vmem:[%s18023_s8 + $0x2b0] sm:$0xff]   ;;  %v17022_v24 = vld [vmem:[%s18023_s8 + $0x2e8] sm:$0xff]  }
 0x862   : > { %v17020_v19 = vld [vmem:[%s18023_s8 + $0x230] sm:$0xff]   ;;  %v17021_v20 = vld [vmem:[%s18023_s8 + $0x268] sm:$0xff]  }
 0x863   : > { %15615 = vmatpush3.bf16.msra.mxu1 %v16999_v21  ;;  %15593 = vmatpush3.bf16.msra.mxu0 %v17000_v22  ;;  %v17024_v21 = vld [vmem:[%s18023_s8 + $0x2a8] sm:$0xff]  }
 0x864   : > { %15594 = vmatprep.subr.bf16.mxu0 %v17001_v26  ;;  %15616 = vmatprep.subr.bf16.mxu1 %v17002_v27  ;;  %v17023_v27 = vld [vmem:[%s18023_s8 + $0x228] sm:$0xff]  }
 0x867   : > { %15617 = vmatpush3.bf16.msra.mxu1 %v17003_v29  ;;  %15595 = vmatpush3.bf16.msra.mxu0 %v17004_v30  ;;  %v17026_v29 = vld [vmem:[%s18023_s8 + $0x2e0] sm:$0xff]  }
 0x868   : > { %v18423_v18 = vpop.f32.mrf.mxu0  ;;  %v18425_v45 = vpop.f32.mrf.mxu1  ;;  %15596 = vmatprep.subr.bf16.mxu0 %v17005_v31  ;;  %15618 = vmatprep.subr.bf16.mxu1 %v17006_v32  ;;  %v17025_v30 = vld [vmem:[%s18023_s8 + $0x260] sm:$0xff]  }
 0x86a   : > { %v2068_v47 = vpop.f32.mrf.mxu0  ;;  %v2109_v48 = vpop.f32.mrf.mxu1 }
 0x86b   : > { %v2069_v49 = vadd.f32 %v2068_v47, %v1842_v42  ;;  %v2110_v51 = vadd.f32 %v2109_v48, %v1844_v10  ;;  %15597 = vmatpush3.bf16.msra.mxu0 %v17007_v43  ;;  %15619 = vmatpush3.bf16.msra.mxu1 %v17008_v44  ;;  %v17027_v43 = vld [vmem:[%s18023_s8 + $0x220] sm:$0xff]   ;;  %v17030_v44 = vld [vmem:[%s18023_s8 + $0x2d8] sm:$0xff]   ;;  %v17034_v48 = vld [vmem:[%s18023_s8 + $0x2d0] sm:$0xff]  }
 0x86c   : > { %v2070_v56 = vpop.f32.mrf.mxu0  ;;  %v2111_v57 = vpop.f32.mrf.mxu1  ;;  %15598 = vmatprep.subr.bf16.mxu0 %v17009_v41  ;;  %15620 = vmatprep.subr.bf16.mxu1 %v17010_v46  ;;  %v17032_v46 = vld [vmem:[%s18023_s8 + $0x298] sm:$0xff]  }
 0x86d   : > { %v2207_v60 = vmax.f32 %v2110_v51, 0.0  ;;  %v2205_v61 = vmax.f32 %v2069_v49, 0.0  ;;  %v18456_v41 = vpop.permute.xlu1 %1827  ;;  %v17031_v47 = vld [vmem:[%s18023_s8 + $0x218] sm:$0xff]   ;;  %v18461_v49 = vpop.permute.xlu0 %1825  ;;  %v17033_v51 = vld [vmem:[%s18023_s8 + $0x250] sm:$0xff]   ;;  %v17037_v57 = vld [vmem:[%s18023_s8 + $0x248] sm:$0xff]  }
 0x86e   : > { %v2071_v62 = vpop.f32.mrf.mxu0  ;;  %v2112_v63 = vpop.f32.mrf.mxu1 }
 0x86f   : > { %15599 = vmatpush3.bf16.msra.mxu0 %v17011_v52  ;;  %15621 = vmatpush3.bf16.msra.mxu1 %v17012_v53  ;;  %v2223_v12 = vpack.c.bf16 %v2207_v60, %v2207_v60  ;;  %v2221_v16 = vpack.c.bf16 %v2205_v61, %v2205_v61  ;;  %v17036_v52 = vld [vmem:[%s18023_s8 + $0x290] sm:$0xff]   ;;  %v1846_v60 = vsel %vm788_vm3, %v18461_v49, %v18456_v41  ;;  %v17040_v61 = vld [vmem:[%s18023_s8 + $0x288] sm:$0xff]   ;;  %v17041_v63 = vld [vmem:[%s18023_s8 + $0x240] sm:$0xff]  }
 0x870   : > { %15628 = vmatprep.subr.bf16.mxu0 %v17013_v58  ;;  %15650 = vmatprep.subr.bf16.mxu1 %v17014_v59  ;;  %v17035_v53 = vld [vmem:[%s18023_s8 + $0x210] sm:$0xff]   ;;  %v1841_v58 = vsel %vm788_vm3, %v18382_v50, %v18403_v28  ;;  %v2108_v62 = vadd.f32 %v18425_v45, %v1843_v55  ;;  %v17042_v50 = vld [vmem:[%s18023_s8 + $0x2c0] sm:$0xff]  }
 0x871   : > { %v1832_v56 = vpop.permute.xlu1 %1831  ;;  %v18474_v59 = vpop.permute.xlu0 %1829  ;;  %v2067_v28 = vadd.f32 %v18423_v18, %v1841_v58  ;;  %v17067_v55 = vld [vmem:[%s18023_s8 + $0x310] sm:$0xff]   ;;  %v17069_v58 = vld [vmem:[%s18023_s8 + $0x348] sm:$0xff]  }
 0x872   : > { %3115 = vmatmul.mubr.bf16.vlgmr.msra.gmra.mxu0 %v2216_v5  ;;  %3155 = vmatmul.mubr.bf16.vlgmr.msra.gmra.mxu1 %v2218_v6  ;;  %v1848_v23 = vsel %vm788_vm3, %v18474_v59, %v1832_v56  ;;  %v17044_v6 = vld [vmem:[%s18023_s8 + $0x280] sm:$0xff]   ;;  %v2206_v45 = vmax.f32 %v2108_v62, 0.0  ;;  %v17070_v56 = vld [vmem:[%s18023_s8 + $0x3c8] sm:$0xff]  }
 0x873   : > { %15651 = vmatpush3.bf16.msra.mxu1 %v17015_v4  ;;  %3234 = vmatprep.mubr.bf16.mxu1 %v2223_v12  ;;  %v17046_v12 = vld [vmem:[%s18023_s8 + $0x3f8] sm:$0xff]  }
 0x874   : > { %15629 = vmatpush3.bf16.msra.mxu0 %v17016_v8  ;;  %3194 = vmatprep.mubr.bf16.mxu0 %v2221_v16  ;;  %v17043_v8 = vld [vmem:[%s18023_s8 + $0x200] sm:$0xff]  }
 0x875   : > { %15630 = vmatprep.subr.bf16.mxu0 %v17017_v14  ;;  %15652 = vmatprep.subr.bf16.mxu1 %v17018_v15  ;;  %v2204_v14 = vmax.f32 %v2067_v28, 0.0  ;;  %v17045_v15 = vld [vmem:[%s18023_s8 + $0x378] sm:$0xff]   ;;  %v17073_v28 = vld [vmem:[%s18023_s8 + $0x340] sm:$0xff]  }
 0x877   : > { %15653 = vmatpush3.bf16.msra.mxu1 %v17019_v17  ;;  %v17048_v17 = vld [vmem:[%s18023_s8 + $0x3b8] sm:$0xff]  }
 0x878   : > { %15631 = vmatpush3.bf16.msra.mxu0 %v17020_v19  ;;  %v18445_v22 = vpop.f32.mrf.mxu0  ;;  %v18447_v26 = vpop.f32.mrf.mxu1  ;;  %15654 = vmatprep.subr.bf16.mxu1 %v17022_v24  ;;  %v2222_v19 = vpack.c.bf16 %v2206_v45, %v2206_v45  ;;  %v17047_v24 = vld [vmem:[%s18023_s8 + $0x338] sm:$0xff]  }
 0x879   : > { %15632 = vmatprep.subr.bf16.mxu0 %v17021_v20  ;;  %v2220_v20 = vpack.c.bf16 %v2204_v14, %v2204_v14 }
 0x87a   : > { %v2150_v31 = vpop.f32.mrf.mxu0  ;;  %v2191_v32 = vpop.f32.mrf.mxu1 }
 0x87b   : > { %15655 = vmatpush3.bf16.msra.mxu1 %v17024_v21  ;;  %v2151_v4 = vadd.f32 %v2150_v31, %v1846_v60  ;;  %v2192_v5 = vadd.f32 %v2191_v32, %v1848_v23  ;;  %v17049_v21 = vld [vmem:[%s18023_s8 + $0x370] sm:$0xff]   ;;  %v1845_v60 = vsel %vm788_vm3, %v18411_v35, %v18461_v49  ;;  %v17071_v23 = vld [vmem:[%s18023_s8 + $0x308] sm:$0xff]   ;;  %v17075_v35 = vld [vmem:[%s18023_s8 + $0x300] sm:$0xff]  }
 0x87c   : > { %15633 = vmatpush3.bf16.msra.mxu0 %v17023_v27  ;;  %v2152_v37 = vpop.f32.mrf.mxu0  ;;  %v2193_v42 = vpop.f32.mrf.mxu1  ;;  %15656 = vmatprep.subr.bf16.mxu1 %v17026_v29  ;;  %v17050_v29 = vld [vmem:[%s18023_s8 + $0x3f0] sm:$0xff]  }
 0x87d   : > { %15634 = vmatprep.subr.bf16.mxu0 %v17025_v30  ;;  %v2209_v16 = vmax.f32 %v2151_v4, 0.0  ;;  %v2211_v18 = vmax.f32 %v2192_v5, 0.0  ;;  %v17052_v31 = vld [vmem:[%s18023_s8 + $0x3b0] sm:$0xff]   ;;  %v17053_v37 = vld [vmem:[%s18023_s8 + $0x368] sm:$0xff]   ;;  %v13940_v5 = vld [vmem:[%s18033_s15 + $0x7] ss:$0 sm:$0xff] }
 0x87e   : > { %v2153_v39 = vpop.f32.mrf.mxu0  ;;  %v2194_v10 = vpop.f32.mrf.mxu1  ;;  %v17051_v32 = vld [vmem:[%s18023_s8 + $0x330] sm:$0xff]   ;;  %v17056_v42 = vld [vmem:[%s18023_s8 + $0x3a8] sm:$0xff]  }
 0x87f   : > { %15657 = vmatpush3.bf16.msra.mxu1 %v17028_v33  ;;  %v2225_v27 = vpack.c.bf16 %v2209_v16, %v2209_v16  ;;  %v2227_v30 = vpack.c.bf16 %v2211_v18, %v2211_v18  ;;  %v17054_v33 = vld [vmem:[%s18023_s8 + $0x3e8] sm:$0xff]   ;;  %v17060_v39 = vld [vmem:[%s18023_s8 + $0x3a0] sm:$0xff]  }
 0x880   : > { %15635 = vmatpush3.bf16.msra.mxu0 %v17027_v43  ;;  %15658 = vmatprep.subr.bf16.mxu1 %v17030_v44  ;;  %v17055_v43 = vld [vmem:[%s18023_s8 + $0x328] sm:$0xff]   ;;  %v17058_v44 = vld [vmem:[%s18023_s8 + $0x3e0] sm:$0xff]  }
 0x881   : > { %15636 = vmatprep.subr.bf16.mxu0 %v17029_v40  ;;  %v17057_v40 = vld [vmem:[%s18023_s8 + $0x360] sm:$0xff]  }
 0x882   : > { %v17059_v10 = vld [vmem:[%s18023_s8 + $0x320] sm:$0xff]  }
 0x883   : > { %15659 = vmatpush3.bf16.msra.mxu1 %v17032_v46  ;;  %v17062_v46 = vld [vmem:[%s18023_s8 + $0x3d8] sm:$0xff]  }
 0x884   : > { %15637 = vmatpush3.bf16.msra.mxu0 %v17031_v47  ;;  %15660 = vmatprep.subr.bf16.mxu1 %v17034_v48  ;;  %v17061_v47 = vld [vmem:[%s18023_s8 + $0x358] sm:$0xff]  }
 0x885   : > { %15638 = vmatprep.subr.bf16.mxu0 %v17033_v51  ;;  %v17064_v48 = vld [vmem:[%s18023_s8 + $0x398] sm:$0xff]  }
 0x886   : > { %v17063_v51 = vld [vmem:[%s18023_s8 + $0x318] sm:$0xff]  }
 0x887   : > { %15661 = vmatpush3.bf16.msra.mxu1 %v17036_v52  ;;  %v17066_v52 = vld [vmem:[%s18023_s8 + $0x3d0] sm:$0xff]  }
 0x888   : > { %15639 = vmatpush3.bf16.msra.mxu0 %v17035_v53  ;;  %15662 = vmatprep.subr.bf16.mxu1 %v17038_v54  ;;  %v17065_v53 = vld [vmem:[%s18023_s8 + $0x350] sm:$0xff]  }
 0x889   : > { %15640 = vmatprep.subr.bf16.mxu0 %v17037_v57  ;;  %v17068_v54 = vld [vmem:[%s18023_s8 + $0x390] sm:$0xff]   ;;  %v1847_v57 = vsel %vm788_vm3, %v18456_v41, %v18474_v59  ;;  %v17076_v41 = vld [vmem:[%s18023_s8 + $0x380] sm:$0xff]  }
 0x88a   : > { %v2190_v62 = vadd.f32 %v18447_v26, %v1847_v57 }
 0x88b   : > { %15663 = vmatpush3.bf16.msra.mxu1 %v17040_v61  ;;  %v17072_v61 = vld [vmem:[%s18023_s8 + $0x388] sm:$0xff]  }
 0x88c   : > { %15641 = vmatpush3.bf16.msra.mxu0 %v17039_v38  ;;  %15664 = vmatprep.subr.bf16.mxu1 %v17042_v50  ;;  %v17074_v38 = vld [vmem:[%s18023_s8 + $0x3c0] sm:$0xff]   ;;  %v2149_v50 = vadd.f32 %v18445_v22, %v1845_v60  ;;  %v2210_v59 = vmax.f32 %v2190_v62, 0.0 }
 0x88d   : > { %15642 = vmatprep.subr.bf16.mxu0 %v17041_v63 }
 0x88e   : > { %v2208_v49 = vmax.f32 %v2149_v50, 0.0  ;;  %v2226_v63 = vpack.c.bf16 %v2210_v59, %v2210_v59 }
 0x88f   : > { %15665 = vmatpush3.bf16.msra.mxu1 %v17044_v6 }
 0x890   : > { %15643 = vmatpush3.bf16.msra.mxu0 %v17043_v8  ;;  %15694 = vmatprep.subr.bf16.mxu1 %v17046_v12  ;;  %v2224_v26 = vpack.c.bf16 %v2208_v49, %v2208_v49 }
 0x891   : > { %15672 = vmatprep.subr.bf16.mxu0 %v17045_v15 }
 0x892   : > { %3235 = vmatmul.mubr.bf16.vlgmr.msra.gmra.mxu1 %v2222_v19 }
 0x893   : > { %3195 = vmatmul.mubr.bf16.vlgmr.msra.gmra.mxu0 %v2220_v20  ;;  %15695 = vmatpush3.bf16.msra.mxu1 %v17048_v17 }
 0x894   : > { %15673 = vmatpush3.bf16.msra.mxu0 %v17047_v24  ;;  %3274 = vmatprep.mubr.bf16.mxu0 %v2225_v27 }
 0x895   : > { %3314 = vmatprep.mubr.bf16.mxu1 %v2227_v30  ;;  %15674 = vmatprep.subr.bf16.mxu0 %v17049_v21 }
 0x896   : > { %15696 = vmatprep.subr.bf16.mxu1 %v17050_v29 }
 0x897   : > { %15697 = vmatpush3.bf16.msra.mxu1 %v17052_v31 }
 0x898   : > { %15675 = vmatpush3.bf16.msra.mxu0 %v17051_v32  ;;  %15698 = vmatprep.subr.bf16.mxu1 %v17054_v33 }
 0x899   : > { %15676 = vmatprep.subr.bf16.mxu0 %v17053_v37 }
 0x89b   : > { %15699 = vmatpush3.bf16.msra.mxu1 %v17056_v42 }
 0x89c   : > { %15677 = vmatpush3.bf16.msra.mxu0 %v17055_v43  ;;  %15700 = vmatprep.subr.bf16.mxu1 %v17058_v44 }
 0x89d   : > { %15678 = vmatprep.subr.bf16.mxu0 %v17057_v40 }
 0x89f   : > { %15701 = vmatpush3.bf16.msra.mxu1 %v17060_v39 }
 0x8a0   : > { %15679 = vmatpush3.bf16.msra.mxu0 %v17059_v10  ;;  %15702 = vmatprep.subr.bf16.mxu1 %v17062_v46 }
 0x8a1   : > { %15680 = vmatprep.subr.bf16.mxu0 %v17061_v47 }
 0x8a3   : > { %15703 = vmatpush3.bf16.msra.mxu1 %v17064_v48 }
 0x8a4   : > { %15681 = vmatpush3.bf16.msra.mxu0 %v17063_v51  ;;  %15704 = vmatprep.subr.bf16.mxu1 %v17066_v52 }
 0x8a5   : > { %15682 = vmatprep.subr.bf16.mxu0 %v17065_v53 }
 0x8a7   : > { %15705 = vmatpush3.bf16.msra.mxu1 %v17068_v54 }
 0x8a8   : > { %15683 = vmatpush3.bf16.msra.mxu0 %v17067_v55  ;;  %15706 = vmatprep.subr.bf16.mxu1 %v17070_v56 }
 0x8a9   : > { %15684 = vmatprep.subr.bf16.mxu0 %v17069_v58 }
 0x8ab   : > { %15707 = vmatpush3.bf16.msra.mxu1 %v17072_v61 }
 0x8ac   : > { %15685 = vmatpush3.bf16.msra.mxu0 %v17071_v23  ;;  %15708 = vmatprep.subr.bf16.mxu1 %v17074_v38 }
 0x8ad   : > { %15686 = vmatprep.subr.bf16.mxu0 %v17073_v28 }
 0x8af   : > { %15709 = vmatpush3.bf16.msra.mxu1 %v17076_v41 }
 0x8b0   : > { %15687 = vmatpush3.bf16.msra.mxu0 %v17075_v35  ;;  %16442 = vmatprep.subr.bf16.mxu1 %v17946_v1 }
 0x8b2   : > { %3315 = vmatmul.mubr.bf16.vlgmr.msra.gmra.mxu1 %v2226_v63  ;;  %v14069_v63 = vld [vmem:[%s18033_s15 + $0x6] ss:$0 sm:$0xff] }
 0x8b3   : > { %3275 = vmatmul.mubr.bf16.vlgmr.msra.gmra.mxu0 %v2224_v26  ;;  %16444 = vmatprep.mubr.msk.bf16.mxu1 %vm17948_vm1, %v17946_v1 }
 0x8b4   : > { %3781 = vmatprep.mubr.bf16.mxu0 %v17947_v2 }
 0x912   : > { %v15556_v22 = vpop.f32.mrf.mxu0  ;;  %v15578_v4 = vpop.f32.mrf.mxu1 }
 0x914   : > { %v15557_v6 = vpop.f32.mrf.mxu0  ;;  %v15579_v45 = vpop.f32.mrf.mxu1 }
 0x915   : > { %v15558_v8 = vadd.f32 %v15557_v6, %v15556_v22  ;;  %v15580_v12 = vadd.f32 %v15579_v45, %v15578_v4  ;;  %v17077_v45 = vld [vmem:[%s18028_s12 + $0x460] ss:$80 sps:$4 sm:$0xff]  }
 0x916   : > { %v15559_v14 = vpop.f32.mrf.mxu0  ;;  %v15581_v15 = vpop.f32.mrf.mxu1 }
 0x917   : > { %v3037_v16 = vadd.f32 %v15558_v8, %v13940_v5  ;;  %v17082_v8 = vld [vmem:[%s18028_s12 + $0x3c4] ss:$80 sps:$4 sm:$0xff]   ;;  %v17083_v15 = vld [vmem:[%s18028_s12 + $0x320] ss:$80 sps:$4 sm:$0xff]  }
 0x918   : > { %v15560_v18 = vpop.f32.mrf.mxu0  ;;  %v15582_v17 = vpop.f32.mrf.mxu1  ;;  %v17085_v14 = vld [vmem:[%s18028_s12 + $0x324] ss:$80 sps:$4 sm:$0xff]  }
 0x919   : > { %v3077_v19 = vadd.f32 %v15580_v12, %v3037_v16  ;;  %v17080_v12 = vld [vmem:[%s18028_s12 + $0x3c0] ss:$80 sps:$4 sm:$0xff]   ;;  %v17088_v16 = vld [vmem:[%s18028_s12 + $0x284] ss:$80 sps:$4 sm:$0xff]  }
 0x91a   : > { %v17086_v18 = vld [vmem:[%s18028_s12 + $0x280] ss:$80 sps:$4 sm:$0xff]  }
 0x932   : > { %v15600_v24 = vpop.f32.mrf.mxu0  ;;  %v15622_v20 = vpop.f32.mrf.mxu1 }
 0x934   : > { %v15601_v21 = vpop.f32.mrf.mxu0  ;;  %v15623_v27 = vpop.f32.mrf.mxu1 }
 0x935   : > { %v15602_v46 = vadd.f32 %v15601_v21, %v15600_v24  ;;  %v15624_v48 = vadd.f32 %v15623_v27, %v15622_v20 }
 0x936   : > { %v15603_v29 = vpop.f32.mrf.mxu0  ;;  %v15625_v30 = vpop.f32.mrf.mxu1 }
 0x937   : > { %v3117_v47 = vadd.f32 %v15602_v46, %v3077_v19 }
 0x938   : > { %v15604_v31 = vpop.f32.mrf.mxu0  ;;  %v15626_v32 = vpop.f32.mrf.mxu1 }
 0x939   : > { %v3157_v52 = vadd.f32 %v15624_v48, %v3117_v47  ;;  %v14406_v32 = vld [vmem:[%s18033_s15 + $0x18] sm:$0x3] }
 0x952   : > { %v15666_v33 = vpop.f32.mrf.mxu1 }
 0x953   : > { %v15644_v37 = vpop.f32.mrf.mxu0 }
 0x954   : > { %v15667_v42 = vpop.f32.mrf.mxu1 }
 0x955   : > { %v15645_v43 = vpop.f32.mrf.mxu0  ;;  %v15668_v56 = vadd.f32 %v15667_v42, %v15666_v33  ;;  %v3699_v33 = vrot.slane %v14406_v32, %v18078_v25 }
 0x956   : > { %v15669_v44 = vpop.f32.mrf.mxu1  ;;  %v15646_v51 = vadd.f32 %v15645_v43, %v15644_v37  ;;  %v3703_v37 = vrot.slane %v14406_v32, %v18090_v34 }
 0x957   : > { %v15647_v40 = vpop.f32.mrf.mxu0 }
 0x958   : > { %v15670_v39 = vpop.f32.mrf.mxu1  ;;  %v3197_v53 = vadd.f32 %v15646_v51, %v3157_v52 }
 0x959   : > { %v15648_v10 = vpop.f32.mrf.mxu0 }
 0x95a   : > { %v3237_v60 = vadd.f32 %v15668_v56, %v3197_v53 }
 0x972   : > { %v15710_v54 = vpop.f32.mrf.mxu1 }
 0x973   : > { %v15688_v55 = vpop.f32.mrf.mxu0 }
 0x974   : > { %v15711_v57 = vpop.f32.mrf.mxu1 }
 0x975   : > { %v15689_v58 = vpop.f32.mrf.mxu0  ;;  %v15712_v50 = vadd.f32 %v15711_v57, %v15710_v54 }
 0x976   : > { %v15690_v61 = vadd.f32 %v15689_v58, %v15688_v55  ;;  %v15713_v62 = vpop.f32.mrf.mxu1 }
 0x977   : > { %v15691_v23 = vpop.f32.mrf.mxu0 }
 0x978   : > { %v3277_v38 = vadd.f32 %v15690_v61, %v3237_v60  ;;  %v15714_v28 = vpop.f32.mrf.mxu1 }
 0x979   : > { %v15692_v41 = vpop.f32.mrf.mxu0 }
 0x97a   : > { %v3317_v59 = vadd.f32 %v15712_v50, %v3277_v38 }
 0x97c   : > { %v3322_v35 = vadd.f32 %v3317_v59, %v18255_v36  ;;  %v17079_v36 = vld [vmem:[%s18028_s12 + $0x464] ss:$80 sps:$4 sm:$0xff]  }
 0x97d   : > { %3757 = vmatprep.subr.bf16.mxu0 %v17079_v36 }
 0x97e   : > { %v3323_v49 = vsel %vm788_vm3, %v3322_v35, 0.0  ;;  %3758 = vmatpush1.bf16.msra.mxu0 %v17077_v45 }
 0x97f   : > { %3324 = vadd.xlane.f32.xlu0 %v3323_v49  ;;  %3759 = vmatprep.subr.bf16.mxu0 %v17082_v8 }
 0x982   : > { %3760 = vmatpush1.bf16.msra.mxu0 %v17080_v12 }
 0x983   : > { %3761 = vmatprep.subr.bf16.mxu0 %v17085_v14 }
 0x986   : > { %3762 = vmatpush1.bf16.msra.mxu0 %v17083_v15 }
 0x987   : > { %3763 = vmatprep.subr.bf16.mxu0 %v17088_v16 }
 0x98a   : > { %3764 = vmatpush1.bf16.msra.mxu0 %v17086_v18 }
 0x98b   : > { %16448 = vmatprep.subr.bf16.mxu0 %v17946_v1 }
 0x995   : > { %3343 = vrot.lane.b32.xlu0 %v14069_v63, %s17950_s27 }
 0xa08   : > { %v3325_v26 = vpop.xlane.xlu0 %3324 }
 0xa09   : > { %v3326_v22 = vmul.f32 0.015625, %v3325_v26 }
 0xa0b   : > { %v3327_v4 = vsub.f32 %v3322_v35, %v3326_v22 }
 0xa0c   : > { %v3344_v27 = vpop.permute.xlu0 %3343 }
 0xa0d   : > { %v3328_v5 = vmul.f32 %v3327_v4, %v3327_v4 }
 0xa0f   : > { %v3329_v6 = vsel %vm788_vm3, %v3328_v5, 0.0 }
 0xa10   : > { %3330 = vadd.xlane.f32.xlu1 %v3329_v6 }
 0xa99   : > { %v3331_v17 = vpop.xlane.xlu1 %3330 }
 0xa9a   : > { %v3332_v19 = vmul.f32 0.015625, %v3331_v17 }
 0xa9c   : > { %v3333_v24 = vadd.f32 1e-05, %v3332_v19 }
 0xa9e   : > { %17335 = vrsqrt.f32 %v3333_v24 }
 0xaab   : > { %v17336_v20 = vpop.eup %17335 }
 0xaac   : > { %v3335_v21 = vmul.f32 %v17336_v20, %v3327_v4 }
 0xaae   : > { %v3342_v29 = vmul.f32 %v14069_v63, %v3335_v21 }
 0xab0   : > { %v18548_v30 = vadd.f32 %v3344_v27, %v3342_v29 }
 0xab2   : > { %v3694_v31 = vpack.c.bf16 %v18548_v30, %v18548_v30 }
 0xab4   : > { %14422 = vmatmul.mubr.msk.bf16.vlgmr.msra.gmra.mxu0 %vm788_vm3, %v3694_v31 }
 0xab5   : > { %16450 = vmatprep.mubr.msk.bf16.mxu0 %vm17948_vm1, %v17946_v1 }
 0xb74   : > { %v3783_v42 = vpop.f32.mrf.mxu0 }
 0xb75   : > { %v3784_v43 = vadd.f32 %v3783_v42, %v3699_v33 }
 0xb76   : > { %v3785_v44 = vpop.f32.mrf.mxu0 }
 0xb77   : > { %v3790_v40 = vpack.c.bf16 %v3784_v43, %v3784_v43  ;;  %v3786_v39 = vadd.f32 %v3785_v44, %v3703_v37 }
 0xb78   : > { %v3787_v10 = vpop.f32.mrf.mxu0 }
 0xb79   : > { %v18558_v46 = vpack.c.bf16 %v3786_v39, %v3786_v39  ;;  %3902 = vrot.lane.b32.xlu0 %v3790_v40, %s17952_s29  ;;  %3793 = vrot.lane.b32.xlu1 %v3790_v40, %s17950_s27 }
 0xb7a   : > { %v3788_v47 = vpop.f32.mrf.mxu0 }
 0xb7b   : > { %v3858_v48 = vsel %vm902_vm5, %v18558_v46, 0 }
 0xb7c   : > { %16449 = vmatpush3.bf16.msra.mxu0 %v3858_v48 }
 0xb7d   : > { %4014 = vrot.lane.b32.xlu0 %v3790_v40, %s17951_s28  ;;  %3900 = vrot.lane.b32.xlu1 %v3790_v40, %s17949_s26 }
 0xb7e   : > { %16460 = vmatprep.subr.bf16.mxu0 %v17946_v1 }
 0xb81   : > { %4125 = vrot.lane.b32.xlu0 %v3790_v40, %s17953_s30  ;;  %4012 = vrot.lane.b32.xlu1 %v3790_v40, %s17954_s9 }
 0xb85   : > { %4123 = vrot.lane.b32.xlu1 %v3790_v40, %s17955_s10 }
 0xbeb   : > { %v3794_v51 = vpop.permute.xlu1 %3793  ;;  %v3903_v53 = vpop.permute.xlu0 %3902 }
 0xbec   : > { %v3799_v52 = vsel %vm838_vm4, %v3794_v51, 0  ;;  %v3908_v54 = vsel %vm838_vm4, %v3903_v53, 0 }
 0xbed   : > { %16443 = vmatpush3.bf16.xpose.msra.mxu1 %v3799_v52 }
 0xbee   : > { %16454 = vmatprep.subr.bf16.mxu1 %v17946_v1 }
 0xbef   : > { %v4015_v55 = vpop.permute.xlu0 %4014  ;;  %v3901_v56 = vpop.permute.xlu1 %3900 }
 0xbf0   : > { %v4020_v57 = vsel %vm838_vm4, %v4015_v55, 0 }
 0xbf3   : > { %v4126_v58 = vpop.permute.xlu0 %4125  ;;  %v4013_v60 = vpop.permute.xlu1 %4012 }
 0xbf4   : > { %16445 = vmatmul.mubr.msk.bf16.vlgmr.msra.gmra.mxu1 %vm838_vm4, %v3790_v40  ;;  %v4131_v61 = vsel %vm838_vm4, %v4126_v58, 0 }
 0xbf5   : > { %16455 = vmatpush3.bf16.xpose.msra.mxu1 %v3908_v54  ;;  %16456 = vmatprep.mubr.msk.bf16.mxu1 %vm17948_vm1, %v17946_v1 }
 0xbf6   : > { %16466 = vmatprep.subr.bf16.mxu1 %v17946_v1 }
 0xbf7   : > { %v4124_v62 = vpop.permute.xlu1 %4123 }
 0xbfc   : > { %16457 = vmatmul.mubr.msk.bf16.vlgmr.msra.gmra.mxu1 %vm838_vm4, %v3901_v56 }
 0xbfd   : > { %16467 = vmatpush3.bf16.xpose.msra.mxu1 %v4020_v57  ;;  %16468 = vmatprep.mubr.msk.bf16.mxu1 %vm17948_vm1, %v17946_v1 }
 0xbfe   : > { %16478 = vmatprep.subr.bf16.mxu1 %v17946_v1 }
 0xc04   : > { %16469 = vmatmul.mubr.msk.bf16.vlgmr.msra.gmra.mxu1 %vm838_vm4, %v4013_v60 }
 0xc05   : > { %16479 = vmatpush3.bf16.xpose.msra.mxu1 %v4131_v61  ;;  %16480 = vmatprep.mubr.msk.bf16.mxu1 %vm17948_vm1, %v17946_v1 }
 0xc06   : > { %16490 = vmatprep.subr.bf16.mxu1 %v17946_v1 }
 0xc0c   : > { %16481 = vmatmul.mubr.msk.bf16.vlgmr.msra.gmra.mxu1 %vm838_vm4, %v4124_v62 }
 0xc0d   : > { %16498 = vmatprep.mubr.msk.bf16.mxu1 %vm17948_vm1, %v17946_v1 }
 0xcb4   : > { %v3835_v23 = vpop.f32.mrf.mxu1 }
 0xcb5   : > { %v3841_v38 = vmul.f32 0.25, %v3835_v23 }
 0xcb6   : > { %v16446_v50 = vpop.f32.mrf.mxu1 }
 0xcb7   : > { %v3842_v28 = vsel %vm886_vm6, %v3841_v38, -inf }
 0xcb8   : > { %3843 = vmax.xlane.f32.xlu0 %v3842_v28  ;;  %v3838_v41 = vpop.f32.mrf.mxu1 }
 0xcba   : > { %v16447_v59 = vpop.f32.mrf.mxu1 }
 0xcbc   : > { %v3944_v35 = vpop.f32.mrf.mxu1 }
 0xcbd   : > { %v3950_v49 = vmul.f32 0.25, %v3944_v35 }
 0xcbe   : > { %v16458_v63 = vpop.f32.mrf.mxu1 }
 0xcbf   : > { %v3951_v26 = vsel %vm886_vm6, %v3950_v49, -inf }
 0xcc0   : > { %3952 = vmax.xlane.f32.xlu1 %v3951_v26  ;;  %v3947_v22 = vpop.f32.mrf.mxu1 }
 0xcc2   : > { %v16459_v4 = vpop.f32.mrf.mxu1 }
 0xcc4   : > { %v4056_v5 = vpop.f32.mrf.mxu1 }
 0xcc5   : > { %v4062_v6 = vmul.f32 0.25, %v4056_v5 }
 0xcc6   : > { %v16470_v45 = vpop.f32.mrf.mxu1 }
 0xcc7   : > { %v4063_v36 = vsel %vm886_vm6, %v4062_v6, -inf  ;;  %v17090_v45 = vld [vmem:[%s18028_s12 + $0x464] ss:$80 sps:$4 sm:$0xff]  }
 0xcc8   : > { %4064 = vmax.xlane.f32.xlu0 %v4063_v36  ;;  %v4059_v8 = vpop.f32.mrf.mxu1  ;;  %v17091_v36 = vld [vmem:[%s18028_s12 + $0x324] ss:$80 sps:$4 sm:$0xff]  }
 0xcca   : > { %v16471_v12 = vpop.f32.mrf.mxu1 }
 0xccc   : > { %v4167_v14 = vpop.f32.mrf.mxu1 }
 0xccd   : > { %v4173_v15 = vmul.f32 0.25, %v4167_v14 }
 0xcce   : > { %v16482_v16 = vpop.f32.mrf.mxu1 }
 0xccf   : > { %v4174_v18 = vsel %vm886_vm6, %v4173_v15, -inf }
 0xcd0   : > { %4175 = vmax.xlane.f32.xlu0 %v4174_v18  ;;  %v4170_v17 = vpop.f32.mrf.mxu1 }
 0xcd2   : > { %v16483_v19 = vpop.f32.mrf.mxu1 }
 0xd41   : > { %v3844_v24 = vpop.xlane.xlu0 %3843 }
 0xd42   : > { %v3845_v20 = vsub.f32 %v3841_v38, %v3844_v24 }
 0xd44   : > { %v3846_v21 = vmul.f32 1.442695, %v3845_v20 }
 0xd46   : > { %17337 = vpow2.f32 %v3846_v21 }
 0xd49   : > { %v3953_v27 = vpop.xlane.xlu1 %3952 }
 0xd4a   : > { %v3954_v29 = vsub.f32 %v3950_v49, %v3953_v27 }
 0xd4c   : > { %v3955_v31 = vmul.f32 1.442695, %v3954_v29  ;;  %v17092_v29 = vld [vmem:[%s18028_s12 + $0x284] ss:$80 sps:$4 sm:$0xff]  }
 0xd4e   : > { %17339 = vpow2.f32 %v3955_v31 }
 0xd51   : > { %v4065_v37 = vpop.xlane.xlu0 %4064 }
 0xd52   : > { %v4066_v48 = vsub.f32 %v4062_v6, %v4065_v37  ;;  %v17089_v6 = vld [vmem:[%s18028_s12 + $0x3c4] ss:$80 sps:$4 sm:$0xff]  }
 0xd53   : > { %v17338_v32 = vpop.eup %17337 }
 0xd54   : > { %v3848_v33 = vsel %vm886_vm6, %v17338_v32, 0.0  ;;  %v4067_v51 = vmul.f32 1.442695, %v4066_v48 }
 0xd55   : > { %3849 = vadd.xlane.f32.xlu1 %v3848_v33 }
 0xd59   : > { %v4176_v42 = vpop.xlane.xlu0 %4175 }
 0xd5a   : > { %v4177_v43 = vsub.f32 %v4173_v15, %v4176_v42 }
 0xd5b   : > { %v17340_v44 = vpop.eup %17339 }
 0xd5c   : > { %v4178_v40 = vmul.f32 1.442695, %v4177_v43  ;;  %v3957_v39 = vsel %vm886_vm6, %v17340_v44, 0.0  ;;  %v14431_v43 = vld [vmem:[%s18033_s15 + $0x19] ss:$0 sm:$0xff] }
 0xd5d   : > { %3958 = vadd.xlane.f32.xlu0 %v3957_v39 }
 0xd5e   : > { %17341 = vpow2.f32 %v4178_v40 }
 0xd5f   : > { %17343 = vpow2.f32 %v4067_v51 }
 0xd66   : > { %3964 = vrot.lane.b32.xlu1 %v18558_v46, %s17949_s26 }
 0xd6b   : > { %v17342_v10 = vpop.eup %17341 }
 0xd6c   : > { %v4180_v47 = vsel %vm886_vm6, %v17342_v10, 0.0  ;;  %v17344_v52 = vpop.eup %17343 }
 0xd6d   : > { %4181 = vadd.xlane.f32.xlu0 %v4180_v47  ;;  %v4069_v53 = vsel %vm886_vm6, %v17344_v52, 0.0 }
 0xd83   : > { %4075 = vrot.lane.b32.xlu0 %v18558_v46, %s17954_s9 }
 0xd87   : > { %4279 = vrot.lane.b32.xlu0 %v17089_v6, %s17950_s27  ;;  %v17110_v6 = vld [vmem:[%s18028_s12 + $0x33c] ss:$80 sps:$4 sm:$0xff]  }
 0xd8a   : > { %4070 = vadd.xlane.f32.xlu1 %v4069_v53 }
 0xd9b   : > { %4186 = vrot.lane.b32.xlu1 %v18558_v46, %s17955_s10 }
 0xd9f   : > { %4281 = vrot.lane.b32.xlu1 %v17090_v45, %s17950_s27  ;;  %v17105_v45 = vld [vmem:[%s18028_s12 + $0x330] ss:$80 sps:$4 sm:$0xff]  }
 0xda3   : > { %4277 = vrot.lane.b32.xlu1 %v17091_v36, %s17950_s27  ;;  %v17108_v36 = vld [vmem:[%s18028_s12 + $0x338] ss:$80 sps:$4 sm:$0xff]  }
 0xdde   : > { %v3850_v54 = vpop.xlane.xlu1 %3849 }
 0xddf   : > { %17345 = vrcp.f32 %v3850_v54 }
 0xde2   : > { %v3965_v58 = vpop.permute.xlu1 %3964 }
 0xde3   : > { %v3970_v61 = vsel %vm902_vm5, %v3965_v58, 0 }
 0xde6   : > { %v3959_v55 = vpop.xlane.xlu0 %3958 }
 0xde7   : > { %17347 = vrcp.f32 %v3959_v55 }
 0xdec   : > { %v17346_v56 = vpop.eup %17345 }
 0xded   : > { %v3852_v57 = vmul.f32 %v17346_v56, %v17338_v32 }
 0xdef   : > { %v3853_v60 = vpack.c.bf16 %v3852_v57, %v3852_v57 }
 0xdf1   : > { %16451 = vmatmul.mubr.msk.bf16.vlgmr.msra.gmra.mxu0 %vm886_vm6, %v3853_v60 }
 0xdf2   : > { %16461 = vmatpush3.bf16.msra.mxu0 %v3970_v61  ;;  %16462 = vmatprep.mubr.msk.bf16.mxu0 %vm17948_vm1, %v17946_v1 }
 0xdf3   : > { %16472 = vmatprep.subr.bf16.mxu0 %v17946_v1 }
 0xdf4   : > { %v17348_v62 = vpop.eup %17347 }
 0xdf5   : > { %v3961_v46 = vmul.f32 %v17348_v62, %v17340_v44 }
 0xdf6   : > { %v4182_v23 = vpop.xlane.xlu0 %4181 }
 0xdf7   : > { %v3962_v38 = vpack.c.bf16 %v3961_v46, %v3961_v46 }
 0xdf9   : > { %16463 = vmatmul.mubr.msk.bf16.vlgmr.msra.gmra.mxu0 %vm886_vm6, %v3962_v38 }
 0xdfa   : > { %v4076_v50 = vpop.permute.xlu0 %4075  ;;  %16474 = vmatprep.mubr.msk.bf16.mxu0 %vm17948_vm1, %v17946_v1 }
 0xdfb   : > { %v4081_v28 = vsel %vm902_vm5, %v4076_v50, 0 }
 0xdfc   : > { %16473 = vmatpush3.bf16.msra.mxu0 %v4081_v28 }
 0xdfd   : > { %16484 = vmatprep.subr.bf16.mxu0 %v17946_v1 }
 0xdfe   : > { %v4280_v18 = vpop.permute.xlu0 %4279 }
 0xe13   : > { %v4071_v41 = vpop.xlane.xlu1 %4070 }
 0xe14   : > { %17349 = vrcp.f32 %v4071_v41  ;;  %v17095_v41 = vld [vmem:[%s18028_s12 + $0x474] ss:$80 sps:$4 sm:$0xff]  }
 0xe15   : > { %17351 = vrcp.f32 %v4182_v23 }
 0xe17   : > { %v4187_v49 = vpop.permute.xlu1 %4186 }
 0xe18   : > { %v4192_v22 = vsel %vm902_vm5, %v4187_v49, 0  ;;  %v17101_v49 = vld [vmem:[%s18028_s12 + $0x3d4] ss:$80 sps:$4 sm:$0xff]  }
 0xe1b   : > { %v4282_v14 = vpop.permute.xlu1 %4281 }
 0xe1c   : > { %16491 = vmatpush3.bf16.msra.mxu1 %v4282_v14  ;;  %v17111_v14 = vld [vmem:[%s18028_s12 + $0x290] ss:$80 sps:$4 sm:$0xff]  }
 0xe1d   : > { %16492 = vmatprep.subr.bf16.mxu1 %v17946_v1 }
 0xe1f   : > { %v4278_v24 = vpop.permute.xlu1 %4277 }
 0xe20   : > { %16493 = vmatpush3.bf16.msra.mxu1 %v4280_v18  ;;  %v17122_v18 = vld [vmem:[%s18028_s12 + $0x48c] ss:$80 sps:$4 sm:$0xff]  }
 0xe21   : > { %v17350_v59 = vpop.eup %17349  ;;  %16494 = vmatprep.subr.bf16.mxu1 %v17946_v1 }
 0xe22   : > { %v4073_v35 = vmul.f32 %v17350_v59, %v17344_v52  ;;  %v17352_v26 = vpop.eup %17351  ;;  %v17096_v59 = vld [vmem:[%s18028_s12 + $0x478] ss:$80 sps:$4 sm:$0xff]  }
 0xe23   : > { %v4184_v4 = vmul.f32 %v17352_v26, %v17342_v10  ;;  %v17099_v26 = vld [vmem:[%s18028_s12 + $0x3d0] ss:$80 sps:$4 sm:$0xff]  }
 0xe24   : > { %v4074_v63 = vpack.c.bf16 %v4073_v35, %v4073_v35  ;;  %16495 = vmatpush3.bf16.msra.mxu1 %v4278_v24  ;;  %v17098_v35 = vld [vmem:[%s18028_s12 + $0x47c] ss:$80 sps:$4 sm:$0xff]  }
 0xe25   : > { %v4185_v5 = vpack.c.bf16 %v4184_v4, %v4184_v4  ;;  %16496 = vmatprep.subr.bf16.mxu1 %v17946_v1  ;;  %v18657_v4 = vld [vmem:[%s18033_s15 + $0x1c] ss:$0 sm:$0xff] }
 0xe26   : > { %16475 = vmatmul.mubr.msk.bf16.vlgmr.msra.gmra.mxu0 %vm886_vm6, %v4074_v63  ;;  %v17104_v63 = vld [vmem:[%s18028_s12 + $0x3dc] ss:$80 sps:$4 sm:$0xff]  }
 0xe27   : > { %16485 = vmatpush3.bf16.msra.mxu0 %v4192_v22  ;;  %16486 = vmatprep.mubr.msk.bf16.mxu0 %vm17948_vm1, %v17946_v1  ;;  %v17102_v22 = vld [vmem:[%s18028_s12 + $0x3d8] ss:$80 sps:$4 sm:$0xff]  }
 0xe28   : > { %4827 = vmatprep.subr.bf16.mxu0 %v17095_v41  ;;  %v17144_v41 = vld [vmem:[%s18028_s12 + $0x498] ss:$80 sps:$4 sm:$0xff]  }
 0xe2e   : > { %16487 = vmatmul.mubr.msk.bf16.vlgmr.msra.gmra.mxu0 %vm886_vm6, %v4185_v5  ;;  %v17107_v5 = vld [vmem:[%s18028_s12 + $0x334] ss:$80 sps:$4 sm:$0xff]  }
 0xe2f   : > { %4851 = vmatprep.mubr.bf16.mxu0 %v17947_v2 }
 0xeb1   : > { %v3894_v8 = vpop.f32.mrf.mxu0 }
 0xeb3   : > { %v16452_v12 = vpop.f32.mrf.mxu0 }
 0xeb4   : > { %v17116_v12 = vld [vmem:[%s18028_s12 + $0x29c] ss:$80 sps:$4 sm:$0xff]  }
 0xeb5   : > { %v3897_v15 = vpop.f32.mrf.mxu0 }
 0xeb6   : > { %v17114_v15 = vld [vmem:[%s18028_s12 + $0x298] ss:$80 sps:$4 sm:$0xff]  }
 0xeb7   : > { %v16453_v16 = vpop.f32.mrf.mxu0 }
 0xeb8   : > { %v17119_v16 = vld [vmem:[%s18028_s12 + $0x484] ss:$80 sps:$4 sm:$0xff]  }
 0xeb9   : > { %v4006_v17 = vpop.f32.mrf.mxu0 }
 0xeba   : > { %4235 = vrot.lane.b32.xlu0 %v4006_v17, %s17953_s30  ;;  %v14408_v17 = vld [vmem:[%s18033_s15 + $0x1f] sm:$0xff] }
 0xebb   : > { %v16464_v19 = vpop.f32.mrf.mxu0  ;;  %v4365_v24 = vrot.slane %v14408_v17, %v18078_v25 }
 0xebc   : > { %v4369_v19 = vrot.slane %v14408_v17, %v18090_v34 }
 0xebd   : > { %v4009_v20 = vpop.f32.mrf.mxu0 }
 0xebe   : > { %v4373_v20 = vrot.slane %v14408_v17, %v18201_v0 }
 0xebf   : > { %v16465_v21 = vpop.f32.mrf.mxu0 }
 0xec0   : > { %v4381_v21 = vrot.slane %v14408_v17, %v18211_v7 }
 0xee6   : > { %v4117_v27 = vpop.f32.mrf.mxu0 }
 0xee7   : > { %4239 = vrot.lane.b32.xlu1 %v4117_v27, %s17951_s28  ;;  %v4377_v27 = vrot.slane %v14408_v17, %v18204_v3 }
 0xee8   : > { %v16476_v31 = vpop.f32.mrf.mxu0 }
 0xee9   : > { %v14409_v31 = vld [vmem:[%s18033_s15 + $0x27] sm:$0xff] }
 0xeea   : > { %v4120_v32 = vpop.f32.mrf.mxu0 }
 0xeeb   : > { %4275 = vrot.lane.b32.xlu1 %v17092_v29, %s17950_s27  ;;  %v4389_v29 = vrot.slane %v14408_v17, %v18221_v11  ;;  %v4385_v32 = vrot.slane %v14408_v17, %v18216_v9 }
 0xeec   : > { %v16477_v33 = vpop.f32.mrf.mxu0 }
 0xeed   : > { %v4397_v33 = vrot.slane %v14409_v31, %v18078_v25  ;;  %v4409_v25 = vrot.slane %v14409_v31, %v18204_v3 }
 0xeee   : > { %v4228_v37 = vpop.f32.mrf.mxu0 }
 0xeef   : > { %4243 = vrot.lane.b32.xlu0 %v4228_v37, %s17952_s29  ;;  %v4393_v37 = vrot.slane %v14408_v17, %v18226_v13  ;;  %v17176_v17 = vld [vmem:[%s18028_s12 + $0x40c] ss:$80 sps:$4 sm:$0xff]  }
 0xef0   : > { %v16488_v42 = vpop.f32.mrf.mxu0 }
 0xef1   : > { %v4405_v42 = vrot.slane %v14409_v31, %v18201_v0  ;;  %v4417_v0 = vrot.slane %v14409_v31, %v18216_v9 }
 0xef2   : > { %v4231_v44 = vpop.f32.mrf.mxu0 }
 0xef3   : > { %4287 = vrot.lane.b32.xlu0 %v14431_v43, %s17950_s27  ;;  %v4401_v43 = vrot.slane %v14409_v31, %v18090_v34  ;;  %v4413_v44 = vrot.slane %v14409_v31, %v18211_v7  ;;  %v14438_v34 = vld [vmem:[%s18033_s15 + $0x2f] ss:$0 sm:$0xff]  ;;  %v4425_v7 = vrot.slane %v14409_v31, %v18226_v13 }
 0xef4   : > { %v16489_v40 = vpop.f32.mrf.mxu0 }
 0xef5   : > { %v4421_v40 = vrot.slane %v14409_v31, %v18221_v11  ;;  %v17185_v31 = vld [vmem:[%s18028_s12 + $0x2c4] ss:$80 sps:$4 sm:$0xff]  }
 0xf2c   : > { %v4236_v39 = vpop.permute.xlu0 %4235 }
 0xf2d   : > { %v4246_v47 = vsel %vm838_vm4, %v3894_v8, %v4236_v39  ;;  %v17113_v8 = vld [vmem:[%s18028_s12 + $0x294] ss:$80 sps:$4 sm:$0xff]  }
 0xf59   : > { %v4240_v1 = vpop.permute.xlu1 %4239 }
 0xf5a   : > { %v4247_v48 = vsel %vm1293_vm7, %v4246_v47, %v4240_v1 }
 0xf5d   : > { %v4276_v10 = vpop.permute.xlu1 %4275 }
 0xf5e   : > { %16497 = vmatpush3.bf16.msra.mxu1 %v4276_v10 }
 0xf5f   : > { %4868 = vmatprep.subr.bf16.mxu1 %v17098_v35  ;;  %v17152_v35 = vld [vmem:[%s18028_s12 + $0x3fc] ss:$80 sps:$4 sm:$0xff]  }
 0xf61   : > { %v4244_v51 = vpop.permute.xlu0 %4243 }
 0xf62   : > { %v4248_v52 = vsel %vm1295_vm8, %v4247_v48, %v4244_v51  ;;  %v17117_v48 = vld [vmem:[%s18028_s12 + $0x480] ss:$80 sps:$4 sm:$0xff]   ;;  %v17120_v51 = vld [vmem:[%s18028_s12 + $0x488] ss:$80 sps:$4 sm:$0xff]  }
 0xf63   : > { %v4249_v53 = vpack.c.bf16 %v4248_v52, %v4248_v52 }
 0xf65   : > { %16499 = vmatmul.mubr.msk.bf16.vlgmr.msra.gmra.mxu1 %vm788_vm3, %v4249_v53  ;;  %v4288_v54 = vpop.permute.xlu0 %4287  ;;  %v17125_v53 = vld [vmem:[%s18028_s12 + $0x3e4] ss:$80 sps:$4 sm:$0xff]  }
 0xf66   : > { %4892 = vmatprep.mubr.bf16.mxu1 %v17947_v2  ;;  %4869 = vmatpush1.bf16.msra.mxu1 %v17096_v59  ;;  %v17149_v59 = vld [vmem:[%s18028_s12 + $0x3f4] ss:$80 sps:$4 sm:$0xff]  }
 0xf67   : > { %4870 = vmatprep.subr.bf16.mxu1 %v17104_v63  ;;  %v17150_v63 = vld [vmem:[%s18028_s12 + $0x3f8] ss:$80 sps:$4 sm:$0xff]  }
 0xf6a   : > { %4871 = vmatpush1.bf16.msra.mxu1 %v17102_v22  ;;  %v17158_v22 = vld [vmem:[%s18028_s12 + $0x35c] ss:$80 sps:$4 sm:$0xff]  }
 0xf6b   : > { %4872 = vmatprep.subr.bf16.mxu1 %v17110_v6  ;;  %v17161_v6 = vld [vmem:[%s18028_s12 + $0x2b4] ss:$80 sps:$4 sm:$0xff]  }
 0xf6e   : > { %4873 = vmatpush1.bf16.msra.mxu1 %v17108_v36  ;;  %v17159_v36 = vld [vmem:[%s18028_s12 + $0x2b0] ss:$80 sps:$4 sm:$0xff]  }
 0xf6f   : > { %4874 = vmatprep.subr.bf16.mxu1 %v17116_v12  ;;  %v17167_v12 = vld [vmem:[%s18028_s12 + $0x4a4] ss:$80 sps:$4 sm:$0xff]  }
 0xf72   : > { %4875 = vmatpush1.bf16.msra.mxu1 %v17114_v15  ;;  %v17165_v15 = vld [vmem:[%s18028_s12 + $0x4a0] ss:$80 sps:$4 sm:$0xff]  }
 0xf73   : > { %4950 = vmatprep.subr.bf16.mxu1 %v17122_v18  ;;  %v17173_v18 = vld [vmem:[%s18028_s12 + $0x404] ss:$80 sps:$4 sm:$0xff]  }
0x1025   : > { %v4327_v55 = vpop.f32.mrf.mxu1 }
0x1026   : > { %v4328_v56 = vadd.f32 %v4327_v55, %v4288_v54  ;;  %v17128_v54 = vld [vmem:[%s18028_s12 + $0x3ec] ss:$80 sps:$4 sm:$0xff]   ;;  %v17123_v55 = vld [vmem:[%s18028_s12 + $0x3e0] ss:$80 sps:$4 sm:$0xff]  }
0x1027   : > { %v16500_v57 = vpop.f32.mrf.mxu1 }
0x1028   : > { %v4333_v58 = vadd.f32 %v4328_v56, %v18548_v30  ;;  %v17093_v30 = vld [vmem:[%s18028_s12 + $0x470] ss:$80 sps:$4 sm:$0xff]   ;;  %v17126_v56 = vld [vmem:[%s18028_s12 + $0x3e8] ss:$80 sps:$4 sm:$0xff]   ;;  %v17131_v57 = vld [vmem:[%s18028_s12 + $0x344] ss:$80 sps:$4 sm:$0xff]  }
0x1029   : > { %v4330_v60 = vpop.f32.mrf.mxu1  ;;  %4828 = vmatpush1.bf16.msra.mxu0 %v17093_v30  ;;  %v17141_v30 = vld [vmem:[%s18028_s12 + $0x490] ss:$80 sps:$4 sm:$0xff]  }
0x102a   : > { %v4334_v61 = vsel %vm788_vm3, %v4333_v58, 0.0  ;;  %4829 = vmatprep.subr.bf16.mxu0 %v17101_v49  ;;  %v17129_v60 = vld [vmem:[%s18028_s12 + $0x340] ss:$80 sps:$4 sm:$0xff]  }
0x102b   : > { %4335 = vadd.xlane.f32.xlu1 %v4334_v61  ;;  %v16501_v62 = vpop.f32.mrf.mxu1  ;;  %v17132_v61 = vld [vmem:[%s18028_s12 + $0x348] ss:$80 sps:$4 sm:$0xff]   ;;  %v17147_v49 = vld [vmem:[%s18028_s12 + $0x3f0] ss:$80 sps:$4 sm:$0xff]  }
0x102c   : > { %v17137_v62 = vld [vmem:[%s18028_s12 + $0x2a4] ss:$80 sps:$4 sm:$0xff]  }
0x102d   : > { %4830 = vmatpush1.bf16.msra.mxu0 %v17099_v26  ;;  %v17155_v26 = vld [vmem:[%s18028_s12 + $0x354] ss:$80 sps:$4 sm:$0xff]  }
0x102e   : > { %4831 = vmatprep.subr.bf16.mxu0 %v17107_v5  ;;  %v17156_v5 = vld [vmem:[%s18028_s12 + $0x358] ss:$80 sps:$4 sm:$0xff]  }
0x1031   : > { %4832 = vmatpush1.bf16.msra.mxu0 %v17105_v45  ;;  %v17164_v45 = vld [vmem:[%s18028_s12 + $0x2bc] ss:$80 sps:$4 sm:$0xff]  }
0x1032   : > { %4833 = vmatprep.subr.bf16.mxu0 %v17113_v8  ;;  %v17162_v8 = vld [vmem:[%s18028_s12 + $0x2b8] ss:$80 sps:$4 sm:$0xff]  }
0x1035   : > { %4834 = vmatpush1.bf16.msra.mxu0 %v17111_v14  ;;  %v17170_v14 = vld [vmem:[%s18028_s12 + $0x4ac] ss:$80 sps:$4 sm:$0xff]  }
0x1036   : > { %4909 = vmatprep.subr.bf16.mxu0 %v17119_v16  ;;  %v17168_v16 = vld [vmem:[%s18028_s12 + $0x4a8] ss:$80 sps:$4 sm:$0xff]  }
0x103c   : > { %4752 = vrot.lane.b32.xlu1 %v4369_v19, %s17950_s27  ;;  %v17171_v19 = vld [vmem:[%s18028_s12 + $0x400] ss:$80 sps:$4 sm:$0xff]  }
0x1040   : > { %4754 = vrot.lane.b32.xlu1 %v4373_v20, %s17950_s27  ;;  %v17179_v20 = vld [vmem:[%s18028_s12 + $0x364] ss:$80 sps:$4 sm:$0xff]  }
0x1044   : > { %4756 = vrot.lane.b32.xlu1 %v4377_v27, %s17950_s27  ;;  %v17177_v27 = vld [vmem:[%s18028_s12 + $0x360] ss:$80 sps:$4 sm:$0xff]  }
0x1048   : > { %4760 = vrot.lane.b32.xlu1 %v4385_v32, %s17950_s27  ;;  %v17188_v32 = vld [vmem:[%s18028_s12 + $0x2cc] ss:$80 sps:$4 sm:$0xff]  }
0x104c   : > { %4764 = vrot.lane.b32.xlu1 %v4393_v37, %s17950_s27  ;;  %v17186_v37 = vld [vmem:[%s18028_s12 + $0x2c8] ss:$80 sps:$4 sm:$0xff]  }
0x1050   : > { %4768 = vrot.lane.b32.xlu1 %v4401_v43, %s17950_s27  ;;  %v17191_v43 = vld [vmem:[%s18023_s8 + $0x438] sm:$0xff]  }
0x1054   : > { %4772 = vrot.lane.b32.xlu1 %v4409_v25, %s17950_s27  ;;  %v17193_v25 = vld [vmem:[%s18023_s8 + $0x470] sm:$0xff]  }
0x1058   : > { %4776 = vrot.lane.b32.xlu1 %v4417_v0, %s17950_s27  ;;  %v17195_v0 = vld [vmem:[%s18023_s8 + $0x430] sm:$0xff]  }
0x105c   : > { %4780 = vrot.lane.b32.xlu1 %v4425_v7, %s17950_s27  ;;  %v17197_v7 = vld [vmem:[%s18023_s8 + $0x468] sm:$0xff]  }
0x10b4   : > { %v4336_v46 = vpop.xlane.xlu1 %4335 }
0x10b5   : > { %v4337_v23 = vmul.f32 0.015625, %v4336_v46  ;;  %v17140_v46 = vld [vmem:[%s18028_s12 + $0x2ac] ss:$80 sps:$4 sm:$0xff]  }
0x10b7   : > { %v18643_v38 = vsub.f32 %v4333_v58, %v4337_v23  ;;  %v17134_v58 = vld [vmem:[%s18028_s12 + $0x34c] ss:$80 sps:$4 sm:$0xff]   ;;  %v17135_v23 = vld [vmem:[%s18028_s12 + $0x2a0] ss:$80 sps:$4 sm:$0xff]  }
0x10b9   : > { %v4339_v50 = vmul.f32 %v18643_v38, %v18643_v38 }
0x10bb   : > { %v4340_v28 = vsel %vm788_vm3, %v4339_v50, 0.0  ;;  %v17143_v50 = vld [vmem:[%s18028_s12 + $0x494] ss:$80 sps:$4 sm:$0xff]  }
0x10bc   : > { %4341 = vadd.xlane.f32.xlu0 %v4340_v28  ;;  %v17146_v28 = vld [vmem:[%s18028_s12 + $0x49c] ss:$80 sps:$4 sm:$0xff]  }
0x10d2   : > { %4354 = vrot.lane.b32.xlu0 %v18657_v4, %s17950_s27 }
0x10d6   : > { %4750 = vrot.lane.b32.xlu0 %v4365_v24, %s17950_s27  ;;  %v17174_v24 = vld [vmem:[%s18028_s12 + $0x408] ss:$80 sps:$4 sm:$0xff]  }
0x10da   : > { %4758 = vrot.lane.b32.xlu0 %v4381_v21, %s17950_s27  ;;  %v17182_v21 = vld [vmem:[%s18028_s12 + $0x36c] ss:$80 sps:$4 sm:$0xff]  }
0x10de   : > { %4762 = vrot.lane.b32.xlu0 %v4389_v29, %s17950_s27  ;;  %v17180_v29 = vld [vmem:[%s18028_s12 + $0x368] ss:$80 sps:$4 sm:$0xff]  }
0x10e2   : > { %4766 = vrot.lane.b32.xlu0 %v4397_v33, %s17950_s27  ;;  %v17183_v33 = vld [vmem:[%s18028_s12 + $0x2c0] ss:$80 sps:$4 sm:$0xff]  }
0x10e6   : > { %4770 = vrot.lane.b32.xlu0 %v4405_v42, %s17950_s27  ;;  %v17190_v42 = vld [vmem:[%s18023_s8 + $0x4f8] sm:$0xff]  }
0x10ea   : > { %4774 = vrot.lane.b32.xlu0 %v4413_v44, %s17950_s27  ;;  %v17192_v44 = vld [vmem:[%s18023_s8 + $0x4b8] sm:$0xff]  }
0x10ee   : > { %4778 = vrot.lane.b32.xlu0 %v4421_v40, %s17950_s27  ;;  %v17194_v40 = vld [vmem:[%s18023_s8 + $0x4f0] sm:$0xff]  }
0x10f2   : > { %4782 = vrot.lane.b32.xlu0 %v14438_v34, %s17950_s27  ;;  %v17196_v34 = vld [vmem:[%s18023_s8 + $0x4b0] sm:$0xff]  }
0x1145   : > { %v4342_v3 = vpop.xlane.xlu0 %4341 }
0x1146   : > { %v4343_v11 = vmul.f32 0.015625, %v4342_v3  ;;  %v17198_v3 = vld [vmem:[%s18023_s8 + $0x4e8] sm:$0xff]  }
0x1148   : > { %v4344_v1 = vadd.f32 1e-05, %v4343_v11  ;;  %v17199_v11 = vld [vmem:[%s18023_s8 + $0x428] sm:$0xff]  }
0x1149   : > { %v4355_v10 = vpop.permute.xlu0 %4354 }
0x114a   : > { %17353 = vrsqrt.f32 %v4344_v1  ;;  %v17200_v1 = vld [vmem:[%s18023_s8 + $0x4a8] sm:$0xff]  }
0x1157   : > { %v17354_v9 = vpop.eup %17353 }
0x1158   : > { %v4346_v39 = vmul.f32 %v17354_v9, %v18643_v38  ;;  %v17138_v38 = vld [vmem:[%s18028_s12 + $0x2a8] ss:$80 sps:$4 sm:$0xff]   ;;  %v17201_v9 = vld [vmem:[%s18023_s8 + $0x460] sm:$0xff]  }
0x115a   : > { %v4353_v47 = vmul.f32 %v18657_v4, %v4346_v39  ;;  %v17153_v4 = vld [vmem:[%s18028_s12 + $0x350] ss:$80 sps:$4 sm:$0xff]  }
0x115b   : > { %v17202_v39 = vld [vmem:[%s18023_s8 + $0x4e0] sm:$0xff]  }
0x115c   : > { %v18709_v13 = vadd.f32 %v4355_v10, %v4353_v47  ;;  %v17203_v10 = vld [vmem:[%s18023_s8 + $0x420] sm:$0xff]  }
0x115d   : > { %v17204_v47 = vld [vmem:[%s18023_s8 + $0x4a0] sm:$0xff]  }
0x115e   : > { %v18715_v52 = vpack.c.bf16 %v18709_v13, %v18709_v13 }
0x1160   : > { %14503 = vmatmul.mubr.msk.bf16.vlgmr.msra.gmra.mxu0 %vm788_vm3, %v18715_v52  ;;  %14504 = vmatmul.mubr.msk.bf16.vlgmr.msra.gmra.mxu1 %vm788_vm3, %v18715_v52 }
0x1161   : > { %4910 = vmatpush1.bf16.msra.mxu0 %v17117_v48  ;;  %4951 = vmatpush1.bf16.msra.mxu1 %v17120_v51  ;;  %v17205_v48 = vld [vmem:[%s18023_s8 + $0x458] sm:$0xff]  }
0x1162   : > { %4911 = vmatprep.subr.bf16.mxu0 %v17125_v53  ;;  %4952 = vmatprep.subr.bf16.mxu1 %v17128_v54  ;;  %v17206_v51 = vld [vmem:[%s18023_s8 + $0x4d8] sm:$0xff]   ;;  %v17209_v54 = vld [vmem:[%s18023_s8 + $0x450] sm:$0xff]  }
0x1163   : > { %4933 = vmatprep.mubr.bf16.mxu0 %v17947_v2  ;;  %4974 = vmatprep.mubr.bf16.mxu1 %v17947_v2  ;;  %v17208_v53 = vld [vmem:[%s18023_s8 + $0x498] sm:$0xff]  }
0x1165   : > { %4912 = vmatpush1.bf16.msra.mxu0 %v17123_v55  ;;  %4953 = vmatpush1.bf16.msra.mxu1 %v17126_v56  ;;  %v17210_v55 = vld [vmem:[%s18023_s8 + $0x4d0] sm:$0xff]  }
0x1166   : > { %4913 = vmatprep.subr.bf16.mxu0 %v17131_v57  ;;  %4954 = vmatprep.subr.bf16.mxu1 %v17134_v58  ;;  %v17211_v56 = vld [vmem:[%s18023_s8 + $0x410] sm:$0xff]   ;;  %v17213_v58 = vld [vmem:[%s18023_s8 + $0x448] sm:$0xff]  }
0x1167   : > { %v17212_v57 = vld [vmem:[%s18023_s8 + $0x490] sm:$0xff]  }
0x1169   : > { %4914 = vmatpush1.bf16.msra.mxu0 %v17129_v60  ;;  %4955 = vmatpush1.bf16.msra.mxu1 %v17132_v61  ;;  %v17214_v60 = vld [vmem:[%s18023_s8 + $0x4c8] sm:$0xff]  }
0x116a   : > { %4915 = vmatprep.subr.bf16.mxu0 %v17137_v62  ;;  %4956 = vmatprep.subr.bf16.mxu1 %v17140_v46  ;;  %v17215_v61 = vld [vmem:[%s18023_s8 + $0x408] sm:$0xff]   ;;  %v17217_v46 = vld [vmem:[%s18023_s8 + $0x440] sm:$0xff]  }
0x116b   : > { %v17216_v62 = vld [vmem:[%s18023_s8 + $0x488] sm:$0xff]  }
0x116d   : > { %4916 = vmatpush1.bf16.msra.mxu0 %v17135_v23  ;;  %4957 = vmatpush1.bf16.msra.mxu1 %v17138_v38  ;;  %v17218_v23 = vld [vmem:[%s18023_s8 + $0x4c0] sm:$0xff]  }
0x116e   : > { %4991 = vmatprep.subr.bf16.mxu0 %v17143_v50  ;;  %5032 = vmatprep.subr.bf16.mxu1 %v17146_v28  ;;  %v17219_v38 = vld [vmem:[%s18023_s8 + $0x400] sm:$0xff]   ;;  %v17221_v28 = vld [vmem:[%s18023_s8 + $0x578] sm:$0xff]  }
0x116f   : > { %v17220_v50 = vld [vmem:[%s18023_s8 + $0x480] sm:$0xff]  }
0x1170   : > { %14505 = vmatmul.mubr.msk.bf16.vlgmr.msra.gmra.mxu0 %vm788_vm3, %v18715_v52  ;;  %14506 = vmatmul.mubr.msk.bf16.vlgmr.msra.gmra.mxu1 %vm788_vm3, %v18715_v52 }
0x1171   : > { %4992 = vmatpush1.bf16.msra.mxu0 %v17141_v30  ;;  %5033 = vmatpush1.bf16.msra.mxu1 %v17144_v41  ;;  %v17222_v30 = vld [vmem:[%s18023_s8 + $0x5f8] sm:$0xff]   ;;  %v4753_v41 = vpop.permute.xlu1 %4752 }
0x1172   : > { %4993 = vmatprep.subr.bf16.mxu0 %v17149_v59  ;;  %5034 = vmatprep.subr.bf16.mxu1 %v17152_v35  ;;  %v4751_v35 = vpop.permute.xlu0 %4750 }
0x1173   : > { %5015 = vmatprep.mubr.bf16.mxu0 %v17947_v2  ;;  %5056 = vmatprep.mubr.bf16.mxu1 %v17947_v2 }
0x1175   : > { %4994 = vmatpush1.bf16.msra.mxu0 %v17147_v49  ;;  %5035 = vmatpush1.bf16.msra.mxu1 %v17150_v63  ;;  %v4755_v59 = vpop.permute.xlu1 %4754 }
0x1176   : > { %4995 = vmatprep.subr.bf16.mxu0 %v17155_v26  ;;  %5036 = vmatprep.subr.bf16.mxu1 %v17158_v22  ;;  %v18817_v63 = vpop.permute.xlu0 %4758  ;;  %v4784_v22 = vsel %vm788_vm3, %v4751_v35, %v4753_v41  ;;  %v17239_v35 = vld [vmem:[%s18023_s8 + $0x518] sm:$0xff]  }
0x1179   : > { %4996 = vmatpush1.bf16.msra.mxu0 %v17153_v4  ;;  %5037 = vmatpush1.bf16.msra.mxu1 %v17156_v5  ;;  %v4757_v49 = vpop.permute.xlu1 %4756 }
0x117a   : > { %4997 = vmatprep.subr.bf16.mxu0 %v17161_v6  ;;  %5038 = vmatprep.subr.bf16.mxu1 %v17164_v45  ;;  %v4786_v26 = vsel %vm788_vm3, %v4755_v59, %v4757_v49  ;;  %v4787_v6 = vsel %vm788_vm3, %v4757_v49, %v18817_v63  ;;  %v17240_v49 = vld [vmem:[%s18023_s8 + $0x598] sm:$0xff]  }
0x117d   : > { %4998 = vmatpush1.bf16.msra.mxu0 %v17159_v36  ;;  %5039 = vmatpush1.bf16.msra.mxu1 %v17162_v8  ;;  %v4785_v8 = vsel %vm788_vm3, %v4753_v41, %v4755_v59 }
0x117e   : > { %5073 = vmatprep.subr.bf16.mxu0 %v17167_v12  ;;  %5114 = vmatprep.subr.bf16.mxu1 %v17170_v14 }
0x1180   : > { %14507 = vmatmul.mubr.msk.bf16.vlgmr.msra.gmra.mxu0 %vm788_vm3, %v18715_v52  ;;  %14508 = vmatmul.mubr.msk.bf16.vlgmr.msra.gmra.mxu1 %vm788_vm3, %v18715_v52 }
0x1181   : > { %5074 = vmatpush1.bf16.msra.mxu0 %v17165_v15  ;;  %5115 = vmatpush1.bf16.msra.mxu1 %v17168_v16 }
0x1182   : > { %5075 = vmatprep.subr.bf16.mxu0 %v17173_v18  ;;  %5116 = vmatprep.subr.bf16.mxu1 %v17176_v17 }
0x1183   : > { %5097 = vmatprep.mubr.bf16.mxu0 %v17947_v2  ;;  %5138 = vmatprep.mubr.bf16.mxu1 %v17947_v2  ;;  %v17189_v2 = vld [vmem:[%s18023_s8 + $0x478] sm:$0xff]  }
0x1185   : > { %5076 = vmatpush1.bf16.msra.mxu0 %v17171_v19  ;;  %5117 = vmatpush1.bf16.msra.mxu1 %v17174_v24 }
0x1186   : > { %5077 = vmatprep.subr.bf16.mxu0 %v17179_v20  ;;  %5118 = vmatprep.subr.bf16.mxu1 %v17182_v21 }
0x1189   : > { %5078 = vmatpush1.bf16.msra.mxu0 %v17177_v27  ;;  %5119 = vmatpush1.bf16.msra.mxu1 %v17180_v29 }
0x118a   : > { %5079 = vmatprep.subr.bf16.mxu0 %v17185_v31  ;;  %5120 = vmatprep.subr.bf16.mxu1 %v17188_v32 }
0x118d   : > { %5080 = vmatpush1.bf16.msra.mxu0 %v17183_v33  ;;  %5121 = vmatpush1.bf16.msra.mxu1 %v17186_v37  ;;  %v17223_v33 = vld [vmem:[%s18023_s8 + $0x538] sm:$0xff]  }
0x118e   : > { %15737 = vmatprep.subr.bf16.mxu0 %v17189_v2  ;;  %15759 = vmatprep.subr.bf16.mxu1 %v17190_v42  ;;  %v17224_v37 = vld [vmem:[%s18023_s8 + $0x5b8] sm:$0xff]   ;;  %v18826_v2 = vpop.permute.xlu0 %4762 }
0x1190   : > { %14509 = vmatmul.mubr.msk.bf16.vlgmr.msra.gmra.mxu0 %vm788_vm3, %v18715_v52  ;;  %14510 = vmatmul.mubr.msk.bf16.vlgmr.msra.gmra.mxu1 %vm788_vm3, %v18715_v52  ;;  %v17207_v52 = vld [vmem:[%s18023_s8 + $0x418] sm:$0xff]  }
0x1191   : > { %15738 = vmatpush3.bf16.msra.mxu0 %v17191_v43  ;;  %15760 = vmatpush3.bf16.msra.mxu1 %v17192_v44  ;;  %v17225_v44 = vld [vmem:[%s18023_s8 + $0x570] sm:$0xff]  }
0x1192   : > { %15739 = vmatprep.subr.bf16.mxu0 %v17193_v25  ;;  %15761 = vmatprep.subr.bf16.mxu1 %v17194_v40  ;;  %v17226_v25 = vld [vmem:[%s18023_s8 + $0x5f0] sm:$0xff]   ;;  %v18830_v40 = vpop.permute.xlu1 %4760 }
0x1195   : > { %15740 = vmatpush3.bf16.msra.mxu0 %v17195_v0  ;;  %15762 = vmatpush3.bf16.msra.mxu1 %v17196_v34  ;;  %v17227_v0 = vld [vmem:[%s18023_s8 + $0x530] sm:$0xff]  }
0x1196   : > { %15741 = vmatprep.subr.bf16.mxu0 %v17197_v7  ;;  %15763 = vmatprep.subr.bf16.mxu1 %v17198_v3  ;;  %v17228_v34 = vld [vmem:[%s18023_s8 + $0x5b0] sm:$0xff]   ;;  %v17229_v7 = vld [vmem:[%s18023_s8 + $0x568] sm:$0xff]  }
0x1197   : > { %v17230_v3 = vld [vmem:[%s18023_s8 + $0x5e8] sm:$0xff]  }
0x1199   : > { %15742 = vmatpush3.bf16.msra.mxu0 %v17199_v11  ;;  %15764 = vmatpush3.bf16.msra.mxu1 %v17200_v1  ;;  %v18836_v11 = vpop.permute.xlu0 %4766  ;;  %v4765_v1 = vpop.permute.xlu1 %4764 }
0x119a   : > { %15743 = vmatprep.subr.bf16.mxu0 %v17201_v9  ;;  %15765 = vmatprep.subr.bf16.mxu1 %v17202_v39  ;;  %v17231_v9 = vld [vmem:[%s18023_s8 + $0x528] sm:$0xff]  }
0x119b   : > { %v17232_v39 = vld [vmem:[%s18023_s8 + $0x5a8] sm:$0xff]  }
0x119d   : > { %15744 = vmatpush3.bf16.msra.mxu0 %v17203_v10  ;;  %15766 = vmatpush3.bf16.msra.mxu1 %v17204_v47 }
0x119e   : > { %15745 = vmatprep.subr.bf16.mxu0 %v17205_v48  ;;  %15767 = vmatprep.subr.bf16.mxu1 %v17206_v51  ;;  %v4789_v48 = vsel %vm788_vm3, %v18830_v40, %v18826_v2  ;;  %v4791_v51 = vsel %vm788_vm3, %v4765_v1, %v18836_v11 }
0x11a1   : > { %15746 = vmatpush3.bf16.msra.mxu0 %v17207_v52  ;;  %15768 = vmatpush3.bf16.msra.mxu1 %v17208_v53  ;;  %v17233_v52 = vld [vmem:[%s18023_s8 + $0x560] sm:$0xff]  }
0x11a2   : > { %15747 = vmatprep.subr.bf16.mxu0 %v17209_v54  ;;  %15769 = vmatprep.subr.bf16.mxu1 %v17210_v55  ;;  %v17234_v53 = vld [vmem:[%s18023_s8 + $0x5e0] sm:$0xff]  }
0x11a5   : > { %15748 = vmatpush3.bf16.msra.mxu0 %v17211_v56  ;;  %15770 = vmatpush3.bf16.msra.mxu1 %v17212_v57 }
0x11a6   : > { %15749 = vmatprep.subr.bf16.mxu0 %v17213_v58  ;;  %15771 = vmatprep.subr.bf16.mxu1 %v17214_v60  ;;  %v17235_v58 = vld [vmem:[%s18023_s8 + $0x520] sm:$0xff]  }
0x11a7   : > { %v17236_v60 = vld [vmem:[%s18023_s8 + $0x5a0] sm:$0xff]  }
0x11a9   : > { %15750 = vmatpush3.bf16.msra.mxu0 %v17215_v61  ;;  %15772 = vmatpush3.bf16.msra.mxu1 %v17216_v62 }
0x11aa   : > { %15751 = vmatprep.subr.bf16.mxu0 %v17217_v46  ;;  %15773 = vmatprep.subr.bf16.mxu1 %v17218_v23  ;;  %v17237_v46 = vld [vmem:[%s18023_s8 + $0x558] sm:$0xff]  }
0x11ab   : > { %v17238_v23 = vld [vmem:[%s18023_s8 + $0x5d8] sm:$0xff]  }
0x11ad   : > { %15752 = vmatpush3.bf16.msra.mxu0 %v17219_v38  ;;  %15774 = vmatpush3.bf16.msra.mxu1 %v17220_v50 }
0x11ae   : > { %15781 = vmatprep.subr.bf16.mxu0 %v17221_v28  ;;  %15803 = vmatprep.subr.bf16.mxu1 %v17222_v30 }
0x1220   : > { %v4853_v4 = vpop.f32.mrf.mxu0  ;;  %v4894_v5 = vpop.f32.mrf.mxu1 }
0x1221   : > { %v4854_v45 = vadd.f32 %v4853_v4, %v4784_v22  ;;  %v4895_v36 = vadd.f32 %v4894_v5, %v4786_v26  ;;  %v18853_v26 = vpop.permute.xlu0 %4770  ;;  %v17241_v22 = vld [vmem:[%s18023_s8 + $0x550] sm:$0xff]   ;;  %v18857_v5 = vpop.permute.xlu1 %4768 }
0x1222   : > { %v4855_v12 = vpop.f32.mrf.mxu0  ;;  %v4896_v14 = vpop.f32.mrf.mxu1  ;;  %v17242_v4 = vld [vmem:[%s18023_s8 + $0x5d0] sm:$0xff]  }
0x1223   : > { %v4856_v15 = vadd.f32 %v4855_v12, %v4785_v8  ;;  %v4897_v16 = vadd.f32 %v4896_v14, %v4787_v6  ;;  %v5147_v18 = vmax.f32 %v4854_v45, 0.0  ;;  %v5149_v17 = vmax.f32 %v4895_v36, 0.0  ;;  %v17243_v6 = vld [vmem:[%s18023_s8 + $0x510] sm:$0xff]   ;;  %v17245_v36 = vld [vmem:[%s18023_s8 + $0x548] sm:$0xff]  }
0x1224   : > { %v4857_v19 = vpop.f32.mrf.mxu0  ;;  %v4898_v24 = vpop.f32.mrf.mxu1  ;;  %v17244_v45 = vld [vmem:[%s18023_s8 + $0x590] sm:$0xff]   ;;  %v17246_v8 = vld [vmem:[%s18023_s8 + $0x5c8] sm:$0xff]   ;;  %v4790_v12 = vsel %vm788_vm3, %v18826_v2, %v4765_v1 }
0x1225   : > { %v5148_v20 = vmax.f32 %v4856_v15, 0.0  ;;  %v5150_v21 = vmax.f32 %v4897_v16, 0.0  ;;  %v5163_v42 = vpack.c.bf16 %v5147_v18, %v5147_v18  ;;  %v5165_v43 = vpack.c.bf16 %v5149_v17, %v5149_v17  ;;  %v18865_v14 = vpop.permute.xlu0 %4774  ;;  %v18870_v16 = vpop.permute.xlu1 %4772  ;;  %v17247_v17 = vld [vmem:[%s18023_s8 + $0x508] sm:$0xff]  }
0x1226   : > { %v4858_v27 = vpop.f32.mrf.mxu0  ;;  %v4899_v29 = vpop.f32.mrf.mxu1  ;;  %v4788_v15 = vsel %vm788_vm3, %v18817_v63, %v18830_v40  ;;  %v4793_v18 = vsel %vm788_vm3, %v18857_v5, %v18853_v26  ;;  %v17248_v19 = vld [vmem:[%s18023_s8 + $0x588] sm:$0xff]   ;;  %v4795_v63 = vsel %vm788_vm3, %v18870_v16, %v18865_v14 }
0x1227   : > { %v5164_v31 = vpack.c.bf16 %v5148_v20, %v5148_v20  ;;  %v5166_v32 = vpack.c.bf16 %v5150_v21, %v5150_v21  ;;  %v17249_v29 = vld [vmem:[%s18023_s8 + $0x540] sm:$0xff]  }
0x1229   : > { %5985 = vmatprep.mubr.bf16.mxu0 %v5164_v31  ;;  %6025 = vmatprep.mubr.bf16.mxu1 %v5166_v32  ;;  %v17250_v31 = vld [vmem:[%s18023_s8 + $0x5c0] sm:$0xff]  }
0x122a   : > { %5986 = vmatmul.mubr.bf16.vlgmr.msra.gmra.mxu0 %v5163_v42  ;;  %6026 = vmatmul.mubr.bf16.vlgmr.msra.gmra.mxu1 %v5165_v43  ;;  %v17251_v42 = vld [vmem:[%s18023_s8 + $0x500] sm:$0xff]  }
0x122b   : > { %15782 = vmatpush3.bf16.msra.mxu0 %v17223_v33  ;;  %15804 = vmatpush3.bf16.msra.mxu1 %v17224_v37  ;;  %v17252_v43 = vld [vmem:[%s18023_s8 + $0x580] sm:$0xff]  }
0x122c   : > { %15783 = vmatprep.subr.bf16.mxu0 %v17225_v44  ;;  %15805 = vmatprep.subr.bf16.mxu1 %v17226_v25 }
0x122f   : > { %15784 = vmatpush3.bf16.msra.mxu0 %v17227_v0  ;;  %15806 = vmatpush3.bf16.msra.mxu1 %v17228_v34  ;;  %v17253_v34 = vld [vmem:[%s18023_s8 + $0x678] sm:$0xff]  }
0x1230   : > { %v4935_v10 = vpop.f32.mrf.mxu0  ;;  %v4976_v47 = vpop.f32.mrf.mxu1  ;;  %15785 = vmatprep.subr.bf16.mxu0 %v17229_v7  ;;  %15807 = vmatprep.subr.bf16.mxu1 %v17230_v3  ;;  %v17254_v7 = vld [vmem:[%s18023_s8 + $0x6f8] sm:$0xff]  }
0x1231   : > { %v4936_v24 = vadd.f32 %v4935_v10, %v4788_v15  ;;  %v4977_v20 = vadd.f32 %v4976_v47, %v4790_v12  ;;  %v17255_v10 = vld [vmem:[%s18023_s8 + $0x638] sm:$0xff]   ;;  %v17273_v15 = vld [vmem:[%s18023_s8 + $0x650] sm:$0xff]  }
0x1232   : > { %v4937_v54 = vpop.f32.mrf.mxu0  ;;  %v4978_v55 = vpop.f32.mrf.mxu1  ;;  %v17272_v12 = vld [vmem:[%s18023_s8 + $0x698] sm:$0xff]  }
0x1233   : > { %v4938_v56 = vadd.f32 %v4937_v54, %v4789_v48  ;;  %v4979_v57 = vadd.f32 %v4978_v55, %v4791_v51  ;;  %15786 = vmatpush3.bf16.msra.mxu0 %v17231_v9  ;;  %15808 = vmatpush3.bf16.msra.mxu1 %v17232_v39  ;;  %v5151_v44 = vmax.f32 %v4936_v24, 0.0  ;;  %v5153_v25 = vmax.f32 %v4977_v20, 0.0  ;;  %v17256_v51 = vld [vmem:[%s18023_s8 + $0x6b8] sm:$0xff]   ;;  %v17258_v54 = vld [vmem:[%s18023_s8 + $0x6f0] sm:$0xff]   ;;  %v17277_v20 = vld [vmem:[%s18023_s8 + $0x648] sm:$0xff]  }
0x1234   : > { %v4939_v61 = vpop.f32.mrf.mxu0  ;;  %v4980_v62 = vpop.f32.mrf.mxu1  ;;  %15787 = vmatprep.subr.bf16.mxu0 %v17233_v52  ;;  %15809 = vmatprep.subr.bf16.mxu1 %v17234_v53  ;;  %v17257_v53 = vld [vmem:[%s18023_s8 + $0x670] sm:$0xff]  }
0x1235   : > { %v5152_v38 = vmax.f32 %v4938_v56, 0.0  ;;  %v5154_v50 = vmax.f32 %v4979_v57, 0.0  ;;  %v5167_v47 = vpack.c.bf16 %v5151_v44, %v5151_v44  ;;  %v5169_v48 = vpack.c.bf16 %v5153_v25, %v5153_v25  ;;  %v17259_v56 = vld [vmem:[%s18023_s8 + $0x630] sm:$0xff]   ;;  %v17263_v61 = vld [vmem:[%s18023_s8 + $0x628] sm:$0xff]  }
0x1236   : > { %v4940_v28 = vpop.f32.mrf.mxu0  ;;  %v4981_v30 = vpop.f32.mrf.mxu1  ;;  %v17260_v57 = vld [vmem:[%s18023_s8 + $0x6b0] sm:$0xff]  }
0x1237   : > { %v5168_v41 = vpack.c.bf16 %v5152_v38, %v5152_v38  ;;  %v5170_v59 = vpack.c.bf16 %v5154_v50, %v5154_v50  ;;  %15788 = vmatpush3.bf16.msra.mxu0 %v17235_v58  ;;  %15810 = vmatpush3.bf16.msra.mxu1 %v17236_v60  ;;  %v17261_v58 = vld [vmem:[%s18023_s8 + $0x668] sm:$0xff]   ;;  %v17265_v38 = vld [vmem:[%s18023_s8 + $0x660] sm:$0xff]   ;;  %v17276_v24 = vld [vmem:[%s18023_s8 + $0x690] sm:$0xff]  }
0x1238   : > { %15789 = vmatprep.subr.bf16.mxu0 %v17237_v46  ;;  %15811 = vmatprep.subr.bf16.mxu1 %v17238_v23  ;;  %v17262_v60 = vld [vmem:[%s18023_s8 + $0x6e8] sm:$0xff]   ;;  %v17266_v50 = vld [vmem:[%s18023_s8 + $0x6e0] sm:$0xff]  }
0x1239   : > { %6065 = vmatprep.mubr.bf16.mxu0 %v5168_v41  ;;  %6105 = vmatprep.mubr.bf16.mxu1 %v5170_v59  ;;  %v17264_v23 = vld [vmem:[%s18023_s8 + $0x6a8] sm:$0xff]   ;;  %v17267_v41 = vld [vmem:[%s18023_s8 + $0x620] sm:$0xff]  }
0x123b   : > { %15790 = vmatpush3.bf16.msra.mxu0 %v17239_v35  ;;  %15812 = vmatpush3.bf16.msra.mxu1 %v17240_v49  ;;  %v17268_v49 = vld [vmem:[%s18023_s8 + $0x6a0] sm:$0xff]  }
0x123c   : > { %15791 = vmatprep.subr.bf16.mxu0 %v17241_v22  ;;  %15813 = vmatprep.subr.bf16.mxu1 %v17242_v4  ;;  %v17269_v22 = vld [vmem:[%s18023_s8 + $0x658] sm:$0xff]  }
0x123d   : > { %v17270_v4 = vld [vmem:[%s18023_s8 + $0x6d8] sm:$0xff]  }
0x123f   : > { %15792 = vmatpush3.bf16.msra.mxu0 %v17243_v6  ;;  %15814 = vmatpush3.bf16.msra.mxu1 %v17244_v45 }
0x1240   : > { %v18877_v21 = vpop.f32.mrf.mxu0  ;;  %v18879_v27 = vpop.f32.mrf.mxu1  ;;  %15793 = vmatprep.subr.bf16.mxu0 %v17245_v36  ;;  %15815 = vmatprep.subr.bf16.mxu1 %v17246_v8  ;;  %v17271_v8 = vld [vmem:[%s18023_s8 + $0x618] sm:$0xff]  }
0x1241   : > { %v18910_v36 = vpop.permute.xlu0 %4778 }
0x1242   : > { %v5019_v32 = vpop.f32.mrf.mxu0  ;;  %v5060_v33 = vpop.f32.mrf.mxu1 }
0x1243   : > { %v5020_v37 = vadd.f32 %v5019_v32, %v4793_v18  ;;  %v5061_v2 = vadd.f32 %v5060_v33, %v4795_v63  ;;  %15794 = vmatpush3.bf16.msra.mxu0 %v17247_v17  ;;  %15816 = vmatpush3.bf16.msra.mxu1 %v17248_v19  ;;  %v18915_v18 = vpop.permute.xlu1 %4776  ;;  %v17274_v17 = vld [vmem:[%s18023_s8 + $0x6d0] sm:$0xff]   ;;  %v4792_v63 = vsel %vm788_vm3, %v18836_v11, %v18857_v5  ;;  %v17280_v5 = vld [vmem:[%s18023_s8 + $0x688] sm:$0xff]  }
0x1244   : > { %v5021_v40 = vpop.f32.mrf.mxu0  ;;  %v5062_v0 = vpop.f32.mrf.mxu1  ;;  %15795 = vmatprep.subr.bf16.mxu0 %v17249_v29  ;;  %15817 = vmatprep.subr.bf16.mxu1 %v17250_v31  ;;  %v17275_v19 = vld [vmem:[%s18023_s8 + $0x610] sm:$0xff]   ;;  %v17278_v31 = vld [vmem:[%s18023_s8 + $0x6c8] sm:$0xff]   ;;  %v4794_v32 = vsel %vm788_vm3, %v18853_v26, %v18870_v16  ;;  %v17281_v26 = vld [vmem:[%s18023_s8 + $0x640] sm:$0xff]  }
0x1245   : > { %v5156_v3 = vmax.f32 %v5020_v37, 0.0  ;;  %v5158_v1 = vmax.f32 %v5061_v2, 0.0  ;;  %v4783_v29 = vpop.permute.xlu0 %4782  ;;  %v4797_v37 = vsel %vm788_vm3, %v18915_v18, %v18910_v36  ;;  %v17279_v2 = vld [vmem:[%s18023_s8 + $0x608] sm:$0xff]   ;;  %v5059_v16 = vadd.f32 %v18879_v27, %v4794_v32  ;;  %v17283_v40 = vld [vmem:[%s18023_s8 + $0x600] sm:$0xff]  }
0x1246   : > { %v5022_v9 = vpop.f32.mrf.mxu0  ;;  %v5063_v39 = vpop.f32.mrf.mxu1  ;;  %v17284_v0 = vld [vmem:[%s18023_s8 + $0x680] sm:$0xff]  }
0x1247   : > { %15796 = vmatpush3.bf16.msra.mxu0 %v17251_v42  ;;  %15818 = vmatpush3.bf16.msra.mxu1 %v17252_v43  ;;  %v5172_v52 = vpack.c.bf16 %v5156_v3, %v5156_v3  ;;  %v5174_v55 = vpack.c.bf16 %v5158_v1, %v5158_v1  ;;  %v18928_v33 = vpop.permute.xlu1 %4780  ;;  %v5018_v42 = vadd.f32 %v18877_v21, %v4792_v63  ;;  %v17282_v43 = vld [vmem:[%s18023_s8 + $0x6c0] sm:$0xff]   ;;  %v17286_v3 = vld [vmem:[%s18023_s8 + $0x7f8] sm:$0xff]  }
0x1248   : > { %15825 = vmatprep.subr.bf16.mxu0 %v17253_v34  ;;  %15847 = vmatprep.subr.bf16.mxu1 %v17254_v7  ;;  %v4799_v11 = vsel %vm788_vm3, %v18928_v33, %v4783_v29  ;;  %v17285_v34 = vld [vmem:[%s18023_s8 + $0x778] sm:$0xff]   ;;  %v5157_v7 = vmax.f32 %v5059_v16, 0.0  ;;  %v17314_v63 = vld [vmem:[%s18023_s8 + $0x7c0] sm:$0xff]  }
0x1249   : > { %v5155_v21 = vmax.f32 %v5018_v42, 0.0  ;;  %v17287_v9 = vld [vmem:[%s18023_s8 + $0x738] sm:$0xff]  }
0x124a   : > { %6066 = vmatmul.mubr.bf16.vlgmr.msra.gmra.mxu0 %v5167_v47  ;;  %6106 = vmatmul.mubr.bf16.vlgmr.msra.gmra.mxu1 %v5169_v48  ;;  %v5173_v47 = vpack.c.bf16 %v5157_v7, %v5157_v7  ;;  %v17289_v48 = vld [vmem:[%s18023_s8 + $0x770] sm:$0xff]  }
0x124b   : > { %15826 = vmatpush3.bf16.msra.mxu0 %v17255_v10  ;;  %6145 = vmatprep.mubr.bf16.mxu0 %v5172_v52  ;;  %v5171_v39 = vpack.c.bf16 %v5155_v21, %v5155_v21  ;;  %v17288_v10 = vld [vmem:[%s18023_s8 + $0x7b8] sm:$0xff]   ;;  %v17290_v52 = vld [vmem:[%s18023_s8 + $0x7f0] sm:$0xff]  }
0x124c   : > { %15848 = vmatpush3.bf16.msra.mxu1 %v17256_v51  ;;  %6185 = vmatprep.mubr.bf16.mxu1 %v5174_v55  ;;  %v17292_v55 = vld [vmem:[%s18023_s8 + $0x7b0] sm:$0xff]  }
0x124d   : > { %15827 = vmatprep.subr.bf16.mxu0 %v17257_v53  ;;  %15849 = vmatprep.subr.bf16.mxu1 %v17258_v54  ;;  %v17291_v54 = vld [vmem:[%s18023_s8 + $0x730] sm:$0xff]  }
0x124f   : > { %15828 = vmatpush3.bf16.msra.mxu0 %v17259_v56  ;;  %v17293_v56 = vld [vmem:[%s18023_s8 + $0x768] sm:$0xff]  }
0x1250   : > { %15850 = vmatpush3.bf16.msra.mxu1 %v17260_v57  ;;  %v18899_v62 = vpop.f32.mrf.mxu0  ;;  %v18901_v46 = vpop.f32.mrf.mxu1  ;;  %15829 = vmatprep.subr.bf16.mxu0 %v17261_v58  ;;  %v17294_v57 = vld [vmem:[%s18023_s8 + $0x7e8] sm:$0xff]  }
0x1251   : > { %15851 = vmatprep.subr.bf16.mxu1 %v17262_v60  ;;  %v17295_v58 = vld [vmem:[%s18023_s8 + $0x728] sm:$0xff]  }
0x1252   : > { %v5101_v28 = vpop.f32.mrf.mxu0  ;;  %v5142_v30 = vpop.f32.mrf.mxu1  ;;  %v17296_v60 = vld [vmem:[%s18023_s8 + $0x7a8] sm:$0xff]  }
0x1253   : > { %15830 = vmatpush3.bf16.msra.mxu0 %v17263_v61  ;;  %v5102_v44 = vadd.f32 %v5101_v28, %v4797_v37  ;;  %v5143_v25 = vadd.f32 %v5142_v30, %v4799_v11  ;;  %v17297_v61 = vld [vmem:[%s18023_s8 + $0x760] sm:$0xff]   ;;  %v17301_v28 = vld [vmem:[%s18023_s8 + $0x758] sm:$0xff]  }
0x1254   : > { %15852 = vmatpush3.bf16.msra.mxu1 %v17264_v23  ;;  %v5103_v59 = vpop.f32.mrf.mxu0  ;;  %v5144_v35 = vpop.f32.mrf.mxu1  ;;  %15831 = vmatprep.subr.bf16.mxu0 %v17265_v38  ;;  %v17298_v23 = vld [vmem:[%s18023_s8 + $0x7e0] sm:$0xff]   ;;  %v17302_v30 = vld [vmem:[%s18023_s8 + $0x7d8] sm:$0xff]  }
0x1255   : > { %15853 = vmatprep.subr.bf16.mxu1 %v17266_v50  ;;  %v5160_v1 = vmax.f32 %v5102_v44, 0.0  ;;  %v5162_v27 = vmax.f32 %v5143_v25, 0.0  ;;  %v17299_v38 = vld [vmem:[%s18023_s8 + $0x720] sm:$0xff]   ;;  %v17304_v59 = vld [vmem:[%s18023_s8 + $0x798] sm:$0xff]   ;;  %v17305_v35 = vld [vmem:[%s18023_s8 + $0x750] sm:$0xff]  }
0x1256   : > { %v5104_v6 = vpop.f32.mrf.mxu0  ;;  %v5145_v45 = vpop.f32.mrf.mxu1  ;;  %v17300_v50 = vld [vmem:[%s18023_s8 + $0x7a0] sm:$0xff]  }
0x1257   : > { %15832 = vmatpush3.bf16.msra.mxu0 %v17267_v41  ;;  %v5176_v51 = vpack.c.bf16 %v5160_v1, %v5160_v1  ;;  %v5178_v53 = vpack.c.bf16 %v5162_v27, %v5162_v27  ;;  %v17303_v41 = vld [vmem:[%s18023_s8 + $0x718] sm:$0xff]   ;;  %v17309_v6 = vld [vmem:[%s18023_s8 + $0x748] sm:$0xff]   ;;  %v4796_v45 = vsel %vm788_vm3, %v18865_v14, %v18915_v18  ;;  %v17315_v14 = vld [vmem:[%s18023_s8 + $0x700] sm:$0xff]  }
0x1258   : > { %15854 = vmatpush3.bf16.msra.mxu1 %v17268_v49  ;;  %15833 = vmatprep.subr.bf16.mxu0 %v17269_v22  ;;  %v17306_v49 = vld [vmem:[%s18023_s8 + $0x7d0] sm:$0xff]  }
0x1259   : > { %15855 = vmatprep.subr.bf16.mxu1 %v17270_v4  ;;  %v17307_v22 = vld [vmem:[%s18023_s8 + $0x710] sm:$0xff]  }
0x125a   : > { %v17308_v4 = vld [vmem:[%s18023_s8 + $0x790] sm:$0xff]  }
0x125b   : > { %15834 = vmatpush3.bf16.msra.mxu0 %v17271_v8  ;;  %v17310_v8 = vld [vmem:[%s18023_s8 + $0x7c8] sm:$0xff]  }
0x125c   : > { %15856 = vmatpush3.bf16.msra.mxu1 %v17272_v12  ;;  %15835 = vmatprep.subr.bf16.mxu0 %v17273_v15  ;;  %v4798_v12 = vsel %vm788_vm3, %v18910_v36, %v18928_v33  ;;  %v17311_v15 = vld [vmem:[%s18023_s8 + $0x708] sm:$0xff]   ;;  %v17316_v36 = vld [vmem:[%s18023_s8 + $0x780] sm:$0xff]  }
0x125d   : > { %15857 = vmatprep.subr.bf16.mxu1 %v17274_v17  ;;  %v5100_v17 = vadd.f32 %v18899_v62, %v4796_v45 }
0x125f   : > { %15836 = vmatpush3.bf16.msra.mxu0 %v17275_v19  ;;  %v17312_v19 = vld [vmem:[%s18023_s8 + $0x788] sm:$0xff]   ;;  %v5159_v18 = vmax.f32 %v5100_v17, 0.0 }
0x1260   : > { %15858 = vmatpush3.bf16.msra.mxu1 %v17276_v24  ;;  %15837 = vmatprep.subr.bf16.mxu0 %v17277_v20  ;;  %v17313_v24 = vld [vmem:[%s18023_s8 + $0x740] sm:$0xff]   ;;  %v5141_v20 = vadd.f32 %v18901_v46, %v4798_v12  ;;  %v14511_v46 = vld [vmem:[%s18033_s15 + $0x1f] ss:$0 sm:$0xff] }
0x1261   : > { %15859 = vmatprep.subr.bf16.mxu1 %v17278_v31  ;;  %v5175_v31 = vpack.c.bf16 %v5159_v18, %v5159_v18 }
0x1262   : > { %v5161_v29 = vmax.f32 %v5141_v20, 0.0 }
0x1263   : > { %15838 = vmatpush3.bf16.msra.mxu0 %v17279_v2 }
0x1264   : > { %15860 = vmatpush3.bf16.msra.mxu1 %v17280_v5  ;;  %15839 = vmatprep.subr.bf16.mxu0 %v17281_v26  ;;  %v5177_v62 = vpack.c.bf16 %v5161_v29, %v5161_v29 }
0x1265   : > { %15861 = vmatprep.subr.bf16.mxu1 %v17282_v43 }
0x1267   : > { %15840 = vmatpush3.bf16.msra.mxu0 %v17283_v40 }
0x1268   : > { %15862 = vmatpush3.bf16.msra.mxu1 %v17284_v0  ;;  %15869 = vmatprep.subr.bf16.mxu0 %v17285_v34 }
0x1269   : > { %15891 = vmatprep.subr.bf16.mxu1 %v17286_v3 }
0x126a   : > { %6146 = vmatmul.mubr.bf16.vlgmr.msra.gmra.mxu0 %v5171_v39 }
0x126b   : > { %6186 = vmatmul.mubr.bf16.vlgmr.msra.gmra.mxu1 %v5173_v47  ;;  %15870 = vmatpush3.bf16.msra.mxu0 %v17287_v9 }
0x126c   : > { %6225 = vmatprep.mubr.bf16.mxu0 %v5176_v51  ;;  %15892 = vmatpush3.bf16.msra.mxu1 %v17288_v10 }
0x126d   : > { %6265 = vmatprep.mubr.bf16.mxu1 %v5178_v53  ;;  %15871 = vmatprep.subr.bf16.mxu0 %v17289_v48 }
0x126e   : > { %15893 = vmatprep.subr.bf16.mxu1 %v17290_v52 }
0x126f   : > { %15872 = vmatpush3.bf16.msra.mxu0 %v17291_v54 }
0x1270   : > { %15894 = vmatpush3.bf16.msra.mxu1 %v17292_v55  ;;  %15873 = vmatprep.subr.bf16.mxu0 %v17293_v56 }
0x1271   : > { %15895 = vmatprep.subr.bf16.mxu1 %v17294_v57 }
0x1273   : > { %15874 = vmatpush3.bf16.msra.mxu0 %v17295_v58 }
0x1274   : > { %15896 = vmatpush3.bf16.msra.mxu1 %v17296_v60  ;;  %15875 = vmatprep.subr.bf16.mxu0 %v17297_v61 }
0x1275   : > { %15897 = vmatprep.subr.bf16.mxu1 %v17298_v23 }
0x1277   : > { %15876 = vmatpush3.bf16.msra.mxu0 %v17299_v38 }
0x1278   : > { %15898 = vmatpush3.bf16.msra.mxu1 %v17300_v50  ;;  %15877 = vmatprep.subr.bf16.mxu0 %v17301_v28 }
0x1279   : > { %15899 = vmatprep.subr.bf16.mxu1 %v17302_v30 }
0x127b   : > { %15878 = vmatpush3.bf16.msra.mxu0 %v17303_v41 }
0x127c   : > { %15900 = vmatpush3.bf16.msra.mxu1 %v17304_v59  ;;  %15879 = vmatprep.subr.bf16.mxu0 %v17305_v35 }
0x127d   : > { %15901 = vmatprep.subr.bf16.mxu1 %v17306_v49 }
0x127f   : > { %15880 = vmatpush3.bf16.msra.mxu0 %v17307_v22 }
0x1280   : > { %15902 = vmatpush3.bf16.msra.mxu1 %v17308_v4  ;;  %15881 = vmatprep.subr.bf16.mxu0 %v17309_v6 }
0x1281   : > { %15903 = vmatprep.subr.bf16.mxu1 %v17310_v8 }
0x1283   : > { %15882 = vmatpush3.bf16.msra.mxu0 %v17311_v15 }
0x1284   : > { %15904 = vmatpush3.bf16.msra.mxu1 %v17312_v19  ;;  %15883 = vmatprep.subr.bf16.mxu0 %v17313_v24 }
0x1285   : > { %15905 = vmatprep.subr.bf16.mxu1 %v17314_v63  ;;  %v14640_v63 = vld [vmem:[%s18033_s15 + $0x1e] ss:$0 sm:$0xff] }
0x1287   : > { %15884 = vmatpush3.bf16.msra.mxu0 %v17315_v14 }
0x1288   : > { %15906 = vmatpush3.bf16.msra.mxu1 %v17316_v36 }
0x128a   : > { %6226 = vmatmul.mubr.bf16.vlgmr.msra.gmra.mxu0 %v5175_v31 }
0x128b   : > { %6266 = vmatmul.mubr.bf16.vlgmr.msra.gmra.mxu1 %v5177_v62 }
0x12ea   : > { %v15753_v32 = vpop.f32.mrf.mxu0  ;;  %v15775_v33 = vpop.f32.mrf.mxu1 }
0x12ec   : > { %v15754_v37 = vpop.f32.mrf.mxu0  ;;  %v15776_v2 = vpop.f32.mrf.mxu1 }
0x12ed   : > { %v15755_v42 = vadd.f32 %v15754_v37, %v15753_v32  ;;  %v15777_v11 = vadd.f32 %v15776_v2, %v15775_v33 }
0x12ee   : > { %v15756_v5 = vpop.f32.mrf.mxu0  ;;  %v15778_v26 = vpop.f32.mrf.mxu1 }
0x12ef   : > { %v5988_v16 = vadd.f32 %v15755_v42, %v14511_v46  ;;  %v14641_v5 = vld [vmem:[%s20246_s3] ss:$0 sm:$0xff] }
0x12f0   : > { %v15757_v43 = vpop.f32.mrf.mxu0  ;;  %v15779_v44 = vpop.f32.mrf.mxu1 }
0x12f1   : > { %v6028_v25 = vadd.f32 %v15777_v11, %v5988_v16 }
0x130a   : > { %v15797_v40 = vpop.f32.mrf.mxu0  ;;  %v15819_v21 = vpop.f32.mrf.mxu1 }
0x130c   : > { %v15798_v0 = vpop.f32.mrf.mxu0  ;;  %v15820_v34 = vpop.f32.mrf.mxu1 }
0x130d   : > { %v15799_v54 = vadd.f32 %v15798_v0, %v15797_v40  ;;  %v15821_v56 = vadd.f32 %v15820_v34, %v15819_v21  ;;  %v14642_v21 = vld [vmem:[%s20246_s3 + $0x1] ss:$0 sm:$0xff] }
0x130e   : > { %v15800_v7 = vpop.f32.mrf.mxu0  ;;  %v15822_v3 = vpop.f32.mrf.mxu1 }
0x130f   : > { %v6068_v55 = vadd.f32 %v15799_v54, %v6028_v25 }
0x1310   : > { %v15801_v1 = vpop.f32.mrf.mxu0  ;;  %v15823_v27 = vpop.f32.mrf.mxu1 }
0x1311   : > { %v6108_v58 = vadd.f32 %v15821_v56, %v6068_v55 }
0x132a   : > { %v15841_v9 = vpop.f32.mrf.mxu0 }
0x132b   : > { %v15863_v39 = vpop.f32.mrf.mxu1 }
0x132c   : > { %v15842_v10 = vpop.f32.mrf.mxu0 }
0x132d   : > { %v15864_v47 = vpop.f32.mrf.mxu1  ;;  %v15843_v57 = vadd.f32 %v15842_v10, %v15841_v9 }
0x132e   : > { %v15844_v48 = vpop.f32.mrf.mxu0  ;;  %v15865_v23 = vadd.f32 %v15864_v47, %v15863_v39 }
0x132f   : > { %v15866_v51 = vpop.f32.mrf.mxu1  ;;  %v6148_v60 = vadd.f32 %v15843_v57, %v6108_v58 }
0x1330   : > { %v15845_v52 = vpop.f32.mrf.mxu0 }
0x1331   : > { %v15867_v53 = vpop.f32.mrf.mxu1  ;;  %v6188_v28 = vadd.f32 %v15865_v23, %v6148_v60 }
0x134a   : > { %v15885_v61 = vpop.f32.mrf.mxu0 }
0x134b   : > { %v15907_v38 = vpop.f32.mrf.mxu1 }
0x134c   : > { %v15886_v50 = vpop.f32.mrf.mxu0 }
0x134d   : > { %v15887_v30 = vadd.f32 %v15886_v50, %v15885_v61  ;;  %v15908_v41 = vpop.f32.mrf.mxu1 }
0x134e   : > { %v15888_v59 = vpop.f32.mrf.mxu0  ;;  %v15909_v49 = vadd.f32 %v15908_v41, %v15907_v38 }
0x134f   : > { %v6228_v35 = vadd.f32 %v15887_v30, %v6188_v28  ;;  %v15910_v22 = vpop.f32.mrf.mxu1 }
0x1350   : > { %v15889_v4 = vpop.f32.mrf.mxu0 }
0x1351   : > { %v6268_v6 = vadd.f32 %v15909_v49, %v6228_v35  ;;  %v15911_v45 = vpop.f32.mrf.mxu1 }
0x1353   : > { %v6273_v8 = vadd.f32 %v6268_v6, %v18709_v13 }
0x1355   : > { %v6274_v12 = vsel %vm788_vm3, %v6273_v8, 0.0 }
0x1356   : > { %6275 = vadd.xlane.f32.xlu1 %v6274_v12 }
0x13df   : > { %v6276_v15 = vpop.xlane.xlu1 %6275 }
0x13e0   : > { %v6277_v17 = vmul.f32 0.015625, %v6276_v15 }
0x13e2   : > { %v6278_v19 = vsub.f32 %v6273_v8, %v6277_v17 }
0x13e4   : > { %v6279_v24 = vmul.f32 %v6278_v19, %v6278_v19 }
0x13e6   : > { %v6280_v20 = vsel %vm788_vm3, %v6279_v24, 0.0 }
0x13e7   : > { %6281 = vadd.xlane.f32.xlu0 %v6280_v20 }
0x13fd   : > { %6294 = vrot.lane.b32.xlu0 %v14640_v63, %s17950_s27 }
0x1470   : > { %v6282_v14 = vpop.xlane.xlu0 %6281 }
0x1471   : > { %v6283_v18 = vmul.f32 0.015625, %v6282_v14 }
0x1473   : > { %v6284_v36 = vadd.f32 1e-05, %v6283_v18 }
0x1474   : > { %v6295_v13 = vpop.permute.xlu0 %6294 }
0x1475   : > { %17355 = vrsqrt.f32 %v6284_v36 }
0x1482   : > { %v17356_v29 = vpop.eup %17355 }
0x1483   : > { %v6286_v31 = vmul.f32 %v17356_v29, %v6278_v19 }
0x1485   : > { %v6293_v62 = vmul.f32 %v14640_v63, %v6286_v31 }
0x1487   : > { %v6297_v32 = vadd.f32 %v6295_v13, %v6293_v62 }
0x1489   : > { %v6300_v33 = vsel %vm788_vm3, %v6297_v32, 0.0 }
0x148a   : > { %6301 = vadd.xlane.f32.xlu1 %v6300_v33 }
0x1513   : > { %v6302_v46 = vpop.xlane.xlu1 %6301 }
0x1514   : > { %v6303_v37 = vmul.f32 0.015625, %v6302_v46 }
0x1516   : > { %v6304_v2 = vsub.f32 %v6297_v32, %v6303_v37 }
0x1518   : > { %v6305_v42 = vmul.f32 %v6304_v2, %v6304_v2 }
0x151a   : > { %v6306_v11 = vsel %vm788_vm3, %v6305_v42, 0.0 }
0x151b   : > { %6307 = vadd.xlane.f32.xlu1 %v6306_v11 }
0x152c   : > { %6318 = vrot.lane.b32.xlu1 %v14641_v5, %s17950_s27 }
0x15a4   : > { %v6308_v26 = vpop.xlane.xlu1 %6307 }
0x15a5   : > { %v6309_v16 = vmul.f32 0.015625, %v6308_v26 }
0x15a7   : > { %v6310_v43 = vadd.f32 1e-05, %v6309_v16 }
0x15a8   : > { %v6319_v25 = vpop.permute.xlu1 %6318 }
0x15a9   : > { %17357 = vrsqrt.f32 %v6310_v43 }
0x15b6   : > { %v17358_v44 = vpop.eup %17357 }
0x15b7   : > { %v6312_v40 = vmul.f32 %v17358_v44, %v6304_v2 }
0x15b9   : > { %v6321_v0 = vmul.f32 %v6319_v25, %v6312_v40 }
0x15bb   : > { %v6328_v34 = vadd.f32 %v14642_v21, %v6321_v0 }
0x15bd   : > { %6329 = vst.msk [vmem:[#allocation3] sm:$0xff] %vm788_vm3, %v6328_v34 }
0x15be PF: > { %p14643_p5 = scmp.le.s32.totalorder %s18015_s25, 0 }
0x15bf   : > { %s17959_s17 = smov (!%p14643_p5), 48   ;;  %s17960_s18 = smov (!%p14643_p5), 64  }
0x15c0   : > { %6334 = sbr.rel (%p14643_p5) target bundleno = 15002 (0x3a9a), region = 56  ;;  %s17961_s19 = smov (!%p14643_p5), 80  }
0x15c1   : > { %s17962_s20 = smov (!%p14643_p5), 112   ;;  %s17963_s21 = smov (!%p14643_p5), 32  }
0x15c2   : > { %s17964_s22 = smov (!%p14643_p5), 96   ;;  %s17965_s23 = smov (!%p14643_p5), 16  }
0x15c3   : > { %p15505_p6 = scmp.ne.s32.totalorder (!%p14643_p5), %s18015_s25, 3 }
0x15c5   : > { %v17359_v7 = vld [vmem:[%s18028_s12 + $0x1e4] ss:$80 sps:$4 sm:$0xff]   ;;  %v17361_v3 = vld [vmem:[%s18028_s12 + $0x1e0] ss:$80 sps:$4 sm:$0xff]   ;;  %v17956_v1 = vmov 0   ;;  %vm6752_vm9 = vcmask 523264   ;;  %v6702_v53 = vlaneseq }
0x15c6   : > { %6788 = vmatprep.mubr.bf16.mxu0 %v17956_v1  ;;  %6764 = vmatprep.subr.bf16.mxu0 %v17359_v7  ;;  %v17362_v27 = vld [vmem:[%s18028_s12 + $0x144] ss:$80 sps:$4 sm:$0xff]   ;;  %v17364_v9 = vld [vmem:[%s18028_s12 + $0x140] ss:$80 sps:$4 sm:$0xff]   ;;  %v17957_v57 = vmov 0.0   ;;  %vm17958_vm10 = vmmov 0  }
0x15c7   : > { %6765 = vmatpush1.bf16.msra.mxu0 %v17361_v3  ;;  %v17365_v39 = vld [vmem:[%s18028_s12 + $0xa4] ss:$80 sps:$4 sm:$0xff]   ;;  %v17367_v10 = vld [vmem:[%s18028_s12 + $0xa0] ss:$80 sps:$4 sm:$0xff]   ;;  %v19010_v54 = vshrl.u32 %v6702_v53, 7  ;;  %16502 = vmatprep.subr.bf16.mxu1 %v17957_v57  ;;  %vm6802_vm11 = vcmask 130048  }
0x15c8   : > { %6766 = vmatprep.subr.bf16.mxu0 %v17362_v27  ;;  %v17368_v47 = vld [vmem:[%s18028_s12 + $0x4] ss:$80 sps:$4 sm:$0xff]   ;;  %v17370_v48 = vld [vmem:[%s18028_s12] ss:$80 sps:$4 sm:$0xff]   ;;  %16504 = vmatprep.mubr.msk.bf16.mxu1 %vm17958_vm10, %v17957_v57  ;;  %vm6866_vm12 = vcmask 1043456   ;;  %vm6850_vm13 = vcmask 64512  }
0x15c9   : > { %v6335_v51 = vld [vmem:[#allocation2] sm:$0xff]  ;;  %v19013_v55 = vsub.s32 0, %v19010_v54  ;;  %v19026_v30 = vsub.s32 1, %v19010_v54  ;;  %vm7257_vm14 = vcmask 261120   ;;  %vm7259_vm15 = vcmask 392192  }
0x15ca   : > { %v6700_v52 = vpack.c.bf16 %v6335_v51, %v6335_v51  ;;  %v6689_v56 = vld [vmem:[%s18033_s15] sm:$0x3] }
0x15cb   : > { %6767 = vmatpush1.bf16.msra.mxu0 %v17364_v9  ;;  %v6705_v58 = vrot.slane %v6689_v56, %v19013_v55  ;;  %v6709_v41 = vrot.slane %v6689_v56, %v19026_v30 }
0x15cc   : > { %6768 = vmatprep.subr.bf16.mxu0 %v17365_v39 }
0x15cf   : > { %6769 = vmatpush1.bf16.msra.mxu0 %v17367_v10 }
0x15d0   : > { %6770 = vmatprep.subr.bf16.mxu0 %v17368_v47 }
0x15d3   : > { %6771 = vmatpush1.bf16.msra.mxu0 %v17370_v48 }
0x15d4   : > { %16526 = vmatprep.subr.bf16.mxu0 %v17957_v57 }
0x15d6   : > { %14652 = vmatmul.mubr.msk.bf16.vlgmr.msra.gmra.mxu0 %vm6752_vm9, %v6700_v52 }
0x15d7   : > { %16528 = vmatprep.mubr.msk.bf16.mxu0 %vm17958_vm10, %v17957_v57 }
0x1696   : > { %v6790_v60 = vpop.f32.mrf.mxu0 }
0x1697   : > { %v6791_v61 = vadd.f32 %v6790_v60, %v6705_v58 }
0x1698   : > { %v6792_v23 = vpop.f32.mrf.mxu0 }
0x1699   : > { %v6797_v38 = vpack.c.bf16 %v6791_v61, %v6791_v61  ;;  %v6793_v35 = vadd.f32 %v6792_v23, %v6709_v41 }
0x169a   : > { %v6794_v50 = vpop.f32.mrf.mxu0 }
0x169b   : > { %6912 = vrot.lane.b32.xlu1 %v6797_v38, %s17959_s17  ;;  %6800 = vrot.lane.b32.xlu0 %v6797_v38, %s17960_s18  ;;  %v19031_v22 = vpack.c.bf16 %v6793_v35, %v6793_v35 }
0x169c   : > { %v6795_v28 = vpop.f32.mrf.mxu0 }
0x169d   : > { %v6868_v4 = vsel %vm6866_vm12, %v19031_v22, 0 }
0x170d   : > { %v6801_v59 = vpop.permute.xlu0 %6800  ;;  %v6913_v18 = vpop.permute.xlu1 %6912 }
0x170e   : > { %v6807_v49 = vsel %vm6802_vm11, %v6801_v59, 0  ;;  %v6918_v42 = vsel %vm6802_vm11, %v6913_v18, 0 }
0x170f   : > { %16503 = vmatpush3.bf16.xpose.msra.mxu1 %v6807_v49 }
0x1710   : > { %16508 = vmatprep.subr.bf16.mxu1 %v17957_v57 }
0x1716   : > { %16505 = vmatmul.mubr.msk.bf16.vlgmr.msra.gmra.mxu1 %vm6802_vm11, %v6797_v38 }
0x1717   : > { %16509 = vmatpush3.bf16.msra.mxu1 %v6868_v4  ;;  %16510 = vmatprep.mubr.msk.bf16.mxu1 %vm17958_vm10, %v17957_v57 }
0x1718   : > { %16514 = vmatprep.subr.bf16.mxu1 %v17957_v57 }
0x17d6   : > { %v6843_v6 = vpop.f32.mrf.mxu1 }
0x17d7   : > { %v6849_v45 = vmul.f32 0.25, %v6843_v6 }
0x17d8   : > { %v16506_v8 = vpop.f32.mrf.mxu1 }
0x17d9   : > { %v6851_v12 = vsel %vm6850_vm13, %v6849_v45, -inf }
0x17da   : > { %6852 = vmax.xlane.f32.xlu0 %v6851_v12  ;;  %v6846_v15 = vpop.f32.mrf.mxu1 }
0x17dc   : > { %v16507_v17 = vpop.f32.mrf.mxu1 }
0x17dd   : > { %v17371_v17 = vld [vmem:[%s18028_s12 + $0x144] ss:$80 sps:$4 sm:$0xff]  }
0x17f0   : > { %7133 = vrot.lane.b32.xlu0 %v6797_v38, %s17961_s19 }
0x1863   : > { %v6853_v19 = vpop.xlane.xlu0 %6852 }
0x1864   : > { %v6854_v24 = vsub.f32 %v6849_v45, %v6853_v19 }
0x1866   : > { %v6855_v20 = vmul.f32 1.442695, %v6854_v24 }
0x1867   : > { %v7134_v11 = vpop.permute.xlu0 %7133 }
0x1868   : > { %17855 = vpow2.f32 %v6855_v20 }
0x1875   : > { %v17856_v63 = vpop.eup %17855 }
0x1876   : > { %v6857_v14 = vsel %vm6850_vm13, %v17856_v63, 0.0 }
0x1877   : > { %6858 = vadd.xlane.f32.xlu1 %v6857_v14 }
0x1888   : > { %6910 = vrot.lane.b32.xlu1 %v6797_v38, %s17962_s20 }
0x188c   : > { %7024 = vrot.lane.b32.xlu1 %v6797_v38, %s17963_s21 }
0x1890   : > { %7022 = vrot.lane.b32.xlu1 %v6797_v38, %s17964_s22 }
0x1894   : > { %7135 = vrot.lane.b32.xlu1 %v6797_v38, %s17965_s23 }
0x1900   : > { %v6859_v36 = vpop.xlane.xlu1 %6858 }
0x1901   : > { %17857 = vrcp.f32 %v6859_v36 }
0x1904   : > { %v6911_v29 = vpop.permute.xlu1 %6910 }
0x1908   : > { %v7025_v31 = vpop.permute.xlu1 %7024 }
0x1909   : > { %v7030_v13 = vsel %vm6802_vm11, %v7025_v31, 0 }
0x190a   : > { %16527 = vmatpush3.bf16.xpose.msra.mxu0 %v7030_v13 }
0x190b   : > { %16538 = vmatprep.subr.bf16.mxu0 %v17957_v57 }
0x190c   : > { %v7023_v62 = vpop.permute.xlu1 %7022 }
0x190e   : > { %v17858_v32 = vpop.eup %17857 }
0x190f   : > { %v6861_v33 = vmul.f32 %v17858_v32, %v17856_v63 }
0x1910   : > { %v7136_v46 = vpop.permute.xlu1 %7135 }
0x1911   : > { %v7141_v37 = vsel %vm6802_vm11, %v7136_v46, 0  ;;  %16529 = vmatmul.mubr.msk.bf16.vlgmr.msra.gmra.mxu0 %vm6802_vm11, %v7023_v62  ;;  %v6862_v2 = vpack.c.bf16 %v6861_v33, %v6861_v33 }
0x1912   : > { %16539 = vmatpush3.bf16.xpose.msra.mxu0 %v7141_v37  ;;  %16540 = vmatprep.mubr.msk.bf16.mxu0 %vm17958_vm10, %v17957_v57 }
0x1913   : > { %16511 = vmatmul.mubr.msk.bf16.vlgmr.msra.gmra.mxu1 %vm6850_vm13, %v6862_v2  ;;  %16550 = vmatprep.subr.bf16.mxu0 %v17957_v57  ;;  %v17372_v2 = vld [vmem:[%s18028_s12 + $0x1e4] ss:$80 sps:$4 sm:$0xff]  }
0x1914   : > { %16515 = vmatpush3.bf16.xpose.msra.mxu1 %v6918_v42  ;;  %16516 = vmatprep.mubr.msk.bf16.mxu1 %vm17958_vm10, %v17957_v57  ;;  %v17373_v42 = vld [vmem:[%s18028_s12 + $0xa4] ss:$80 sps:$4 sm:$0xff]  }
0x1915   : > { %16520 = vmatprep.subr.bf16.mxu1 %v17957_v57 }
0x1919   : > { %16541 = vmatmul.mubr.msk.bf16.vlgmr.msra.gmra.mxu0 %vm6802_vm11, %v7134_v11 }
0x191a   : > { %16558 = vmatprep.mubr.msk.bf16.mxu0 %vm17958_vm10, %v17957_v57 }
0x191b   : > { %16517 = vmatmul.mubr.msk.bf16.vlgmr.msra.gmra.mxu1 %vm6802_vm11, %v6911_v29 }
0x191c   : > { %16522 = vmatprep.mubr.msk.bf16.mxu1 %vm17958_vm10, %v17957_v57 }
0x19d1   : > { %v7066_v5 = vpop.f32.mrf.mxu0 }
0x19d2   : > { %v7072_v26 = vmul.f32 0.25, %v7066_v5 }
0x19d3   : > { %v19064_v16 = vpop.f32.mrf.mxu1  ;;  %v16530_v43 = vpop.f32.mrf.mxu0 }
0x19d4   : > { %v7073_v44 = vsel %vm6850_vm13, %v7072_v26, -inf }
0x19d5   : > { %7074 = vmax.xlane.f32.xlu0 %v7073_v44  ;;  %v16512_v25 = vpop.f32.mrf.mxu1  ;;  %v7069_v40 = vpop.f32.mrf.mxu0 }
0x19d7   : > { %v6907_v21 = vpop.f32.mrf.mxu1  ;;  %v16531_v0 = vpop.f32.mrf.mxu0 }
0x19d8   : > { %v17374_v0 = vld [vmem:[%s18028_s12 + $0x4] ss:$80 sps:$4 sm:$0xff]  }
0x19d9   : > { %v16513_v34 = vpop.f32.mrf.mxu1  ;;  %v7177_v7 = vpop.f32.mrf.mxu0 }
0x19da   : > { %v7183_v47 = vmul.f32 0.25, %v7177_v7 }
0x19db   : > { %v6954_v3 = vpop.f32.mrf.mxu1  ;;  %v16542_v27 = vpop.f32.mrf.mxu0 }
0x19dc   : > { %v6960_v9 = vmul.f32 0.25, %v6954_v3  ;;  %v7184_v56 = vsel %vm6850_vm13, %v7183_v47, -inf }
0x19dd   : > { %v16518_v39 = vpop.f32.mrf.mxu1  ;;  %v7180_v10 = vpop.f32.mrf.mxu0 }
0x19de   : > { %v6961_v48 = vsel %vm6850_vm13, %v6960_v9, -inf  ;;  %v14661_v39 = vld [vmem:[%s18033_s15 + $0x1] ss:$0 sm:$0xff] }
0x19df   : > { %v16543_v51 = vpop.f32.mrf.mxu0  ;;  %6962 = vmax.xlane.f32.xlu1 %v6961_v48  ;;  %v6957_v52 = vpop.f32.mrf.mxu1 }
0x19e1   : > { %v16519_v53 = vpop.f32.mrf.mxu1 }
0x19e3   : > { %7185 = vmax.xlane.f32.xlu1 %v7184_v56 }
0x19eb   : > { %6974 = vrot.lane.b32.xlu0 %v19031_v22, %s17962_s20 }
0x19ef   : > { %7293 = vrot.lane.b32.xlu0 %v17372_v2, %s17960_s18 }
0x19f3   : > { %7289 = vrot.lane.b32.xlu0 %v17373_v42, %s17960_s18 }
0x1a5e   : > { %v7075_v58 = vpop.xlane.xlu0 %7074 }
0x1a5f   : > { %v7076_v60 = vsub.f32 %v7072_v26, %v7075_v58 }
0x1a61   : > { %v7077_v61 = vmul.f32 1.442695, %v7076_v60 }
0x1a62   : > { %v6975_v23 = vpop.permute.xlu0 %6974 }
0x1a63   : > { %17859 = vpow2.f32 %v7077_v61  ;;  %v6980_v38 = vsel %vm6866_vm12, %v6975_v23, 0 }
0x1a64   : > { %16521 = vmatpush3.bf16.msra.mxu1 %v6980_v38 }
0x1a65   : > { %16532 = vmatprep.subr.bf16.mxu1 %v17957_v57 }
0x1a66   : > { %v7294_v11 = vpop.permute.xlu0 %7293 }
0x1a67   : > { %16551 = vmatpush3.bf16.msra.mxu0 %v7294_v11  ;;  %v14674_v11 = vld [vmem:[%s18033_s15 + $0x3] ss:$0 sm:$0xff] }
0x1a68   : > { %v6963_v50 = vpop.xlane.xlu1 %6962  ;;  %16552 = vmatprep.subr.bf16.mxu0 %v17957_v57 }
0x1a69   : > { %v6964_v28 = vsub.f32 %v6960_v9, %v6963_v50 }
0x1a6a   : > { %v7290_v26 = vpop.permute.xlu0 %7289 }
0x1a6b   : > { %v6965_v35 = vmul.f32 1.442695, %v6964_v28 }
0x1a6c   : > { %v7186_v41 = vpop.xlane.xlu1 %7185 }
0x1a6d   : > { %v7187_v59 = vsub.f32 %v7183_v47, %v7186_v41  ;;  %v17931_v41 = vld [vmem:[#allocation2] sm:$0xff] }
0x1a6f   : > { %v7188_v49 = vmul.f32 1.442695, %v7187_v59 }
0x1a70   : > { %v17860_v4 = vpop.eup %17859 }
0x1a71   : > { %17861 = vpow2.f32 %v7188_v49  ;;  %v7079_v6 = vsel %vm6850_vm13, %v17860_v4, 0.0 }
0x1a72   : > { %7080 = vadd.xlane.f32.xlu1 %v7079_v6  ;;  %17863 = vpow2.f32 %v6965_v35  ;;  %v14667_v6 = vld [vmem:[%s18033_s15 + $0x4] ss:$0 sm:$0xff] }
0x1a7e   : > { %v17862_v45 = vpop.eup %17861 }
0x1a7f   : > { %v7190_v8 = vsel %vm6850_vm13, %v17862_v45, 0.0  ;;  %v17864_v12 = vpop.eup %17863 }
0x1a80   : > { %7191 = vadd.xlane.f32.xlu1 %v7190_v8  ;;  %v6967_v15 = vsel %vm6850_vm13, %v17864_v12, 0.0 }
0x1a84   : > { %6968 = vadd.xlane.f32.xlu1 %v6967_v15 }
0x1a95   : > { %7085 = vrot.lane.b32.xlu1 %v19031_v22, %s17964_s22 }
0x1a99   : > { %7196 = vrot.lane.b32.xlu1 %v19031_v22, %s17961_s19 }
0x1a9d   : > { %7291 = vrot.lane.b32.xlu1 %v17371_v17, %s17960_s18 }
0x1afb   : > { %v7081_v19 = vpop.xlane.xlu1 %7080 }
0x1b09   : > { %v7192_v24 = vpop.xlane.xlu1 %7191 }
0x1b0d   : > { %v6969_v20 = vpop.xlane.xlu1 %6968 }
0x1b0e   : > { %17865 = vrcp.f32 %v6969_v20  ;;  %v17378_v20 = vld [vmem:[%s18028_s12 + $0xc] ss:$80 sps:$4 sm:$0xff]  }
0x1b0f   : > { %17867 = vrcp.f32 %v7081_v19 }
0x1b10   : > { %17869 = vrcp.f32 %v7192_v24  ;;  %v17377_v24 = vld [vmem:[%s18028_s12 + $0xac] ss:$80 sps:$4 sm:$0xff]  }
0x1b11   : > { %v7086_v18 = vpop.permute.xlu1 %7085 }
0x1b12   : > { %v7091_v31 = vsel %vm6866_vm12, %v7086_v18, 0  ;;  %v19133_v18 = vld [vmem:[%s18028_s12 + $0x148] ss:$80 sps:$4 sm:$0xff]  }
0x1b15   : > { %v7197_v13 = vpop.permute.xlu1 %7196 }
0x1b16   : > { %v7202_v33 = vsel %vm6866_vm12, %v7197_v13, 0 }
0x1b19   : > { %v7292_v5 = vpop.permute.xlu1 %7291 }
0x1b1a   : > { %16553 = vmatpush3.bf16.msra.mxu0 %v7292_v5 }
0x1b1b   : > { %v17866_v63 = vpop.eup %17865  ;;  %16554 = vmatprep.subr.bf16.mxu0 %v17957_v57 }
0x1b1c   : > { %v6971_v14 = vmul.f32 %v17866_v63, %v17864_v12  ;;  %v17868_v29 = vpop.eup %17867  ;;  %v6336_v63 = vld [vmem:[#allocation3] sm:$0xff] }
0x1b1d   : > { %v7083_v22 = vmul.f32 %v17868_v29, %v17860_v4  ;;  %v17870_v32 = vpop.eup %17869  ;;  %v17375_v4 = vld [vmem:[%s18028_s12 + $0x1ec] ss:$80 sps:$4 sm:$0xff]   ;;  %v19141_v29 = vld [vmem:[%s18028_s12 + $0xa8] ss:$80 sps:$4 sm:$0xff]  }
0x1b1e   : > { %v6972_v36 = vpack.c.bf16 %v6971_v14, %v6971_v14  ;;  %v7194_v46 = vmul.f32 %v17870_v32, %v17862_v45  ;;  %16555 = vmatpush3.bf16.msra.mxu0 %v7290_v26  ;;  %v17376_v45 = vld [vmem:[%s18028_s12 + $0x14c] ss:$80 sps:$4 sm:$0xff]   ;;  %v19128_v14 = vld [vmem:[%s18028_s12 + $0x1e8] ss:$80 sps:$4 sm:$0xff]  }
0x1b1f   : > { %v7084_v62 = vpack.c.bf16 %v7083_v22, %v7083_v22  ;;  %16556 = vmatprep.subr.bf16.mxu0 %v17957_v57 }
0x1b20   : > { %16523 = vmatmul.mubr.msk.bf16.vlgmr.msra.gmra.mxu1 %vm6850_vm13, %v6972_v36  ;;  %v7195_v37 = vpack.c.bf16 %v7194_v46, %v7194_v46  ;;  %v19135_v36 = vpack.c.bf16 %v6336_v63, %v6336_v63 }
0x1b21   : > { %16533 = vmatpush3.bf16.msra.mxu1 %v7091_v31  ;;  %16534 = vmatprep.mubr.msk.bf16.mxu1 %vm17958_vm10, %v17957_v57  ;;  %v19151_v31 = vld [vmem:[%s18028_s12 + $0x8] ss:$80 sps:$4 sm:$0xff]  }
0x1b22   : > { %16544 = vmatprep.subr.bf16.mxu1 %v17957_v57 }
0x1b28   : > { %16535 = vmatmul.mubr.msk.bf16.vlgmr.msra.gmra.mxu1 %vm6850_vm13, %v7084_v62 }
0x1b29   : > { %16545 = vmatpush3.bf16.msra.mxu1 %v7202_v33  ;;  %16546 = vmatprep.mubr.msk.bf16.mxu1 %vm17958_vm10, %v17957_v57 }
0x1b2a   : > { %16562 = vmatprep.subr.bf16.mxu1 %v17957_v57 }
0x1b30   : > { %16547 = vmatmul.mubr.msk.bf16.vlgmr.msra.gmra.mxu1 %vm6850_vm13, %v7195_v37 }
0x1b31   : > { %16570 = vmatprep.mubr.msk.bf16.mxu1 %vm17958_vm10, %v17957_v57  ;;  %16563 = vmatpush3.bf16.msra.mxu1 %v19128_v14 }
0x1b32   : > { %16564 = vmatprep.subr.bf16.mxu1 %v17957_v57 }
0x1b35   : > { %16565 = vmatpush3.bf16.msra.mxu1 %v19133_v18 }
0x1b36   : > { %16566 = vmatprep.subr.bf16.mxu1 %v17957_v57 }
0x1b39   : > { %16567 = vmatpush3.bf16.msra.mxu1 %v19141_v29 }
0x1b3a   : > { %16568 = vmatprep.subr.bf16.mxu1 %v17957_v57 }
0x1b3d   : > { %16569 = vmatpush3.bf16.msra.mxu1 %v19151_v31 }
0x1b3e   : > { %16586 = vmatprep.subr.bf16.mxu1 %v17957_v57 }
0x1be0   : > { %v7016_v43 = vpop.f32.mrf.mxu1 }
0x1be1   : > { %7245 = vrot.lane.b32.xlu1 %v7016_v43, %s17965_s23 }
0x1be2   : > { %v16524_v44 = vpop.f32.mrf.mxu1 }
0x1be4   : > { %v7019_v25 = vpop.f32.mrf.mxu1 }
0x1be6   : > { %v16525_v40 = vpop.f32.mrf.mxu1 }
0x1be8   : > { %v7127_v21 = vpop.f32.mrf.mxu1 }
0x1be9   : > { %7249 = vrot.lane.b32.xlu0 %v7127_v21, %s17963_s21 }
0x1bea   : > { %v16536_v34 = vpop.f32.mrf.mxu1 }
0x1bec   : > { %v7130_v7 = vpop.f32.mrf.mxu1 }
0x1bed   : > { %7287 = vrot.lane.b32.xlu0 %v17374_v0, %s17960_s18  ;;  %v19177_v7 = vld [vmem:[%s18033_s15 + $0x2] ss:$0 sm:$0xff] }
0x1bee   : > { %v16537_v3 = vpop.f32.mrf.mxu1 }
0x1bf0   : > { %v7238_v27 = vpop.f32.mrf.mxu1 }
0x1bf1   : > { %7253 = vrot.lane.b32.xlu1 %v7238_v27, %s17959_s17 }
0x1bf2   : > { %v16548_v9 = vpop.f32.mrf.mxu1 }
0x1bf4   : > { %v7241_v10 = vpop.f32.mrf.mxu1 }
0x1bf5   : > { %7299 = vrot.lane.b32.xlu1 %v14661_v39, %s17960_s18 }
0x1bf6   : > { %v16549_v47 = vpop.f32.mrf.mxu1 }
0x1c53   : > { %v7246_v51 = vpop.permute.xlu1 %7245 }
0x1c54   : > { %v7256_v53 = vsel %vm6802_vm11, %v19064_v16, %v7246_v51 }
0x1c5b   : > { %v7250_v48 = vpop.permute.xlu0 %7249 }
0x1c5c   : > { %v7258_v56 = vsel %vm7257_vm14, %v7256_v53, %v7250_v48 }
0x1c5f   : > { %v7288_v52 = vpop.permute.xlu0 %7287 }
0x1c60   : > { %16557 = vmatpush3.bf16.msra.mxu0 %v7288_v52 }
0x1c61   : > { %16574 = vmatprep.subr.bf16.mxu0 %v17957_v57 }
0x1c63   : > { %v7254_v58 = vpop.permute.xlu1 %7253 }
0x1c64   : > { %v7260_v60 = vsel %vm7259_vm15, %v7258_v56, %v7254_v58 }
0x1c65   : > { %v7261_v61 = vpack.c.bf16 %v7260_v60, %v7260_v60 }
0x1c67   : > { %16559 = vmatmul.mubr.msk.bf16.vlgmr.msra.gmra.mxu0 %vm6752_vm9, %v7261_v61  ;;  %v7300_v23 = vpop.permute.xlu1 %7299 }
0x1c68   : > { %16582 = vmatprep.mubr.msk.bf16.mxu0 %vm17958_vm10, %v17957_v57  ;;  %16575 = vmatpush3.bf16.msra.mxu0 %v17375_v4 }
0x1c69   : > { %16576 = vmatprep.subr.bf16.mxu0 %v17957_v57 }
0x1c6c   : > { %16577 = vmatpush3.bf16.msra.mxu0 %v17376_v45 }
0x1c6d   : > { %16578 = vmatprep.subr.bf16.mxu0 %v17957_v57 }
0x1c70   : > { %16579 = vmatpush3.bf16.msra.mxu0 %v17377_v24 }
0x1c71   : > { %16580 = vmatprep.subr.bf16.mxu0 %v17957_v57 }
0x1c74   : > { %16581 = vmatpush3.bf16.msra.mxu0 %v17378_v20 }
0x1c75   : > { %16598 = vmatprep.subr.bf16.mxu0 %v17957_v57 }
0x1c77   : > { %16583 = vmatmul.mubr.msk.bf16.vlgmr.msra.gmra.mxu0 %vm6752_vm9, %v19135_v36 }
0x1c78   : > { %16600 = vmatprep.mubr.msk.bf16.mxu0 %vm17958_vm10, %v17957_v57 }
0x1d27   : > { %v7339_v38 = vpop.f32.mrf.mxu0 }
0x1d28   : > { %v7340_v50 = vadd.f32 %v7339_v38, %v7300_v23 }
0x1d29   : > { %v16560_v28 = vpop.f32.mrf.mxu0 }
0x1d2a   : > { %v7345_v16 = vadd.f32 %v17931_v41, %v7340_v50 }
0x1d2b   : > { %v7342_v59 = vpop.f32.mrf.mxu0 }
0x1d2c   : > { %v7346_v35 = vsel %vm6752_vm9, %v7345_v16, 0.0 }
0x1d2d   : > { %v16561_v49 = vpop.f32.mrf.mxu0  ;;  %7347 = vadd.xlane.f32.xlu0 %v7346_v35 }
0x1d37   : > { %v7513_v5 = vpop.f32.mrf.mxu0 }
0x1d38   : > { %v7514_v26 = vadd.f32 %v14674_v11, %v7513_v5 }
0x1d39   : > { %v16584_v43 = vpop.f32.mrf.mxu0 }
0x1d3a   : > { %v19163_v44 = vpack.c.bf16 %v7514_v26, %v7514_v26 }
0x1d3b   : > { %v7516_v25 = vpop.f32.mrf.mxu0 }
0x1d3c   : > { %v7525_v40 = vsel %vm6802_vm11, %v19163_v44, 0 }
0x1d3d   : > { %v16585_v21 = vpop.f32.mrf.mxu0 }
0x1d43   : > { %7367 = vrot.lane.b32.xlu0 %v14667_v6, %s17960_s18 }
0x1db6   : > { %v7348_v8 = vpop.xlane.xlu0 %7347 }
0x1db7   : > { %v7350_v12 = vmul.f32 0.015625, %v7348_v8 }
0x1db9   : > { %v7351_v15 = vsub.f32 %v7345_v16, %v7350_v12 }
0x1dba   : > { %v7368_v46 = vpop.permute.xlu0 %7367 }
0x1dbb   : > { %v7352_v17 = vmul.f32 %v7351_v15, %v7351_v15 }
0x1dbd   : > { %v7353_v19 = vsel %vm6752_vm9, %v7352_v17, 0.0 }
0x1dbe   : > { %7354 = vadd.xlane.f32.xlu1 %v7353_v19 }
0x1dcf   : > { %7632 = vrot.lane.b32.xlu1 %v19163_v44, %s17962_s20 }
0x1dd3   : > { %7743 = vrot.lane.b32.xlu1 %v19163_v44, %s17964_s22 }
0x1dd7   : > { %7854 = vrot.lane.b32.xlu1 %v19163_v44, %s17961_s19 }
0x1e47   : > { %v7355_v22 = vpop.xlane.xlu1 %7354 }
0x1e48   : > { %v7356_v13 = vmul.f32 0.015625, %v7355_v22 }
0x1e4a   : > { %v7357_v62 = vadd.f32 1e-05, %v7356_v13 }
0x1e4b   : > { %v7633_v0 = vpop.permute.xlu1 %7632 }
0x1e4c   : > { %17871 = vrsqrt.f32 %v7357_v62  ;;  %v7638_v34 = vsel %vm6802_vm11, %v7633_v0, 0 }
0x1e4d   : > { %16599 = vmatpush3.bf16.xpose.msra.mxu0 %v7638_v34 }
0x1e4e   : > { %16610 = vmatprep.subr.bf16.mxu0 %v17957_v57 }
0x1e4f   : > { %v7744_v48 = vpop.permute.xlu1 %7743 }
0x1e50   : > { %v7749_v52 = vsel %vm6802_vm11, %v7744_v48, 0 }
0x1e53   : > { %v7855_v53 = vpop.permute.xlu1 %7854 }
0x1e54   : > { %v7860_v58 = vsel %vm6802_vm11, %v7855_v53, 0 }
0x1e59   : > { %v17872_v32 = vpop.eup %17871 }
0x1e5a   : > { %v7359_v33 = vmul.f32 %v17872_v32, %v7351_v15 }
0x1e5c   : > { %v7366_v37 = vmul.f32 %v14667_v6, %v7359_v33 }
0x1e5e   : > { %v19155_v2 = vadd.f32 %v7368_v46, %v7366_v37 }
0x1e60   : > { %v7371_v42 = vpack.c.bf16 %v19155_v2, %v19155_v2 }
0x1e62   : > { %16571 = vmatmul.mubr.msk.bf16.vlgmr.msra.gmra.mxu1 %vm6752_vm9, %v7371_v42 }
0x1e63   : > { %16588 = vmatprep.mubr.msk.bf16.mxu1 %vm17958_vm10, %v17957_v57  ;;  %16587 = vmatpush3.bf16.xpose.msra.mxu1 %v7525_v40 }
0x1e64   : > { %16592 = vmatprep.subr.bf16.mxu1 %v17957_v57 }
0x1f22   : > { %v7439_v3 = vpop.f32.mrf.mxu1 }
0x1f23   : > { %v7440_v27 = vadd.f32 %v19177_v7, %v7439_v3 }
0x1f24   : > { %v16572_v9 = vpop.f32.mrf.mxu1 }
0x1f25   : > { %v7519_v39 = vpack.c.bf16 %v7440_v27, %v7440_v27 }
0x1f26   : > { %v7442_v10 = vpop.f32.mrf.mxu1 }
0x1f27   : > { %7630 = vrot.lane.b32.xlu0 %v7519_v39, %s17962_s20  ;;  %16589 = vmatmul.mubr.msk.bf16.vlgmr.msra.gmra.mxu1 %vm6802_vm11, %v7519_v39 }
0x1f28   : > { %v16573_v47 = vpop.f32.mrf.mxu1  ;;  %16594 = vmatprep.mubr.msk.bf16.mxu1 %vm17958_vm10, %v17957_v57 }
0x1f2b   : > { %7741 = vrot.lane.b32.xlu0 %v7519_v39, %s17964_s22 }
0x1f2f   : > { %7852 = vrot.lane.b32.xlu0 %v7519_v39, %s17961_s19 }
0x1f99   : > { %v7631_v51 = vpop.permute.xlu0 %7630 }
0x1f9a   : > { %16601 = vmatmul.mubr.msk.bf16.vlgmr.msra.gmra.mxu0 %vm6802_vm11, %v7631_v51 }
0x1f9b   : > { %16611 = vmatpush3.bf16.xpose.msra.mxu0 %v7749_v52  ;;  %16612 = vmatprep.mubr.msk.bf16.mxu0 %vm17958_vm10, %v17957_v57 }
0x1f9c   : > { %16622 = vmatprep.subr.bf16.mxu0 %v17957_v57 }
0x1f9d   : > { %v7742_v56 = vpop.permute.xlu0 %7741 }
0x1fa1   : > { %v7853_v60 = vpop.permute.xlu0 %7852 }
0x1fa2   : > { %16613 = vmatmul.mubr.msk.bf16.vlgmr.msra.gmra.mxu0 %vm6802_vm11, %v7742_v56 }
0x1fa3   : > { %16623 = vmatpush3.bf16.xpose.msra.mxu0 %v7860_v58  ;;  %16624 = vmatprep.mubr.msk.bf16.mxu0 %vm17958_vm10, %v17957_v57 }
0x1fa4   : > { %16634 = vmatprep.subr.bf16.mxu0 %v17957_v57 }
0x1faa   : > { %16625 = vmatmul.mubr.msk.bf16.vlgmr.msra.gmra.mxu0 %vm6802_vm11, %v7853_v60 }
0x1fab   : > { %16642 = vmatprep.mubr.msk.bf16.mxu0 %vm17958_vm10, %v17957_v57 }
0x1fe7   : > { %v7561_v61 = vpop.f32.mrf.mxu1 }
0x1fe8   : > { %v7567_v23 = vmul.f32 0.25, %v7561_v61 }
0x1fe9   : > { %v16590_v38 = vpop.f32.mrf.mxu1 }
0x1fea   : > { %v7568_v50 = vsel %vm6850_vm13, %v7567_v23, -inf }
0x1feb   : > { %7569 = vmax.xlane.f32.xlu1 %v7568_v50  ;;  %v7564_v28 = vpop.f32.mrf.mxu1 }
0x1fed   : > { %v16591_v41 = vpop.f32.mrf.mxu1 }
0x205a   : > { %v7674_v16 = vpop.f32.mrf.mxu0 }
0x205b   : > { %v7680_v59 = vmul.f32 0.25, %v7674_v16 }
0x205c   : > { %v16602_v35 = vpop.f32.mrf.mxu0 }
0x205d   : > { %v7681_v49 = vsel %vm6850_vm13, %v7680_v59, -inf }
0x205e   : > { %7682 = vmax.xlane.f32.xlu0 %v7681_v49  ;;  %v7677_v4 = vpop.f32.mrf.mxu0 }
0x2060   : > { %v16603_v6 = vpop.f32.mrf.mxu0 }
0x2062   : > { %v7785_v45 = vpop.f32.mrf.mxu0 }
0x2063   : > { %v7791_v8 = vmul.f32 0.25, %v7785_v45 }
0x2064   : > { %v16614_v12 = vpop.f32.mrf.mxu0 }
0x2065   : > { %v7792_v15 = vsel %vm6850_vm13, %v7791_v8, -inf }
0x2066   : > { %7793 = vmax.xlane.f32.xlu0 %v7792_v15  ;;  %v7788_v17 = vpop.f32.mrf.mxu0 }
0x2068   : > { %v16615_v19 = vpop.f32.mrf.mxu0 }
0x206a   : > { %v7896_v24 = vpop.f32.mrf.mxu0 }
0x206b   : > { %v7902_v20 = vmul.f32 0.25, %v7896_v24 }
0x206c   : > { %v16626_v63 = vpop.f32.mrf.mxu0 }
0x206d   : > { %v7903_v22 = vsel %vm6850_vm13, %v7902_v20, -inf }
0x206e   : > { %v7899_v13 = vpop.f32.mrf.mxu0  ;;  %7904 = vmax.xlane.f32.xlu1 %v7903_v22 }
0x2070   : > { %v16627_v62 = vpop.f32.mrf.mxu0 }
0x2074   : > { %v7570_v32 = vpop.xlane.xlu1 %7569 }
0x2075   : > { %v7571_v33 = vsub.f32 %v7567_v23, %v7570_v32 }
0x2077   : > { %v7572_v46 = vmul.f32 1.442695, %v7571_v33 }
0x2079   : > { %17873 = vpow2.f32 %v7572_v46 }
0x2086   : > { %v17874_v37 = vpop.eup %17873 }
0x2087   : > { %v7574_v42 = vsel %vm6850_vm13, %v17874_v37, 0.0 }
0x2088   : > { %7575 = vadd.xlane.f32.xlu0 %v7574_v42 }
0x20e7   : > { %v7683_v11 = vpop.xlane.xlu0 %7682 }
0x20e8   : > { %v7684_v5 = vsub.f32 %v7680_v59, %v7683_v11 }
0x20ea   : > { %v7685_v26 = vmul.f32 1.442695, %v7684_v5 }
0x20ec   : > { %17875 = vpow2.f32 %v7685_v26 }
0x20ef   : > { %v7794_v43 = vpop.xlane.xlu0 %7793 }
0x20f0   : > { %v7795_v25 = vsub.f32 %v7791_v8, %v7794_v43 }
0x20f2   : > { %v7796_v40 = vmul.f32 1.442695, %v7795_v25 }
0x20f4   : > { %17877 = vpow2.f32 %v7796_v40 }
0x20f7   : > { %v7905_v27 = vpop.xlane.xlu1 %7904 }
0x20f8   : > { %v7906_v9 = vsub.f32 %v7902_v20, %v7905_v27 }
0x20f9   : > { %v17876_v21 = vpop.eup %17875 }
0x20fa   : > { %v7687_v0 = vsel %vm6850_vm13, %v17876_v21, 0.0  ;;  %v7907_v39 = vmul.f32 1.442695, %v7906_v9 }
0x20fb   : > { %7688 = vadd.xlane.f32.xlu1 %v7687_v0 }
0x20fc   : > { %17879 = vpow2.f32 %v7907_v39 }
0x2101   : > { %v17878_v34 = vpop.eup %17877 }
0x2102   : > { %v7798_v3 = vsel %vm6850_vm13, %v17878_v34, 0.0 }
0x2103   : > { %7799 = vadd.xlane.f32.xlu0 %v7798_v3 }
0x2109   : > { %v17880_v10 = vpop.eup %17879 }
0x210a   : > { %v7909_v47 = vsel %vm6850_vm13, %v17880_v10, 0.0 }
0x210c   : > { %7693 = vrot.lane.b32.xlu1 %v19163_v44, %s17959_s17 }
0x2111   : > { %v7576_v48 = vpop.xlane.xlu0 %7575 }
0x2112   : > { %17881 = vrcp.f32 %v7576_v48 }
0x2119   : > { %7581 = vrot.lane.b32.xlu0 %v19163_v44, %s17960_s18 }
0x211d   : > { %7915 = vrot.lane.b32.xlu0 %v19163_v44, %s17965_s23 }
0x211f   : > { %v17882_v52 = vpop.eup %17881 }
0x2121   : > { %7983 = vrot.lane.b32.xlu0 %v19133_v18, %s17960_s18  ;;  %v7578_v18 = vmul.f32 %v17882_v52, %v17874_v37 }
0x2123   : > { %v7579_v61 = vpack.c.bf16 %v7578_v18, %v7578_v18 }
0x2130   : > { %7910 = vadd.xlane.f32.xlu1 %v7909_v47 }
0x2141   : > { %7804 = vrot.lane.b32.xlu1 %v19163_v44, %s17963_s21 }
0x2145   : > { %7985 = vrot.lane.b32.xlu1 %v19128_v14, %s17960_s18 }
0x2149   : > { %7981 = vrot.lane.b32.xlu1 %v19141_v29, %s17960_s18 }
0x2184   : > { %v7689_v51 = vpop.xlane.xlu1 %7688 }
0x2185   : > { %17883 = vrcp.f32 %v7689_v51 }
0x2188   : > { %v7694_v60 = vpop.permute.xlu1 %7693 }
0x2189   : > { %v7699_v14 = vsel %vm6866_vm12, %v7694_v60, 0  ;;  %v17385_v60 = vld [vmem:[%s18028_s12 + $0x1f4] ss:$80 sps:$4 sm:$0xff]  }
0x218c   : > { %v7800_v53 = vpop.xlane.xlu0 %7799 }
0x218d   : > { %17885 = vrcp.f32 %v7800_v53 }
0x2190   : > { %v7582_v56 = vpop.permute.xlu0 %7581 }
0x2191   : > { %v7587_v58 = vsel %vm6866_vm12, %v7582_v56, 0 }
0x2192   : > { %16593 = vmatpush3.bf16.msra.mxu1 %v7587_v58  ;;  %v17884_v44 = vpop.eup %17883 }
0x2193   : > { %16604 = vmatprep.subr.bf16.mxu1 %v17957_v57  ;;  %v7691_v29 = vmul.f32 %v17884_v44, %v17876_v21  ;;  %v17388_v44 = vld [vmem:[%s18028_s12 + $0x1fc] ss:$80 sps:$4 sm:$0xff]  }
0x2194   : > { %v7916_v59 = vpop.permute.xlu0 %7915 }
0x2195   : > { %16595 = vmatmul.mubr.msk.bf16.vlgmr.msra.gmra.mxu1 %vm6850_vm13, %v7579_v61  ;;  %v7692_v23 = vpack.c.bf16 %v7691_v29, %v7691_v29  ;;  %v7921_v49 = vsel %vm6866_vm12, %v7916_v59, 0  ;;  %v17386_v61 = vld [vmem:[%s18028_s12 + $0x1f8] ss:$80 sps:$4 sm:$0xff]   ;;  %v17394_v29 = vld [vmem:[%s18028_s12 + $0x15c] ss:$80 sps:$4 sm:$0xff]  }
0x2196   : > { %16605 = vmatpush3.bf16.msra.mxu1 %v7699_v14  ;;  %16606 = vmatprep.mubr.msk.bf16.mxu1 %vm17958_vm10, %v17957_v57  ;;  %v17391_v14 = vld [vmem:[%s18028_s12 + $0x154] ss:$80 sps:$4 sm:$0xff]   ;;  %v17398_v59 = vld [vmem:[%s18028_s12 + $0xb8] ss:$80 sps:$4 sm:$0xff]  }
0x2197   : > { %16616 = vmatprep.subr.bf16.mxu1 %v17957_v57 }
0x2198   : > { %v7984_v15 = vpop.permute.xlu0 %7983 }
0x219a   : > { %v17886_v38 = vpop.eup %17885 }
0x219b   : > { %v7802_v28 = vmul.f32 %v17886_v38, %v17878_v34  ;;  %v17392_v38 = vld [vmem:[%s18028_s12 + $0x158] ss:$80 sps:$4 sm:$0xff]  }
0x219d   : > { %16607 = vmatmul.mubr.msk.bf16.vlgmr.msra.gmra.mxu1 %vm6850_vm13, %v7692_v23  ;;  %v7803_v35 = vpack.c.bf16 %v7802_v28, %v7802_v28  ;;  %v17389_v23 = vld [vmem:[%s18028_s12 + $0x150] ss:$80 sps:$4 sm:$0xff]   ;;  %v17397_v28 = vld [vmem:[%s18028_s12 + $0xb4] ss:$80 sps:$4 sm:$0xff]  }
0x219e   : > { %16618 = vmatprep.mubr.msk.bf16.mxu1 %vm17958_vm10, %v17957_v57 }
0x21b9   : > { %v7911_v50 = vpop.xlane.xlu1 %7910 }
0x21ba   : > { %17887 = vrcp.f32 %v7911_v50  ;;  %v19270_v50 = vld [vmem:[%s18033_s15 + $0x5] ss:$0 sm:$0xff] }
0x21bd   : > { %v7805_v41 = vpop.permute.xlu1 %7804 }
0x21be   : > { %v7810_v16 = vsel %vm6866_vm12, %v7805_v41, 0  ;;  %v17400_v41 = vld [vmem:[%s18028_s12 + $0xbc] ss:$80 sps:$4 sm:$0xff]  }
0x21bf   : > { %16617 = vmatpush3.bf16.msra.mxu1 %v7810_v16  ;;  %v17395_v16 = vld [vmem:[%s18028_s12 + $0xb0] ss:$80 sps:$4 sm:$0xff]  }
0x21c0   : > { %16628 = vmatprep.subr.bf16.mxu1 %v17957_v57 }
0x21c1   : > { %v7986_v8 = vpop.permute.xlu1 %7985 }
0x21c2   : > { %16619 = vmatmul.mubr.msk.bf16.vlgmr.msra.gmra.mxu1 %vm6850_vm13, %v7803_v35  ;;  %16635 = vmatpush3.bf16.msra.mxu0 %v7986_v8  ;;  %v17403_v35 = vld [vmem:[%s18028_s12 + $0x14] ss:$80 sps:$4 sm:$0xff]   ;;  %v17412_v8 = vld [vmem:[%s18028_s12 + $0x20c] ss:$80 sps:$4 sm:$0xff]  }
0x21c3   : > { %16629 = vmatpush3.bf16.msra.mxu1 %v7921_v49  ;;  %16630 = vmatprep.mubr.msk.bf16.mxu1 %vm17958_vm10, %v17957_v57  ;;  %v17406_v49 = vld [vmem:[%s18028_s12 + $0x1c] ss:$80 sps:$4 sm:$0xff]  }
0x21c4   : > { %16636 = vmatprep.subr.bf16.mxu0 %v17957_v57  ;;  %8531 = vmatprep.subr.bf16.mxu1 %v17385_v60  ;;  %v17424_v60 = vld [vmem:[%s18028_s12 + $0xcc] ss:$80 sps:$4 sm:$0xff]  }
0x21c5   : > { %v7982_v24 = vpop.permute.xlu1 %7981 }
0x21c6   : > { %16637 = vmatpush3.bf16.msra.mxu0 %v7984_v15  ;;  %v19286_v15 = vsub.s32 2, %v19010_v54 }
0x21c7   : > { %v17888_v4 = vpop.eup %17887  ;;  %16638 = vmatprep.subr.bf16.mxu0 %v17957_v57 }
0x21c8   : > { %v7913_v6 = vmul.f32 %v17888_v4, %v17880_v10  ;;  %v17401_v4 = vld [vmem:[%s18028_s12 + $0x10] ss:$80 sps:$4 sm:$0xff]  }
0x21ca   : > { %v7914_v45 = vpack.c.bf16 %v7913_v6, %v7913_v6  ;;  %16639 = vmatpush3.bf16.msra.mxu0 %v7982_v24  ;;  %v17404_v6 = vld [vmem:[%s18028_s12 + $0x18] ss:$80 sps:$4 sm:$0xff]  }
0x21cb   : > { %16640 = vmatprep.subr.bf16.mxu0 %v17957_v57 }
0x21cc   : > { %16631 = vmatmul.mubr.msk.bf16.vlgmr.msra.gmra.mxu1 %vm6850_vm13, %v7914_v45  ;;  %v17409_v45 = vld [vmem:[%s18028_s12 + $0x204] ss:$80 sps:$4 sm:$0xff]  }
0x21cd   : > { %8555 = vmatprep.mubr.bf16.mxu1 %v17956_v1 }
0x2255   : > { %v7623_v12 = vpop.f32.mrf.mxu1 }
0x2257   : > { %v16596_v17 = vpop.f32.mrf.mxu1 }
0x2258   : > { %v19289_v17 = vsub.s32 4, %v19010_v54 }
0x2259   : > { %v7626_v19 = vpop.f32.mrf.mxu1 }
0x225b   : > { %v16597_v20 = vpop.f32.mrf.mxu1 }
0x225d   : > { %v7735_v63 = vpop.f32.mrf.mxu1 }
0x225e   : > { %7964 = vrot.lane.b32.xlu0 %v7735_v63, %s17965_s23  ;;  %v19297_v63 = vsub.s32 3, %v19010_v54 }
0x225f   : > { %v16608_v22 = vpop.f32.mrf.mxu1 }
0x2261   : > { %v7738_v13 = vpop.f32.mrf.mxu1 }
0x2262   : > { %v19301_v13 = vsub.s32 6, %v19010_v54 }
0x2263   : > { %v16609_v62 = vpop.f32.mrf.mxu1 }
0x2282   : > { %v7846_v32 = vpop.f32.mrf.mxu1 }
0x2283   : > { %7968 = vrot.lane.b32.xlu1 %v7846_v32, %s17963_s21  ;;  %v19307_v32 = vsub.s32 5, %v19010_v54 }
0x2284   : > { %v16620_v33 = vpop.f32.mrf.mxu1 }
0x2286   : > { %v7849_v46 = vpop.f32.mrf.mxu1 }
0x2287   : > { %7979 = vrot.lane.b32.xlu1 %v19151_v31, %s17960_s18  ;;  %v6694_v46 = vld [vmem:[%s18033_s15 + $0xf] sm:$0xff] }
0x2288   : > { %v16621_v37 = vpop.f32.mrf.mxu1 }
0x228c   : > { %v7957_v42 = vpop.f32.mrf.mxu1 }
0x228d   : > { %7972 = vrot.lane.b32.xlu0 %v7957_v42, %s17959_s17  ;;  %v19315_v42 = vsub.s32 7, %v19010_v54  ;;  %v8117_v54 = vrot.slane %v6694_v46, %v19289_v17 }
0x228e   : > { %v16632_v11 = vpop.f32.mrf.mxu1 }
0x228f   : > { %v8101_v11 = vrot.slane %v6694_v46, %v19013_v55 }
0x2290   : > { %v7960_v5 = vpop.f32.mrf.mxu1 }
0x2291   : > { %7991 = vrot.lane.b32.xlu0 %v19177_v7, %s17960_s18 }
0x2292   : > { %v16633_v26 = vpop.f32.mrf.mxu1 }
0x2293   : > { %v8109_v26 = vrot.slane %v6694_v46, %v19286_v15 }
0x22d0   : > { %v7965_v40 = vpop.permute.xlu0 %7964 }
0x22d1   : > { %v7975_v21 = vsel %vm6802_vm11, %v7623_v12, %v7965_v40  ;;  %v6693_v12 = vld [vmem:[%s18033_s15 + $0x7] sm:$0xff]  ;;  %v8125_v40 = vrot.slane %v6694_v46, %v19301_v13 }
0x22d2   : > { %v8073_v19 = vrot.slane %v6693_v12, %v19026_v30  ;;  %v8069_v24 = vrot.slane %v6693_v12, %v19013_v55  ;;  %v8077_v20 = vrot.slane %v6693_v12, %v19286_v15  ;;  %v8085_v22 = vrot.slane %v6693_v12, %v19289_v17 }
0x22d3   : > { %v8081_v62 = vrot.slane %v6693_v12, %v19297_v63  ;;  %v8093_v33 = vrot.slane %v6693_v12, %v19301_v13  ;;  %v8089_v37 = vrot.slane %v6693_v12, %v19307_v32  ;;  %v8097_v5 = vrot.slane %v6693_v12, %v19315_v42  ;;  %v17446_v12 = vld [vmem:[%s18028_s12 + $0xd8] ss:$80 sps:$4 sm:$0xff]  }
0x22f5   : > { %v7969_v43 = vpop.permute.xlu1 %7968 }
0x22f6   : > { %v7976_v0 = vsel %vm7257_vm14, %v7975_v21, %v7969_v43  ;;  %v8105_v43 = vrot.slane %v6694_v46, %v19026_v30  ;;  %v8121_v21 = vrot.slane %v6694_v46, %v19307_v32 }
0x22f9   : > { %v7980_v25 = vpop.permute.xlu1 %7979 }
0x22fa   : > { %16641 = vmatpush3.bf16.msra.mxu0 %v7980_v25  ;;  %v8113_v25 = vrot.slane %v6694_v46, %v19297_v63 }
0x22fb   : > { %8572 = vmatprep.subr.bf16.mxu0 %v17388_v44  ;;  %v17422_v44 = vld [vmem:[%s18028_s12 + $0xc8] ss:$80 sps:$4 sm:$0xff]  }
0x22ff   : > { %v7973_v34 = vpop.permute.xlu0 %7972 }
0x2300   : > { %v7977_v31 = vsel %vm7259_vm15, %v7976_v0, %v7973_v34  ;;  %v14690_v0 = vld [vmem:[%s18033_s15 + $0x17] ss:$0 sm:$0xff]  ;;  %v8129_v34 = vrot.slane %v6694_v46, %v19315_v42  ;;  %v17455_v46 = vld [vmem:[%s18028_s12 + $0x220] ss:$80 sps:$4 sm:$0xff]  }
0x2301   : > { %v7978_v3 = vpack.c.bf16 %v7977_v31, %v7977_v31 }
0x2303   : > { %16643 = vmatmul.mubr.msk.bf16.vlgmr.msra.gmra.mxu0 %vm6752_vm9, %v7978_v3  ;;  %v7992_v27 = vpop.permute.xlu0 %7991 }
0x2304   : > { %8596 = vmatprep.mubr.bf16.mxu0 %v17956_v1  ;;  %8573 = vmatpush1.bf16.msra.mxu0 %v17386_v61  ;;  %v17419_v61 = vld [vmem:[%s18028_s12 + $0xc0] ss:$80 sps:$4 sm:$0xff]  }
0x2305   : > { %8574 = vmatprep.subr.bf16.mxu0 %v17394_v29  ;;  %v17430_v29 = vld [vmem:[%s18028_s12 + $0x2c] ss:$80 sps:$4 sm:$0xff]  }
0x2308   : > { %8575 = vmatpush1.bf16.msra.mxu0 %v17392_v38  ;;  %v17428_v38 = vld [vmem:[%s18028_s12 + $0x28] ss:$80 sps:$4 sm:$0xff]  }
0x2309   : > { %8576 = vmatprep.subr.bf16.mxu0 %v17400_v41  ;;  %v17431_v41 = vld [vmem:[%s18028_s12 + $0x210] ss:$80 sps:$4 sm:$0xff]  }
0x230c   : > { %8577 = vmatpush1.bf16.msra.mxu0 %v17398_v59  ;;  %v17439_v59 = vld [vmem:[%s18028_s12 + $0x174] ss:$80 sps:$4 sm:$0xff]  }
0x230d   : > { %8578 = vmatprep.subr.bf16.mxu0 %v17406_v49  ;;  %v17437_v49 = vld [vmem:[%s18028_s12 + $0x170] ss:$80 sps:$4 sm:$0xff]  }
0x2310   : > { %8579 = vmatpush1.bf16.msra.mxu0 %v17404_v6  ;;  %v17445_v6 = vld [vmem:[%s18028_s12 + $0xd4] ss:$80 sps:$4 sm:$0xff]  }
0x2311   : > { %8654 = vmatprep.subr.bf16.mxu0 %v17412_v8  ;;  %v17443_v8 = vld [vmem:[%s18028_s12 + $0xd0] ss:$80 sps:$4 sm:$0xff]  }
0x23c3   : > { %v8031_v7 = vpop.f32.mrf.mxu0 }
0x23c4   : > { %v8032_v9 = vadd.f32 %v8031_v7, %v7992_v27 }
0x23c5   : > { %v16644_v39 = vpop.f32.mrf.mxu0 }
0x23c6   : > { %v8037_v10 = vadd.f32 %v8032_v9, %v19155_v2  ;;  %v17383_v2 = vld [vmem:[%s18028_s12 + $0x1f0] ss:$80 sps:$4 sm:$0xff]  }
0x23c7   : > { %v8034_v47 = vpop.f32.mrf.mxu0  ;;  %8532 = vmatpush1.bf16.msra.mxu1 %v17383_v2  ;;  %v17421_v2 = vld [vmem:[%s18028_s12 + $0xc4] ss:$80 sps:$4 sm:$0xff]  }
0x23c8   : > { %v8038_v48 = vsel %vm6752_vm9, %v8037_v10, 0.0  ;;  %8533 = vmatprep.subr.bf16.mxu1 %v17391_v14  ;;  %v17427_v14 = vld [vmem:[%s18028_s12 + $0x24] ss:$80 sps:$4 sm:$0xff]  }
0x23c9   : > { %v16645_v51 = vpop.f32.mrf.mxu0  ;;  %8039 = vadd.xlane.f32.xlu1 %v8038_v48  ;;  %v17407_v48 = vld [vmem:[%s18028_s12 + $0x200] ss:$80 sps:$4 sm:$0xff]  }
0x23ca   : > { %v17410_v51 = vld [vmem:[%s18028_s12 + $0x208] ss:$80 sps:$4 sm:$0xff]  }
0x23cb   : > { %8534 = vmatpush1.bf16.msra.mxu1 %v17389_v23  ;;  %v17425_v23 = vld [vmem:[%s18028_s12 + $0x20] ss:$80 sps:$4 sm:$0xff]  }
0x23cc   : > { %8535 = vmatprep.subr.bf16.mxu1 %v17397_v28  ;;  %v17436_v28 = vld [vmem:[%s18028_s12 + $0x21c] ss:$80 sps:$4 sm:$0xff]  }
0x23cf   : > { %8536 = vmatpush1.bf16.msra.mxu1 %v17395_v16  ;;  %v17434_v16 = vld [vmem:[%s18028_s12 + $0x218] ss:$80 sps:$4 sm:$0xff]  }
0x23d0   : > { %8537 = vmatprep.subr.bf16.mxu1 %v17403_v35  ;;  %v17442_v35 = vld [vmem:[%s18028_s12 + $0x17c] ss:$80 sps:$4 sm:$0xff]  }
0x23d3   : > { %8538 = vmatpush1.bf16.msra.mxu1 %v17401_v4  ;;  %v17440_v4 = vld [vmem:[%s18028_s12 + $0x178] ss:$80 sps:$4 sm:$0xff]  }
0x23d4   : > { %8613 = vmatprep.subr.bf16.mxu1 %v17409_v45  ;;  %v17448_v45 = vld [vmem:[%s18028_s12 + $0xdc] ss:$80 sps:$4 sm:$0xff]  }
0x23da   : > { %8456 = vrot.lane.b32.xlu1 %v8073_v19, %s17960_s18  ;;  %v17451_v19 = vld [vmem:[%s18028_s12 + $0x34] ss:$80 sps:$4 sm:$0xff]  }
0x23de   : > { %8458 = vrot.lane.b32.xlu1 %v8077_v20, %s17960_s18  ;;  %v17449_v20 = vld [vmem:[%s18028_s12 + $0x30] ss:$80 sps:$4 sm:$0xff]  }
0x23e2   : > { %8460 = vrot.lane.b32.xlu1 %v8081_v62, %s17960_s18  ;;  %v17457_v62 = vld [vmem:[%s18028_s12 + $0x224] ss:$80 sps:$4 sm:$0xff]  }
0x23e6   : > { %8464 = vrot.lane.b32.xlu1 %v8089_v37, %s17960_s18  ;;  %v17458_v37 = vld [vmem:[%s18028_s12 + $0x228] ss:$80 sps:$4 sm:$0xff]  }
0x23ea   : > { %8468 = vrot.lane.b32.xlu1 %v8097_v5, %s17960_s18  ;;  %v17466_v5 = vld [vmem:[%s18028_s12 + $0x18c] ss:$80 sps:$4 sm:$0xff]  }
0x23ee   : > { %8472 = vrot.lane.b32.xlu1 %v8105_v43, %s17960_s18  ;;  %v17464_v43 = vld [vmem:[%s18028_s12 + $0x188] ss:$80 sps:$4 sm:$0xff]  }
0x23f2   : > { %8476 = vrot.lane.b32.xlu1 %v8113_v25, %s17960_s18  ;;  %v17472_v25 = vld [vmem:[%s18028_s12 + $0xec] ss:$80 sps:$4 sm:$0xff]  }
0x23f6   : > { %8480 = vrot.lane.b32.xlu1 %v8121_v21, %s17960_s18  ;;  %v17470_v21 = vld [vmem:[%s18028_s12 + $0xe8] ss:$80 sps:$4 sm:$0xff]  }
0x23fa   : > { %8484 = vrot.lane.b32.xlu1 %v8129_v34, %s17960_s18  ;;  %v17478_v34 = vld [vmem:[%s18028_s12 + $0x4c] ss:$80 sps:$4 sm:$0xff]  }
0x2452   : > { %v8040_v52 = vpop.xlane.xlu1 %8039 }
0x2453   : > { %v8041_v53 = vmul.f32 0.015625, %v8040_v52 }
0x2455   : > { %v19256_v18 = vsub.f32 %v8037_v10, %v8041_v53  ;;  %v17415_v53 = vld [vmem:[%s18028_s12 + $0x164] ss:$80 sps:$4 sm:$0xff]  }
0x2457   : > { %v8043_v56 = vmul.f32 %v19256_v18, %v19256_v18 }
0x2459   : > { %v8044_v58 = vsel %vm6752_vm9, %v8043_v56, 0.0  ;;  %v17418_v56 = vld [vmem:[%s18028_s12 + $0x16c] ss:$80 sps:$4 sm:$0xff]  }
0x245a   : > { %8045 = vadd.xlane.f32.xlu0 %v8044_v58  ;;  %v17416_v58 = vld [vmem:[%s18028_s12 + $0x168] ss:$80 sps:$4 sm:$0xff]  }
0x2470   : > { %8058 = vrot.lane.b32.xlu0 %v19270_v50, %s17960_s18 }
0x2474   : > { %8454 = vrot.lane.b32.xlu0 %v8069_v24, %s17960_s18  ;;  %v17454_v24 = vld [vmem:[%s18028_s12 + $0x3c] ss:$80 sps:$4 sm:$0xff]  }
0x2478   : > { %8462 = vrot.lane.b32.xlu0 %v8085_v22, %s17960_s18  ;;  %v17452_v22 = vld [vmem:[%s18028_s12 + $0x38] ss:$80 sps:$4 sm:$0xff]  }
0x247c   : > { %8466 = vrot.lane.b32.xlu0 %v8093_v33, %s17960_s18  ;;  %v17460_v33 = vld [vmem:[%s18028_s12 + $0x22c] ss:$80 sps:$4 sm:$0xff]  }
0x2480   : > { %8470 = vrot.lane.b32.xlu0 %v8101_v11, %s17960_s18  ;;  %v17463_v11 = vld [vmem:[%s18028_s12 + $0x184] ss:$80 sps:$4 sm:$0xff]  }
0x2484   : > { %8474 = vrot.lane.b32.xlu0 %v8109_v26, %s17960_s18  ;;  %v17461_v26 = vld [vmem:[%s18028_s12 + $0x180] ss:$80 sps:$4 sm:$0xff]  }
0x2488   : > { %8478 = vrot.lane.b32.xlu0 %v8117_v54, %s17960_s18  ;;  %v17469_v54 = vld [vmem:[%s18028_s12 + $0xe4] ss:$80 sps:$4 sm:$0xff]  }
0x248c   : > { %8482 = vrot.lane.b32.xlu0 %v8125_v40, %s17960_s18  ;;  %v17467_v40 = vld [vmem:[%s18028_s12 + $0xe0] ss:$80 sps:$4 sm:$0xff]  }
0x2490   : > { %8486 = vrot.lane.b32.xlu0 %v14690_v0, %s17960_s18  ;;  %v17475_v0 = vld [vmem:[%s18028_s12 + $0x44] ss:$80 sps:$4 sm:$0xff]  }
0x24e3   : > { %v8046_v31 = vpop.xlane.xlu0 %8045 }
0x24e4   : > { %v8047_v3 = vmul.f32 0.015625, %v8046_v31  ;;  %v17473_v31 = vld [vmem:[%s18028_s12 + $0x40] ss:$80 sps:$4 sm:$0xff]  }
0x24e6   : > { %v8048_v27 = vadd.f32 1e-05, %v8047_v3  ;;  %v17476_v3 = vld [vmem:[%s18028_s12 + $0x48] ss:$80 sps:$4 sm:$0xff]  }
0x24e7   : > { %v8059_v39 = vpop.permute.xlu0 %8058 }
0x24e8   : > { %17889 = vrsqrt.f32 %v8048_v27  ;;  %v17479_v27 = vld [vmem:[%s18023_s8 + $0x78] sm:$0xff]  }
0x24f5   : > { %v17890_v7 = vpop.eup %17889 }
0x24f6   : > { %v8050_v9 = vmul.f32 %v17890_v7, %v19256_v18  ;;  %v17413_v18 = vld [vmem:[%s18028_s12 + $0x160] ss:$80 sps:$4 sm:$0xff]   ;;  %v17480_v7 = vld [vmem:[%s18023_s8 + $0xf8] sm:$0xff]  }
0x24f8   : > { %v8057_v10 = vmul.f32 %v19270_v50, %v8050_v9  ;;  %v17433_v50 = vld [vmem:[%s18028_s12 + $0x214] ss:$80 sps:$4 sm:$0xff]   ;;  %v17481_v9 = vld [vmem:[%s18023_s8 + $0x38] sm:$0xff]  }
0x24fa   : > { %v19340_v47 = vadd.f32 %v8059_v39, %v8057_v10  ;;  %v17482_v39 = vld [vmem:[%s18023_s8 + $0xb8] sm:$0xff]   ;;  %v17483_v10 = vld [vmem:[%s18023_s8 + $0x70] sm:$0xff]  }
0x24fc   : > { %v19346_v52 = vpack.c.bf16 %v19340_v47, %v19340_v47 }
0x24fe   : > { %14755 = vmatmul.mubr.msk.bf16.vlgmr.msra.gmra.mxu1 %vm6752_vm9, %v19346_v52  ;;  %14756 = vmatmul.mubr.msk.bf16.vlgmr.msra.gmra.mxu0 %vm6752_vm9, %v19346_v52 }
0x24ff   : > { %8614 = vmatpush1.bf16.msra.mxu1 %v17407_v48  ;;  %8655 = vmatpush1.bf16.msra.mxu0 %v17410_v51  ;;  %v17484_v48 = vld [vmem:[%s18023_s8 + $0xf0] sm:$0xff]  }
0x2500   : > { %8615 = vmatprep.subr.bf16.mxu1 %v17415_v53  ;;  %8656 = vmatprep.subr.bf16.mxu0 %v17418_v56  ;;  %v17485_v51 = vld [vmem:[%s18023_s8 + $0x30] sm:$0xff]   ;;  %v17487_v56 = vld [vmem:[%s18023_s8 + $0x68] sm:$0xff]  }
0x2501   : > { %8637 = vmatprep.mubr.bf16.mxu1 %v17956_v1  ;;  %8678 = vmatprep.mubr.bf16.mxu0 %v17956_v1  ;;  %v17486_v53 = vld [vmem:[%s18023_s8 + $0xb0] sm:$0xff]  }
0x2503   : > { %8616 = vmatpush1.bf16.msra.mxu1 %v17413_v18  ;;  %8657 = vmatpush1.bf16.msra.mxu0 %v17416_v58  ;;  %v17488_v18 = vld [vmem:[%s18023_s8 + $0xe8] sm:$0xff]  }
0x2504   : > { %8617 = vmatprep.subr.bf16.mxu1 %v17421_v2  ;;  %8658 = vmatprep.subr.bf16.mxu0 %v17424_v60  ;;  %v17489_v58 = vld [vmem:[%s18023_s8 + $0x28] sm:$0xff]   ;;  %v17492_v60 = vld [vmem:[%s18023_s8 + $0xe0] sm:$0xff]  }
0x2505   : > { %v17490_v2 = vld [vmem:[%s18023_s8 + $0xa8] sm:$0xff]  }
0x2507   : > { %8618 = vmatpush1.bf16.msra.mxu1 %v17419_v61  ;;  %8659 = vmatpush1.bf16.msra.mxu0 %v17422_v44  ;;  %v17493_v61 = vld [vmem:[%s18023_s8 + $0x20] sm:$0xff]  }
0x2508   : > { %8619 = vmatprep.subr.bf16.mxu1 %v17427_v14  ;;  %8660 = vmatprep.subr.bf16.mxu0 %v17430_v29  ;;  %v17494_v44 = vld [vmem:[%s18023_s8 + $0xa0] sm:$0xff]   ;;  %v17495_v14 = vld [vmem:[%s18023_s8 + $0x58] sm:$0xff]  }
0x2509   : > { %v17496_v29 = vld [vmem:[%s18023_s8 + $0xd8] sm:$0xff]  }
0x250b   : > { %8620 = vmatpush1.bf16.msra.mxu1 %v17425_v23  ;;  %8661 = vmatpush1.bf16.msra.mxu0 %v17428_v38  ;;  %v17497_v23 = vld [vmem:[%s18023_s8 + $0x18] sm:$0xff]  }
0x250c   : > { %8695 = vmatprep.subr.bf16.mxu1 %v17433_v50  ;;  %8736 = vmatprep.subr.bf16.mxu0 %v17436_v28  ;;  %v17498_v38 = vld [vmem:[%s18023_s8 + $0x98] sm:$0xff]   ;;  %v17499_v50 = vld [vmem:[%s18023_s8 + $0x50] sm:$0xff]  }
0x250d   : > { %v17500_v28 = vld [vmem:[%s18023_s8 + $0xd0] sm:$0xff]  }
0x250e   : > { %14757 = vmatmul.mubr.msk.bf16.vlgmr.msra.gmra.mxu1 %vm6752_vm9, %v19346_v52  ;;  %14758 = vmatmul.mubr.msk.bf16.vlgmr.msra.gmra.mxu0 %vm6752_vm9, %v19346_v52 }
0x250f   : > { %8696 = vmatpush1.bf16.msra.mxu1 %v17431_v41  ;;  %8737 = vmatpush1.bf16.msra.mxu0 %v17434_v16  ;;  %v17501_v41 = vld [vmem:[%s18023_s8 + $0x10] sm:$0xff]  }
0x2510   : > { %8697 = vmatprep.subr.bf16.mxu1 %v17439_v59  ;;  %8738 = vmatprep.subr.bf16.mxu0 %v17442_v35  ;;  %v17502_v16 = vld [vmem:[%s18023_s8 + $0x90] sm:$0xff]   ;;  %v17503_v59 = vld [vmem:[%s18023_s8 + $0x48] sm:$0xff]  }
0x2511   : > { %8719 = vmatprep.mubr.bf16.mxu1 %v17956_v1  ;;  %8760 = vmatprep.mubr.bf16.mxu0 %v17956_v1  ;;  %v17504_v35 = vld [vmem:[%s18023_s8 + $0xc8] sm:$0xff]  }
0x2513   : > { %8698 = vmatpush1.bf16.msra.mxu1 %v17437_v49  ;;  %8739 = vmatpush1.bf16.msra.mxu0 %v17440_v4  ;;  %v17505_v49 = vld [vmem:[%s18023_s8 + $0x8] sm:$0xff]  }
0x2514   : > { %8699 = vmatprep.subr.bf16.mxu1 %v17445_v6  ;;  %8740 = vmatprep.subr.bf16.mxu0 %v17448_v45  ;;  %v17506_v4 = vld [vmem:[%s18023_s8 + $0x88] sm:$0xff]   ;;  %v17507_v6 = vld [vmem:[%s18023_s8 + $0x40] sm:$0xff]  }
0x2515   : > { %v17508_v45 = vld [vmem:[%s18023_s8 + $0xc0] sm:$0xff]  }
0x2517   : > { %8700 = vmatpush1.bf16.msra.mxu1 %v17443_v8  ;;  %8741 = vmatpush1.bf16.msra.mxu0 %v17446_v12  ;;  %v17509_v8 = vld [vmem:[%s18023_s8] sm:$0xff]  }
0x2518   : > { %8701 = vmatprep.subr.bf16.mxu1 %v17451_v19  ;;  %8742 = vmatprep.subr.bf16.mxu0 %v17454_v24  ;;  %v17510_v12 = vld [vmem:[%s18023_s8 + $0x80] sm:$0xff]   ;;  %v17511_v19 = vld [vmem:[%s18023_s8 + $0x178] sm:$0xff]  }
0x2519   : > { %v17512_v24 = vld [vmem:[%s18023_s8 + $0x1f8] sm:$0xff]  }
0x251b   : > { %8702 = vmatpush1.bf16.msra.mxu1 %v17449_v20  ;;  %8743 = vmatpush1.bf16.msra.mxu0 %v17452_v22  ;;  %v8457_v20 = vpop.permute.xlu1 %8456 }
0x251c   : > { %8777 = vmatprep.subr.bf16.mxu1 %v17457_v62  ;;  %8818 = vmatprep.subr.bf16.mxu0 %v17460_v33  ;;  %v8455_v62 = vpop.permute.xlu0 %8454 }
0x251e   : > { %14759 = vmatmul.mubr.msk.bf16.vlgmr.msra.gmra.mxu1 %vm6752_vm9, %v19346_v52  ;;  %14760 = vmatmul.mubr.msk.bf16.vlgmr.msra.gmra.mxu0 %vm6752_vm9, %v19346_v52 }
0x251f   : > { %8778 = vmatpush1.bf16.msra.mxu1 %v17455_v46  ;;  %8819 = vmatpush1.bf16.msra.mxu0 %v17458_v37  ;;  %v8459_v22 = vpop.permute.xlu1 %8458 }
0x2520   : > { %8779 = vmatprep.subr.bf16.mxu1 %v17463_v11  ;;  %8820 = vmatprep.subr.bf16.mxu0 %v17466_v5  ;;  %v19448_v46 = vpop.permute.xlu0 %8462  ;;  %v8488_v11 = vsel %vm6752_vm9, %v8455_v62, %v8457_v20  ;;  %v17526_v62 = vld [vmem:[%s18023_s8 + $0x1a0] sm:$0xff]  }
0x2521   : > { %8801 = vmatprep.mubr.bf16.mxu1 %v17956_v1  ;;  %8842 = vmatprep.mubr.bf16.mxu0 %v17956_v1 }
0x2523   : > { %8780 = vmatpush1.bf16.msra.mxu1 %v17461_v26  ;;  %8821 = vmatpush1.bf16.msra.mxu0 %v17464_v43  ;;  %v8461_v33 = vpop.permute.xlu1 %8460 }
0x2524   : > { %8781 = vmatprep.subr.bf16.mxu1 %v17469_v54  ;;  %8822 = vmatprep.subr.bf16.mxu0 %v17472_v25  ;;  %v8490_v37 = vsel %vm6752_vm9, %v8459_v22, %v8461_v33  ;;  %v8491_v43 = vsel %vm6752_vm9, %v8461_v33, %v19448_v46 }
0x2527   : > { %8782 = vmatpush1.bf16.msra.mxu1 %v17467_v40  ;;  %8823 = vmatpush1.bf16.msra.mxu0 %v17470_v21  ;;  %v8489_v40 = vsel %vm6752_vm9, %v8457_v20, %v8459_v22  ;;  %v17525_v22 = vld [vmem:[%s18023_s8 + $0x120] sm:$0xff]  }
0x2528   : > { %8783 = vmatprep.subr.bf16.mxu1 %v17475_v0  ;;  %8824 = vmatprep.subr.bf16.mxu0 %v17478_v34 }
0x252b   : > { %8784 = vmatpush1.bf16.msra.mxu1 %v17473_v31  ;;  %8825 = vmatpush1.bf16.msra.mxu0 %v17476_v3 }
0x252c   : > { %15965 = vmatprep.subr.bf16.mxu1 %v17479_v27  ;;  %15987 = vmatprep.subr.bf16.mxu0 %v17480_v7 }
0x252e   : > { %14761 = vmatmul.mubr.msk.bf16.vlgmr.msra.gmra.mxu1 %vm6752_vm9, %v19346_v52  ;;  %14762 = vmatmul.mubr.msk.bf16.vlgmr.msra.gmra.mxu0 %vm6752_vm9, %v19346_v52  ;;  %v17491_v52 = vld [vmem:[%s18023_s8 + $0x60] sm:$0xff]  }
0x252f   : > { %15966 = vmatpush3.bf16.msra.mxu1 %v17481_v9  ;;  %15988 = vmatpush3.bf16.msra.mxu0 %v17482_v39 }
0x2530   : > { %15967 = vmatprep.subr.bf16.mxu1 %v17483_v10  ;;  %15989 = vmatprep.subr.bf16.mxu0 %v17484_v48 }
0x2533   : > { %15968 = vmatpush3.bf16.msra.mxu1 %v17485_v51  ;;  %15990 = vmatpush3.bf16.msra.mxu0 %v17486_v53 }
0x2534   : > { %15969 = vmatprep.subr.bf16.mxu1 %v17487_v56  ;;  %15991 = vmatprep.subr.bf16.mxu0 %v17488_v18  ;;  %v17513_v18 = vld [vmem:[%s18023_s8 + $0x138] sm:$0xff]  }
0x2537   : > { %15970 = vmatpush3.bf16.msra.mxu1 %v17489_v58  ;;  %15992 = vmatpush3.bf16.msra.mxu0 %v17490_v2  ;;  %v17514_v58 = vld [vmem:[%s18023_s8 + $0x1b8] sm:$0xff]   ;;  %v19457_v2 = vpop.permute.xlu0 %8466 }
0x2538   : > { %15971 = vmatprep.subr.bf16.mxu1 %v17491_v52  ;;  %15993 = vmatprep.subr.bf16.mxu0 %v17492_v60 }
0x253b   : > { %15972 = vmatpush3.bf16.msra.mxu1 %v17493_v61  ;;  %15994 = vmatpush3.bf16.msra.mxu0 %v17494_v44  ;;  %v17515_v61 = vld [vmem:[%s18023_s8 + $0x170] sm:$0xff]  }
0x253c   : > { %15973 = vmatprep.subr.bf16.mxu1 %v17495_v14  ;;  %15995 = vmatprep.subr.bf16.mxu0 %v17496_v29  ;;  %v17516_v44 = vld [vmem:[%s18023_s8 + $0x1f0] sm:$0xff]   ;;  %v19461_v14 = vpop.permute.xlu1 %8464 }
0x253d   : > { %v17517_v29 = vld [vmem:[%s18023_s8 + $0x1b0] sm:$0xff]  }
0x253f   : > { %15974 = vmatpush3.bf16.msra.mxu1 %v17497_v23  ;;  %15996 = vmatpush3.bf16.msra.mxu0 %v17498_v38  ;;  %v17518_v23 = vld [vmem:[%s18023_s8 + $0x130] sm:$0xff]   ;;  %v17519_v38 = vld [vmem:[%s18023_s8 + $0x168] sm:$0xff]  }
0x2540   : > { %15975 = vmatprep.subr.bf16.mxu1 %v17499_v50  ;;  %15997 = vmatprep.subr.bf16.mxu0 %v17500_v28  ;;  %v17520_v50 = vld [vmem:[%s18023_s8 + $0x1e8] sm:$0xff]   ;;  %v19467_v28 = vpop.permute.xlu0 %8470 }
0x2543   : > { %15976 = vmatpush3.bf16.msra.mxu1 %v17501_v41  ;;  %15998 = vmatpush3.bf16.msra.mxu0 %v17502_v16  ;;  %v8469_v41 = vpop.permute.xlu1 %8468  ;;  %v17521_v16 = vld [vmem:[%s18023_s8 + $0x128] sm:$0xff]  }
0x2544   : > { %15977 = vmatprep.subr.bf16.mxu1 %v17503_v59  ;;  %15999 = vmatprep.subr.bf16.mxu0 %v17504_v35  ;;  %v17522_v59 = vld [vmem:[%s18023_s8 + $0x1a8] sm:$0xff]  }
0x2547   : > { %15978 = vmatpush3.bf16.msra.mxu1 %v17505_v49  ;;  %16000 = vmatpush3.bf16.msra.mxu0 %v17506_v4  ;;  %v8493_v4 = vsel %vm6752_vm9, %v19461_v14, %v19457_v2 }
0x2548   : > { %15979 = vmatprep.subr.bf16.mxu1 %v17507_v6  ;;  %16001 = vmatprep.subr.bf16.mxu0 %v17508_v45  ;;  %v8495_v6 = vsel %vm6752_vm9, %v8469_v41, %v19467_v28  ;;  %v17523_v45 = vld [vmem:[%s18023_s8 + $0x160] sm:$0xff]  }
0x254b   : > { %15980 = vmatpush3.bf16.msra.mxu1 %v17509_v8  ;;  %16002 = vmatpush3.bf16.msra.mxu0 %v17510_v12  ;;  %v17524_v8 = vld [vmem:[%s18023_s8 + $0x1e0] sm:$0xff]  }
0x254c   : > { %16009 = vmatprep.subr.bf16.mxu1 %v17511_v19  ;;  %16031 = vmatprep.subr.bf16.mxu0 %v17512_v24 }
0x25be   : > { %v8557_v5 = vpop.f32.mrf.mxu1  ;;  %v8598_v26 = vpop.f32.mrf.mxu0 }
0x25bf   : > { %v8558_v54 = vadd.f32 %v8557_v5, %v8488_v11  ;;  %v8599_v25 = vadd.f32 %v8598_v26, %v8490_v37  ;;  %v17527_v11 = vld [vmem:[%s18023_s8 + $0x158] sm:$0xff]  }
0x25c0   : > { %v8559_v21 = vpop.f32.mrf.mxu1  ;;  %v8600_v0 = vpop.f32.mrf.mxu0  ;;  %v17528_v5 = vld [vmem:[%s18023_s8 + $0x1d8] sm:$0xff]  }
0x25c1   : > { %v8560_v34 = vadd.f32 %v8559_v21, %v8489_v40  ;;  %v8601_v31 = vadd.f32 %v8600_v0, %v8491_v43  ;;  %v8851_v3 = vmax.f32 %v8558_v54, 0.0  ;;  %v8853_v27 = vmax.f32 %v8599_v25, 0.0  ;;  %v17529_v0 = vld [vmem:[%s18023_s8 + $0x198] sm:$0xff]  }
0x25c2   : > { %v8561_v7 = vpop.f32.mrf.mxu1  ;;  %v8602_v9 = vpop.f32.mrf.mxu0 }
0x25c3   : > { %v8852_v39 = vmax.f32 %v8560_v34, 0.0  ;;  %v8854_v10 = vmax.f32 %v8601_v31, 0.0  ;;  %v8867_v52 = vpack.c.bf16 %v8851_v3, %v8851_v3  ;;  %v8869_v60 = vpack.c.bf16 %v8853_v27, %v8853_v27  ;;  %v17530_v34 = vld [vmem:[%s18023_s8 + $0x118] sm:$0xff]   ;;  %v19484_v31 = vpop.permute.xlu0 %8474  ;;  %v17531_v3 = vld [vmem:[%s18023_s8 + $0x150] sm:$0xff]   ;;  %v19488_v7 = vpop.permute.xlu1 %8472 }
0x25c4   : > { %v8562_v48 = vpop.f32.mrf.mxu1  ;;  %v8603_v51 = vpop.f32.mrf.mxu0  ;;  %v17532_v27 = vld [vmem:[%s18023_s8 + $0x1d0] sm:$0xff]  }
0x25c5   : > { %v8868_v53 = vpack.c.bf16 %v8852_v39, %v8852_v39  ;;  %v8870_v56 = vpack.c.bf16 %v8854_v10, %v8854_v10  ;;  %v17533_v9 = vld [vmem:[%s18023_s8 + $0x190] sm:$0xff]   ;;  %v17535_v10 = vld [vmem:[%s18023_s8 + $0x148] sm:$0xff]   ;;  %v8494_v51 = vsel %vm6752_vm9, %v19457_v2, %v8469_v41 }
0x25c6   : > { %v17534_v39 = vld [vmem:[%s18023_s8 + $0x110] sm:$0xff]   ;;  %v17536_v48 = vld [vmem:[%s18023_s8 + $0x1c8] sm:$0xff]  }
0x25c7   : > { %9689 = vmatprep.mubr.bf16.mxu1 %v8868_v53  ;;  %9729 = vmatprep.mubr.bf16.mxu0 %v8870_v56  ;;  %v19496_v53 = vpop.permute.xlu0 %8478  ;;  %v8492_v56 = vsel %vm6752_vm9, %v19448_v46, %v19461_v14  ;;  %v17539_v14 = vld [vmem:[%s18023_s8 + $0x140] sm:$0xff]  }
0x25c8   : > { %9690 = vmatmul.mubr.bf16.vlgmr.msra.gmra.mxu1 %v8867_v52  ;;  %9730 = vmatmul.mubr.bf16.vlgmr.msra.gmra.mxu0 %v8869_v60  ;;  %v17537_v52 = vld [vmem:[%s18023_s8 + $0x108] sm:$0xff]  }
0x25c9   : > { %16010 = vmatpush3.bf16.msra.mxu1 %v17513_v18  ;;  %16032 = vmatpush3.bf16.msra.mxu0 %v17514_v58  ;;  %v19501_v18 = vpop.permute.xlu1 %8476  ;;  %v8497_v58 = vsel %vm6752_vm9, %v19488_v7, %v19484_v31  ;;  %v17538_v60 = vld [vmem:[%s18023_s8 + $0x188] sm:$0xff]  }
0x25ca   : > { %16011 = vmatprep.subr.bf16.mxu1 %v17515_v61  ;;  %16033 = vmatprep.subr.bf16.mxu0 %v17516_v44  ;;  %v8499_v46 = vsel %vm6752_vm9, %v19501_v18, %v19496_v53 }
0x25cd   : > { %16034 = vmatpush3.bf16.msra.mxu0 %v17517_v29  ;;  %16012 = vmatpush3.bf16.msra.mxu1 %v17518_v23  ;;  %v17540_v23 = vld [vmem:[%s18023_s8 + $0x1c0] sm:$0xff]  }
0x25ce   : > { %v8639_v35 = vpop.f32.mrf.mxu1  ;;  %v8680_v49 = vpop.f32.mrf.mxu0  ;;  %16013 = vmatprep.subr.bf16.mxu1 %v17519_v38  ;;  %16035 = vmatprep.subr.bf16.mxu0 %v17520_v50 }
0x25cf   : > { %v8640_v2 = vadd.f32 %v8639_v35, %v8492_v56  ;;  %v8681_v61 = vadd.f32 %v8680_v49, %v8494_v51  ;;  %v17542_v35 = vld [vmem:[%s18023_s8 + $0x180] sm:$0xff]  }
0x25d0   : > { %v8641_v12 = vpop.f32.mrf.mxu1  ;;  %v8682_v19 = vpop.f32.mrf.mxu0  ;;  %v17558_v56 = vld [vmem:[%s18023_s8 + $0x2a0] sm:$0xff]  }
0x25d1   : > { %v8642_v24 = vadd.f32 %v8641_v12, %v8493_v4  ;;  %v8683_v20 = vadd.f32 %v8682_v19, %v8495_v6  ;;  %16014 = vmatpush3.bf16.msra.mxu1 %v17521_v16  ;;  %16036 = vmatpush3.bf16.msra.mxu0 %v17522_v59  ;;  %v17541_v59 = vld [vmem:[%s18023_s8 + $0x100] sm:$0xff]   ;;  %v8855_v49 = vmax.f32 %v8640_v2, 0.0  ;;  %v8857_v4 = vmax.f32 %v8681_v61, 0.0  ;;  %v17544_v12 = vld [vmem:[%s18023_s8 + $0x2f8] sm:$0xff]  }
0x25d2   : > { %v8643_v33 = vpop.f32.mrf.mxu1  ;;  %v8684_v37 = vpop.f32.mrf.mxu0  ;;  %16015 = vmatprep.subr.bf16.mxu1 %v17523_v45  ;;  %16037 = vmatprep.subr.bf16.mxu0 %v17524_v8  ;;  %v17543_v8 = vld [vmem:[%s18023_s8 + $0x278] sm:$0xff]  }
0x25d3   : > { %v8856_v26 = vmax.f32 %v8642_v24, 0.0  ;;  %v8858_v43 = vmax.f32 %v8683_v20, 0.0  ;;  %v8871_v33 = vpack.c.bf16 %v8855_v49, %v8855_v49  ;;  %v8873_v37 = vpack.c.bf16 %v8857_v4, %v8857_v4  ;;  %v17560_v2 = vld [vmem:[%s18023_s8 + $0x2d8] sm:$0xff]   ;;  %v17565_v49 = vld [vmem:[%s18023_s8 + $0x210] sm:$0xff]   ;;  %v17568_v4 = vld [vmem:[%s18023_s8 + $0x2c8] sm:$0xff]  }
0x25d4   : > { %v8644_v54 = vpop.f32.mrf.mxu1  ;;  %v8685_v25 = vpop.f32.mrf.mxu0  ;;  %v17559_v61 = vld [vmem:[%s18023_s8 + $0x258] sm:$0xff]  }
0x25d5   : > { %v8872_v40 = vpack.c.bf16 %v8856_v26, %v8856_v26  ;;  %v8874_v21 = vpack.c.bf16 %v8858_v43, %v8858_v43  ;;  %16016 = vmatpush3.bf16.msra.mxu1 %v17525_v22  ;;  %16038 = vmatpush3.bf16.msra.mxu0 %v17526_v62  ;;  %v17545_v62 = vld [vmem:[%s18023_s8 + $0x2b8] sm:$0xff]   ;;  %v17547_v26 = vld [vmem:[%s18023_s8 + $0x270] sm:$0xff]  }
0x25d6   : > { %16017 = vmatprep.subr.bf16.mxu1 %v17527_v11  ;;  %16039 = vmatprep.subr.bf16.mxu0 %v17528_v5  ;;  %v17546_v11 = vld [vmem:[%s18023_s8 + $0x238] sm:$0xff]   ;;  %v17548_v43 = vld [vmem:[%s18023_s8 + $0x2f0] sm:$0xff]  }
0x25d7   : > { %9769 = vmatprep.mubr.bf16.mxu1 %v8872_v40  ;;  %9809 = vmatprep.mubr.bf16.mxu0 %v8874_v21  ;;  %v17549_v25 = vld [vmem:[%s18023_s8 + $0x2b0] sm:$0xff]   ;;  %v17552_v21 = vld [vmem:[%s18023_s8 + $0x2e8] sm:$0xff]  }
0x25d8   : > { %v17550_v40 = vld [vmem:[%s18023_s8 + $0x230] sm:$0xff]  }
0x25d9   : > { %16040 = vmatpush3.bf16.msra.mxu0 %v17529_v0  ;;  %16018 = vmatpush3.bf16.msra.mxu1 %v17530_v34  ;;  %v17551_v0 = vld [vmem:[%s18023_s8 + $0x268] sm:$0xff]  }
0x25da   : > { %16019 = vmatprep.subr.bf16.mxu1 %v17531_v3  ;;  %16041 = vmatprep.subr.bf16.mxu0 %v17532_v27  ;;  %v17554_v34 = vld [vmem:[%s18023_s8 + $0x2a8] sm:$0xff]  }
0x25dd   : > { %16042 = vmatpush3.bf16.msra.mxu0 %v17533_v9  ;;  %16020 = vmatpush3.bf16.msra.mxu1 %v17534_v39  ;;  %v17553_v9 = vld [vmem:[%s18023_s8 + $0x228] sm:$0xff]   ;;  %v17556_v39 = vld [vmem:[%s18023_s8 + $0x2e0] sm:$0xff]  }
0x25de   : > { %v19508_v44 = vpop.f32.mrf.mxu1  ;;  %v19510_v29 = vpop.f32.mrf.mxu0  ;;  %16021 = vmatprep.subr.bf16.mxu1 %v17535_v10  ;;  %16043 = vmatprep.subr.bf16.mxu0 %v17536_v48  ;;  %v17555_v10 = vld [vmem:[%s18023_s8 + $0x260] sm:$0xff]  }
0x25e0   : > { %v8723_v38 = vpop.f32.mrf.mxu1  ;;  %v8764_v50 = vpop.f32.mrf.mxu0 }
0x25e1   : > { %v8724_v41 = vadd.f32 %v8723_v38, %v8497_v58  ;;  %v8765_v16 = vadd.f32 %v8764_v50, %v8499_v46  ;;  %16022 = vmatpush3.bf16.msra.mxu1 %v17537_v52  ;;  %16044 = vmatpush3.bf16.msra.mxu0 %v17538_v60  ;;  %v17557_v60 = vld [vmem:[%s18023_s8 + $0x220] sm:$0xff]   ;;  %v17562_v38 = vld [vmem:[%s18023_s8 + $0x298] sm:$0xff]  }
0x25e2   : > { %v8725_v6 = vpop.f32.mrf.mxu1  ;;  %v8766_v45 = vpop.f32.mrf.mxu0  ;;  %16023 = vmatprep.subr.bf16.mxu1 %v17539_v14  ;;  %16045 = vmatprep.subr.bf16.mxu0 %v17540_v23  ;;  %v17561_v50 = vld [vmem:[%s18023_s8 + $0x218] sm:$0xff]  }
0x25e3   : > { %v8862_v19 = vmax.f32 %v8765_v16, 0.0  ;;  %v8860_v24 = vmax.f32 %v8724_v41, 0.0  ;;  %v19541_v23 = vpop.permute.xlu0 %8482  ;;  %v17564_v41 = vld [vmem:[%s18023_s8 + $0x2d0] sm:$0xff]   ;;  %v19546_v16 = vpop.permute.xlu1 %8480  ;;  %v8498_v6 = vsel %vm6752_vm9, %v19484_v31, %v19501_v18  ;;  %v17569_v18 = vld [vmem:[%s18023_s8 + $0x208] sm:$0xff]  }
0x25e4   : > { %v8726_v20 = vpop.f32.mrf.mxu1  ;;  %v8767_v22 = vpop.f32.mrf.mxu0 }
0x25e5   : > { %16024 = vmatpush3.bf16.msra.mxu1 %v17541_v59  ;;  %16046 = vmatpush3.bf16.msra.mxu0 %v17542_v35  ;;  %v8878_v5 = vpack.c.bf16 %v8862_v19, %v8862_v19  ;;  %v8876_v54 = vpack.c.bf16 %v8860_v24, %v8860_v24  ;;  %v17563_v59 = vld [vmem:[%s18023_s8 + $0x250] sm:$0xff]   ;;  %v8501_v24 = vsel %vm6752_vm9, %v19546_v16, %v19541_v23  ;;  %v17570_v20 = vld [vmem:[%s18023_s8 + $0x288] sm:$0xff]  }
0x25e6   : > { %16053 = vmatprep.subr.bf16.mxu1 %v17543_v8  ;;  %16075 = vmatprep.subr.bf16.mxu0 %v17544_v12  ;;  %v17566_v35 = vld [vmem:[%s18023_s8 + $0x290] sm:$0xff]   ;;  %v17567_v8 = vld [vmem:[%s18023_s8 + $0x248] sm:$0xff]   ;;  %v8496_v12 = vsel %vm6752_vm9, %v19467_v28, %v19488_v7  ;;  %v8763_v22 = vadd.f32 %v19510_v29, %v8498_v6  ;;  %v17572_v28 = vld [vmem:[%s18023_s8 + $0x2c0] sm:$0xff]  }
0x25e7   : > { %v8487_v45 = vpop.permute.xlu0 %8486  ;;  %v19559_v19 = vpop.permute.xlu1 %8484  ;;  %v8722_v7 = vadd.f32 %v19508_v44, %v8496_v12  ;;  %v17598_v6 = vld [vmem:[%s18023_s8 + $0x390] sm:$0xff]  }
0x25e8   : > { %9770 = vmatmul.mubr.bf16.vlgmr.msra.gmra.mxu1 %v8871_v33  ;;  %9810 = vmatmul.mubr.bf16.vlgmr.msra.gmra.mxu0 %v8873_v37  ;;  %v8503_v31 = vsel %vm6752_vm9, %v19559_v19, %v8487_v45  ;;  %v8861_v29 = vmax.f32 %v8763_v22, 0.0  ;;  %v17597_v45 = vld [vmem:[%s18023_s8 + $0x310] sm:$0xff]   ;;  %v8502_v12 = vsel %vm6752_vm9, %v19541_v23, %v19559_v19  ;;  %v17602_v22 = vld [vmem:[%s18023_s8 + $0x388] sm:$0xff]   ;;  %v17606_v23 = vld [vmem:[%s18023_s8 + $0x380] sm:$0xff]  }
0x25e9   : > { %16076 = vmatpush3.bf16.msra.mxu0 %v17545_v62  ;;  %9889 = vmatprep.mubr.bf16.mxu0 %v8878_v5  ;;  %v17571_v62 = vld [vmem:[%s18023_s8 + $0x240] sm:$0xff]  }
0x25ea   : > { %16054 = vmatpush3.bf16.msra.mxu1 %v17546_v11  ;;  %9849 = vmatprep.mubr.bf16.mxu1 %v8876_v54  ;;  %v17574_v11 = vld [vmem:[%s18023_s8 + $0x280] sm:$0xff]   ;;  %v17575_v54 = vld [vmem:[%s18023_s8 + $0x378] sm:$0xff]  }
0x25eb   : > { %16055 = vmatprep.subr.bf16.mxu1 %v17547_v26  ;;  %16077 = vmatprep.subr.bf16.mxu0 %v17548_v43  ;;  %v17573_v5 = vld [vmem:[%s18023_s8 + $0x200] sm:$0xff]   ;;  %v17576_v26 = vld [vmem:[%s18023_s8 + $0x3f8] sm:$0xff]   ;;  %v8859_v43 = vmax.f32 %v8722_v7, 0.0 }
0x25ed   : > { %16078 = vmatpush3.bf16.msra.mxu0 %v17549_v25 }
0x25ee   : > { %16056 = vmatpush3.bf16.msra.mxu1 %v17550_v40  ;;  %v19530_v3 = vpop.f32.mrf.mxu1  ;;  %v19532_v27 = vpop.f32.mrf.mxu0  ;;  %16079 = vmatprep.subr.bf16.mxu0 %v17552_v21  ;;  %v17578_v40 = vld [vmem:[%s18023_s8 + $0x3b8] sm:$0xff]   ;;  %v8877_v21 = vpack.c.bf16 %v8861_v29, %v8861_v29 }
0x25ef   : > { %16057 = vmatprep.subr.bf16.mxu1 %v17551_v0  ;;  %v17577_v0 = vld [vmem:[%s18023_s8 + $0x338] sm:$0xff]  }
0x25f0   : > { %v8805_v48 = vpop.f32.mrf.mxu1  ;;  %v8846_v51 = vpop.f32.mrf.mxu0 }
0x25f1   : > { %16080 = vmatpush3.bf16.msra.mxu0 %v17554_v34  ;;  %v8806_v33 = vadd.f32 %v8805_v48, %v8501_v24  ;;  %v8847_v37 = vadd.f32 %v8846_v51, %v8503_v31  ;;  %v8875_v34 = vpack.c.bf16 %v8859_v43, %v8859_v43  ;;  %v17582_v51 = vld [vmem:[%s18023_s8 + $0x3b0] sm:$0xff]   ;;  %v17599_v24 = vld [vmem:[%s18023_s8 + $0x348] sm:$0xff]   ;;  %v8845_v31 = vadd.f32 %v19532_v27, %v8502_v12 }
0x25f2   : > { %16058 = vmatpush3.bf16.msra.mxu1 %v17553_v9  ;;  %v8807_v58 = vpop.f32.mrf.mxu1  ;;  %v8848_v52 = vpop.f32.mrf.mxu0  ;;  %16081 = vmatprep.subr.bf16.mxu0 %v17556_v39  ;;  %v17579_v9 = vld [vmem:[%s18023_s8 + $0x370] sm:$0xff]  }
0x25f3   : > { %16059 = vmatprep.subr.bf16.mxu1 %v17555_v10  ;;  %v8864_v25 = vmax.f32 %v8806_v33, 0.0  ;;  %v8866_v44 = vmax.f32 %v8847_v37, 0.0  ;;  %v17580_v10 = vld [vmem:[%s18023_s8 + $0x3f0] sm:$0xff]   ;;  %v17584_v58 = vld [vmem:[%s18023_s8 + $0x3e8] sm:$0xff]   ;;  %v8865_v19 = vmax.f32 %v8845_v31, 0.0 }
0x25f4   : > { %v8808_v46 = vpop.f32.mrf.mxu1  ;;  %v8849_v14 = vpop.f32.mrf.mxu0  ;;  %v17583_v52 = vld [vmem:[%s18023_s8 + $0x368] sm:$0xff]  }
0x25f5   : > { %16082 = vmatpush3.bf16.msra.mxu0 %v17558_v56  ;;  %v8880_v39 = vpack.c.bf16 %v8864_v25, %v8864_v25  ;;  %v8882_v48 = vpack.c.bf16 %v8866_v44, %v8866_v44  ;;  %v17581_v56 = vld [vmem:[%s18023_s8 + $0x330] sm:$0xff]   ;;  %v17587_v46 = vld [vmem:[%s18023_s8 + $0x360] sm:$0xff]   ;;  %v8881_v33 = vpack.c.bf16 %v8865_v19, %v8865_v19 }
0x25f6   : > { %16060 = vmatpush3.bf16.msra.mxu1 %v17557_v60  ;;  %16083 = vmatprep.subr.bf16.mxu0 %v17560_v2  ;;  %v17586_v60 = vld [vmem:[%s18023_s8 + $0x3a8] sm:$0xff]   ;;  %v17590_v14 = vld [vmem:[%s18023_s8 + $0x3a0] sm:$0xff]  }
0x25f7   : > { %16061 = vmatprep.subr.bf16.mxu1 %v17559_v61  ;;  %v17585_v2 = vld [vmem:[%s18023_s8 + $0x328] sm:$0xff]   ;;  %v17588_v61 = vld [vmem:[%s18023_s8 + $0x3e0] sm:$0xff]  }
0x25f9   : > { %16084 = vmatpush3.bf16.msra.mxu0 %v17562_v38  ;;  %v17589_v38 = vld [vmem:[%s18023_s8 + $0x320] sm:$0xff]  }
0x25fa   : > { %16062 = vmatpush3.bf16.msra.mxu1 %v17561_v50  ;;  %16085 = vmatprep.subr.bf16.mxu0 %v17564_v41  ;;  %v17592_v50 = vld [vmem:[%s18023_s8 + $0x3d8] sm:$0xff]  }
0x25fb   : > { %16063 = vmatprep.subr.bf16.mxu1 %v17563_v59  ;;  %v17591_v41 = vld [vmem:[%s18023_s8 + $0x358] sm:$0xff]  }
0x25fc   : > { %v17594_v59 = vld [vmem:[%s18023_s8 + $0x398] sm:$0xff]  }
0x25fd   : > { %16086 = vmatpush3.bf16.msra.mxu0 %v17566_v35  ;;  %v17593_v35 = vld [vmem:[%s18023_s8 + $0x318] sm:$0xff]  }
0x25fe   : > { %16064 = vmatpush3.bf16.msra.mxu1 %v17565_v49  ;;  %16087 = vmatprep.subr.bf16.mxu0 %v17568_v4  ;;  %v17596_v49 = vld [vmem:[%s18023_s8 + $0x3d0] sm:$0xff]  }
0x25ff   : > { %16065 = vmatprep.subr.bf16.mxu1 %v17567_v8  ;;  %v17595_v4 = vld [vmem:[%s18023_s8 + $0x350] sm:$0xff]   ;;  %v17600_v8 = vld [vmem:[%s18023_s8 + $0x3c8] sm:$0xff]  }
0x2601   : > { %16088 = vmatpush3.bf16.msra.mxu0 %v17570_v20  ;;  %v8500_v20 = vsel %vm6752_vm9, %v19496_v53, %v19546_v16  ;;  %v17605_v53 = vld [vmem:[%s18023_s8 + $0x300] sm:$0xff]  }
0x2602   : > { %16066 = vmatpush3.bf16.msra.mxu1 %v17569_v18  ;;  %16089 = vmatprep.subr.bf16.mxu0 %v17572_v28  ;;  %v17601_v18 = vld [vmem:[%s18023_s8 + $0x308] sm:$0xff]   ;;  %v17604_v28 = vld [vmem:[%s18023_s8 + $0x3c0] sm:$0xff]   ;;  %v8804_v7 = vadd.f32 %v19530_v3, %v8500_v20 }
0x2603   : > { %16067 = vmatprep.subr.bf16.mxu1 %v17571_v62  ;;  %v17603_v62 = vld [vmem:[%s18023_s8 + $0x340] sm:$0xff]  }
0x2604   : > { %v8863_v16 = vmax.f32 %v8804_v7, 0.0 }
0x2605   : > { %16090 = vmatpush3.bf16.msra.mxu0 %v17574_v11  ;;  %v14763_v11 = vld [vmem:[%s18033_s15 + $0x7] ss:$0 sm:$0xff] }
0x2606   : > { %16068 = vmatpush3.bf16.msra.mxu1 %v17573_v5  ;;  %16119 = vmatprep.subr.bf16.mxu0 %v17576_v26  ;;  %v8879_v27 = vpack.c.bf16 %v8863_v16, %v8863_v16 }
0x2607   : > { %16097 = vmatprep.subr.bf16.mxu1 %v17575_v54 }
0x2608   : > { %9890 = vmatmul.mubr.bf16.vlgmr.msra.gmra.mxu0 %v8877_v21 }
0x2609   : > { %9850 = vmatmul.mubr.bf16.vlgmr.msra.gmra.mxu1 %v8875_v34  ;;  %16120 = vmatpush3.bf16.msra.mxu0 %v17578_v40 }
0x260a   : > { %16098 = vmatpush3.bf16.msra.mxu1 %v17577_v0  ;;  %9929 = vmatprep.mubr.bf16.mxu1 %v8880_v39 }
0x260b   : > { %9969 = vmatprep.mubr.bf16.mxu0 %v8882_v48  ;;  %16099 = vmatprep.subr.bf16.mxu1 %v17579_v9 }
0x260c   : > { %16121 = vmatprep.subr.bf16.mxu0 %v17580_v10 }
0x260d   : > { %16122 = vmatpush3.bf16.msra.mxu0 %v17582_v51 }
0x260e   : > { %16100 = vmatpush3.bf16.msra.mxu1 %v17581_v56  ;;  %16123 = vmatprep.subr.bf16.mxu0 %v17584_v58 }
0x260f   : > { %16101 = vmatprep.subr.bf16.mxu1 %v17583_v52 }
0x2611   : > { %16124 = vmatpush3.bf16.msra.mxu0 %v17586_v60 }
0x2612   : > { %16102 = vmatpush3.bf16.msra.mxu1 %v17585_v2  ;;  %16125 = vmatprep.subr.bf16.mxu0 %v17588_v61 }
0x2613   : > { %16103 = vmatprep.subr.bf16.mxu1 %v17587_v46 }
0x2615   : > { %16126 = vmatpush3.bf16.msra.mxu0 %v17590_v14 }
0x2616   : > { %16104 = vmatpush3.bf16.msra.mxu1 %v17589_v38  ;;  %16127 = vmatprep.subr.bf16.mxu0 %v17592_v50 }
0x2617   : > { %16105 = vmatprep.subr.bf16.mxu1 %v17591_v41 }
0x2619   : > { %16128 = vmatpush3.bf16.msra.mxu0 %v17594_v59 }
0x261a   : > { %16106 = vmatpush3.bf16.msra.mxu1 %v17593_v35  ;;  %16129 = vmatprep.subr.bf16.mxu0 %v17596_v49 }
0x261b   : > { %16107 = vmatprep.subr.bf16.mxu1 %v17595_v4 }
0x261d   : > { %16130 = vmatpush3.bf16.msra.mxu0 %v17598_v6 }
0x261e   : > { %16108 = vmatpush3.bf16.msra.mxu1 %v17597_v45  ;;  %16131 = vmatprep.subr.bf16.mxu0 %v17600_v8 }
0x261f   : > { %16109 = vmatprep.subr.bf16.mxu1 %v17599_v24 }
0x2621   : > { %16132 = vmatpush3.bf16.msra.mxu0 %v17602_v22 }
0x2622   : > { %16110 = vmatpush3.bf16.msra.mxu1 %v17601_v18  ;;  %16133 = vmatprep.subr.bf16.mxu0 %v17604_v28 }
0x2623   : > { %16111 = vmatprep.subr.bf16.mxu1 %v17603_v62 }
0x2625   : > { %16134 = vmatpush3.bf16.msra.mxu0 %v17606_v23 }
0x2626   : > { %16112 = vmatpush3.bf16.msra.mxu1 %v17605_v53  ;;  %16646 = vmatprep.subr.bf16.mxu0 %v17957_v57 }
0x2628   : > { %9970 = vmatmul.mubr.bf16.vlgmr.msra.gmra.mxu0 %v8881_v33 }
0x2629   : > { %9930 = vmatmul.mubr.bf16.vlgmr.msra.gmra.mxu1 %v8879_v27  ;;  %16648 = vmatprep.mubr.msk.bf16.mxu0 %vm17958_vm10, %v17957_v57 }
0x262a   : > { %10455 = vmatprep.mubr.bf16.mxu1 %v17956_v1 }
0x2688   : > { %v15981_v3 = vpop.f32.mrf.mxu1  ;;  %v16003_v37 = vpop.f32.mrf.mxu0 }
0x268a   : > { %v15982_v29 = vpop.f32.mrf.mxu1  ;;  %v16004_v5 = vpop.f32.mrf.mxu0 }
0x268b   : > { %v15983_v26 = vadd.f32 %v15982_v29, %v15981_v3  ;;  %v16005_v43 = vadd.f32 %v16004_v5, %v16003_v37  ;;  %v17607_v5 = vld [vmem:[%s18028_s12 + $0x460] ss:$80 sps:$4 sm:$0xff]  }
0x268c   : > { %v15984_v54 = vpop.f32.mrf.mxu1  ;;  %v16006_v25 = vpop.f32.mrf.mxu0 }
0x268d   : > { %v9692_v44 = vadd.f32 %v15983_v26, %v14763_v11  ;;  %v17609_v26 = vld [vmem:[%s18028_s12 + $0x464] ss:$80 sps:$4 sm:$0xff]  }
0x268e   : > { %v15985_v40 = vpop.f32.mrf.mxu1  ;;  %v16007_v21 = vpop.f32.mrf.mxu0  ;;  %10431 = vmatprep.subr.bf16.mxu1 %v17609_v26  ;;  %v17615_v54 = vld [vmem:[%s18028_s12 + $0x324] ss:$80 sps:$4 sm:$0xff]  }
0x268f   : > { %v9732_v0 = vadd.f32 %v16005_v43, %v9692_v44  ;;  %v17612_v43 = vld [vmem:[%s18028_s12 + $0x3c4] ss:$80 sps:$4 sm:$0xff]   ;;  %10432 = vmatpush1.bf16.msra.mxu1 %v17607_v5  ;;  %v17613_v44 = vld [vmem:[%s18028_s12 + $0x320] ss:$80 sps:$4 sm:$0xff]  }
0x2690   : > { %10433 = vmatprep.subr.bf16.mxu1 %v17612_v43  ;;  %v14892_v25 = vld [vmem:[%s18033_s15 + $0x6] ss:$0 sm:$0xff]  ;;  %v17616_v21 = vld [vmem:[%s18028_s12 + $0x280] ss:$80 sps:$4 sm:$0xff]  }
0x2691   : > { %v17618_v40 = vld [vmem:[%s18028_s12 + $0x284] ss:$80 sps:$4 sm:$0xff]  }
0x26a8   : > { %v16025_v34 = vpop.f32.mrf.mxu1  ;;  %v16047_v9 = vpop.f32.mrf.mxu0 }
0x26aa   : > { %v16026_v39 = vpop.f32.mrf.mxu1  ;;  %v16048_v10 = vpop.f32.mrf.mxu0 }
0x26ab   : > { %v16027_v41 = vadd.f32 %v16026_v39, %v16025_v34  ;;  %v16049_v35 = vadd.f32 %v16048_v10, %v16047_v9 }
0x26ac   : > { %v16028_v48 = vpop.f32.mrf.mxu1  ;;  %v16050_v51 = vpop.f32.mrf.mxu0 }
0x26ad   : > { %v9772_v59 = vadd.f32 %v16027_v41, %v9732_v0 }
0x26ae   : > { %v16029_v56 = vpop.f32.mrf.mxu1  ;;  %v16051_v58 = vpop.f32.mrf.mxu0 }
0x26af   : > { %v9812_v4 = vadd.f32 %v16049_v35, %v9772_v59 }
0x26c8   : > { %v16091_v52 = vpop.f32.mrf.mxu0 }
0x26c9   : > { %v16069_v60 = vpop.f32.mrf.mxu1 }
0x26ca   : > { %v16092_v2 = vpop.f32.mrf.mxu0 }
0x26cb   : > { %v16070_v61 = vpop.f32.mrf.mxu1  ;;  %v16093_v12 = vadd.f32 %v16092_v2, %v16091_v52  ;;  %v15245_v52 = vld [vmem:[%s18033_s15 + $0x18] sm:$0x3] }
0x26cc   : > { %v16094_v46 = vpop.f32.mrf.mxu0  ;;  %v16071_v49 = vadd.f32 %v16070_v61, %v16069_v60  ;;  %v10373_v60 = vrot.slane %v15245_v52, %v19013_v55  ;;  %v10377_v2 = vrot.slane %v15245_v52, %v19026_v30 }
0x26cd   : > { %v16072_v14 = vpop.f32.mrf.mxu1 }
0x26ce   : > { %v16095_v38 = vpop.f32.mrf.mxu0  ;;  %v9852_v6 = vadd.f32 %v16071_v49, %v9812_v4 }
0x26cf   : > { %v16073_v50 = vpop.f32.mrf.mxu1 }
0x26d0   : > { %v9892_v22 = vadd.f32 %v16093_v12, %v9852_v6 }
0x26e8   : > { %v16135_v45 = vpop.f32.mrf.mxu0 }
0x26e9   : > { %v16113_v8 = vpop.f32.mrf.mxu1 }
0x26ea   : > { %v16136_v24 = vpop.f32.mrf.mxu0 }
0x26eb   : > { %v16114_v20 = vpop.f32.mrf.mxu1  ;;  %v16137_v62 = vadd.f32 %v16136_v24, %v16135_v45 }
0x26ec   : > { %v16115_v31 = vadd.f32 %v16114_v20, %v16113_v8  ;;  %v16138_v18 = vpop.f32.mrf.mxu0 }
0x26ed   : > { %v16116_v28 = vpop.f32.mrf.mxu1 }
0x26ee   : > { %v9932_v7 = vadd.f32 %v16115_v31, %v9892_v22  ;;  %v16139_v23 = vpop.f32.mrf.mxu0 }
0x26ef   : > { %v16117_v19 = vpop.f32.mrf.mxu1 }
0x26f0   : > { %v9972_v53 = vadd.f32 %v16137_v62, %v9932_v7 }
0x26f2   : > { %v9977_v16 = vadd.f32 %v9972_v53, %v19340_v47  ;;  %v17610_v47 = vld [vmem:[%s18028_s12 + $0x3c0] ss:$80 sps:$4 sm:$0xff]  }
0x26f3   : > { %10434 = vmatpush1.bf16.msra.mxu1 %v17610_v47 }
0x26f4   : > { %v9978_v33 = vsel %vm6752_vm9, %v9977_v16, 0.0  ;;  %10435 = vmatprep.subr.bf16.mxu1 %v17615_v54 }
0x26f5   : > { %9979 = vadd.xlane.f32.xlu1 %v9978_v33 }
0x26f7   : > { %10436 = vmatpush1.bf16.msra.mxu1 %v17613_v44 }
0x26f8   : > { %10437 = vmatprep.subr.bf16.mxu1 %v17618_v40 }
0x26fb   : > { %10438 = vmatpush1.bf16.msra.mxu1 %v17616_v21 }
0x26fc   : > { %16652 = vmatprep.subr.bf16.mxu1 %v17957_v57 }
0x277e   : > { %v9980_v27 = vpop.xlane.xlu1 %9979 }
0x277f   : > { %v9981_v3 = vmul.f32 0.015625, %v9980_v27 }
0x2781   : > { %v9982_v37 = vsub.f32 %v9977_v16, %v9981_v3 }
0x2783   : > { %v9983_v11 = vmul.f32 %v9982_v37, %v9982_v37 }
0x2785   : > { %v9984_v29 = vsel %vm6752_vm9, %v9983_v11, 0.0 }
0x2786   : > { %9985 = vadd.xlane.f32.xlu0 %v9984_v29 }
0x279c   : > { %9998 = vrot.lane.b32.xlu0 %v14892_v25, %s17960_s18 }
0x280f   : > { %v9986_v0 = vpop.xlane.xlu0 %9985 }
0x2810   : > { %v9987_v34 = vmul.f32 0.015625, %v9986_v0 }
0x2812   : > { %v9988_v9 = vadd.f32 1e-05, %v9987_v34 }
0x2813   : > { %v9999_v48 = vpop.permute.xlu0 %9998 }
0x2814   : > { %17891 = vrsqrt.f32 %v9988_v9 }
0x2821   : > { %v17892_v39 = vpop.eup %17891 }
0x2822   : > { %v9990_v10 = vmul.f32 %v17892_v39, %v9982_v37 }
0x2824   : > { %v9997_v51 = vmul.f32 %v14892_v25, %v9990_v10 }
0x2826   : > { %v19633_v56 = vadd.f32 %v9999_v48, %v9997_v51 }
0x2828   : > { %v10368_v58 = vpack.c.bf16 %v19633_v56, %v19633_v56 }
0x282a   : > { %15264 = vmatmul.mubr.msk.bf16.vlgmr.msra.gmra.mxu1 %vm6752_vm9, %v10368_v58 }
0x282b   : > { %16654 = vmatprep.mubr.msk.bf16.mxu1 %vm17958_vm10, %v17957_v57 }
0x28ea   : > { %v10457_v61 = vpop.f32.mrf.mxu1 }
0x28eb   : > { %v10458_v46 = vadd.f32 %v10457_v61, %v10373_v60 }
0x28ec   : > { %v10459_v14 = vpop.f32.mrf.mxu1 }
0x28ed   : > { %v10464_v38 = vpack.c.bf16 %v10458_v46, %v10458_v46  ;;  %v10460_v50 = vadd.f32 %v10459_v14, %v10377_v2 }
0x28ee   : > { %v10461_v41 = vpop.f32.mrf.mxu1 }
0x28ef   : > { %v19643_v59 = vpack.c.bf16 %v10460_v50, %v10460_v50  ;;  %10574 = vrot.lane.b32.xlu0 %v10464_v38, %s17962_s20  ;;  %10467 = vrot.lane.b32.xlu1 %v10464_v38, %s17960_s18 }
0x28f0   : > { %v10462_v35 = vpop.f32.mrf.mxu1 }
0x28f1   : > { %v10532_v49 = vsel %vm6866_vm12, %v19643_v59, 0 }
0x28f2   : > { %16653 = vmatpush3.bf16.msra.mxu1 %v10532_v49 }
0x28f3   : > { %10686 = vrot.lane.b32.xlu0 %v10464_v38, %s17964_s22  ;;  %10576 = vrot.lane.b32.xlu1 %v10464_v38, %s17959_s17 }
0x28f4   : > { %16664 = vmatprep.subr.bf16.mxu1 %v17957_v57 }
0x28f7   : > { %10797 = vrot.lane.b32.xlu0 %v10464_v38, %s17961_s19  ;;  %10688 = vrot.lane.b32.xlu1 %v10464_v38, %s17963_s21 }
0x28fb   : > { %10799 = vrot.lane.b32.xlu1 %v10464_v38, %s17965_s23 }
0x2961   : > { %v10468_v4 = vpop.permute.xlu1 %10467  ;;  %v10575_v24 = vpop.permute.xlu0 %10574 }
0x2962   : > { %v10473_v6 = vsel %vm6802_vm11, %v10468_v4, 0 }
0x2963   : > { %16647 = vmatpush3.bf16.xpose.msra.mxu0 %v10473_v6 }
0x2964   : > { %16658 = vmatprep.subr.bf16.mxu0 %v17957_v57 }
0x2965   : > { %v10577_v45 = vpop.permute.xlu1 %10576  ;;  %v10687_v31 = vpop.permute.xlu0 %10686 }
0x2966   : > { %v10582_v8 = vsel %vm6802_vm11, %v10577_v45, 0 }
0x2969   : > { %v10689_v12 = vpop.permute.xlu1 %10688  ;;  %v10798_v28 = vpop.permute.xlu0 %10797 }
0x296a   : > { %16649 = vmatmul.mubr.msk.bf16.vlgmr.msra.gmra.mxu0 %vm6802_vm11, %v10464_v38  ;;  %v10694_v20 = vsel %vm6802_vm11, %v10689_v12, 0 }
0x296b   : > { %16659 = vmatpush3.bf16.xpose.msra.mxu0 %v10582_v8  ;;  %16660 = vmatprep.mubr.msk.bf16.mxu0 %vm17958_vm10, %v17957_v57 }
0x296c   : > { %16670 = vmatprep.subr.bf16.mxu0 %v17957_v57 }
0x296d   : > { %v10800_v22 = vpop.permute.xlu1 %10799 }
0x296e   : > { %v10805_v18 = vsel %vm6802_vm11, %v10800_v22, 0 }
0x2972   : > { %16661 = vmatmul.mubr.msk.bf16.vlgmr.msra.gmra.mxu0 %vm6802_vm11, %v10575_v24 }
0x2973   : > { %16671 = vmatpush3.bf16.xpose.msra.mxu0 %v10694_v20  ;;  %16672 = vmatprep.mubr.msk.bf16.mxu0 %vm17958_vm10, %v17957_v57 }
0x2974   : > { %16682 = vmatprep.subr.bf16.mxu0 %v17957_v57 }
0x297a   : > { %16673 = vmatmul.mubr.msk.bf16.vlgmr.msra.gmra.mxu0 %vm6802_vm11, %v10687_v31 }
0x297b   : > { %16683 = vmatpush3.bf16.xpose.msra.mxu0 %v10805_v18  ;;  %16684 = vmatprep.mubr.msk.bf16.mxu0 %vm17958_vm10, %v17957_v57 }
0x297c   : > { %16694 = vmatprep.subr.bf16.mxu0 %v17957_v57 }
0x2982   : > { %16685 = vmatmul.mubr.msk.bf16.vlgmr.msra.gmra.mxu0 %vm6802_vm11, %v10798_v28 }
0x2983   : > { %16702 = vmatprep.mubr.msk.bf16.mxu0 %vm17958_vm10, %v17957_v57 }
0x2a2a   : > { %v10509_v7 = vpop.f32.mrf.mxu0 }
0x2a2b   : > { %v10515_v62 = vmul.f32 0.25, %v10509_v7 }
0x2a2c   : > { %v16650_v23 = vpop.f32.mrf.mxu0 }
0x2a2d   : > { %v10516_v19 = vsel %vm6850_vm13, %v10515_v62, -inf }
0x2a2e   : > { %10517 = vmax.xlane.f32.xlu1 %v10516_v19  ;;  %v10512_v53 = vpop.f32.mrf.mxu0 }
0x2a30   : > { %v16651_v16 = vpop.f32.mrf.mxu0 }
0x2a32   : > { %v10618_v33 = vpop.f32.mrf.mxu0 }
0x2a33   : > { %v10624_v27 = vmul.f32 0.25, %v10618_v33 }
0x2a34   : > { %v16662_v3 = vpop.f32.mrf.mxu0 }
0x2a35   : > { %v10625_v37 = vsel %vm6850_vm13, %v10624_v27, -inf }
0x2a36   : > { %10626 = vmax.xlane.f32.xlu0 %v10625_v37  ;;  %v10621_v11 = vpop.f32.mrf.mxu0 }
0x2a38   : > { %v16663_v29 = vpop.f32.mrf.mxu0 }
0x2a3a   : > { %v10730_v5 = vpop.f32.mrf.mxu0 }
0x2a3b   : > { %v10736_v26 = vmul.f32 0.25, %v10730_v5 }
0x2a3c   : > { %v16674_v43 = vpop.f32.mrf.mxu0 }
0x2a3d   : > { %v10737_v47 = vsel %vm6850_vm13, %v10736_v26, -inf  ;;  %v17619_v43 = vld [vmem:[%s18028_s12 + $0x3c4] ss:$80 sps:$4 sm:$0xff]  }
0x2a3e   : > { %10738 = vmax.xlane.f32.xlu0 %v10737_v47  ;;  %v10733_v54 = vpop.f32.mrf.mxu0  ;;  %v17620_v47 = vld [vmem:[%s18028_s12 + $0x464] ss:$80 sps:$4 sm:$0xff]  }
0x2a3f   : > { %v17621_v54 = vld [vmem:[%s18028_s12 + $0x324] ss:$80 sps:$4 sm:$0xff]  }
0x2a40   : > { %v16675_v25 = vpop.f32.mrf.mxu0 }
0x2a42   : > { %v10841_v44 = vpop.f32.mrf.mxu0 }
0x2a43   : > { %v10847_v40 = vmul.f32 0.25, %v10841_v44 }
0x2a44   : > { %v16686_v21 = vpop.f32.mrf.mxu0 }
0x2a45   : > { %v10848_v0 = vsel %vm6850_vm13, %v10847_v40, -inf }
0x2a46   : > { %10849 = vmax.xlane.f32.xlu1 %v10848_v0  ;;  %v10844_v34 = vpop.f32.mrf.mxu0 }
0x2a48   : > { %v16687_v9 = vpop.f32.mrf.mxu0 }
0x2ab7   : > { %v10518_v39 = vpop.xlane.xlu1 %10517 }
0x2ab8   : > { %v10519_v10 = vsub.f32 %v10515_v62, %v10518_v39 }
0x2aba   : > { %v10520_v48 = vmul.f32 1.442695, %v10519_v10 }
0x2abc   : > { %17893 = vpow2.f32 %v10520_v48 }
0x2abf   : > { %v10627_v51 = vpop.xlane.xlu0 %10626 }
0x2ac0   : > { %v10628_v58 = vsub.f32 %v10624_v27, %v10627_v51 }
0x2ac2   : > { %v10629_v52 = vmul.f32 1.442695, %v10628_v58 }
0x2ac4   : > { %17895 = vpow2.f32 %v10629_v52  ;;  %v17622_v52 = vld [vmem:[%s18028_s12 + $0x284] ss:$80 sps:$4 sm:$0xff]  }
0x2ac7   : > { %v10739_v60 = vpop.xlane.xlu0 %10738 }
0x2ac8   : > { %v10740_v2 = vsub.f32 %v10736_v26, %v10739_v60 }
0x2ac9   : > { %v17894_v61 = vpop.eup %17893 }
0x2aca   : > { %v10741_v46 = vmul.f32 1.442695, %v10740_v2  ;;  %v10522_v14 = vsel %vm6850_vm13, %v17894_v61, 0.0 }
0x2acb   : > { %10523 = vadd.xlane.f32.xlu0 %v10522_v14 }
0x2acc   : > { %17897 = vpow2.f32 %v10741_v46 }
0x2acf   : > { %v10850_v49 = vpop.xlane.xlu1 %10849 }
0x2ad0   : > { %v10851_v4 = vsub.f32 %v10847_v40, %v10850_v49 }
0x2ad1   : > { %v17896_v38 = vpop.eup %17895 }
0x2ad2   : > { %v10631_v50 = vsel %vm6850_vm13, %v17896_v38, 0.0  ;;  %v10852_v6 = vmul.f32 1.442695, %v10851_v4 }
0x2ad3   : > { %10632 = vadd.xlane.f32.xlu1 %v10631_v50 }
0x2ad4   : > { %17899 = vpow2.f32 %v10852_v6 }
0x2ad9   : > { %v17898_v41 = vpop.eup %17897 }
0x2ada   : > { %v10743_v35 = vsel %vm6850_vm13, %v17898_v41, 0.0 }
0x2adb   : > { %10744 = vadd.xlane.f32.xlu0 %v10743_v35 }
0x2ae1   : > { %v17900_v45 = vpop.eup %17899 }
0x2ae2   : > { %v10854_v8 = vsel %vm6850_vm13, %v17900_v45, 0.0 }
0x2ae4   : > { %10749 = vrot.lane.b32.xlu1 %v19643_v59, %s17964_s22 }
0x2af1   : > { %10638 = vrot.lane.b32.xlu0 %v19643_v59, %s17962_s20 }
0x2af5   : > { %10955 = vrot.lane.b32.xlu0 %v17620_v47, %s17960_s18 }
0x2af9   : > { %10951 = vrot.lane.b32.xlu0 %v17621_v54, %s17960_s18 }
0x2b08   : > { %10855 = vadd.xlane.f32.xlu1 %v10854_v8 }
0x2b19   : > { %10860 = vrot.lane.b32.xlu1 %v19643_v59, %s17961_s19 }
0x2b1d   : > { %10953 = vrot.lane.b32.xlu1 %v17619_v43, %s17960_s18  ;;  %v19763_v43 = vld [vmem:[%s18028_s12 + $0x288] ss:$80 sps:$4 sm:$0xff]  }
0x2b54   : > { %v10524_v12 = vpop.xlane.xlu0 %10523 }
0x2b55   : > { %17901 = vrcp.f32 %v10524_v12 }
0x2b5c   : > { %v10633_v24 = vpop.xlane.xlu1 %10632 }
0x2b5d   : > { %17903 = vrcp.f32 %v10633_v24 }
0x2b60   : > { %v10750_v23 = vpop.permute.xlu1 %10749 }
0x2b61   : > { %v10755_v53 = vsel %vm6866_vm12, %v10750_v23, 0  ;;  %v17623_v23 = vld [vmem:[%s18028_s12 + $0x46c] ss:$80 sps:$4 sm:$0xff]  }
0x2b62   : > { %v17902_v20 = vpop.eup %17901 }
0x2b63   : > { %v10526_v22 = vmul.f32 %v17902_v20, %v17894_v61 }
0x2b64   : > { %v10745_v31 = vpop.xlane.xlu0 %10744 }
0x2b65   : > { %17905 = vrcp.f32 %v10745_v31  ;;  %v10527_v18 = vpack.c.bf16 %v10526_v22, %v10526_v22 }
0x2b67   : > { %16655 = vmatmul.mubr.msk.bf16.vlgmr.msra.gmra.mxu1 %vm6850_vm13, %v10527_v18 }
0x2b68   : > { %v10639_v28 = vpop.permute.xlu0 %10638  ;;  %16666 = vmatprep.mubr.msk.bf16.mxu1 %vm17958_vm10, %v17957_v57 }
0x2b69   : > { %v10644_v7 = vsel %vm6866_vm12, %v10639_v28, 0 }
0x2b6a   : > { %v17904_v62 = vpop.eup %17903  ;;  %16665 = vmatpush3.bf16.msra.mxu1 %v10644_v7 }
0x2b6b   : > { %16676 = vmatprep.subr.bf16.mxu1 %v17957_v57  ;;  %v10635_v59 = vmul.f32 %v17904_v62, %v17896_v38  ;;  %v15273_v38 = vld [vmem:[%s18033_s15 + $0x19] ss:$0 sm:$0xff] }
0x2b6c   : > { %v10956_v25 = vpop.permute.xlu0 %10955 }
0x2b6d   : > { %v10636_v19 = vpack.c.bf16 %v10635_v59, %v10635_v59  ;;  %16695 = vmatpush3.bf16.msra.mxu0 %v10956_v25 }
0x2b6e   : > { %16696 = vmatprep.subr.bf16.mxu0 %v17957_v57 }
0x2b6f   : > { %16667 = vmatmul.mubr.msk.bf16.vlgmr.msra.gmra.mxu1 %vm6850_vm13, %v10636_v19  ;;  %v15279_v19 = vld [vmem:[%s18033_s15 + $0x1c] ss:$0 sm:$0xff] }
0x2b70   : > { %16677 = vmatpush3.bf16.msra.mxu1 %v10755_v53  ;;  %16678 = vmatprep.mubr.msk.bf16.mxu1 %vm17958_vm10, %v17957_v57  ;;  %v10952_v34 = vpop.permute.xlu0 %10951  ;;  %v17624_v53 = vld [vmem:[%s18028_s12 + $0x3cc] ss:$80 sps:$4 sm:$0xff]  }
0x2b71   : > { %16688 = vmatprep.subr.bf16.mxu1 %v17957_v57 }
0x2b72   : > { %v17906_v16 = vpop.eup %17905 }
0x2b73   : > { %v10747_v33 = vmul.f32 %v17906_v16, %v17898_v41 }
0x2b75   : > { %v10748_v27 = vpack.c.bf16 %v10747_v33, %v10747_v33 }
0x2b77   : > { %16679 = vmatmul.mubr.msk.bf16.vlgmr.msra.gmra.mxu1 %vm6850_vm13, %v10748_v27 }
0x2b78   : > { %16690 = vmatprep.mubr.msk.bf16.mxu1 %vm17958_vm10, %v17957_v57 }
0x2b91   : > { %v10856_v3 = vpop.xlane.xlu1 %10855 }
0x2b92   : > { %17907 = vrcp.f32 %v10856_v3 }
0x2b95   : > { %v10861_v37 = vpop.permute.xlu1 %10860 }
0x2b96   : > { %v10866_v11 = vsel %vm6866_vm12, %v10861_v37, 0  ;;  %v17625_v37 = vld [vmem:[%s18028_s12 + $0x32c] ss:$80 sps:$4 sm:$0xff]  }
0x2b97   : > { %16689 = vmatpush3.bf16.msra.mxu1 %v10866_v11  ;;  %v17626_v11 = vld [vmem:[%s18028_s12 + $0x28c] ss:$80 sps:$4 sm:$0xff]  }
0x2b98   : > { %16706 = vmatprep.subr.bf16.mxu1 %v17957_v57 }
0x2b99   : > { %v10954_v40 = vpop.permute.xlu1 %10953 }
0x2b9a   : > { %16697 = vmatpush3.bf16.msra.mxu0 %v10954_v40 }
0x2b9b   : > { %16698 = vmatprep.subr.bf16.mxu0 %v17957_v57 }
0x2b9e   : > { %16699 = vmatpush3.bf16.msra.mxu0 %v10952_v34 }
0x2b9f   : > { %v17908_v29 = vpop.eup %17907  ;;  %16700 = vmatprep.subr.bf16.mxu0 %v17957_v57 }
0x2ba0   : > { %v10858_v5 = vmul.f32 %v17908_v29, %v17900_v45  ;;  %v19742_v29 = vld [vmem:[%s18028_s12 + $0x468] ss:$80 sps:$4 sm:$0xff]  }
0x2ba2   : > { %v10859_v26 = vpack.c.bf16 %v10858_v5, %v10858_v5  ;;  %v19747_v5 = vld [vmem:[%s18028_s12 + $0x3c8] ss:$80 sps:$4 sm:$0xff]  }
0x2ba4   : > { %16691 = vmatmul.mubr.msk.bf16.vlgmr.msra.gmra.mxu1 %vm6850_vm13, %v10859_v26  ;;  %v19753_v26 = vld [vmem:[%s18028_s12 + $0x328] ss:$80 sps:$4 sm:$0xff]  }
0x2ba5   : > { %16714 = vmatprep.mubr.msk.bf16.mxu1 %vm17958_vm10, %v17957_v57  ;;  %16707 = vmatpush3.bf16.msra.mxu1 %v19742_v29 }
0x2ba6   : > { %16708 = vmatprep.subr.bf16.mxu1 %v17957_v57 }
0x2ba9   : > { %16709 = vmatpush3.bf16.msra.mxu1 %v19747_v5 }
0x2baa   : > { %16710 = vmatprep.subr.bf16.mxu1 %v17957_v57 }
0x2bad   : > { %16711 = vmatpush3.bf16.msra.mxu1 %v19753_v26 }
0x2bae   : > { %16712 = vmatprep.subr.bf16.mxu1 %v17957_v57 }
0x2bb1   : > { %16713 = vmatpush3.bf16.msra.mxu1 %v19763_v43 }
0x2bb2   : > { %16730 = vmatprep.subr.bf16.mxu1 %v17957_v57 }
0x2c27   : > { %v10568_v44 = vpop.f32.mrf.mxu1 }
0x2c29   : > { %v16656_v21 = vpop.f32.mrf.mxu1 }
0x2c2b   : > { %v10571_v0 = vpop.f32.mrf.mxu1 }
0x2c2d   : > { %v16657_v9 = vpop.f32.mrf.mxu1 }
0x2c2e   : > { %v15286_v9 = vld [vmem:[%s18033_s15 + $0x1b] ss:$0 sm:$0xff] }
0x2c2f   : > { %v10680_v39 = vpop.f32.mrf.mxu1 }
0x2c30   : > { %10909 = vrot.lane.b32.xlu1 %v10680_v39, %s17965_s23 }
0x2c31   : > { %v16668_v10 = vpop.f32.mrf.mxu1 }
0x2c33   : > { %v10683_v48 = vpop.f32.mrf.mxu1 }
0x2c35   : > { %v16669_v51 = vpop.f32.mrf.mxu1 }
0x2c37   : > { %v10791_v58 = vpop.f32.mrf.mxu1 }
0x2c38   : > { %10913 = vrot.lane.b32.xlu0 %v10791_v58, %s17963_s21 }
0x2c39   : > { %v16680_v60 = vpop.f32.mrf.mxu1 }
0x2c3b   : > { %v10794_v2 = vpop.f32.mrf.mxu1 }
0x2c3c   : > { %10949 = vrot.lane.b32.xlu0 %v17622_v52, %s17960_s18 }
0x2c3d   : > { %v16681_v61 = vpop.f32.mrf.mxu1 }
0x2c64   : > { %v10902_v46 = vpop.f32.mrf.mxu1 }
0x2c65   : > { %10917 = vrot.lane.b32.xlu1 %v10902_v46, %s17959_s17  ;;  %v19789_v46 = vld [vmem:[%s18033_s15 + $0x1a] ss:$0 sm:$0xff] }
0x2c66   : > { %v16692_v14 = vpop.f32.mrf.mxu1 }
0x2c68   : > { %v10905_v50 = vpop.f32.mrf.mxu1 }
0x2c69   : > { %10961 = vrot.lane.b32.xlu1 %v15273_v38, %s17960_s18 }
0x2c6a   : > { %v16693_v41 = vpop.f32.mrf.mxu1 }
0x2ca2   : > { %v10910_v4 = vpop.permute.xlu1 %10909 }
0x2ca3   : > { %v10920_v6 = vsel %vm6802_vm11, %v10568_v44, %v10910_v4 }
0x2caa   : > { %v10914_v35 = vpop.permute.xlu0 %10913 }
0x2cab   : > { %v10921_v45 = vsel %vm7257_vm14, %v10920_v6, %v10914_v35 }
0x2cae   : > { %v10950_v49 = vpop.permute.xlu0 %10949 }
0x2caf   : > { %16701 = vmatpush3.bf16.msra.mxu0 %v10950_v49 }
0x2cb0   : > { %16718 = vmatprep.subr.bf16.mxu0 %v17957_v57 }
0x2cd7   : > { %v10918_v8 = vpop.permute.xlu1 %10917 }
0x2cd8   : > { %v10922_v12 = vsel %vm7259_vm15, %v10921_v45, %v10918_v8 }
0x2cd9   : > { %v10923_v24 = vpack.c.bf16 %v10922_v12, %v10922_v12 }
0x2cdb   : > { %16703 = vmatmul.mubr.msk.bf16.vlgmr.msra.gmra.mxu0 %vm6752_vm9, %v10923_v24  ;;  %v10962_v20 = vpop.permute.xlu1 %10961 }
0x2cdc   : > { %16726 = vmatprep.mubr.msk.bf16.mxu0 %vm17958_vm10, %v17957_v57  ;;  %16719 = vmatpush3.bf16.msra.mxu0 %v17623_v23 }
0x2cdd   : > { %16720 = vmatprep.subr.bf16.mxu0 %v17957_v57 }
0x2ce0   : > { %16721 = vmatpush3.bf16.msra.mxu0 %v17624_v53 }
0x2ce1   : > { %16722 = vmatprep.subr.bf16.mxu0 %v17957_v57 }
0x2ce4   : > { %16723 = vmatpush3.bf16.msra.mxu0 %v17625_v37 }
0x2ce5   : > { %16724 = vmatprep.subr.bf16.mxu0 %v17957_v57 }
0x2ce8   : > { %16725 = vmatpush3.bf16.msra.mxu0 %v17626_v11 }
0x2ce9   : > { %16742 = vmatprep.subr.bf16.mxu0 %v17957_v57 }
0x2ceb   : > { %16727 = vmatmul.mubr.msk.bf16.vlgmr.msra.gmra.mxu0 %vm6752_vm9, %v19135_v36 }
0x2cec   : > { %16744 = vmatprep.mubr.msk.bf16.mxu0 %vm17958_vm10, %v17957_v57 }
0x2d9b   : > { %v11001_v22 = vpop.f32.mrf.mxu0 }
0x2d9c   : > { %v11002_v31 = vadd.f32 %v11001_v22, %v10962_v20 }
0x2d9d   : > { %v16704_v18 = vpop.f32.mrf.mxu0 }
0x2d9e   : > { %v11007_v28 = vadd.f32 %v11002_v31, %v19633_v56 }
0x2d9f   : > { %v11004_v7 = vpop.f32.mrf.mxu0 }
0x2da0   : > { %v11008_v62 = vsel %vm6752_vm9, %v11007_v28, 0.0 }
0x2da1   : > { %v16705_v59 = vpop.f32.mrf.mxu0  ;;  %11009 = vadd.xlane.f32.xlu0 %v11008_v62 }
0x2dab   : > { %v11170_v39 = vpop.f32.mrf.mxu0 }
0x2dac   : > { %v11171_v10 = vadd.f32 %v15286_v9, %v11170_v39 }
0x2dad   : > { %v16728_v48 = vpop.f32.mrf.mxu0 }
0x2dae   : > { %v19775_v51 = vpack.c.bf16 %v11171_v10, %v11171_v10 }
0x2daf   : > { %v11173_v58 = vpop.f32.mrf.mxu0 }
0x2db0   : > { %v11182_v52 = vsel %vm6802_vm11, %v19775_v51, 0 }
0x2db1   : > { %v16729_v60 = vpop.f32.mrf.mxu0 }
0x2db7   : > { %11028 = vrot.lane.b32.xlu0 %v15279_v19, %s17960_s18 }
0x2e2a   : > { %v11010_v56 = vpop.xlane.xlu0 %11009 }
0x2e2b   : > { %v11011_v16 = vmul.f32 0.015625, %v11010_v56 }
0x2e2d   : > { %v11012_v33 = vsub.f32 %v11007_v28, %v11011_v16 }
0x2e2e   : > { %v11029_v40 = vpop.permute.xlu0 %11028 }
0x2e2f   : > { %v11013_v27 = vmul.f32 %v11012_v33, %v11012_v33 }
0x2e31   : > { %v11014_v3 = vsel %vm6752_vm9, %v11013_v27, 0.0 }
0x2e32   : > { %11015 = vadd.xlane.f32.xlu1 %v11014_v3 }
0x2e43   : > { %11289 = vrot.lane.b32.xlu1 %v19775_v51, %s17962_s20 }
0x2e47   : > { %11400 = vrot.lane.b32.xlu1 %v19775_v51, %s17964_s22 }
0x2e4b   : > { %11511 = vrot.lane.b32.xlu1 %v19775_v51, %s17961_s19 }
0x2ebb   : > { %v11016_v47 = vpop.xlane.xlu1 %11015 }
0x2ebc   : > { %v11017_v54 = vmul.f32 0.015625, %v11016_v47 }
0x2ebe   : > { %v11018_v25 = vadd.f32 1e-05, %v11017_v54 }
0x2ebf   : > { %v11290_v2 = vpop.permute.xlu1 %11289 }
0x2ec0   : > { %17909 = vrsqrt.f32 %v11018_v25  ;;  %v11295_v61 = vsel %vm6802_vm11, %v11290_v2, 0 }
0x2ec1   : > { %16743 = vmatpush3.bf16.xpose.msra.mxu0 %v11295_v61 }
0x2ec2   : > { %16754 = vmatprep.subr.bf16.mxu0 %v17957_v57 }
0x2ec3   : > { %v11401_v4 = vpop.permute.xlu1 %11400 }
0x2ec4   : > { %v11406_v45 = vsel %vm6802_vm11, %v11401_v4, 0 }
0x2ec7   : > { %v11512_v8 = vpop.permute.xlu1 %11511 }
0x2ec8   : > { %v11517_v24 = vsel %vm6802_vm11, %v11512_v8, 0 }
0x2ecd   : > { %v17910_v36 = vpop.eup %17909 }
0x2ece   : > { %v11020_v44 = vmul.f32 %v17910_v36, %v11012_v33 }
0x2ed0   : > { %v11027_v21 = vmul.f32 %v15279_v19, %v11020_v44 }
0x2ed2   : > { %v19767_v0 = vadd.f32 %v11029_v40, %v11027_v21 }
0x2ed4   : > { %v11032_v34 = vpack.c.bf16 %v19767_v0, %v19767_v0 }
0x2ed6   : > { %16715 = vmatmul.mubr.msk.bf16.vlgmr.msra.gmra.mxu1 %vm6752_vm9, %v11032_v34 }
0x2ed7   : > { %16732 = vmatprep.mubr.msk.bf16.mxu1 %vm17958_vm10, %v17957_v57  ;;  %16731 = vmatpush3.bf16.xpose.msra.mxu1 %v11182_v52 }
0x2ed8   : > { %16736 = vmatprep.subr.bf16.mxu1 %v17957_v57 }
0x2f96   : > { %v11100_v14 = vpop.f32.mrf.mxu1 }
0x2f97   : > { %v11101_v38 = vadd.f32 %v19789_v46, %v11100_v14 }
0x2f98   : > { %v16716_v50 = vpop.f32.mrf.mxu1 }
0x2f99   : > { %v11176_v41 = vpack.c.bf16 %v11101_v38, %v11101_v38 }
0x2f9a   : > { %v11103_v35 = vpop.f32.mrf.mxu1 }
0x2f9b   : > { %11287 = vrot.lane.b32.xlu0 %v11176_v41, %s17962_s20  ;;  %16733 = vmatmul.mubr.msk.bf16.vlgmr.msra.gmra.mxu1 %vm6802_vm11, %v11176_v41 }
0x2f9c   : > { %v16717_v49 = vpop.f32.mrf.mxu1  ;;  %16738 = vmatprep.mubr.msk.bf16.mxu1 %vm17958_vm10, %v17957_v57 }
0x2f9f   : > { %11398 = vrot.lane.b32.xlu0 %v11176_v41, %s17964_s22 }
0x2fa3   : > { %11509 = vrot.lane.b32.xlu0 %v11176_v41, %s17961_s19 }
0x300d   : > { %v11288_v6 = vpop.permute.xlu0 %11287 }
0x300e   : > { %16745 = vmatmul.mubr.msk.bf16.vlgmr.msra.gmra.mxu0 %vm6802_vm11, %v11288_v6 }
0x300f   : > { %16755 = vmatpush3.bf16.xpose.msra.mxu0 %v11406_v45  ;;  %16756 = vmatprep.mubr.msk.bf16.mxu0 %vm17958_vm10, %v17957_v57 }
0x3010   : > { %16766 = vmatprep.subr.bf16.mxu0 %v17957_v57 }
0x3011   : > { %v11399_v12 = vpop.permute.xlu0 %11398 }
0x3015   : > { %v11510_v20 = vpop.permute.xlu0 %11509 }
0x3016   : > { %16757 = vmatmul.mubr.msk.bf16.vlgmr.msra.gmra.mxu0 %vm6802_vm11, %v11399_v12 }
0x3017   : > { %16767 = vmatpush3.bf16.xpose.msra.mxu0 %v11517_v24  ;;  %16768 = vmatprep.mubr.msk.bf16.mxu0 %vm17958_vm10, %v17957_v57 }
0x3018   : > { %16778 = vmatprep.subr.bf16.mxu0 %v17957_v57 }
0x301e   : > { %16769 = vmatmul.mubr.msk.bf16.vlgmr.msra.gmra.mxu0 %vm6802_vm11, %v11510_v20 }
0x301f   : > { %16786 = vmatprep.mubr.msk.bf16.mxu0 %vm17958_vm10, %v17957_v57 }
0x305b   : > { %v11218_v22 = vpop.f32.mrf.mxu1 }
0x305c   : > { %v11224_v31 = vmul.f32 0.25, %v11218_v22 }
0x305d   : > { %v16734_v18 = vpop.f32.mrf.mxu1 }
0x305e   : > { %v11225_v28 = vsel %vm6850_vm13, %v11224_v31, -inf }
0x305f   : > { %11226 = vmax.xlane.f32.xlu1 %v11225_v28  ;;  %v11221_v7 = vpop.f32.mrf.mxu1 }
0x3061   : > { %v16735_v62 = vpop.f32.mrf.mxu1 }
0x30ce   : > { %v11331_v59 = vpop.f32.mrf.mxu0 }
0x30cf   : > { %v11337_v23 = vmul.f32 0.25, %v11331_v59 }
0x30d0   : > { %v16746_v19 = vpop.f32.mrf.mxu0 }
0x30d1   : > { %v11338_v53 = vsel %vm6850_vm13, %v11337_v23, -inf }
0x30d2   : > { %11339 = vmax.xlane.f32.xlu0 %v11338_v53  ;;  %v11334_v56 = vpop.f32.mrf.mxu0 }
0x30d4   : > { %v16747_v16 = vpop.f32.mrf.mxu0 }
0x30d6   : > { %v11442_v33 = vpop.f32.mrf.mxu0 }
0x30d7   : > { %v11448_v27 = vmul.f32 0.25, %v11442_v33 }
0x30d8   : > { %v16758_v3 = vpop.f32.mrf.mxu0 }
0x30d9   : > { %v11449_v37 = vsel %vm6850_vm13, %v11448_v27, -inf }
0x30da   : > { %11450 = vmax.xlane.f32.xlu0 %v11449_v37  ;;  %v11445_v11 = vpop.f32.mrf.mxu0 }
0x30dc   : > { %v16759_v47 = vpop.f32.mrf.mxu0 }
0x30de   : > { %v11553_v54 = vpop.f32.mrf.mxu0 }
0x30df   : > { %v11559_v25 = vmul.f32 0.25, %v11553_v54 }
0x30e0   : > { %v16770_v36 = vpop.f32.mrf.mxu0 }
0x30e1   : > { %v11560_v44 = vsel %vm6850_vm13, %v11559_v25, -inf }
0x30e2   : > { %v11556_v40 = vpop.f32.mrf.mxu0  ;;  %11561 = vmax.xlane.f32.xlu1 %v11560_v44 }
0x30e4   : > { %v16771_v21 = vpop.f32.mrf.mxu0 }
0x30e8   : > { %v11227_v34 = vpop.xlane.xlu1 %11226 }
0x30e9   : > { %v11228_v9 = vsub.f32 %v11224_v31, %v11227_v34 }
0x30eb   : > { %v11229_v39 = vmul.f32 1.442695, %v11228_v9 }
0x30ed   : > { %17911 = vpow2.f32 %v11229_v39 }
0x30fa   : > { %v17912_v10 = vpop.eup %17911 }
0x30fb   : > { %v11231_v48 = vsel %vm6850_vm13, %v17912_v10, 0.0 }
0x30fc   : > { %11232 = vadd.xlane.f32.xlu0 %v11231_v48 }
0x315b   : > { %v11340_v58 = vpop.xlane.xlu0 %11339 }
0x315c   : > { %v11341_v52 = vsub.f32 %v11337_v23, %v11340_v58 }
0x315e   : > { %v11342_v60 = vmul.f32 1.442695, %v11341_v52 }
0x3160   : > { %17913 = vpow2.f32 %v11342_v60 }
0x3163   : > { %v11451_v2 = vpop.xlane.xlu0 %11450 }
0x3164   : > { %v11452_v61 = vsub.f32 %v11448_v27, %v11451_v2 }
0x3166   : > { %v11453_v14 = vmul.f32 1.442695, %v11452_v61 }
0x3168   : > { %17915 = vpow2.f32 %v11453_v14 }
0x316b   : > { %v11562_v49 = vpop.xlane.xlu1 %11561 }
0x316c   : > { %v11563_v4 = vsub.f32 %v11559_v25, %v11562_v49 }
0x316d   : > { %v17914_v38 = vpop.eup %17913 }
0x316e   : > { %v11344_v50 = vsel %vm6850_vm13, %v17914_v38, 0.0  ;;  %v11564_v6 = vmul.f32 1.442695, %v11563_v4 }
0x316f   : > { %11345 = vadd.xlane.f32.xlu1 %v11344_v50 }
0x3170   : > { %17917 = vpow2.f32 %v11564_v6 }
0x3175   : > { %v17916_v41 = vpop.eup %17915 }
0x3176   : > { %v11455_v35 = vsel %vm6850_vm13, %v17916_v41, 0.0 }
0x3177   : > { %11456 = vadd.xlane.f32.xlu0 %v11455_v35 }
0x317d   : > { %v17918_v45 = vpop.eup %17917 }
0x317e   : > { %v11566_v8 = vsel %vm6850_vm13, %v17918_v45, 0.0 }
0x3180   : > { %11350 = vrot.lane.b32.xlu1 %v19775_v51, %s17959_s17 }
0x3185   : > { %v11233_v12 = vpop.xlane.xlu0 %11232 }
0x3186   : > { %17919 = vrcp.f32 %v11233_v12 }
0x318d   : > { %11238 = vrot.lane.b32.xlu0 %v19775_v51, %s17960_s18 }
0x3191   : > { %11572 = vrot.lane.b32.xlu0 %v19775_v51, %s17965_s23 }
0x3193   : > { %v17920_v20 = vpop.eup %17919 }
0x3195   : > { %11640 = vrot.lane.b32.xlu0 %v19747_v5, %s17960_s18  ;;  %v11235_v5 = vmul.f32 %v17920_v20, %v17912_v10 }
0x3197   : > { %v11236_v7 = vpack.c.bf16 %v11235_v5, %v11235_v5 }
0x31a4   : > { %11567 = vadd.xlane.f32.xlu1 %v11566_v8 }
0x31b5   : > { %11461 = vrot.lane.b32.xlu1 %v19775_v51, %s17963_s21 }
0x31b9   : > { %11642 = vrot.lane.b32.xlu1 %v19742_v29, %s17960_s18 }
0x31bd   : > { %11638 = vrot.lane.b32.xlu1 %v19753_v26, %s17960_s18 }
0x31f8   : > { %v11346_v24 = vpop.xlane.xlu1 %11345 }
0x31f9   : > { %17921 = vrcp.f32 %v11346_v24 }
0x31fc   : > { %v11351_v28 = vpop.permute.xlu1 %11350 }
0x31fd   : > { %v11356_v29 = vsel %vm6866_vm12, %v11351_v28, 0 }
0x3200   : > { %v11457_v22 = vpop.xlane.xlu0 %11456 }
0x3201   : > { %17923 = vrcp.f32 %v11457_v22 }
0x3204   : > { %v11239_v31 = vpop.permute.xlu0 %11238 }
0x3205   : > { %v11244_v18 = vsel %vm6866_vm12, %v11239_v31, 0 }
0x3206   : > { %16737 = vmatpush3.bf16.msra.mxu1 %v11244_v18  ;;  %v17922_v51 = vpop.eup %17921 }
0x3207   : > { %16748 = vmatprep.subr.bf16.mxu1 %v17957_v57  ;;  %v11348_v26 = vmul.f32 %v17922_v51, %v17914_v38 }
0x3208   : > { %v11573_v16 = vpop.permute.xlu0 %11572 }
0x3209   : > { %16739 = vmatmul.mubr.msk.bf16.vlgmr.msra.gmra.mxu1 %vm6850_vm13, %v11236_v7  ;;  %v11349_v62 = vpack.c.bf16 %v11348_v26, %v11348_v26  ;;  %v11578_v27 = vsel %vm6866_vm12, %v11573_v16, 0  ;;  %v17634_v26 = vld [vmem:[%s18028_s12 + $0x478] ss:$80 sps:$4 sm:$0xff]   ;;  %v17645_v16 = vld [vmem:[%s18028_s12 + $0x334] ss:$80 sps:$4 sm:$0xff]  }
0x320a   : > { %16749 = vmatpush3.bf16.msra.mxu1 %v11356_v29  ;;  %16750 = vmatprep.mubr.msk.bf16.mxu1 %vm17958_vm10, %v17957_v57  ;;  %v17633_v29 = vld [vmem:[%s18028_s12 + $0x474] ss:$80 sps:$4 sm:$0xff]  }
0x320b   : > { %16760 = vmatprep.subr.bf16.mxu1 %v17957_v57 }
0x320c   : > { %v11641_v25 = vpop.permute.xlu0 %11640 }
0x320e   : > { %v17924_v59 = vpop.eup %17923 }
0x320f   : > { %v11459_v19 = vmul.f32 %v17924_v59, %v17916_v41  ;;  %v17639_v59 = vld [vmem:[%s18028_s12 + $0x3d4] ss:$80 sps:$4 sm:$0xff]  }
0x3211   : > { %16751 = vmatmul.mubr.msk.bf16.vlgmr.msra.gmra.mxu1 %vm6850_vm13, %v11349_v62  ;;  %v11460_v33 = vpack.c.bf16 %v11459_v19, %v11459_v19  ;;  %v17636_v62 = vld [vmem:[%s18028_s12 + $0x47c] ss:$80 sps:$4 sm:$0xff]   ;;  %v17637_v19 = vld [vmem:[%s18028_s12 + $0x3d0] ss:$80 sps:$4 sm:$0xff]  }
0x3212   : > { %16762 = vmatprep.mubr.msk.bf16.mxu1 %vm17958_vm10, %v17957_v57 }
0x322d   : > { %v11568_v23 = vpop.xlane.xlu1 %11567 }
0x322e   : > { %17925 = vrcp.f32 %v11568_v23  ;;  %v17642_v23 = vld [vmem:[%s18028_s12 + $0x3dc] ss:$80 sps:$4 sm:$0xff]  }
0x3231   : > { %v11462_v53 = vpop.permute.xlu1 %11461 }
0x3232   : > { %v11467_v56 = vsel %vm6866_vm12, %v11462_v53, 0  ;;  %v17640_v53 = vld [vmem:[%s18028_s12 + $0x3d8] ss:$80 sps:$4 sm:$0xff]  }
0x3233   : > { %16761 = vmatpush3.bf16.msra.mxu1 %v11467_v56  ;;  %v19882_v56 = vld [vmem:[%s18033_s15 + $0x1d] ss:$0 sm:$0xff] }
0x3234   : > { %16772 = vmatprep.subr.bf16.mxu1 %v17957_v57 }
0x3235   : > { %v11643_v47 = vpop.permute.xlu1 %11642 }
0x3236   : > { %16763 = vmatmul.mubr.msk.bf16.vlgmr.msra.gmra.mxu1 %vm6850_vm13, %v11460_v33  ;;  %16779 = vmatpush3.bf16.msra.mxu0 %v11643_v47  ;;  %v17648_v33 = vld [vmem:[%s18028_s12 + $0x33c] ss:$80 sps:$4 sm:$0xff]   ;;  %v17649_v47 = vld [vmem:[%s18028_s12 + $0x290] ss:$80 sps:$4 sm:$0xff]  }
0x3237   : > { %16773 = vmatpush3.bf16.msra.mxu1 %v11578_v27  ;;  %16774 = vmatprep.mubr.msk.bf16.mxu1 %vm17958_vm10, %v17957_v57  ;;  %v17643_v27 = vld [vmem:[%s18028_s12 + $0x330] ss:$80 sps:$4 sm:$0xff]  }
0x3238   : > { %16780 = vmatprep.subr.bf16.mxu0 %v17957_v57  ;;  %12188 = vmatprep.subr.bf16.mxu1 %v17633_v29  ;;  %v17682_v29 = vld [vmem:[%s18028_s12 + $0x498] ss:$80 sps:$4 sm:$0xff]  }
0x3239   : > { %v11639_v40 = vpop.permute.xlu1 %11638 }
0x323a   : > { %16781 = vmatpush3.bf16.msra.mxu0 %v11641_v25  ;;  %v17657_v25 = vld [vmem:[%s18028_s12 + $0x484] ss:$80 sps:$4 sm:$0xff]  }
0x323b   : > { %v17926_v3 = vpop.eup %17925  ;;  %16782 = vmatprep.subr.bf16.mxu0 %v17957_v57 }
0x323c   : > { %v11570_v37 = vmul.f32 %v17926_v3, %v17918_v45  ;;  %v17646_v3 = vld [vmem:[%s18028_s12 + $0x338] ss:$80 sps:$4 sm:$0xff]  }
0x323e   : > { %v11571_v11 = vpack.c.bf16 %v11570_v37, %v11570_v37  ;;  %16783 = vmatpush3.bf16.msra.mxu0 %v11639_v40  ;;  %v17651_v37 = vld [vmem:[%s18028_s12 + $0x294] ss:$80 sps:$4 sm:$0xff]  }
0x323f   : > { %16784 = vmatprep.subr.bf16.mxu0 %v17957_v57 }
0x3240   : > { %16775 = vmatmul.mubr.msk.bf16.vlgmr.msra.gmra.mxu1 %vm6850_vm13, %v11571_v11  ;;  %v17654_v11 = vld [vmem:[%s18028_s12 + $0x29c] ss:$80 sps:$4 sm:$0xff]  }
0x3241   : > { %12212 = vmatprep.mubr.bf16.mxu1 %v17956_v1 }
0x32c9   : > { %v11280_v54 = vpop.f32.mrf.mxu1 }
0x32cb   : > { %v16740_v36 = vpop.f32.mrf.mxu1 }
0x32cc   : > { %v17660_v36 = vld [vmem:[%s18028_s12 + $0x48c] ss:$80 sps:$4 sm:$0xff]  }
0x32cd   : > { %v11283_v44 = vpop.f32.mrf.mxu1 }
0x32ce   : > { %v15249_v44 = vld [vmem:[%s18033_s15 + $0x1f] sm:$0xff] }
0x32cf   : > { %v16741_v21 = vpop.f32.mrf.mxu1  ;;  %v11730_v40 = vrot.slane %v15249_v44, %v19026_v30 }
0x32d0   : > { %v11726_v21 = vrot.slane %v15249_v44, %v19013_v55 }
0x32d1   : > { %v11392_v34 = vpop.f32.mrf.mxu1 }
0x32d2   : > { %11621 = vrot.lane.b32.xlu0 %v11392_v34, %s17965_s23  ;;  %v11734_v34 = vrot.slane %v15249_v44, %v19286_v15 }
0x32d3   : > { %v16752_v9 = vpop.f32.mrf.mxu1 }
0x32d4   : > { %v11742_v9 = vrot.slane %v15249_v44, %v19289_v17 }
0x32d5   : > { %v11395_v39 = vpop.f32.mrf.mxu1 }
0x32d6   : > { %v11738_v39 = vrot.slane %v15249_v44, %v19297_v63 }
0x32d7   : > { %v16753_v10 = vpop.f32.mrf.mxu1 }
0x32d8   : > { %v11750_v10 = vrot.slane %v15249_v44, %v19301_v13 }
0x32f6   : > { %v11503_v48 = vpop.f32.mrf.mxu1 }
0x32f7   : > { %11625 = vrot.lane.b32.xlu1 %v11503_v48, %s17963_s21  ;;  %v15250_v48 = vld [vmem:[%s18033_s15 + $0x27] sm:$0xff] }
0x32f8   : > { %v16764_v58 = vpop.f32.mrf.mxu1 }
0x32f9   : > { %v11746_v58 = vrot.slane %v15249_v44, %v19307_v32 }
0x32fa   : > { %v11506_v52 = vpop.f32.mrf.mxu1 }
0x32fb   : > { %11636 = vrot.lane.b32.xlu1 %v19763_v43, %s17960_s18  ;;  %v11758_v52 = vrot.slane %v15250_v48, %v19013_v55  ;;  %v11770_v55 = vrot.slane %v15250_v48, %v19297_v63 }
0x32fc   : > { %v16765_v60 = vpop.f32.mrf.mxu1 }
0x32fd   : > { %v11754_v60 = vrot.slane %v15249_v44, %v19315_v42  ;;  %v17714_v44 = vld [vmem:[%s18028_s12 + $0x40c] ss:$80 sps:$4 sm:$0xff]  }
0x3300   : > { %v11614_v2 = vpop.f32.mrf.mxu1 }
0x3301   : > { %11629 = vrot.lane.b32.xlu0 %v11614_v2, %s17959_s17  ;;  %v11766_v2 = vrot.slane %v15250_v48, %v19286_v15  ;;  %v11778_v15 = vrot.slane %v15250_v48, %v19307_v32 }
0x3302   : > { %v16776_v61 = vpop.f32.mrf.mxu1 }
0x3303   : > { %v11762_v61 = vrot.slane %v15250_v48, %v19026_v30  ;;  %v15302_v30 = vld [vmem:[%s18033_s15 + $0x2f] ss:$0 sm:$0xff] }
0x3304   : > { %v11617_v57 = vpop.f32.mrf.mxu1 }
0x3305   : > { %11648 = vrot.lane.b32.xlu0 %v19789_v46, %s17960_s18  ;;  %v11774_v57 = vrot.slane %v15250_v48, %v19289_v17  ;;  %v11786_v17 = vrot.slane %v15250_v48, %v19315_v42 }
0x3306   : > { %v16777_v14 = vpop.f32.mrf.mxu1 }
0x3307   : > { %v11782_v14 = vrot.slane %v15250_v48, %v19301_v13  ;;  %v17723_v48 = vld [vmem:[%s18028_s12 + $0x2c4] ss:$80 sps:$4 sm:$0xff]  }
0x3344   : > { %v11622_v41 = vpop.permute.xlu0 %11621 }
0x3345   : > { %v11632_v35 = vsel %vm6802_vm11, %v11280_v54, %v11622_v41  ;;  %v17652_v54 = vld [vmem:[%s18028_s12 + $0x298] ss:$80 sps:$4 sm:$0xff]  }
0x3369   : > { %v11626_v38 = vpop.permute.xlu1 %11625 }
0x336a   : > { %v11633_v49 = vsel %vm7257_vm14, %v11632_v35, %v11626_v38 }
0x336d   : > { %v11637_v50 = vpop.permute.xlu1 %11636 }
0x336e   : > { %16785 = vmatpush3.bf16.msra.mxu0 %v11637_v50 }
0x336f   : > { %12229 = vmatprep.subr.bf16.mxu0 %v17636_v62  ;;  %v17690_v62 = vld [vmem:[%s18028_s12 + $0x3fc] ss:$80 sps:$4 sm:$0xff]  }
0x3373   : > { %v11630_v4 = vpop.permute.xlu0 %11629 }
0x3374   : > { %v11634_v43 = vsel %vm7259_vm15, %v11633_v49, %v11630_v4  ;;  %v17655_v49 = vld [vmem:[%s18028_s12 + $0x480] ss:$80 sps:$4 sm:$0xff]   ;;  %v17658_v4 = vld [vmem:[%s18028_s12 + $0x488] ss:$80 sps:$4 sm:$0xff]  }
0x3375   : > { %v11635_v6 = vpack.c.bf16 %v11634_v43, %v11634_v43 }
0x3377   : > { %16787 = vmatmul.mubr.msk.bf16.vlgmr.msra.gmra.mxu0 %vm6752_vm9, %v11635_v6  ;;  %v11649_v45 = vpop.permute.xlu0 %11648  ;;  %v17663_v6 = vld [vmem:[%s18028_s12 + $0x3e4] ss:$80 sps:$4 sm:$0xff]  }
0x3378   : > { %12253 = vmatprep.mubr.bf16.mxu0 %v17956_v1  ;;  %12230 = vmatpush1.bf16.msra.mxu0 %v17634_v26  ;;  %v17687_v26 = vld [vmem:[%s18028_s12 + $0x3f4] ss:$80 sps:$4 sm:$0xff]  }
0x3379   : > { %12231 = vmatprep.subr.bf16.mxu0 %v17642_v23  ;;  %v17688_v23 = vld [vmem:[%s18028_s12 + $0x3f8] ss:$80 sps:$4 sm:$0xff]  }
0x337c   : > { %12232 = vmatpush1.bf16.msra.mxu0 %v17640_v53  ;;  %v17696_v53 = vld [vmem:[%s18028_s12 + $0x35c] ss:$80 sps:$4 sm:$0xff]  }
0x337d   : > { %12233 = vmatprep.subr.bf16.mxu0 %v17648_v33  ;;  %v17699_v33 = vld [vmem:[%s18028_s12 + $0x2b4] ss:$80 sps:$4 sm:$0xff]  }
0x3380   : > { %12234 = vmatpush1.bf16.msra.mxu0 %v17646_v3  ;;  %v17697_v3 = vld [vmem:[%s18028_s12 + $0x2b0] ss:$80 sps:$4 sm:$0xff]  }
0x3381   : > { %12235 = vmatprep.subr.bf16.mxu0 %v17654_v11  ;;  %v17705_v11 = vld [vmem:[%s18028_s12 + $0x4a4] ss:$80 sps:$4 sm:$0xff]  }
0x3384   : > { %12236 = vmatpush1.bf16.msra.mxu0 %v17652_v54  ;;  %v17703_v54 = vld [vmem:[%s18028_s12 + $0x4a0] ss:$80 sps:$4 sm:$0xff]  }
0x3385   : > { %12311 = vmatprep.subr.bf16.mxu0 %v17660_v36  ;;  %v17711_v36 = vld [vmem:[%s18028_s12 + $0x404] ss:$80 sps:$4 sm:$0xff]  }
0x3437   : > { %v11688_v46 = vpop.f32.mrf.mxu0 }
0x3438   : > { %v11689_v8 = vadd.f32 %v11688_v46, %v11649_v45  ;;  %v17666_v45 = vld [vmem:[%s18028_s12 + $0x3ec] ss:$80 sps:$4 sm:$0xff]   ;;  %v17661_v46 = vld [vmem:[%s18028_s12 + $0x3e0] ss:$80 sps:$4 sm:$0xff]  }
0x3439   : > { %v16788_v12 = vpop.f32.mrf.mxu0 }
0x343a   : > { %v11694_v24 = vadd.f32 %v11689_v8, %v19767_v0  ;;  %v17631_v0 = vld [vmem:[%s18028_s12 + $0x470] ss:$80 sps:$4 sm:$0xff]   ;;  %v17664_v8 = vld [vmem:[%s18028_s12 + $0x3e8] ss:$80 sps:$4 sm:$0xff]   ;;  %v17669_v12 = vld [vmem:[%s18028_s12 + $0x344] ss:$80 sps:$4 sm:$0xff]  }
0x343b   : > { %v11691_v20 = vpop.f32.mrf.mxu0  ;;  %12189 = vmatpush1.bf16.msra.mxu1 %v17631_v0  ;;  %v17679_v0 = vld [vmem:[%s18028_s12 + $0x490] ss:$80 sps:$4 sm:$0xff]  }
0x343c   : > { %v11695_v22 = vsel %vm6752_vm9, %v11694_v24, 0.0  ;;  %12190 = vmatprep.subr.bf16.mxu1 %v17639_v59  ;;  %v17667_v20 = vld [vmem:[%s18028_s12 + $0x340] ss:$80 sps:$4 sm:$0xff]  }
0x343d   : > { %v16789_v5 = vpop.f32.mrf.mxu0  ;;  %11696 = vadd.xlane.f32.xlu1 %v11695_v22  ;;  %v17670_v22 = vld [vmem:[%s18028_s12 + $0x348] ss:$80 sps:$4 sm:$0xff]   ;;  %v17685_v59 = vld [vmem:[%s18028_s12 + $0x3f0] ss:$80 sps:$4 sm:$0xff]  }
0x343e   : > { %v17675_v5 = vld [vmem:[%s18028_s12 + $0x2a4] ss:$80 sps:$4 sm:$0xff]  }
0x343f   : > { %12191 = vmatpush1.bf16.msra.mxu1 %v17637_v19  ;;  %v17693_v19 = vld [vmem:[%s18028_s12 + $0x354] ss:$80 sps:$4 sm:$0xff]  }
0x3440   : > { %12192 = vmatprep.subr.bf16.mxu1 %v17645_v16  ;;  %v17694_v16 = vld [vmem:[%s18028_s12 + $0x358] ss:$80 sps:$4 sm:$0xff]  }
0x3443   : > { %12193 = vmatpush1.bf16.msra.mxu1 %v17643_v27  ;;  %v17702_v27 = vld [vmem:[%s18028_s12 + $0x2bc] ss:$80 sps:$4 sm:$0xff]  }
0x3444   : > { %12194 = vmatprep.subr.bf16.mxu1 %v17651_v37  ;;  %v17700_v37 = vld [vmem:[%s18028_s12 + $0x2b8] ss:$80 sps:$4 sm:$0xff]  }
0x3447   : > { %12195 = vmatpush1.bf16.msra.mxu1 %v17649_v47  ;;  %v17708_v47 = vld [vmem:[%s18028_s12 + $0x4ac] ss:$80 sps:$4 sm:$0xff]  }
0x3448   : > { %12270 = vmatprep.subr.bf16.mxu1 %v17657_v25  ;;  %v17706_v25 = vld [vmem:[%s18028_s12 + $0x4a8] ss:$80 sps:$4 sm:$0xff]  }
0x344e   : > { %12113 = vrot.lane.b32.xlu1 %v11730_v40, %s17960_s18  ;;  %v17709_v40 = vld [vmem:[%s18028_s12 + $0x400] ss:$80 sps:$4 sm:$0xff]  }
0x3452   : > { %12115 = vrot.lane.b32.xlu1 %v11734_v34, %s17960_s18  ;;  %v17717_v34 = vld [vmem:[%s18028_s12 + $0x364] ss:$80 sps:$4 sm:$0xff]  }
0x3456   : > { %12117 = vrot.lane.b32.xlu1 %v11738_v39, %s17960_s18  ;;  %v17715_v39 = vld [vmem:[%s18028_s12 + $0x360] ss:$80 sps:$4 sm:$0xff]  }
0x345a   : > { %12121 = vrot.lane.b32.xlu1 %v11746_v58, %s17960_s18  ;;  %v17726_v58 = vld [vmem:[%s18028_s12 + $0x2cc] ss:$80 sps:$4 sm:$0xff]  }
0x345e   : > { %12125 = vrot.lane.b32.xlu1 %v11754_v60, %s17960_s18  ;;  %v17724_v60 = vld [vmem:[%s18028_s12 + $0x2c8] ss:$80 sps:$4 sm:$0xff]  }
0x3462   : > { %12129 = vrot.lane.b32.xlu1 %v11762_v61, %s17960_s18  ;;  %v17729_v61 = vld [vmem:[%s18023_s8 + $0x438] sm:$0xff]  }
0x3466   : > { %12133 = vrot.lane.b32.xlu1 %v11770_v55, %s17960_s18  ;;  %v17731_v55 = vld [vmem:[%s18023_s8 + $0x470] sm:$0xff]  }
0x346a   : > { %12137 = vrot.lane.b32.xlu1 %v11778_v15, %s17960_s18  ;;  %v17733_v15 = vld [vmem:[%s18023_s8 + $0x430] sm:$0xff]  }
0x346e   : > { %12141 = vrot.lane.b32.xlu1 %v11786_v17, %s17960_s18  ;;  %v17735_v17 = vld [vmem:[%s18023_s8 + $0x468] sm:$0xff]  }
0x34c6   : > { %v11697_v31 = vpop.xlane.xlu1 %11696 }
0x34c7   : > { %v11698_v18 = vmul.f32 0.015625, %v11697_v31  ;;  %v17678_v31 = vld [vmem:[%s18028_s12 + $0x2ac] ss:$80 sps:$4 sm:$0xff]  }
0x34c9   : > { %v19868_v28 = vsub.f32 %v11694_v24, %v11698_v18  ;;  %v17672_v24 = vld [vmem:[%s18028_s12 + $0x34c] ss:$80 sps:$4 sm:$0xff]   ;;  %v17673_v18 = vld [vmem:[%s18028_s12 + $0x2a0] ss:$80 sps:$4 sm:$0xff]  }
0x34cb   : > { %v11700_v7 = vmul.f32 %v19868_v28, %v19868_v28 }
0x34cd   : > { %v11701_v51 = vsel %vm6752_vm9, %v11700_v7, 0.0  ;;  %v17681_v7 = vld [vmem:[%s18028_s12 + $0x494] ss:$80 sps:$4 sm:$0xff]  }
0x34ce   : > { %11702 = vadd.xlane.f32.xlu0 %v11701_v51  ;;  %v17684_v51 = vld [vmem:[%s18028_s12 + $0x49c] ss:$80 sps:$4 sm:$0xff]  }
0x34e4   : > { %11715 = vrot.lane.b32.xlu0 %v19882_v56, %s17960_s18 }
0x34e8   : > { %12111 = vrot.lane.b32.xlu0 %v11726_v21, %s17960_s18  ;;  %v17712_v21 = vld [vmem:[%s18028_s12 + $0x408] ss:$80 sps:$4 sm:$0xff]  }
0x34ec   : > { %12119 = vrot.lane.b32.xlu0 %v11742_v9, %s17960_s18  ;;  %v17720_v9 = vld [vmem:[%s18028_s12 + $0x36c] ss:$80 sps:$4 sm:$0xff]  }
0x34f0   : > { %12123 = vrot.lane.b32.xlu0 %v11750_v10, %s17960_s18  ;;  %v17718_v10 = vld [vmem:[%s18028_s12 + $0x368] ss:$80 sps:$4 sm:$0xff]  }
0x34f4   : > { %12127 = vrot.lane.b32.xlu0 %v11758_v52, %s17960_s18  ;;  %v17721_v52 = vld [vmem:[%s18028_s12 + $0x2c0] ss:$80 sps:$4 sm:$0xff]  }
0x34f8   : > { %12131 = vrot.lane.b32.xlu0 %v11766_v2, %s17960_s18  ;;  %v17728_v2 = vld [vmem:[%s18023_s8 + $0x4f8] sm:$0xff]  }
0x34fc   : > { %12135 = vrot.lane.b32.xlu0 %v11774_v57, %s17960_s18  ;;  %v17730_v57 = vld [vmem:[%s18023_s8 + $0x4b8] sm:$0xff]  }
0x3500   : > { %12139 = vrot.lane.b32.xlu0 %v11782_v14, %s17960_s18  ;;  %v17732_v14 = vld [vmem:[%s18023_s8 + $0x4f0] sm:$0xff]  }
0x3504   : > { %12143 = vrot.lane.b32.xlu0 %v15302_v30, %s17960_s18  ;;  %v17734_v30 = vld [vmem:[%s18023_s8 + $0x4b0] sm:$0xff]  }
0x3557   : > { %v11703_v63 = vpop.xlane.xlu0 %11702 }
0x3558   : > { %v11704_v13 = vmul.f32 0.015625, %v11703_v63  ;;  %v17736_v63 = vld [vmem:[%s18023_s8 + $0x4e8] sm:$0xff]  }
0x355a   : > { %v11705_v38 = vadd.f32 1e-05, %v11704_v13  ;;  %v17737_v13 = vld [vmem:[%s18023_s8 + $0x428] sm:$0xff]  }
0x355b   : > { %v11716_v41 = vpop.permute.xlu0 %11715 }
0x355c   : > { %17927 = vrsqrt.f32 %v11705_v38  ;;  %v17738_v38 = vld [vmem:[%s18023_s8 + $0x4a8] sm:$0xff]  }
0x3569   : > { %v17928_v32 = vpop.eup %17927 }
0x356a   : > { %v11707_v50 = vmul.f32 %v17928_v32, %v19868_v28  ;;  %v17676_v28 = vld [vmem:[%s18028_s12 + $0x2a8] ss:$80 sps:$4 sm:$0xff]   ;;  %v17739_v32 = vld [vmem:[%s18023_s8 + $0x460] sm:$0xff]  }
0x356c   : > { %v11714_v35 = vmul.f32 %v19882_v56, %v11707_v50  ;;  %v17691_v56 = vld [vmem:[%s18028_s12 + $0x350] ss:$80 sps:$4 sm:$0xff]  }
0x356d   : > { %v17740_v50 = vld [vmem:[%s18023_s8 + $0x4e0] sm:$0xff]  }
0x356e   : > { %v19934_v42 = vadd.f32 %v11716_v41, %v11714_v35  ;;  %v17741_v41 = vld [vmem:[%s18023_s8 + $0x420] sm:$0xff]  }
0x356f   : > { %v17742_v35 = vld [vmem:[%s18023_s8 + $0x4a0] sm:$0xff]  }
0x3570   : > { %v19940_v43 = vpack.c.bf16 %v19934_v42, %v19934_v42 }
0x3572   : > { %15367 = vmatmul.mubr.msk.bf16.vlgmr.msra.gmra.mxu1 %vm6752_vm9, %v19940_v43  ;;  %15368 = vmatmul.mubr.msk.bf16.vlgmr.msra.gmra.mxu0 %vm6752_vm9, %v19940_v43 }
0x3573   : > { %12271 = vmatpush1.bf16.msra.mxu1 %v17655_v49  ;;  %12312 = vmatpush1.bf16.msra.mxu0 %v17658_v4  ;;  %v17743_v49 = vld [vmem:[%s18023_s8 + $0x458] sm:$0xff]  }
0x3574   : > { %12272 = vmatprep.subr.bf16.mxu1 %v17663_v6  ;;  %12313 = vmatprep.subr.bf16.mxu0 %v17666_v45  ;;  %v17744_v4 = vld [vmem:[%s18023_s8 + $0x4d8] sm:$0xff]   ;;  %v17747_v45 = vld [vmem:[%s18023_s8 + $0x450] sm:$0xff]  }
0x3575   : > { %12294 = vmatprep.mubr.bf16.mxu1 %v17956_v1  ;;  %12335 = vmatprep.mubr.bf16.mxu0 %v17956_v1  ;;  %v17746_v6 = vld [vmem:[%s18023_s8 + $0x498] sm:$0xff]  }
0x3577   : > { %12273 = vmatpush1.bf16.msra.mxu1 %v17661_v46  ;;  %12314 = vmatpush1.bf16.msra.mxu0 %v17664_v8  ;;  %v17748_v46 = vld [vmem:[%s18023_s8 + $0x4d0] sm:$0xff]  }
0x3578   : > { %12274 = vmatprep.subr.bf16.mxu1 %v17669_v12  ;;  %12315 = vmatprep.subr.bf16.mxu0 %v17672_v24  ;;  %v17749_v8 = vld [vmem:[%s18023_s8 + $0x410] sm:$0xff]   ;;  %v17751_v24 = vld [vmem:[%s18023_s8 + $0x448] sm:$0xff]  }
0x3579   : > { %v17750_v12 = vld [vmem:[%s18023_s8 + $0x490] sm:$0xff]  }
0x357b   : > { %12275 = vmatpush1.bf16.msra.mxu1 %v17667_v20  ;;  %12316 = vmatpush1.bf16.msra.mxu0 %v17670_v22  ;;  %v17752_v20 = vld [vmem:[%s18023_s8 + $0x4c8] sm:$0xff]  }
0x357c   : > { %12276 = vmatprep.subr.bf16.mxu1 %v17675_v5  ;;  %12317 = vmatprep.subr.bf16.mxu0 %v17678_v31  ;;  %v17753_v22 = vld [vmem:[%s18023_s8 + $0x408] sm:$0xff]   ;;  %v17755_v31 = vld [vmem:[%s18023_s8 + $0x440] sm:$0xff]  }
0x357d   : > { %v17754_v5 = vld [vmem:[%s18023_s8 + $0x488] sm:$0xff]  }
0x357f   : > { %12277 = vmatpush1.bf16.msra.mxu1 %v17673_v18  ;;  %12318 = vmatpush1.bf16.msra.mxu0 %v17676_v28  ;;  %v17756_v18 = vld [vmem:[%s18023_s8 + $0x4c0] sm:$0xff]  }
0x3580   : > { %12352 = vmatprep.subr.bf16.mxu1 %v17681_v7  ;;  %12393 = vmatprep.subr.bf16.mxu0 %v17684_v51  ;;  %v17757_v28 = vld [vmem:[%s18023_s8 + $0x400] sm:$0xff]   ;;  %v17759_v51 = vld [vmem:[%s18023_s8 + $0x578] sm:$0xff]  }
0x3581   : > { %v17758_v7 = vld [vmem:[%s18023_s8 + $0x480] sm:$0xff]  }
0x3582   : > { %15369 = vmatmul.mubr.msk.bf16.vlgmr.msra.gmra.mxu1 %vm6752_vm9, %v19940_v43  ;;  %15370 = vmatmul.mubr.msk.bf16.vlgmr.msra.gmra.mxu0 %vm6752_vm9, %v19940_v43 }
0x3583   : > { %12353 = vmatpush1.bf16.msra.mxu1 %v17679_v0  ;;  %12394 = vmatpush1.bf16.msra.mxu0 %v17682_v29  ;;  %v17760_v0 = vld [vmem:[%s18023_s8 + $0x5f8] sm:$0xff]   ;;  %v12114_v29 = vpop.permute.xlu1 %12113 }
0x3584   : > { %12354 = vmatprep.subr.bf16.mxu1 %v17687_v26  ;;  %12395 = vmatprep.subr.bf16.mxu0 %v17690_v62  ;;  %v12112_v62 = vpop.permute.xlu0 %12111 }
0x3585   : > { %12376 = vmatprep.mubr.bf16.mxu1 %v17956_v1  ;;  %12417 = vmatprep.mubr.bf16.mxu0 %v17956_v1 }
0x3587   : > { %12355 = vmatpush1.bf16.msra.mxu1 %v17685_v59  ;;  %12396 = vmatpush1.bf16.msra.mxu0 %v17688_v23  ;;  %v12116_v26 = vpop.permute.xlu1 %12115 }
0x3588   : > { %12356 = vmatprep.subr.bf16.mxu1 %v17693_v19  ;;  %12397 = vmatprep.subr.bf16.mxu0 %v17696_v53  ;;  %v20042_v23 = vpop.permute.xlu0 %12119  ;;  %v12145_v53 = vsel %vm6752_vm9, %v12112_v62, %v12114_v29  ;;  %v17777_v62 = vld [vmem:[%s18023_s8 + $0x598] sm:$0xff]  }
0x358b   : > { %12357 = vmatpush1.bf16.msra.mxu1 %v17691_v56  ;;  %12398 = vmatpush1.bf16.msra.mxu0 %v17694_v16  ;;  %v12118_v59 = vpop.permute.xlu1 %12117 }
0x358c   : > { %12358 = vmatprep.subr.bf16.mxu1 %v17699_v33  ;;  %12399 = vmatprep.subr.bf16.mxu0 %v17702_v27  ;;  %v12147_v19 = vsel %vm6752_vm9, %v12116_v26, %v12118_v59  ;;  %v12148_v33 = vsel %vm6752_vm9, %v12118_v59, %v20042_v23  ;;  %v17778_v59 = vld [vmem:[%s18023_s8 + $0x518] sm:$0xff]  }
0x358f   : > { %12359 = vmatpush1.bf16.msra.mxu1 %v17697_v3  ;;  %12400 = vmatpush1.bf16.msra.mxu0 %v17700_v37  ;;  %v12146_v37 = vsel %vm6752_vm9, %v12114_v29, %v12116_v26 }
0x3590   : > { %12434 = vmatprep.subr.bf16.mxu1 %v17705_v11  ;;  %12475 = vmatprep.subr.bf16.mxu0 %v17708_v47 }
0x3592   : > { %15371 = vmatmul.mubr.msk.bf16.vlgmr.msra.gmra.mxu1 %vm6752_vm9, %v19940_v43  ;;  %15372 = vmatmul.mubr.msk.bf16.vlgmr.msra.gmra.mxu0 %vm6752_vm9, %v19940_v43 }
0x3593   : > { %12435 = vmatpush1.bf16.msra.mxu1 %v17703_v54  ;;  %12476 = vmatpush1.bf16.msra.mxu0 %v17706_v25 }
0x3594   : > { %12436 = vmatprep.subr.bf16.mxu1 %v17711_v36  ;;  %12477 = vmatprep.subr.bf16.mxu0 %v17714_v44 }
0x3595   : > { %12458 = vmatprep.mubr.bf16.mxu1 %v17956_v1  ;;  %12499 = vmatprep.mubr.bf16.mxu0 %v17956_v1  ;;  %v17727_v1 = vld [vmem:[%s18023_s8 + $0x478] sm:$0xff]  }
0x3597   : > { %12437 = vmatpush1.bf16.msra.mxu1 %v17709_v40  ;;  %12478 = vmatpush1.bf16.msra.mxu0 %v17712_v21 }
0x3598   : > { %12438 = vmatprep.subr.bf16.mxu1 %v17717_v34  ;;  %12479 = vmatprep.subr.bf16.mxu0 %v17720_v9 }
0x359b   : > { %12439 = vmatpush1.bf16.msra.mxu1 %v17715_v39  ;;  %12480 = vmatpush1.bf16.msra.mxu0 %v17718_v10 }
0x359c   : > { %12440 = vmatprep.subr.bf16.mxu1 %v17723_v48  ;;  %12481 = vmatprep.subr.bf16.mxu0 %v17726_v58 }
0x359f   : > { %12441 = vmatpush1.bf16.msra.mxu1 %v17721_v52  ;;  %12482 = vmatpush1.bf16.msra.mxu0 %v17724_v60  ;;  %v17761_v52 = vld [vmem:[%s18023_s8 + $0x538] sm:$0xff]  }
0x35a0   : > { %16193 = vmatprep.subr.bf16.mxu1 %v17727_v1  ;;  %16215 = vmatprep.subr.bf16.mxu0 %v17728_v2  ;;  %v17762_v60 = vld [vmem:[%s18023_s8 + $0x5b8] sm:$0xff]   ;;  %v20051_v1 = vpop.permute.xlu0 %12123 }
0x35a2   : > { %15373 = vmatmul.mubr.msk.bf16.vlgmr.msra.gmra.mxu1 %vm6752_vm9, %v19940_v43  ;;  %15374 = vmatmul.mubr.msk.bf16.vlgmr.msra.gmra.mxu0 %vm6752_vm9, %v19940_v43  ;;  %v17745_v43 = vld [vmem:[%s18023_s8 + $0x418] sm:$0xff]  }
0x35a3   : > { %16194 = vmatpush3.bf16.msra.mxu1 %v17729_v61  ;;  %16216 = vmatpush3.bf16.msra.mxu0 %v17730_v57  ;;  %v17763_v57 = vld [vmem:[%s18023_s8 + $0x570] sm:$0xff]  }
0x35a4   : > { %16195 = vmatprep.subr.bf16.mxu1 %v17731_v55  ;;  %16217 = vmatprep.subr.bf16.mxu0 %v17732_v14  ;;  %v17764_v55 = vld [vmem:[%s18023_s8 + $0x5f0] sm:$0xff]   ;;  %v20055_v14 = vpop.permute.xlu1 %12121 }
0x35a7   : > { %16196 = vmatpush3.bf16.msra.mxu1 %v17733_v15  ;;  %16218 = vmatpush3.bf16.msra.mxu0 %v17734_v30  ;;  %v17765_v15 = vld [vmem:[%s18023_s8 + $0x5b0] sm:$0xff]  }
0x35a8   : > { %16197 = vmatprep.subr.bf16.mxu1 %v17735_v17  ;;  %16219 = vmatprep.subr.bf16.mxu0 %v17736_v63  ;;  %v17766_v30 = vld [vmem:[%s18023_s8 + $0x530] sm:$0xff]   ;;  %v17767_v17 = vld [vmem:[%s18023_s8 + $0x568] sm:$0xff]  }
0x35a9   : > { %v17768_v63 = vld [vmem:[%s18023_s8 + $0x5e8] sm:$0xff]  }
0x35ab   : > { %16198 = vmatpush3.bf16.msra.mxu1 %v17737_v13  ;;  %16220 = vmatpush3.bf16.msra.mxu0 %v17738_v38  ;;  %v20061_v13 = vpop.permute.xlu0 %12127  ;;  %v12126_v38 = vpop.permute.xlu1 %12125 }
0x35ac   : > { %16199 = vmatprep.subr.bf16.mxu1 %v17739_v32  ;;  %16221 = vmatprep.subr.bf16.mxu0 %v17740_v50  ;;  %v17769_v32 = vld [vmem:[%s18023_s8 + $0x528] sm:$0xff]  }
0x35ad   : > { %v17770_v50 = vld [vmem:[%s18023_s8 + $0x5a8] sm:$0xff]  }
0x35af   : > { %16200 = vmatpush3.bf16.msra.mxu1 %v17741_v41  ;;  %16222 = vmatpush3.bf16.msra.mxu0 %v17742_v35 }
0x35b0   : > { %16201 = vmatprep.subr.bf16.mxu1 %v17743_v49  ;;  %16223 = vmatprep.subr.bf16.mxu0 %v17744_v4  ;;  %v12150_v49 = vsel %vm6752_vm9, %v20055_v14, %v20051_v1  ;;  %v12152_v4 = vsel %vm6752_vm9, %v12126_v38, %v20061_v13 }
0x35b3   : > { %16202 = vmatpush3.bf16.msra.mxu1 %v17745_v43  ;;  %16224 = vmatpush3.bf16.msra.mxu0 %v17746_v6  ;;  %v17771_v43 = vld [vmem:[%s18023_s8 + $0x560] sm:$0xff]  }
0x35b4   : > { %16203 = vmatprep.subr.bf16.mxu1 %v17747_v45  ;;  %16225 = vmatprep.subr.bf16.mxu0 %v17748_v46  ;;  %v17772_v6 = vld [vmem:[%s18023_s8 + $0x5e0] sm:$0xff]  }
0x35b7   : > { %16204 = vmatpush3.bf16.msra.mxu1 %v17749_v8  ;;  %16226 = vmatpush3.bf16.msra.mxu0 %v17750_v12 }
0x35b8   : > { %16205 = vmatprep.subr.bf16.mxu1 %v17751_v24  ;;  %16227 = vmatprep.subr.bf16.mxu0 %v17752_v20  ;;  %v17773_v24 = vld [vmem:[%s18023_s8 + $0x520] sm:$0xff]  }
0x35b9   : > { %v17774_v20 = vld [vmem:[%s18023_s8 + $0x5a0] sm:$0xff]  }
0x35bb   : > { %16206 = vmatpush3.bf16.msra.mxu1 %v17753_v22  ;;  %16228 = vmatpush3.bf16.msra.mxu0 %v17754_v5 }
0x35bc   : > { %16207 = vmatprep.subr.bf16.mxu1 %v17755_v31  ;;  %16229 = vmatprep.subr.bf16.mxu0 %v17756_v18  ;;  %v17775_v31 = vld [vmem:[%s18023_s8 + $0x558] sm:$0xff]  }
0x35bd   : > { %v17776_v18 = vld [vmem:[%s18023_s8 + $0x5d8] sm:$0xff]  }
0x35bf   : > { %16208 = vmatpush3.bf16.msra.mxu1 %v17757_v28  ;;  %16230 = vmatpush3.bf16.msra.mxu0 %v17758_v7 }
0x35c0   : > { %16237 = vmatprep.subr.bf16.mxu1 %v17759_v51  ;;  %16259 = vmatprep.subr.bf16.mxu0 %v17760_v0 }
0x3632   : > { %v12214_v56 = vpop.f32.mrf.mxu1  ;;  %v12255_v16 = vpop.f32.mrf.mxu0 }
0x3633   : > { %v12215_v27 = vadd.f32 %v12214_v56, %v12145_v53  ;;  %v12256_v3 = vadd.f32 %v12255_v16, %v12147_v19  ;;  %v20078_v19 = vpop.permute.xlu0 %12131  ;;  %v17779_v53 = vld [vmem:[%s18023_s8 + $0x550] sm:$0xff]   ;;  %v20082_v16 = vpop.permute.xlu1 %12129 }
0x3634   : > { %v12216_v11 = vpop.f32.mrf.mxu1  ;;  %v12257_v47 = vpop.f32.mrf.mxu0  ;;  %v17780_v56 = vld [vmem:[%s18023_s8 + $0x5d0] sm:$0xff]  }
0x3635   : > { %v12217_v54 = vadd.f32 %v12216_v11, %v12146_v37  ;;  %v12258_v25 = vadd.f32 %v12257_v47, %v12148_v33  ;;  %v12508_v36 = vmax.f32 %v12215_v27, 0.0  ;;  %v12510_v44 = vmax.f32 %v12256_v3, 0.0  ;;  %v17781_v33 = vld [vmem:[%s18023_s8 + $0x590] sm:$0xff]   ;;  %v17783_v3 = vld [vmem:[%s18023_s8 + $0x548] sm:$0xff]  }
0x3636   : > { %v12218_v40 = vpop.f32.mrf.mxu1  ;;  %v12259_v21 = vpop.f32.mrf.mxu0  ;;  %v17782_v27 = vld [vmem:[%s18023_s8 + $0x510] sm:$0xff]   ;;  %v17784_v37 = vld [vmem:[%s18023_s8 + $0x5c8] sm:$0xff]   ;;  %v12151_v11 = vsel %vm6752_vm9, %v20051_v1, %v12126_v38 }
0x3637   : > { %v12509_v34 = vmax.f32 %v12217_v54, 0.0  ;;  %v12511_v9 = vmax.f32 %v12258_v25, 0.0  ;;  %v12524_v2 = vpack.c.bf16 %v12508_v36, %v12508_v36  ;;  %v12526_v61 = vpack.c.bf16 %v12510_v44, %v12510_v44  ;;  %v20090_v47 = vpop.permute.xlu0 %12135  ;;  %v20095_v25 = vpop.permute.xlu1 %12133  ;;  %v17785_v44 = vld [vmem:[%s18023_s8 + $0x508] sm:$0xff]  }
0x3638   : > { %v12260_v39 = vpop.f32.mrf.mxu0  ;;  %v12219_v10 = vpop.f32.mrf.mxu1  ;;  %v12149_v54 = vsel %vm6752_vm9, %v20042_v23, %v20055_v14  ;;  %v12154_v36 = vsel %vm6752_vm9, %v20082_v16, %v20078_v19  ;;  %v17786_v40 = vld [vmem:[%s18023_s8 + $0x588] sm:$0xff]   ;;  %v12156_v23 = vsel %vm6752_vm9, %v20095_v25, %v20090_v47 }
0x3639   : > { %v12525_v48 = vpack.c.bf16 %v12509_v34, %v12509_v34  ;;  %v12527_v58 = vpack.c.bf16 %v12511_v9, %v12511_v9  ;;  %v17787_v10 = vld [vmem:[%s18023_s8 + $0x540] sm:$0xff]  }
0x363b   : > { %13346 = vmatprep.mubr.bf16.mxu1 %v12525_v48  ;;  %13386 = vmatprep.mubr.bf16.mxu0 %v12527_v58  ;;  %v17788_v48 = vld [vmem:[%s18023_s8 + $0x5c0] sm:$0xff]  }
0x363c   : > { %13347 = vmatmul.mubr.bf16.vlgmr.msra.gmra.mxu1 %v12524_v2  ;;  %13387 = vmatmul.mubr.bf16.vlgmr.msra.gmra.mxu0 %v12526_v61  ;;  %v17789_v2 = vld [vmem:[%s18023_s8 + $0x500] sm:$0xff]  }
0x363d   : > { %16238 = vmatpush3.bf16.msra.mxu1 %v17761_v52  ;;  %16260 = vmatpush3.bf16.msra.mxu0 %v17762_v60  ;;  %v17790_v61 = vld [vmem:[%s18023_s8 + $0x580] sm:$0xff]  }
0x363e   : > { %16239 = vmatprep.subr.bf16.mxu1 %v17763_v57  ;;  %16261 = vmatprep.subr.bf16.mxu0 %v17764_v55 }
0x3641   : > { %16262 = vmatpush3.bf16.msra.mxu0 %v17765_v15  ;;  %16240 = vmatpush3.bf16.msra.mxu1 %v17766_v30  ;;  %v17791_v30 = vld [vmem:[%s18023_s8 + $0x678] sm:$0xff]  }
0x3642   : > { %v12296_v41 = vpop.f32.mrf.mxu1  ;;  %v12337_v35 = vpop.f32.mrf.mxu0  ;;  %16241 = vmatprep.subr.bf16.mxu1 %v17767_v17  ;;  %16263 = vmatprep.subr.bf16.mxu0 %v17768_v63  ;;  %v17792_v17 = vld [vmem:[%s18023_s8 + $0x6f8] sm:$0xff]  }
0x3643   : > { %v12297_v21 = vadd.f32 %v12296_v41, %v12149_v54  ;;  %v12338_v34 = vadd.f32 %v12337_v35, %v12151_v11  ;;  %v17793_v41 = vld [vmem:[%s18023_s8 + $0x6b8] sm:$0xff]   ;;  %v17812_v54 = vld [vmem:[%s18023_s8 + $0x6d0] sm:$0xff]  }
0x3644   : > { %v12298_v45 = vpop.f32.mrf.mxu1  ;;  %v12339_v46 = vpop.f32.mrf.mxu0  ;;  %v17809_v11 = vld [vmem:[%s18023_s8 + $0x618] sm:$0xff]  }
0x3645   : > { %v12299_v8 = vadd.f32 %v12298_v45, %v12150_v49  ;;  %v12340_v12 = vadd.f32 %v12339_v46, %v12152_v4  ;;  %16242 = vmatpush3.bf16.msra.mxu1 %v17769_v32  ;;  %16264 = vmatpush3.bf16.msra.mxu0 %v17770_v50  ;;  %v12512_v57 = vmax.f32 %v12297_v21, 0.0  ;;  %v12514_v55 = vmax.f32 %v12338_v34, 0.0  ;;  %v17794_v4 = vld [vmem:[%s18023_s8 + $0x638] sm:$0xff]   ;;  %v17796_v45 = vld [vmem:[%s18023_s8 + $0x6f0] sm:$0xff]   ;;  %v17816_v34 = vld [vmem:[%s18023_s8 + $0x6c8] sm:$0xff]  }
0x3646   : > { %v12300_v22 = vpop.f32.mrf.mxu1  ;;  %v12341_v5 = vpop.f32.mrf.mxu0  ;;  %16243 = vmatprep.subr.bf16.mxu1 %v17771_v43  ;;  %16265 = vmatprep.subr.bf16.mxu0 %v17772_v6  ;;  %v17795_v6 = vld [vmem:[%s18023_s8 + $0x670] sm:$0xff]  }
0x3647   : > { %v12513_v28 = vmax.f32 %v12299_v8, 0.0  ;;  %v12515_v7 = vmax.f32 %v12340_v12, 0.0  ;;  %v12528_v35 = vpack.c.bf16 %v12512_v57, %v12512_v57  ;;  %v12530_v49 = vpack.c.bf16 %v12514_v55, %v12514_v55  ;;  %v17797_v8 = vld [vmem:[%s18023_s8 + $0x6b0] sm:$0xff]   ;;  %v17802_v22 = vld [vmem:[%s18023_s8 + $0x6a8] sm:$0xff]  }
0x3648   : > { %v12301_v51 = vpop.f32.mrf.mxu1  ;;  %v12342_v0 = vpop.f32.mrf.mxu0  ;;  %v17798_v12 = vld [vmem:[%s18023_s8 + $0x630] sm:$0xff]  }
0x3649   : > { %v12529_v29 = vpack.c.bf16 %v12513_v28, %v12513_v28  ;;  %v12531_v26 = vpack.c.bf16 %v12515_v7, %v12515_v7  ;;  %16244 = vmatpush3.bf16.msra.mxu1 %v17773_v24  ;;  %16266 = vmatpush3.bf16.msra.mxu0 %v17774_v20  ;;  %v17800_v24 = vld [vmem:[%s18023_s8 + $0x6e8] sm:$0xff]   ;;  %v17804_v28 = vld [vmem:[%s18023_s8 + $0x6e0] sm:$0xff]   ;;  %v17813_v21 = vld [vmem:[%s18023_s8 + $0x610] sm:$0xff]  }
0x364a   : > { %16245 = vmatprep.subr.bf16.mxu1 %v17775_v31  ;;  %16267 = vmatprep.subr.bf16.mxu0 %v17776_v18  ;;  %v17799_v20 = vld [vmem:[%s18023_s8 + $0x668] sm:$0xff]   ;;  %v17803_v7 = vld [vmem:[%s18023_s8 + $0x660] sm:$0xff]  }
0x364b   : > { %13426 = vmatprep.mubr.bf16.mxu1 %v12529_v29  ;;  %13466 = vmatprep.mubr.bf16.mxu0 %v12531_v26  ;;  %v17801_v18 = vld [vmem:[%s18023_s8 + $0x628] sm:$0xff]   ;;  %v17806_v29 = vld [vmem:[%s18023_s8 + $0x6a0] sm:$0xff]  }
0x364d   : > { %16268 = vmatpush3.bf16.msra.mxu0 %v17777_v62  ;;  %16246 = vmatpush3.bf16.msra.mxu1 %v17778_v59  ;;  %v17805_v59 = vld [vmem:[%s18023_s8 + $0x620] sm:$0xff]  }
0x364e   : > { %16247 = vmatprep.subr.bf16.mxu1 %v17779_v53  ;;  %16269 = vmatprep.subr.bf16.mxu0 %v17780_v56  ;;  %v17808_v53 = vld [vmem:[%s18023_s8 + $0x6d8] sm:$0xff]  }
0x364f   : > { %v17807_v56 = vld [vmem:[%s18023_s8 + $0x658] sm:$0xff]  }
0x3651   : > { %16270 = vmatpush3.bf16.msra.mxu0 %v17781_v33  ;;  %16248 = vmatpush3.bf16.msra.mxu1 %v17782_v27 }
0x3652   : > { %v20102_v9 = vpop.f32.mrf.mxu1  ;;  %v20104_v39 = vpop.f32.mrf.mxu0  ;;  %16249 = vmatprep.subr.bf16.mxu1 %v17783_v3  ;;  %16271 = vmatprep.subr.bf16.mxu0 %v17784_v37  ;;  %v17810_v37 = vld [vmem:[%s18023_s8 + $0x698] sm:$0xff]  }
0x3653   : > { %v20135_v3 = vpop.permute.xlu0 %12139 }
0x3654   : > { %v12380_v58 = vpop.f32.mrf.mxu1  ;;  %v12421_v52 = vpop.f32.mrf.mxu0 }
0x3655   : > { %v12381_v60 = vadd.f32 %v12380_v58, %v12154_v36  ;;  %v12422_v1 = vadd.f32 %v12421_v52, %v12156_v23  ;;  %16250 = vmatpush3.bf16.msra.mxu1 %v17785_v44  ;;  %16272 = vmatpush3.bf16.msra.mxu0 %v17786_v40  ;;  %v20140_v36 = vpop.permute.xlu1 %12137  ;;  %v17811_v44 = vld [vmem:[%s18023_s8 + $0x650] sm:$0xff]   ;;  %v12155_v23 = vsel %vm6752_vm9, %v20078_v19, %v20095_v25  ;;  %v17817_v25 = vld [vmem:[%s18023_s8 + $0x608] sm:$0xff]  }
0x3656   : > { %v12382_v14 = vpop.f32.mrf.mxu1  ;;  %v12423_v15 = vpop.f32.mrf.mxu0  ;;  %16251 = vmatprep.subr.bf16.mxu1 %v17787_v10  ;;  %16273 = vmatprep.subr.bf16.mxu0 %v17788_v48  ;;  %v17814_v40 = vld [vmem:[%s18023_s8 + $0x690] sm:$0xff]   ;;  %v17815_v48 = vld [vmem:[%s18023_s8 + $0x648] sm:$0xff]   ;;  %v12153_v58 = vsel %vm6752_vm9, %v20061_v13, %v20082_v16  ;;  %v17820_v13 = vld [vmem:[%s18023_s8 + $0x6c0] sm:$0xff]  }
0x3657   : > { %v12519_v63 = vmax.f32 %v12422_v1, 0.0  ;;  %v12517_v38 = vmax.f32 %v12381_v60, 0.0  ;;  %v12144_v10 = vpop.permute.xlu0 %12143  ;;  %v12158_v60 = vsel %vm6752_vm9, %v20140_v36, %v20135_v3  ;;  %v17818_v1 = vld [vmem:[%s18023_s8 + $0x688] sm:$0xff]   ;;  %v12379_v16 = vadd.f32 %v20102_v9, %v12153_v58  ;;  %v17822_v14 = vld [vmem:[%s18023_s8 + $0x680] sm:$0xff]  }
0x3658   : > { %v12383_v32 = vpop.f32.mrf.mxu1  ;;  %v12424_v50 = vpop.f32.mrf.mxu0  ;;  %v17821_v15 = vld [vmem:[%s18023_s8 + $0x600] sm:$0xff]  }
0x3659   : > { %16252 = vmatpush3.bf16.msra.mxu1 %v17789_v2  ;;  %16274 = vmatpush3.bf16.msra.mxu0 %v17790_v61  ;;  %v12535_v43 = vpack.c.bf16 %v12519_v63, %v12519_v63  ;;  %v12533_v46 = vpack.c.bf16 %v12517_v38, %v12517_v38  ;;  %v20153_v52 = vpop.permute.xlu1 %12141  ;;  %v12420_v2 = vadd.f32 %v20104_v39, %v12155_v23  ;;  %v17819_v61 = vld [vmem:[%s18023_s8 + $0x640] sm:$0xff]   ;;  %v17823_v63 = vld [vmem:[%s18023_s8 + $0x778] sm:$0xff]  }
0x365a   : > { %16281 = vmatprep.subr.bf16.mxu1 %v17791_v30  ;;  %16303 = vmatprep.subr.bf16.mxu0 %v17792_v17  ;;  %v12160_v19 = vsel %vm6752_vm9, %v20153_v52, %v12144_v10  ;;  %v17824_v30 = vld [vmem:[%s18023_s8 + $0x7f8] sm:$0xff]   ;;  %v12516_v17 = vmax.f32 %v12379_v16, 0.0  ;;  %v17851_v23 = vld [vmem:[%s18023_s8 + $0x740] sm:$0xff]  }
0x365b   : > { %v12518_v39 = vmax.f32 %v12420_v2, 0.0  ;;  %v17826_v32 = vld [vmem:[%s18023_s8 + $0x7b8] sm:$0xff]  }
0x365c   : > { %13427 = vmatmul.mubr.bf16.vlgmr.msra.gmra.mxu1 %v12528_v35  ;;  %13467 = vmatmul.mubr.bf16.vlgmr.msra.gmra.mxu0 %v12530_v49  ;;  %v12532_v35 = vpack.c.bf16 %v12516_v17, %v12516_v17  ;;  %v17827_v49 = vld [vmem:[%s18023_s8 + $0x770] sm:$0xff]  }
0x365d   : > { %16304 = vmatpush3.bf16.msra.mxu0 %v17793_v41  ;;  %13546 = vmatprep.mubr.bf16.mxu0 %v12535_v43  ;;  %v12534_v50 = vpack.c.bf16 %v12518_v39, %v12518_v39  ;;  %v17825_v41 = vld [vmem:[%s18023_s8 + $0x738] sm:$0xff]   ;;  %v17828_v43 = vld [vmem:[%s18023_s8 + $0x7f0] sm:$0xff]  }
0x365e   : > { %16282 = vmatpush3.bf16.msra.mxu1 %v17794_v4  ;;  %13506 = vmatprep.mubr.bf16.mxu1 %v12533_v46  ;;  %v17829_v46 = vld [vmem:[%s18023_s8 + $0x730] sm:$0xff]  }
0x365f   : > { %16283 = vmatprep.subr.bf16.mxu1 %v17795_v6  ;;  %16305 = vmatprep.subr.bf16.mxu0 %v17796_v45  ;;  %v17830_v45 = vld [vmem:[%s18023_s8 + $0x7b0] sm:$0xff]  }
0x3661   : > { %16306 = vmatpush3.bf16.msra.mxu0 %v17797_v8  ;;  %v17832_v8 = vld [vmem:[%s18023_s8 + $0x7e8] sm:$0xff]  }
0x3662   : > { %16284 = vmatpush3.bf16.msra.mxu1 %v17798_v12  ;;  %v20124_v5 = vpop.f32.mrf.mxu1  ;;  %v20126_v31 = vpop.f32.mrf.mxu0  ;;  %16307 = vmatprep.subr.bf16.mxu0 %v17800_v24  ;;  %v17831_v12 = vld [vmem:[%s18023_s8 + $0x768] sm:$0xff]  }
0x3663   : > { %16285 = vmatprep.subr.bf16.mxu1 %v17799_v20  ;;  %v17834_v24 = vld [vmem:[%s18023_s8 + $0x7a8] sm:$0xff]  }
0x3664   : > { %v12462_v51 = vpop.f32.mrf.mxu1  ;;  %v12503_v0 = vpop.f32.mrf.mxu0  ;;  %v17833_v20 = vld [vmem:[%s18023_s8 + $0x728] sm:$0xff]  }
0x3665   : > { %16308 = vmatpush3.bf16.msra.mxu0 %v17802_v22  ;;  %v12463_v57 = vadd.f32 %v12462_v51, %v12158_v60  ;;  %v12504_v55 = vadd.f32 %v12503_v0, %v12160_v19  ;;  %v17836_v22 = vld [vmem:[%s18023_s8 + $0x7e0] sm:$0xff]   ;;  %v17840_v51 = vld [vmem:[%s18023_s8 + $0x7d8] sm:$0xff]  }
0x3666   : > { %16286 = vmatpush3.bf16.msra.mxu1 %v17801_v18  ;;  %v12464_v26 = vpop.f32.mrf.mxu1  ;;  %v12505_v62 = vpop.f32.mrf.mxu0  ;;  %16309 = vmatprep.subr.bf16.mxu0 %v17804_v28  ;;  %v17835_v18 = vld [vmem:[%s18023_s8 + $0x760] sm:$0xff]   ;;  %v17839_v0 = vld [vmem:[%s18023_s8 + $0x758] sm:$0xff]  }
0x3667   : > { %16287 = vmatprep.subr.bf16.mxu1 %v17803_v7  ;;  %v12521_v38 = vmax.f32 %v12463_v57, 0.0  ;;  %v12523_v9 = vmax.f32 %v12504_v55, 0.0  ;;  %v17838_v28 = vld [vmem:[%s18023_s8 + $0x7a0] sm:$0xff]   ;;  %v17841_v26 = vld [vmem:[%s18023_s8 + $0x718] sm:$0xff]   ;;  %v17844_v62 = vld [vmem:[%s18023_s8 + $0x7d0] sm:$0xff]  }
0x3668   : > { %v12465_v33 = vpop.f32.mrf.mxu1  ;;  %v12506_v27 = vpop.f32.mrf.mxu0  ;;  %v17837_v7 = vld [vmem:[%s18023_s8 + $0x720] sm:$0xff]  }
0x3669   : > { %16310 = vmatpush3.bf16.msra.mxu0 %v17806_v29  ;;  %v12537_v4 = vpack.c.bf16 %v12521_v38, %v12521_v38  ;;  %v12539_v6 = vpack.c.bf16 %v12523_v9, %v12523_v9  ;;  %v17842_v29 = vld [vmem:[%s18023_s8 + $0x798] sm:$0xff]   ;;  %v17848_v33 = vld [vmem:[%s18023_s8 + $0x7c8] sm:$0xff]   ;;  %v12159_v27 = vsel %vm6752_vm9, %v20135_v3, %v20153_v52  ;;  %v17854_v3 = vld [vmem:[%s18023_s8 + $0x780] sm:$0xff]  }
0x366a   : > { %16288 = vmatpush3.bf16.msra.mxu1 %v17805_v59  ;;  %16311 = vmatprep.subr.bf16.mxu0 %v17808_v53  ;;  %v17843_v59 = vld [vmem:[%s18023_s8 + $0x750] sm:$0xff]  }
0x366b   : > { %16289 = vmatprep.subr.bf16.mxu1 %v17807_v56  ;;  %v17846_v53 = vld [vmem:[%s18023_s8 + $0x790] sm:$0xff]  }
0x366c   : > { %v17845_v56 = vld [vmem:[%s18023_s8 + $0x710] sm:$0xff]  }
0x366d   : > { %16312 = vmatpush3.bf16.msra.mxu0 %v17810_v37  ;;  %v17847_v37 = vld [vmem:[%s18023_s8 + $0x748] sm:$0xff]  }
0x366e   : > { %16290 = vmatpush3.bf16.msra.mxu1 %v17809_v11  ;;  %16313 = vmatprep.subr.bf16.mxu0 %v17812_v54  ;;  %v12157_v11 = vsel %vm6752_vm9, %v20090_v47, %v20140_v36  ;;  %v17850_v54 = vld [vmem:[%s18023_s8 + $0x788] sm:$0xff]   ;;  %v17853_v47 = vld [vmem:[%s18023_s8 + $0x700] sm:$0xff]  }
0x366f   : > { %16291 = vmatprep.subr.bf16.mxu1 %v17811_v44  ;;  %v12502_v44 = vadd.f32 %v20126_v31, %v12159_v27 }
0x3671   : > { %16314 = vmatpush3.bf16.msra.mxu0 %v17814_v40  ;;  %v17849_v40 = vld [vmem:[%s18023_s8 + $0x708] sm:$0xff]   ;;  %v12522_v10 = vmax.f32 %v12502_v44, 0.0 }
0x3672   : > { %16292 = vmatpush3.bf16.msra.mxu1 %v17813_v21  ;;  %16315 = vmatprep.subr.bf16.mxu0 %v17816_v34  ;;  %v17852_v21 = vld [vmem:[%s18023_s8 + $0x7c0] sm:$0xff]   ;;  %v12461_v34 = vadd.f32 %v20124_v5, %v12157_v11  ;;  %v15375_v5 = vld [vmem:[%s18033_s15 + $0x1f] ss:$0 sm:$0xff] }
0x3673   : > { %16293 = vmatprep.subr.bf16.mxu1 %v17815_v48  ;;  %v12538_v48 = vpack.c.bf16 %v12522_v10, %v12522_v10 }
0x3674   : > { %v12520_v36 = vmax.f32 %v12461_v34, 0.0 }
0x3675   : > { %16316 = vmatpush3.bf16.msra.mxu0 %v17818_v1 }
0x3676   : > { %16294 = vmatpush3.bf16.msra.mxu1 %v17817_v25  ;;  %16317 = vmatprep.subr.bf16.mxu0 %v17820_v13  ;;  %v12536_v31 = vpack.c.bf16 %v12520_v36, %v12520_v36 }
0x3677   : > { %16295 = vmatprep.subr.bf16.mxu1 %v17819_v61 }
0x3679   : > { %16318 = vmatpush3.bf16.msra.mxu0 %v17822_v14 }
0x367a   : > { %16296 = vmatpush3.bf16.msra.mxu1 %v17821_v15  ;;  %16347 = vmatprep.subr.bf16.mxu0 %v17824_v30 }
0x367b   : > { %16325 = vmatprep.subr.bf16.mxu1 %v17823_v63 }
0x367c   : > { %13547 = vmatmul.mubr.bf16.vlgmr.msra.gmra.mxu0 %v12534_v50 }
0x367d   : > { %13507 = vmatmul.mubr.bf16.vlgmr.msra.gmra.mxu1 %v12532_v35  ;;  %16348 = vmatpush3.bf16.msra.mxu0 %v17826_v32 }
0x367e   : > { %16326 = vmatpush3.bf16.msra.mxu1 %v17825_v41  ;;  %13586 = vmatprep.mubr.bf16.mxu1 %v12537_v4 }
0x367f   : > { %13626 = vmatprep.mubr.bf16.mxu0 %v12539_v6  ;;  %16327 = vmatprep.subr.bf16.mxu1 %v17827_v49 }
0x3680   : > { %16349 = vmatprep.subr.bf16.mxu0 %v17828_v43 }
0x3681   : > { %16350 = vmatpush3.bf16.msra.mxu0 %v17830_v45 }
0x3682   : > { %16328 = vmatpush3.bf16.msra.mxu1 %v17829_v46  ;;  %16351 = vmatprep.subr.bf16.mxu0 %v17832_v8 }
0x3683   : > { %16329 = vmatprep.subr.bf16.mxu1 %v17831_v12 }
0x3685   : > { %16352 = vmatpush3.bf16.msra.mxu0 %v17834_v24 }
0x3686   : > { %16330 = vmatpush3.bf16.msra.mxu1 %v17833_v20  ;;  %16353 = vmatprep.subr.bf16.mxu0 %v17836_v22 }
0x3687   : > { %16331 = vmatprep.subr.bf16.mxu1 %v17835_v18 }
0x3689   : > { %16354 = vmatpush3.bf16.msra.mxu0 %v17838_v28 }
0x368a   : > { %16332 = vmatpush3.bf16.msra.mxu1 %v17837_v7  ;;  %16355 = vmatprep.subr.bf16.mxu0 %v17840_v51 }
0x368b   : > { %16333 = vmatprep.subr.bf16.mxu1 %v17839_v0 }
0x368d   : > { %16356 = vmatpush3.bf16.msra.mxu0 %v17842_v29 }
0x368e   : > { %16334 = vmatpush3.bf16.msra.mxu1 %v17841_v26  ;;  %16357 = vmatprep.subr.bf16.mxu0 %v17844_v62 }
0x368f   : > { %16335 = vmatprep.subr.bf16.mxu1 %v17843_v59 }
0x3691   : > { %16358 = vmatpush3.bf16.msra.mxu0 %v17846_v53 }
0x3692   : > { %16336 = vmatpush3.bf16.msra.mxu1 %v17845_v56  ;;  %16359 = vmatprep.subr.bf16.mxu0 %v17848_v33 }
0x3693   : > { %16337 = vmatprep.subr.bf16.mxu1 %v17847_v37 }
0x3695   : > { %16360 = vmatpush3.bf16.msra.mxu0 %v17850_v54 }
0x3696   : > { %16338 = vmatpush3.bf16.msra.mxu1 %v17849_v40  ;;  %16361 = vmatprep.subr.bf16.mxu0 %v17852_v21 }
0x3697   : > { %16339 = vmatprep.subr.bf16.mxu1 %v17851_v23  ;;  %v15504_v23 = vld [vmem:[%s18033_s15 + $0x1e] ss:$0 sm:$0xff]  ;;  %s17966_s15 = smov (!%p15505_p6), 64  }
0x3699   : > { %16362 = vmatpush3.bf16.msra.mxu0 %v17854_v3 }
0x369a   : > { %16340 = vmatpush3.bf16.msra.mxu1 %v17853_v47 }
0x369c   : > { %13627 = vmatmul.mubr.bf16.vlgmr.msra.gmra.mxu0 %v12538_v48 }
0x369d   : > { %13587 = vmatmul.mubr.bf16.vlgmr.msra.gmra.mxu1 %v12536_v31 }
0x36fc   : > { %v16209_v58 = vpop.f32.mrf.mxu1  ;;  %v16231_v52 = vpop.f32.mrf.mxu0 }
0x36fe   : > { %v16210_v60 = vpop.f32.mrf.mxu1  ;;  %v16232_v1 = vpop.f32.mrf.mxu0 }
0x36ff   : > { %v16211_v2 = vadd.f32 %v16210_v60, %v16209_v58  ;;  %v16233_v19 = vadd.f32 %v16232_v1, %v16231_v52 }
0x3700   : > { %v16212_v25 = vpop.f32.mrf.mxu1  ;;  %v16234_v13 = vpop.f32.mrf.mxu0 }
0x3701   : > { %v13349_v16 = vadd.f32 %v16211_v2, %v15375_v5 }
0x3702   : > { %v16213_v61 = vpop.f32.mrf.mxu1  ;;  %v16235_v57 = vpop.f32.mrf.mxu0 }
0x3703   : > { %v13389_v55 = vadd.f32 %v16233_v19, %v13349_v16 }
0x371c   : > { %v16253_v14 = vpop.f32.mrf.mxu1  ;;  %v16275_v39 = vpop.f32.mrf.mxu0 }
0x371e   : > { %v16254_v15 = vpop.f32.mrf.mxu1  ;;  %v16276_v30 = vpop.f32.mrf.mxu0 }
0x371f   : > { %v16255_v45 = vadd.f32 %v16254_v15, %v16253_v14  ;;  %v16277_v8 = vadd.f32 %v16276_v30, %v16275_v39 }
0x3720   : > { %v16256_v17 = vpop.f32.mrf.mxu1  ;;  %v16278_v63 = vpop.f32.mrf.mxu0 }
0x3721   : > { %v13429_v46 = vadd.f32 %v16255_v45, %v13389_v55 }
0x3722   : > { %v16257_v38 = vpop.f32.mrf.mxu1  ;;  %v16279_v9 = vpop.f32.mrf.mxu0 }
0x3723   : > { %v13469_v24 = vadd.f32 %v16277_v8, %v13429_v46 }
0x373c   : > { %v16319_v32 = vpop.f32.mrf.mxu0 }
0x373d   : > { %v16297_v50 = vpop.f32.mrf.mxu1 }
0x373e   : > { %v16320_v41 = vpop.f32.mrf.mxu0 }
0x373f   : > { %v16298_v35 = vpop.f32.mrf.mxu1  ;;  %v16321_v28 = vadd.f32 %v16320_v41, %v16319_v32 }
0x3740   : > { %v16322_v49 = vpop.f32.mrf.mxu0  ;;  %v16299_v12 = vadd.f32 %v16298_v35, %v16297_v50 }
0x3741   : > { %v16300_v4 = vpop.f32.mrf.mxu1 }
0x3742   : > { %v16323_v43 = vpop.f32.mrf.mxu0  ;;  %v13509_v20 = vadd.f32 %v16299_v12, %v13469_v24 }
0x3743   : > { %v16301_v6 = vpop.f32.mrf.mxu1 }
0x3744   : > { %v13549_v0 = vadd.f32 %v16321_v28, %v13509_v20 }
0x375c   : > { %v16363_v22 = vpop.f32.mrf.mxu0 }
0x375d   : > { %v16341_v18 = vpop.f32.mrf.mxu1 }
0x375e   : > { %v16364_v7 = vpop.f32.mrf.mxu0 }
0x375f   : > { %v16342_v51 = vpop.f32.mrf.mxu1  ;;  %v16365_v53 = vadd.f32 %v16364_v7, %v16363_v22 }
0x3760   : > { %v16343_v29 = vadd.f32 %v16342_v51, %v16341_v18  ;;  %v16366_v26 = vpop.f32.mrf.mxu0 }
0x3761   : > { %v16344_v62 = vpop.f32.mrf.mxu1 }
0x3762   : > { %v13589_v59 = vadd.f32 %v16343_v29, %v13549_v0  ;;  %v16367_v56 = vpop.f32.mrf.mxu0 }
0x3763   : > { %v16345_v33 = vpop.f32.mrf.mxu1 }
0x3764   : > { %v13629_v27 = vadd.f32 %v16365_v53, %v13589_v59 }
0x3766   : > { %v13634_v37 = vadd.f32 %v13629_v27, %v19934_v42 }
0x3768   : > { %v13635_v11 = vsel %vm6752_vm9, %v13634_v37, 0.0 }
0x3769   : > { %13636 = vadd.xlane.f32.xlu1 %v13635_v11 }
0x37f2   : > { %v13637_v54 = vpop.xlane.xlu1 %13636 }
0x37f3   : > { %v13638_v44 = vmul.f32 0.015625, %v13637_v54 }
0x37f5   : > { %v13639_v40 = vsub.f32 %v13634_v37, %v13638_v44 }
0x37f7   : > { %v13640_v21 = vmul.f32 %v13639_v40, %v13639_v40 }
0x37f9   : > { %v13641_v34 = vsel %vm6752_vm9, %v13640_v21, 0.0 }
0x37fa   : > { %13642 = vadd.xlane.f32.xlu0 %v13641_v34 }
0x3810   : > { %13655 = vrot.lane.b32.xlu0 %v15504_v23, %s17960_s18 }
0x3883   : > { %v13643_v3 = vpop.xlane.xlu0 %13642 }
0x3884   : > { %v13644_v10 = vmul.f32 0.015625, %v13643_v3 }
0x3886   : > { %v13645_v47 = vadd.f32 1e-05, %v13644_v10 }
0x3887   : > { %v13656_v42 = vpop.permute.xlu0 %13655 }
0x3888   : > { %17929 = vrsqrt.f32 %v13645_v47 }
0x3895   : > { %v17930_v36 = vpop.eup %17929 }
0x3896   : > { %v13647_v48 = vmul.f32 %v17930_v36, %v13639_v40 }
0x3898   : > { %v13654_v31 = vmul.f32 %v15504_v23, %v13647_v48  ;;  %13663 = sbr.rel (%p15505_p6) target bundleno = 15002 (0x3a9a), region = 60 }
0x389a   : > { %v13658_v58 = vadd.f32 %v13656_v42, %v13654_v31 }
0x389c   : > { %13659 = vst.msk [vmem:[#allocation2] sm:$0xff] %vm6752_vm9, %v13658_v58 }
0x389d   : > { %v13666_v52 = vsel %vm6752_vm9, %v13658_v58, 0.0  ;;  %v15506_v5 = vld [vmem:[%s20246_s3 + $0x1] ss:$0 sm:$0xff]  ;;  %v17932_v13 = vld [vmem:[%s20245_s2 + $0x18] sm:$0xff]   ;;  %v17967_v16 = vmov 0.0   ;;  %v17933_v57 = vld [vmem:[%s20245_s2 + $0x10] sm:$0xff]  }
0x389e   : > { %13667 = vadd.xlane.f32.xlu0 %v13666_v52  ;;  %13684 = vrot.lane.b32.xlu1 %v15506_v5, %s17966_s15  ;;  %v15507_v61 = vld [vmem:[%s20246_s3 + $0x2] ss:$0 sm:$0xff]  ;;  %v17934_v55 = vld [vmem:[%s20245_s2 + $0x8] sm:$0xff]   ;;  %vm17968_vm0 = vmmov 0   ;;  %vm13774_vm1 = vcmask 23552  }
0x389f   : > { %16790 = vmatprep.subr.bf16.mxu0 %v17967_v16  ;;  %v17935_v14 = vld [vmem:[%s20245_s2] sm:$0xff]   ;;  %16798 = vmatprep.mubr.msk.bf16.mxu0 %vm17968_vm0, %v17967_v16 }
0x38a0   : > { %16791 = vmatpush3.bf16.msra.mxu0 %v17932_v13 }
0x38a1   : > { %16792 = vmatprep.subr.bf16.mxu0 %v17967_v16 }
0x38a2   : > { %13728 = vrot.lane.b32.xlu1 %v15507_v61, %s17966_s15 }
0x38a4   : > { %16793 = vmatpush3.bf16.msra.mxu0 %v17933_v57 }
0x38a5   : > { %16794 = vmatprep.subr.bf16.mxu0 %v17967_v16 }
0x38a8   : > { %16795 = vmatpush3.bf16.msra.mxu0 %v17934_v55 }
0x38a9   : > { %16796 = vmatprep.subr.bf16.mxu0 %v17967_v16 }
0x38ac   : > { %16797 = vmatpush3.bf16.msra.mxu0 %v17935_v14 }
0x3910   : > { %v13685_v63 = vpop.permute.xlu1 %13684 }
0x3914   : > { %v13729_v41 = vpop.permute.xlu1 %13728 }
0x3927   : > { %v13668_v60 = vpop.xlane.xlu0 %13667 }
0x3928   : > { %v13669_v1 = vmul.f32 0.015625, %v13668_v60 }
0x392a   : > { %v13670_v2 = vsub.f32 %v13658_v58, %v13669_v1 }
0x392c   : > { %v13671_v19 = vmul.f32 %v13670_v2, %v13670_v2 }
0x392e   : > { %v13672_v25 = vsel %vm6752_vm9, %v13671_v19, 0.0 }
0x392f   : > { %13673 = vadd.xlane.f32.xlu0 %v13672_v25 }
0x39b8   : > { %v13674_v39 = vpop.xlane.xlu0 %13673 }
0x39b9   : > { %v13675_v15 = vmul.f32 0.015625, %v13674_v39 }
0x39bb   : > { %v13676_v30 = vadd.f32 1e-05, %v13675_v15 }
0x39bd   : > { %17936 = vrsqrt.f32 %v13676_v30 }
0x39ca   : > { %v17937_v17 = vpop.eup %17936 }
0x39cb   : > { %v13678_v38 = vmul.f32 %v17937_v17, %v13670_v2 }
0x39cd   : > { %v13687_v9 = vmul.f32 %v13685_v63, %v13678_v38 }
0x39cf   : > { %v13694_v32 = vadd.f32 %v15507_v61, %v13687_v9 }
0x39d1   : > { %v13695_v50 = vpack.c.bf16 %v13694_v32, %v13694_v32 }
0x39d3   : > { %16799 = vmatmul.mubr.msk.bf16.vlgmr.msra.gmra.mxu0 %vm6752_vm9, %v13695_v50 }
0x3a93   : > { %v13768_v35 = vpop.f32.mrf.mxu0 }
0x3a94   : > { %v13769_v49 = vadd.f32 %v13768_v35, %v13729_v41 }
0x3a95   : > { %v16800_v4 = vpop.f32.mrf.mxu0 }
0x3a96   : > { %13775 = vst.msk [vmem:[%s20250_s7] sm:$0xff] %vm13774_vm1, %v13769_v49 }
0x3a97   : > { %v13771_v43 = vpop.f32.mrf.mxu0 }
0x3a99   : > { %v16801_v6 = vpop.f32.mrf.mxu0 }
0x3a9a PF: > { %s17_s24 = sadd.s32 1, %s17944_s24  }
0x3a9b   : > { %p14_p7 = scmp.ge.s32.totalorder %s17_s24, 6  }
0x3a9d   :  { %16 = sbr.rel (!%p14_p7) target bundleno = 1 (0x1), region = 98 }

</bundles_post_ra>
